<compile_context>
chip_gen: v5e
topology: v5e:2x2
jax: 0.10.0
libtpu: 0.0.40
codegen_flags: <defaults>
</compile_context>

<pallas_src>
import functools

import jax
import jax.numpy as jnp
from jax.experimental import pallas as pl
from jax.experimental.pallas import tpu as pltpu

LANE = 128
ROW_CHUNK = 8          # output rows per register-accumulation chunk


def _round_up(x, m):
    return (x + m - 1) // m * m


# -----------------------------------------------------------------------------
# In-kernel helper: Conv2d(3x3, pad=1) -> folded BN -> ReLU for one image plane
# -----------------------------------------------------------------------------
def _conv3x3_bn_relu(xpad_ref, valid, w_ref, sb_ref, *, H, W, Wp):
    """valid: (H, W, Cin) bf16 plane (already pooled if needed).

    Scratch layout (flat, row pitch Wp, Wp % 8 == 0, Wp >= W + 2):
      block 0          : zero guard (its last column is the left pad of row 0)
      block 1          : zero (top pad row)
      blocks 2 .. H+1  : image rows; columns [0, W) data, [W, Wp) zero
      block H+2 .. end : zero (bottom pad row + slack)
    Padded-image element (h', w') with w' >= 1 lives at flat (h'+1)*Wp + w'-1;
    the w' == 0 left pad is the (zero) trailing column of the previous block.
    Tap (ky, kx) for output flat index o = h*Wp + w therefore reads
    flat o + (ky+1)*Wp + kx - 1.
    """
    C = valid.shape[-1]
    cout = w_ref.shape[-1]

    # --- stage the zero-padded plane with aligned bulk stores -------------
    pad_cols = Wp - W
    xp = jnp.concatenate(
        [valid, jnp.zeros((H, pad_cols, C), valid.dtype)], axis=1)   # (H, Wp, C)
    xpad_ref[pl.ds(0, 2 * Wp), :] = jnp.zeros((2 * Wp, C), valid.dtype)
    xpad_ref[pl.ds(2 * Wp, H * Wp), :] = xp.reshape(H * Wp, C)
    tail = xpad_ref.shape[0] - (H + 2) * Wp
    xpad_ref[pl.ds((H + 2) * Wp, tail), :] = jnp.zeros((tail, C), valid.dtype)

    # --- folded BN params, broadcast once ---------------------------------
    scale = sb_ref[0:1, :]
    bias = sb_ref[1:2, :]

    # --- 9 shifted MXU matmuls, register accumulation per row chunk -------
    chunks = []
    for h0 in range(0, H, ROW_CHUNK):
        hc = min(ROW_CHUNK, H - h0)
        m = hc * Wp
        acc = None
        for ky in range(3):
            for kx in range(3):
                start = (h0 + ky + 1) * Wp + kx - 1
                xs = xpad_ref[pl.ds(start, m), :]
                d = jnp.dot(xs, w_ref[ky * 3 + kx],
                            preferred_element_type=jnp.float32)
                acc = d if acc is None else acc + d
        y = jnp.maximum(acc * scale + bias, 0.0)                     # (m, cout)
        chunks.append(y.reshape(hc, Wp, cout))
    if len(chunks) == 1:
        return chunks[0]
    return jnp.concatenate(chunks, axis=0)                           # (H, Wp, cout)


# -----------------------------------------------------------------------------
# Fused encoder block kernel: [MaxPool2d(2)] -> conv/BN/ReLU -> conv/BN/ReLU
# -----------------------------------------------------------------------------
def _encoder_block_kernel(x_ref, w1_ref, sb1_ref, w2_ref, sb2_ref, o_ref,
                          xpad1_ref, xpad2_ref, *, H, W, Wp, pool):
    """One image per grid step.

    x_ref : (Hin, Win, Cblk) bf16.  If pool: Hin = 2H, Win = W, Cblk = 2*Cin
            (wrapper packed the two pooling columns into the lane axis).
    w*_ref: (9, Cin, Cout) bf16 tap-major packed conv weights.
    sb*_ref: (2, Cout) f32  -- row 0 = folded BN scale, row 1 = folded bias.
    o_ref : (H, W, Cout2) bf16.
    xpad* : flat bf16 padded-plane scratches.
    """
    cin = x_ref.shape[-1] // 2 if pool else x_ref.shape[-1]
    x = x_ref[...]
    if pool:
        # Column pool: the two pooling columns sit in the two lane halves ->
        # two aligned 128-lane slices + max (pure VPU work).
        xc = jnp.maximum(x[:, :, :cin], x[:, :, cin:])               # (2H, W, cin)
        # Row pool: split the leading dim only (free) and max the pairs.
        xr = xc.reshape(H, 2, W, cin)
        x = jnp.maximum(xr[:, 0], xr[:, 1])                          # (H, W, cin)

    # conv1 + BN + ReLU
    y1 = _conv3x3_bn_relu(xpad1_ref, x, w1_ref, sb1_ref, H=H, W=W, Wp=Wp)
    # conv2 + BN + ReLU -- fed straight from VMEM/registers, no HBM round trip
    y1v = y1[:, :W, :].astype(jnp.bfloat16)
    y2 = _conv3x3_bn_relu(xpad2_ref, y1v, w2_ref, sb2_ref, H=H, W=W, Wp=Wp)

    # Single lane-dense bulk store; junk columns dropped by one slice.
    o_ref[...] = y2[:, :W, :].astype(o_ref.dtype)


def encoder_block(x, w1, sb1, w2, sb2, *, H, W, pool):
    """x: (N, Hin, Win, Cblk) bf16 NHWC, channels padded to a multiple of 128.
    If pool, the wrapper already reshaped (N, 2H, 2W, Cin) -> (N, 2H, W, 2*Cin)
    (a free row-major reshape) so the kernel pools with aligned lane slices."""
    N, Hin, Win, Cblk = x.shape
    cin = Cblk // 2 if pool else Cblk
    cmid = w1.shape[-1]
    cout = w2.shape[-1]
    assert w1.shape == (9, cin, cmid), (w1.shape, cin, cmid)
    assert w2.shape == (9, cmid, cout), (w2.shape, cmid, cout)
    if pool:
        assert Hin == 2 * H and Win == W
    else:
        assert Hin == H and Win == W

    Wp = _round_up(W + 2, 8)                 # 8-aligned padded row pitch
    scratch_rows = (H + 3) * Wp + 8          # guard block + slack, multiple of 8

    kernel = functools.partial(_encoder_block_kernel, H=H, W=W, Wp=Wp, pool=pool)
    return pl.pallas_call(
        kernel,
        out_shape=jax.ShapeDtypeStruct((N, H, W, cout), jnp.bfloat16),
        grid=(N,),
        in_specs=[
            pl.BlockSpec((None, Hin, Win, Cblk), lambda n: (n, 0, 0, 0)),
            pl.BlockSpec((9, cin, cmid), lambda n: (0, 0, 0)),
            pl.BlockSpec((2, cmid), lambda n: (0, 0)),
            pl.BlockSpec((9, cmid, cout), lambda n: (0, 0, 0)),
            pl.BlockSpec((2, cout), lambda n: (0, 0)),
        ],
        out_specs=pl.BlockSpec((None, H, W, cout), lambda n: (n, 0, 0, 0)),
        scratch_shapes=[
            pltpu.VMEM((scratch_rows, cin), jnp.bfloat16),
            pltpu.VMEM((scratch_rows, cmid), jnp.bfloat16),
        ],
        compiler_params=pltpu.CompilerParams(
            dimension_semantics=("parallel",),
            vmem_limit_bytes=48 * 1024 * 1024,
        ),
    )(x, w1, sb1, w2, sb2)


# -----------------------------------------------------------------------------
# Encoder forward (Pallas path)
# -----------------------------------------------------------------------------
def pallas_encoder(x_nchw, params, out_c_list):
    """Returns the PyTorch-style cache: one NCHW f32 tensor per encoder block."""
    # NCHW -> NHWC once at the boundary; pad channels to the 128-lane width.
    x = jnp.transpose(x_nchw, (0, 2, 3, 1))
    cin = x.shape[-1]
    cin_p = _round_up(cin, LANE)
    x = jnp.pad(x, ((0, 0), (0, 0), (0, 0), (0, cin_p - cin))).astype(jnp.bfloat16)

    cache = []
    for p, out_c in zip(params, out_c_list):
        pool = out_c != out_c_list[0]        # matches the PyTorch use_pool rule
        N, Hc, Wc, Cc = x.shape
        if pool:
            assert Hc % 2 == 0 and Wc % 2 == 0
        H = Hc // 2 if pool else Hc
        W = Wc // 2 if pool else Wc
        if pool:
            # Free row-major reshape: pack the two pooling columns into lanes.
            x_in = x.reshape(N, Hc, W, 2 * Cc)
        else:
            x_in = x
        x = encoder_block(x_in, p["w1"], p["sb1"], p["w2"], p["sb2"],
                          H=H, W=W, pool=pool)
        cache.append(x)

    # Un-pad channels & NHWC -> NCHW once, outside the kernels (lazy XLA).
    outs = []
    for c, out_c in zip(cache, out_c_list):
        outs.append(jnp.transpose(c[..., :out_c], (0, 3, 1, 2)).astype(jnp.float32))
    return outs


# -----------------------------------------------------------------------------
# Parameter creation / BN folding / packing
# -----------------------------------------------------------------------------
def _fold_bn(conv_bias, gamma, beta, mean, var, eps=1e-5):
    scale = gamma * jax.lax.rsqrt(var + eps)
    bias = beta + (conv_bias - mean) * scale
    return scale, bias


def _pack_w(w, cin_p, cout_p):
    cout, cin, _, _ = w.shape
    wp = jnp.transpose(w, (2, 3, 1, 0)).reshape(9, cin, cout)   # [ky*3+kx, ci, co]
    wp = jnp.pad(wp, ((0, 0), (0, cin_p - cin), (0, cout_p - cout)))
    return wp.astype(jnp.bfloat16)


def _pack_sb(scale, bias, cout_p):
    cout = scale.shape[0]
    return jnp.stack([jnp.pad(scale, (0, cout_p - cout)),
                      jnp.pad(bias, (0, cout_p - cout))]).astype(jnp.float32)


def init_encoder_params(key, in_channels, out_c_list):
    """Random conv + eval-mode BN params.  Returns (raw params for the pure-JAX
    reference, packed/folded params for the Pallas kernels)."""
    raw_blocks, packed_blocks = [], []
    c_in = in_channels
    for out_c in out_c_list:
        raw, packed = {}, {}
        cin_cur = c_in
        for li in (1, 2):
            key, kw, kb, kg, kbe, km, kv = jax.random.split(key, 7)
            w = jax.random.normal(kw, (out_c, cin_cur, 3, 3), jnp.float32)
            w = w / (3.0 * (cin_cur ** 0.5))
            b = 0.1 * jax.random.normal(kb, (out_c,), jnp.float32)
            gamma = 1.0 + 0.2 * jax.random.normal(kg, (out_c,), jnp.float32)
            beta = 0.1 * jax.random.normal(kbe, (out_c,), jnp.float32)
            mean = 0.1 * jax.random.normal(km, (out_c,), jnp.float32)
            var = 0.8 + 0.4 * jax.random.uniform(kv, (out_c,), jnp.float32)
            scale, bias = _fold_bn(b, gamma, beta, mean, var)
            cin_p, cout_p = _round_up(cin_cur, LANE), _round_up(out_c, LANE)
            raw[f"w{li}"], raw[f"scale{li}"], raw[f"bias{li}"] = w, scale, bias
            packed[f"w{li}"] = _pack_w(w, cin_p, cout_p)
            packed[f"sb{li}"] = _pack_sb(scale, bias, cout_p)
            cin_cur = out_c
        raw_blocks.append(raw)
        packed_blocks.append(packed)
        c_in = out_c
    return raw_blocks, packed_blocks


# -----------------------------------------------------------------------------
# Pure-JAX reference (same bf16 cast points as the kernel path)
# -----------------------------------------------------------------------------
def _ref_conv_bn_relu(x, w, scale, bias):
    w_hwio = jnp.transpose(w, (2, 3, 1, 0)).astype(jnp.bfloat16)
    y = jax.lax.conv_general_dilated(
        x, w_hwio, window_strides=(1, 1), padding=((1, 1), (1, 1)),
        dimension_numbers=("NHWC", "HWIO", "NHWC"),
        preferred_element_type=jnp.float32)
    y = y * scale[None, None, None, :] + bias[None, None, None, :]
    return jnp.maximum(y, 0.0).astype(jnp.bfloat16)


def _ref_maxpool2(x):
    n, h, w, c = x.shape
    return jnp.max(x.reshape(n, h // 2, 2, w // 2, 2, c), axis=(2, 4))


def reference_encoder(x_nchw, raw_params, out_c_list):
    x = jnp.transpose(x_nchw, (0, 2, 3, 1)).astype(jnp.bfloat16)
    cache = []
    for p, out_c in zip(raw_params, out_c_list):
        if out_c != out_c_list[0]:
            x = _ref_maxpool2(x)
        x = _ref_conv_bn_relu(x, p["w1"], p["scale1"], p["bias1"])
        x = _ref_conv_bn_relu(x, p["w2"], p["scale2"], p["bias2"])
        cache.append(x)
    return [jnp.transpose(c, (0, 3, 1, 2)).astype(jnp.float32) for c in cache]


# -----------------------------------------------------------------------------
if __name__ == "__main__":
    key = jax.random.PRNGKey(0)
    N, C_IN, H_IN, W_IN = 2, 4, 16, 16
    OUT_C_LIST = [8, 16]

    k_x, k_p = jax.random.split(key)
    x = jax.random.normal(k_x, (N, C_IN, H_IN, W_IN), jnp.float32)
    raw_params, packed_params = init_encoder_params(k_p, C_IN, OUT_C_LIST)

    pallas_fn = jax.jit(functools.partial(pallas_encoder, out_c_list=OUT_C_LIST))
    outs = jax.block_until_ready(pallas_fn(x, packed_params))

    ref_fn = jax.jit(functools.partial(reference_encoder, out_c_list=OUT_C_LIST))
    refs = jax.block_until_ready(ref_fn(x, raw_params))

    for o, r in zip(outs, refs):
        assert o.shape == r.shape, (o.shape, r.shape)
        err = float(jnp.max(jnp.abs(o - r)))
        if not err < 0.15:
            raise AssertionError(f"Pallas/reference mismatch: max abs err = {err}")

    print("KERNEL_OK")
</pallas_src>

<mosaic_0001>
module attributes {stable_mosaic.version = 11 : i64} {
  func.func @_encoder_block_kernel(%arg0: i32, %arg1: memref<1x16x16x128xbf16, #tpu.memory_space<vmem>>, %arg2: memref<9x128x128xbf16, #tpu.memory_space<vmem>>, %arg3: memref<2x128xf32, #tpu.memory_space<vmem>>, %arg4: memref<9x128x128xbf16, #tpu.memory_space<vmem>>, %arg5: memref<2x128xf32, #tpu.memory_space<vmem>>, %arg6: memref<1x16x16x128xbf16, #tpu.memory_space<vmem>>, %arg7: memref<464x128xbf16, #tpu.memory_space<vmem>>, %arg8: memref<464x128xbf16, #tpu.memory_space<vmem>>) attributes {dimension_semantics = [#tpu.dimension_semantics<parallel>], iteration_bounds = array<i64: 2>, scalar_prefetch = 0 : i64, scratch_operands = 2 : i64, tpu.core_type = #tpu.core_type<tc>, window_params = [{transform_indices = @transform_0, window_bounds = array<i64: 1, 16, 16, 128>}, {pipeline_mode = #tpu.pipeline_mode<synchronous>, transform_indices = @transform_1, window_bounds = array<i64: 9, 128, 128>}, {pipeline_mode = #tpu.pipeline_mode<synchronous>, transform_indices = @transform_2, window_bounds = array<i64: 2, 128>}, {pipeline_mode = #tpu.pipeline_mode<synchronous>, transform_indices = @transform_3, window_bounds = array<i64: 9, 128, 128>}, {pipeline_mode = #tpu.pipeline_mode<synchronous>, transform_indices = @transform_4, window_bounds = array<i64: 2, 128>}, {transform_indices = @transform_5, window_bounds = array<i64: 1, 16, 16, 128>}]} {
    %c0 = arith.constant 0 : index
    %c0_0 = arith.constant 0 : index
    %c0_1 = arith.constant 0 : index
    %c0_2 = arith.constant 0 : index
    %0 = vector.load %arg1[%c0, %c0_0, %c0_1, %c0_2] : memref<1x16x16x128xbf16, #tpu.memory_space<vmem>>, vector<1x16x16x128xbf16>
    %1 = vector.shape_cast %0 : vector<1x16x16x128xbf16> to vector<16x16x128xbf16>
    %cst = arith.constant 0.000000e+00 : bf16
    %2 = vector.broadcast %cst : bf16 to vector<16x8x128xbf16>
    %3 = tpu.concatenate %1, %2 in 1 : vector<16x16x128xbf16>, vector<16x8x128xbf16> -> vector<16x24x128xbf16>
    %cst_3 = arith.constant 0.000000e+00 : bf16
    %4 = vector.broadcast %cst_3 : bf16 to vector<48x128xbf16>
    %c0_4 = arith.constant 0 : index
    %c0_5 = arith.constant 0 : index
    %5 = vector.load %arg7[%c0_4, %c0_5] : memref<464x128xbf16, #tpu.memory_space<vmem>>, vector<48x128xbf16>
    tpu.vector_store %arg7[%c0_4, %c0_5], %4 {strides = array<i32>} : memref<464x128xbf16, #tpu.memory_space<vmem>>, vector<48x128xbf16>,
    %6 = vector.shape_cast %3 : vector<16x24x128xbf16> to vector<384x128xbf16>
    %c48 = arith.constant 48 : index
    %c0_6 = arith.constant 0 : index
    %7 = vector.load %arg7[%c48, %c0_6] : memref<464x128xbf16, #tpu.memory_space<vmem>>, vector<384x128xbf16>
    tpu.vector_store %arg7[%c48, %c0_6], %6 {strides = array<i32>} : memref<464x128xbf16, #tpu.memory_space<vmem>>, vector<384x128xbf16>,
    %cst_7 = arith.constant 0.000000e+00 : bf16
    %8 = vector.broadcast %cst_7 : bf16 to vector<32x128xbf16>
    %c432 = arith.constant 432 : index
    %c0_8 = arith.constant 0 : index
    %9 = vector.load %arg7[%c432, %c0_8] : memref<464x128xbf16, #tpu.memory_space<vmem>>, vector<32x128xbf16>
    tpu.vector_store %arg7[%c432, %c0_8], %8 {strides = array<i32>} : memref<464x128xbf16, #tpu.memory_space<vmem>>, vector<32x128xbf16>,
    %c0_9 = arith.constant 0 : index
    %c0_10 = arith.constant 0 : index
    %10 = vector.load %arg3[%c0_9, %c0_10] : memref<2x128xf32, #tpu.memory_space<vmem>>, vector<1x128xf32>
    %c1 = arith.constant 1 : index
    %c0_11 = arith.constant 0 : index
    %11 = vector.load %arg3[%c1, %c0_11] : memref<2x128xf32, #tpu.memory_space<vmem>>, vector<1x128xf32>
    %c23 = arith.constant 23 : index
    %c0_12 = arith.constant 0 : index
    %12 = vector.load %arg7[%c23, %c0_12] : memref<464x128xbf16, #tpu.memory_space<vmem>>, vector<192x128xbf16>
    %c0_13 = arith.constant 0 : index
    %c0_14 = arith.constant 0 : index
    %c0_15 = arith.constant 0 : index
    %13 = vector.load %arg2[%c0_13, %c0_14, %c0_15] : memref<9x128x128xbf16, #tpu.memory_space<vmem>>, vector<1x128x128xbf16>
    %14 = vector.shape_cast %13 : vector<1x128x128xbf16> to vector<128x128xbf16>
    %cst_16 = arith.constant dense<0.000000e+00> : vector<192x128xf32>
    %15 = tpu.matmul %12, %14, %cst_16 {dimension_numbers = #tpu.dot_dimension_numbers<[1], [0], [0], [1], [0, 0, 1, 1], [], []>} : vector<192x128xbf16>, vector<128x128xbf16>, vector<192x128xf32> -> vector<192x128xf32>
    %c24 = arith.constant 24 : index
    %c0_17 = arith.constant 0 : index
    %16 = vector.load %arg7[%c24, %c0_17] : memref<464x128xbf16, #tpu.memory_space<vmem>>, vector<192x128xbf16>
    %c1_18 = arith.constant 1 : index
    %c0_19 = arith.constant 0 : index
    %c0_20 = arith.constant 0 : index
    %17 = vector.load %arg2[%c1_18, %c0_19, %c0_20] : memref<9x128x128xbf16, #tpu.memory_space<vmem>>, vector<1x128x128xbf16>
    %18 = vector.shape_cast %17 : vector<1x128x128xbf16> to vector<128x128xbf16>
    %cst_21 = arith.constant dense<0.000000e+00> : vector<192x128xf32>
    %19 = tpu.matmul %16, %18, %cst_21 {dimension_numbers = #tpu.dot_dimension_numbers<[1], [0], [0], [1], [0, 0, 1, 1], [], []>} : vector<192x128xbf16>, vector<128x128xbf16>, vector<192x128xf32> -> vector<192x128xf32>
    %20 = arith.addf %15, %19 : vector<192x128xf32>
    %c25 = arith.constant 25 : index
    %c0_22 = arith.constant 0 : index
    %21 = vector.load %arg7[%c25, %c0_22] : memref<464x128xbf16, #tpu.memory_space<vmem>>, vector<192x128xbf16>
    %c2 = arith.constant 2 : index
    %c0_23 = arith.constant 0 : index
    %c0_24 = arith.constant 0 : index
    %22 = vector.load %arg2[%c2, %c0_23, %c0_24] : memref<9x128x128xbf16, #tpu.memory_space<vmem>>, vector<1x128x128xbf16>
    %23 = vector.shape_cast %22 : vector<1x128x128xbf16> to vector<128x128xbf16>
    %cst_25 = arith.constant dense<0.000000e+00> : vector<192x128xf32>
    %24 = tpu.matmul %21, %23, %cst_25 {dimension_numbers = #tpu.dot_dimension_numbers<[1], [0], [0], [1], [0, 0, 1, 1], [], []>} : vector<192x128xbf16>, vector<128x128xbf16>, vector<192x128xf32> -> vector<192x128xf32>
    %25 = arith.addf %20, %24 : vector<192x128xf32>
    %c47 = arith.constant 47 : index
    %c0_26 = arith.constant 0 : index
    %26 = vector.load %arg7[%c47, %c0_26] : memref<464x128xbf16, #tpu.memory_space<vmem>>, vector<192x128xbf16>
    %c3 = arith.constant 3 : index
    %c0_27 = arith.constant 0 : index
    %c0_28 = arith.constant 0 : index
    %27 = vector.load %arg2[%c3, %c0_27, %c0_28] : memref<9x128x128xbf16, #tpu.memory_space<vmem>>, vector<1x128x128xbf16>
    %28 = vector.shape_cast %27 : vector<1x128x128xbf16> to vector<128x128xbf16>
    %cst_29 = arith.constant dense<0.000000e+00> : vector<192x128xf32>
    %29 = tpu.matmul %26, %28, %cst_29 {dimension_numbers = #tpu.dot_dimension_numbers<[1], [0], [0], [1], [0, 0, 1, 1], [], []>} : vector<192x128xbf16>, vector<128x128xbf16>, vector<192x128xf32> -> vector<192x128xf32>
    %30 = arith.addf %25, %29 : vector<192x128xf32>
    %c48_30 = arith.constant 48 : index
    %c0_31 = arith.constant 0 : index
    %31 = vector.load %arg7[%c48_30, %c0_31] : memref<464x128xbf16, #tpu.memory_space<vmem>>, vector<192x128xbf16>
    %c4 = arith.constant 4 : index
    %c0_32 = arith.constant 0 : index
    %c0_33 = arith.constant 0 : index
    %32 = vector.load %arg2[%c4, %c0_32, %c0_33] : memref<9x128x128xbf16, #tpu.memory_space<vmem>>, vector<1x128x128xbf16>
    %33 = vector.shape_cast %32 : vector<1x128x128xbf16> to vector<128x128xbf16>
    %cst_34 = arith.constant dense<0.000000e+00> : vector<192x128xf32>
    %34 = tpu.matmul %31, %33, %cst_34 {dimension_numbers = #tpu.dot_dimension_numbers<[1], [0], [0], [1], [0, 0, 1, 1], [], []>} : vector<192x128xbf16>, vector<128x128xbf16>, vector<192x128xf32> -> vector<192x128xf32>
    %35 = arith.addf %30, %34 : vector<192x128xf32>
    %c49 = arith.constant 49 : index
    %c0_35 = arith.constant 0 : index
    %36 = vector.load %arg7[%c49, %c0_35] : memref<464x128xbf16, #tpu.memory_space<vmem>>, vector<192x128xbf16>
    %c5 = arith.constant 5 : index
    %c0_36 = arith.constant 0 : index
    %c0_37 = arith.constant 0 : index
    %37 = vector.load %arg2[%c5, %c0_36, %c0_37] : memref<9x128x128xbf16, #tpu.memory_space<vmem>>, vector<1x128x128xbf16>
    %38 = vector.shape_cast %37 : vector<1x128x128xbf16> to vector<128x128xbf16>
    %cst_38 = arith.constant dense<0.000000e+00> : vector<192x128xf32>
    %39 = tpu.matmul %36, %38, %cst_38 {dimension_numbers = #tpu.dot_dimension_numbers<[1], [0], [0], [1], [0, 0, 1, 1], [], []>} : vector<192x128xbf16>, vector<128x128xbf16>, vector<192x128xf32> -> vector<192x128xf32>
    %40 = arith.addf %35, %39 : vector<192x128xf32>
    %c71 = arith.constant 71 : index
    %c0_39 = arith.constant 0 : index
    %41 = vector.load %arg7[%c71, %c0_39] : memref<464x128xbf16, #tpu.memory_space<vmem>>, vector<192x128xbf16>
    %c6 = arith.constant 6 : index
    %c0_40 = arith.constant 0 : index
    %c0_41 = arith.constant 0 : index
    %42 = vector.load %arg2[%c6, %c0_40, %c0_41] : memref<9x128x128xbf16, #tpu.memory_space<vmem>>, vector<1x128x128xbf16>
    %43 = vector.shape_cast %42 : vector<1x128x128xbf16> to vector<128x128xbf16>
    %cst_42 = arith.constant dense<0.000000e+00> : vector<192x128xf32>
    %44 = tpu.matmul %41, %43, %cst_42 {dimension_numbers = #tpu.dot_dimension_numbers<[1], [0], [0], [1], [0, 0, 1, 1], [], []>} : vector<192x128xbf16>, vector<128x128xbf16>, vector<192x128xf32> -> vector<192x128xf32>
    %45 = arith.addf %40, %44 : vector<192x128xf32>
    %c72 = arith.constant 72 : index
    %c0_43 = arith.constant 0 : index
    %46 = vector.load %arg7[%c72, %c0_43] : memref<464x128xbf16, #tpu.memory_space<vmem>>, vector<192x128xbf16>
    %c7 = arith.constant 7 : index
    %c0_44 = arith.constant 0 : index
    %c0_45 = arith.constant 0 : index
    %47 = vector.load %arg2[%c7, %c0_44, %c0_45] : memref<9x128x128xbf16, #tpu.memory_space<vmem>>, vector<1x128x128xbf16>
    %48 = vector.shape_cast %47 : vector<1x128x128xbf16> to vector<128x128xbf16>
    %cst_46 = arith.constant dense<0.000000e+00> : vector<192x128xf32>
    %49 = tpu.matmul %46, %48, %cst_46 {dimension_numbers = #tpu.dot_dimension_numbers<[1], [0], [0], [1], [0, 0, 1, 1], [], []>} : vector<192x128xbf16>, vector<128x128xbf16>, vector<192x128xf32> -> vector<192x128xf32>
    %50 = arith.addf %45, %49 : vector<192x128xf32>
    %c73 = arith.constant 73 : index
    %c0_47 = arith.constant 0 : index
    %51 = vector.load %arg7[%c73, %c0_47] : memref<464x128xbf16, #tpu.memory_space<vmem>>, vector<192x128xbf16>
    %c8 = arith.constant 8 : index
    %c0_48 = arith.constant 0 : index
    %c0_49 = arith.constant 0 : index
    %52 = vector.load %arg2[%c8, %c0_48, %c0_49] : memref<9x128x128xbf16, #tpu.memory_space<vmem>>, vector<1x128x128xbf16>
    %53 = vector.shape_cast %52 : vector<1x128x128xbf16> to vector<128x128xbf16>
    %cst_50 = arith.constant dense<0.000000e+00> : vector<192x128xf32>
    %54 = tpu.matmul %51, %53, %cst_50 {dimension_numbers = #tpu.dot_dimension_numbers<[1], [0], [0], [1], [0, 0, 1, 1], [], []>} : vector<192x128xbf16>, vector<128x128xbf16>, vector<192x128xf32> -> vector<192x128xf32>
    %55 = arith.addf %50, %54 : vector<192x128xf32>
    %56 = vector.broadcast %10 : vector<1x128xf32> to vector<192x128xf32>
    %57 = arith.mulf %55, %56 : vector<192x128xf32>
    %58 = vector.broadcast %11 : vector<1x128xf32> to vector<192x128xf32>
    %59 = arith.addf %57, %58 : vector<192x128xf32>
    %cst_51 = arith.constant 0.000000e+00 : f32
    %60 = vector.broadcast %cst_51 : f32 to vector<192x128xf32>
    %61 = arith.maximumf %59, %60 : vector<192x128xf32>
    %62 = vector.shape_cast %61 : vector<192x128xf32> to vector<8x24x128xf32>
    %c215 = arith.constant 215 : index
    %c0_52 = arith.constant 0 : index
    %63 = vector.load %arg7[%c215, %c0_52] : memref<464x128xbf16, #tpu.memory_space<vmem>>, vector<192x128xbf16>
    %c0_53 = arith.constant 0 : index
    %c0_54 = arith.constant 0 : index
    %c0_55 = arith.constant 0 : index
    %64 = vector.load %arg2[%c0_53, %c0_54, %c0_55] : memref<9x128x128xbf16, #tpu.memory_space<vmem>>, vector<1x128x128xbf16>
    %65 = vector.shape_cast %64 : vector<1x128x128xbf16> to vector<128x128xbf16>
    %cst_56 = arith.constant dense<0.000000e+00> : vector<192x128xf32>
    %66 = tpu.matmul %63, %65, %cst_56 {dimension_numbers = #tpu.dot_dimension_numbers<[1], [0], [0], [1], [0, 0, 1, 1], [], []>} : vector<192x128xbf16>, vector<128x128xbf16>, vector<192x128xf32> -> vector<192x128xf32>
    %c216 = arith.constant 216 : index
    %c0_57 = arith.constant 0 : index
    %67 = vector.load %arg7[%c216, %c0_57] : memref<464x128xbf16, #tpu.memory_space<vmem>>, vector<192x128xbf16>
    %c1_58 = arith.constant 1 : index
    %c0_59 = arith.constant 0 : index
    %c0_60 = arith.constant 0 : index
    %68 = vector.load %arg2[%c1_58, %c0_59, %c0_60] : memref<9x128x128xbf16, #tpu.memory_space<vmem>>, vector<1x128x128xbf16>
    %69 = vector.shape_cast %68 : vector<1x128x128xbf16> to vector<128x128xbf16>
    %cst_61 = arith.constant dense<0.000000e+00> : vector<192x128xf32>
    %70 = tpu.matmul %67, %69, %cst_61 {dimension_numbers = #tpu.dot_dimension_numbers<[1], [0], [0], [1], [0, 0, 1, 1], [], []>} : vector<192x128xbf16>, vector<128x128xbf16>, vector<192x128xf32> -> vector<192x128xf32>
    %71 = arith.addf %66, %70 : vector<192x128xf32>
    %c217 = arith.constant 217 : index
    %c0_62 = arith.constant 0 : index
    %72 = vector.load %arg7[%c217, %c0_62] : memref<464x128xbf16, #tpu.memory_space<vmem>>, vector<192x128xbf16>
    %c2_63 = arith.constant 2 : index
    %c0_64 = arith.constant 0 : index
    %c0_65 = arith.constant 0 : index
    %73 = vector.load %arg2[%c2_63, %c0_64, %c0_65] : memref<9x128x128xbf16, #tpu.memory_space<vmem>>, vector<1x128x128xbf16>
    %74 = vector.shape_cast %73 : vector<1x128x128xbf16> to vector<128x128xbf16>
    %cst_66 = arith.constant dense<0.000000e+00> : vector<192x128xf32>
    %75 = tpu.matmul %72, %74, %cst_66 {dimension_numbers = #tpu.dot_dimension_numbers<[1], [0], [0], [1], [0, 0, 1, 1], [], []>} : vector<192x128xbf16>, vector<128x128xbf16>, vector<192x128xf32> -> vector<192x128xf32>
    %76 = arith.addf %71, %75 : vector<192x128xf32>
    %c239 = arith.constant 239 : index
    %c0_67 = arith.constant 0 : index
    %77 = vector.load %arg7[%c239, %c0_67] : memref<464x128xbf16, #tpu.memory_space<vmem>>, vector<192x128xbf16>
    %c3_68 = arith.constant 3 : index
    %c0_69 = arith.constant 0 : index
    %c0_70 = arith.constant 0 : index
    %78 = vector.load %arg2[%c3_68, %c0_69, %c0_70] : memref<9x128x128xbf16, #tpu.memory_space<vmem>>, vector<1x128x128xbf16>
    %79 = vector.shape_cast %78 : vector<1x128x128xbf16> to vector<128x128xbf16>
    %cst_71 = arith.constant dense<0.000000e+00> : vector<192x128xf32>
    %80 = tpu.matmul %77, %79, %cst_71 {dimension_numbers = #tpu.dot_dimension_numbers<[1], [0], [0], [1], [0, 0, 1, 1], [], []>} : vector<192x128xbf16>, vector<128x128xbf16>, vector<192x128xf32> -> vector<192x128xf32>
    %81 = arith.addf %76, %80 : vector<192x128xf32>
    %c240 = arith.constant 240 : index
    %c0_72 = arith.constant 0 : index
    %82 = vector.load %arg7[%c240, %c0_72] : memref<464x128xbf16, #tpu.memory_space<vmem>>, vector<192x128xbf16>
    %c4_73 = arith.constant 4 : index
    %c0_74 = arith.constant 0 : index
    %c0_75 = arith.constant 0 : index
    %83 = vector.load %arg2[%c4_73, %c0_74, %c0_75] : memref<9x128x128xbf16, #tpu.memory_space<vmem>>, vector<1x128x128xbf16>
    %84 = vector.shape_cast %83 : vector<1x128x128xbf16> to vector<128x128xbf16>
    %cst_76 = arith.constant dense<0.000000e+00> : vector<192x128xf32>
    %85 = tpu.matmul %82, %84, %cst_76 {dimension_numbers = #tpu.dot_dimension_numbers<[1], [0], [0], [1], [0, 0, 1, 1], [], []>} : vector<192x128xbf16>, vector<128x128xbf16>, vector<192x128xf32> -> vector<192x128xf32>
    %86 = arith.addf %81, %85 : vector<192x128xf32>
    %c241 = arith.constant 241 : index
    %c0_77 = arith.constant 0 : index
    %87 = vector.load %arg7[%c241, %c0_77] : memref<464x128xbf16, #tpu.memory_space<vmem>>, vector<192x128xbf16>
    %c5_78 = arith.constant 5 : index
    %c0_79 = arith.constant 0 : index
    %c0_80 = arith.constant 0 : index
    %88 = vector.load %arg2[%c5_78, %c0_79, %c0_80] : memref<9x128x128xbf16, #tpu.memory_space<vmem>>, vector<1x128x128xbf16>
    %89 = vector.shape_cast %88 : vector<1x128x128xbf16> to vector<128x128xbf16>
    %cst_81 = arith.constant dense<0.000000e+00> : vector<192x128xf32>
    %90 = tpu.matmul %87, %89, %cst_81 {dimension_numbers = #tpu.dot_dimension_numbers<[1], [0], [0], [1], [0, 0, 1, 1], [], []>} : vector<192x128xbf16>, vector<128x128xbf16>, vector<192x128xf32> -> vector<192x128xf32>
    %91 = arith.addf %86, %90 : vector<192x128xf32>
    %c263 = arith.constant 263 : index
    %c0_82 = arith.constant 0 : index
    %92 = vector.load %arg7[%c263, %c0_82] : memref<464x128xbf16, #tpu.memory_space<vmem>>, vector<192x128xbf16>
    %c6_83 = arith.constant 6 : index
    %c0_84 = arith.constant 0 : index
    %c0_85 = arith.constant 0 : index
    %93 = vector.load %arg2[%c6_83, %c0_84, %c0_85] : memref<9x128x128xbf16, #tpu.memory_space<vmem>>, vector<1x128x128xbf16>
    %94 = vector.shape_cast %93 : vector<1x128x128xbf16> to vector<128x128xbf16>
    %cst_86 = arith.constant dense<0.000000e+00> : vector<192x128xf32>
    %95 = tpu.matmul %92, %94, %cst_86 {dimension_numbers = #tpu.dot_dimension_numbers<[1], [0], [0], [1], [0, 0, 1, 1], [], []>} : vector<192x128xbf16>, vector<128x128xbf16>, vector<192x128xf32> -> vector<192x128xf32>
    %96 = arith.addf %91, %95 : vector<192x128xf32>
    %c264 = arith.constant 264 : index
    %c0_87 = arith.constant 0 : index
    %97 = vector.load %arg7[%c264, %c0_87] : memref<464x128xbf16, #tpu.memory_space<vmem>>, vector<192x128xbf16>
    %c7_88 = arith.constant 7 : index
    %c0_89 = arith.constant 0 : index
    %c0_90 = arith.constant 0 : index
    %98 = vector.load %arg2[%c7_88, %c0_89, %c0_90] : memref<9x128x128xbf16, #tpu.memory_space<vmem>>, vector<1x128x128xbf16>
    %99 = vector.shape_cast %98 : vector<1x128x128xbf16> to vector<128x128xbf16>
    %cst_91 = arith.constant dense<0.000000e+00> : vector<192x128xf32>
    %100 = tpu.matmul %97, %99, %cst_91 {dimension_numbers = #tpu.dot_dimension_numbers<[1], [0], [0], [1], [0, 0, 1, 1], [], []>} : vector<192x128xbf16>, vector<128x128xbf16>, vector<192x128xf32> -> vector<192x128xf32>
    %101 = arith.addf %96, %100 : vector<192x128xf32>
    %c265 = arith.constant 265 : index
    %c0_92 = arith.constant 0 : index
    %102 = vector.load %arg7[%c265, %c0_92] : memref<464x128xbf16, #tpu.memory_space<vmem>>, vector<192x128xbf16>
    %c8_93 = arith.constant 8 : index
    %c0_94 = arith.constant 0 : index
    %c0_95 = arith.constant 0 : index
    %103 = vector.load %arg2[%c8_93, %c0_94, %c0_95] : memref<9x128x128xbf16, #tpu.memory_space<vmem>>, vector<1x128x128xbf16>
    %104 = vector.shape_cast %103 : vector<1x128x128xbf16> to vector<128x128xbf16>
    %cst_96 = arith.constant dense<0.000000e+00> : vector<192x128xf32>
    %105 = tpu.matmul %102, %104, %cst_96 {dimension_numbers = #tpu.dot_dimension_numbers<[1], [0], [0], [1], [0, 0, 1, 1], [], []>} : vector<192x128xbf16>, vector<128x128xbf16>, vector<192x128xf32> -> vector<192x128xf32>
    %106 = arith.addf %101, %105 : vector<192x128xf32>
    %107 = vector.broadcast %10 : vector<1x128xf32> to vector<192x128xf32>
    %108 = arith.mulf %106, %107 : vector<192x128xf32>
    %109 = vector.broadcast %11 : vector<1x128xf32> to vector<192x128xf32>
    %110 = arith.addf %108, %109 : vector<192x128xf32>
    %cst_97 = arith.constant 0.000000e+00 : f32
    %111 = vector.broadcast %cst_97 : f32 to vector<192x128xf32>
    %112 = arith.maximumf %110, %111 : vector<192x128xf32>
    %113 = vector.shape_cast %112 : vector<192x128xf32> to vector<8x24x128xf32>
    %114 = tpu.concatenate %62, %113 in 0 : vector<8x24x128xf32>, vector<8x24x128xf32> -> vector<16x24x128xf32>
    %115 = vector.extract_strided_slice %114 {offsets = [0, 0, 0], sizes = [16, 16, 128], strides = [1, 1, 1]} : vector<16x24x128xf32> to vector<16x16x128xf32>
    %116 = arith.truncf %115 : vector<16x16x128xf32> to vector<16x16x128xbf16>
    %cst_98 = arith.constant 0.000000e+00 : bf16
    %117 = vector.broadcast %cst_98 : bf16 to vector<16x8x128xbf16>
    %118 = tpu.concatenate %116, %117 in 1 : vector<16x16x128xbf16>, vector<16x8x128xbf16> -> vector<16x24x128xbf16>
    %cst_99 = arith.constant 0.000000e+00 : bf16
    %119 = vector.broadcast %cst_99 : bf16 to vector<48x128xbf16>
    %c0_100 = arith.constant 0 : index
    %c0_101 = arith.constant 0 : index
    %120 = vector.load %arg8[%c0_100, %c0_101] : memref<464x128xbf16, #tpu.memory_space<vmem>>, vector<48x128xbf16>
    tpu.vector_store %arg8[%c0_100, %c0_101], %119 {strides = array<i32>} : memref<464x128xbf16, #tpu.memory_space<vmem>>, vector<48x128xbf16>,
    %121 = vector.shape_cast %118 : vector<16x24x128xbf16> to vector<384x128xbf16>
    %c48_102 = arith.constant 48 : index
    %c0_103 = arith.constant 0 : index
    %122 = vector.load %arg8[%c48_102, %c0_103] : memref<464x128xbf16, #tpu.memory_space<vmem>>, vector<384x128xbf16>
    tpu.vector_store %arg8[%c48_102, %c0_103], %121 {strides = array<i32>} : memref<464x128xbf16, #tpu.memory_space<vmem>>, vector<384x128xbf16>,
    %cst_104 = arith.constant 0.000000e+00 : bf16
    %123 = vector.broadcast %cst_104 : bf16 to vector<32x128xbf16>
    %c432_105 = arith.constant 432 : index
    %c0_106 = arith.constant 0 : index
    %124 = vector.load %arg8[%c432_105, %c0_106] : memref<464x128xbf16, #tpu.memory_space<vmem>>, vector<32x128xbf16>
    tpu.vector_store %arg8[%c432_105, %c0_106], %123 {strides = array<i32>} : memref<464x128xbf16, #tpu.memory_space<vmem>>, vector<32x128xbf16>,
    %c0_107 = arith.constant 0 : index
    %c0_108 = arith.constant 0 : index
    %125 = vector.load %arg5[%c0_107, %c0_108] : memref<2x128xf32, #tpu.memory_space<vmem>>, vector<1x128xf32>
    %c1_109 = arith.constant 1 : index
    %c0_110 = arith.constant 0 : index
    %126 = vector.load %arg5[%c1_109, %c0_110] : memref<2x128xf32, #tpu.memory_space<vmem>>, vector<1x128xf32>
    %c23_111 = arith.constant 23 : index
    %c0_112 = arith.constant 0 : index
    %127 = vector.load %arg8[%c23_111, %c0_112] : memref<464x128xbf16, #tpu.memory_space<vmem>>, vector<192x128xbf16>
    %c0_113 = arith.constant 0 : index
    %c0_114 = arith.constant 0 : index
    %c0_115 = arith.constant 0 : index
    %128 = vector.load %arg4[%c0_113, %c0_114, %c0_115] : memref<9x128x128xbf16, #tpu.memory_space<vmem>>, vector<1x128x128xbf16>
    %129 = vector.shape_cast %128 : vector<1x128x128xbf16> to vector<128x128xbf16>
    %cst_116 = arith.constant dense<0.000000e+00> : vector<192x128xf32>
    %130 = tpu.matmul %127, %129, %cst_116 {dimension_numbers = #tpu.dot_dimension_numbers<[1], [0], [0], [1], [0, 0, 1, 1], [], []>} : vector<192x128xbf16>, vector<128x128xbf16>, vector<192x128xf32> -> vector<192x128xf32>
    %c24_117 = arith.constant 24 : index
    %c0_118 = arith.constant 0 : index
    %131 = vector.load %arg8[%c24_117, %c0_118] : memref<464x128xbf16, #tpu.memory_space<vmem>>, vector<192x128xbf16>
    %c1_119 = arith.constant 1 : index
    %c0_120 = arith.constant 0 : index
    %c0_121 = arith.constant 0 : index
    %132 = vector.load %arg4[%c1_119, %c0_120, %c0_121] : memref<9x128x128xbf16, #tpu.memory_space<vmem>>, vector<1x128x128xbf16>
    %133 = vector.shape_cast %132 : vector<1x128x128xbf16> to vector<128x128xbf16>
    %cst_122 = arith.constant dense<0.000000e+00> : vector<192x128xf32>
    %134 = tpu.matmul %131, %133, %cst_122 {dimension_numbers = #tpu.dot_dimension_numbers<[1], [0], [0], [1], [0, 0, 1, 1], [], []>} : vector<192x128xbf16>, vector<128x128xbf16>, vector<192x128xf32> -> vector<192x128xf32>
    %135 = arith.addf %130, %134 : vector<192x128xf32>
    %c25_123 = arith.constant 25 : index
    %c0_124 = arith.constant 0 : index
    %136 = vector.load %arg8[%c25_123, %c0_124] : memref<464x128xbf16, #tpu.memory_space<vmem>>, vector<192x128xbf16>
    %c2_125 = arith.constant 2 : index
    %c0_126 = arith.constant 0 : index
    %c0_127 = arith.constant 0 : index
    %137 = vector.load %arg4[%c2_125, %c0_126, %c0_127] : memref<9x128x128xbf16, #tpu.memory_space<vmem>>, vector<1x128x128xbf16>
    %138 = vector.shape_cast %137 : vector<1x128x128xbf16> to vector<128x128xbf16>
    %cst_128 = arith.constant dense<0.000000e+00> : vector<192x128xf32>
    %139 = tpu.matmul %136, %138, %cst_128 {dimension_numbers = #tpu.dot_dimension_numbers<[1], [0], [0], [1], [0, 0, 1, 1], [], []>} : vector<192x128xbf16>, vector<128x128xbf16>, vector<192x128xf32> -> vector<192x128xf32>
    %140 = arith.addf %135, %139 : vector<192x128xf32>
    %c47_129 = arith.constant 47 : index
    %c0_130 = arith.constant 0 : index
    %141 = vector.load %arg8[%c47_129, %c0_130] : memref<464x128xbf16, #tpu.memory_space<vmem>>, vector<192x128xbf16>
    %c3_131 = arith.constant 3 : index
    %c0_132 = arith.constant 0 : index
    %c0_133 = arith.constant 0 : index
    %142 = vector.load %arg4[%c3_131, %c0_132, %c0_133] : memref<9x128x128xbf16, #tpu.memory_space<vmem>>, vector<1x128x128xbf16>
    %143 = vector.shape_cast %142 : vector<1x128x128xbf16> to vector<128x128xbf16>
    %cst_134 = arith.constant dense<0.000000e+00> : vector<192x128xf32>
    %144 = tpu.matmul %141, %143, %cst_134 {dimension_numbers = #tpu.dot_dimension_numbers<[1], [0], [0], [1], [0, 0, 1, 1], [], []>} : vector<192x128xbf16>, vector<128x128xbf16>, vector<192x128xf32> -> vector<192x128xf32>
    %145 = arith.addf %140, %144 : vector<192x128xf32>
    %c48_135 = arith.constant 48 : index
    %c0_136 = arith.constant 0 : index
    %146 = vector.load %arg8[%c48_135, %c0_136] : memref<464x128xbf16, #tpu.memory_space<vmem>>, vector<192x128xbf16>
    %c4_137 = arith.constant 4 : index
    %c0_138 = arith.constant 0 : index
    %c0_139 = arith.constant 0 : index
    %147 = vector.load %arg4[%c4_137, %c0_138, %c0_139] : memref<9x128x128xbf16, #tpu.memory_space<vmem>>, vector<1x128x128xbf16>
    %148 = vector.shape_cast %147 : vector<1x128x128xbf16> to vector<128x128xbf16>
    %cst_140 = arith.constant dense<0.000000e+00> : vector<192x128xf32>
    %149 = tpu.matmul %146, %148, %cst_140 {dimension_numbers = #tpu.dot_dimension_numbers<[1], [0], [0], [1], [0, 0, 1, 1], [], []>} : vector<192x128xbf16>, vector<128x128xbf16>, vector<192x128xf32> -> vector<192x128xf32>
    %150 = arith.addf %145, %149 : vector<192x128xf32>
    %c49_141 = arith.constant 49 : index
    %c0_142 = arith.constant 0 : index
    %151 = vector.load %arg8[%c49_141, %c0_142] : memref<464x128xbf16, #tpu.memory_space<vmem>>, vector<192x128xbf16>
    %c5_143 = arith.constant 5 : index
    %c0_144 = arith.constant 0 : index
    %c0_145 = arith.constant 0 : index
    %152 = vector.load %arg4[%c5_143, %c0_144, %c0_145] : memref<9x128x128xbf16, #tpu.memory_space<vmem>>, vector<1x128x128xbf16>
    %153 = vector.shape_cast %152 : vector<1x128x128xbf16> to vector<128x128xbf16>
    %cst_146 = arith.constant dense<0.000000e+00> : vector<192x128xf32>
    %154 = tpu.matmul %151, %153, %cst_146 {dimension_numbers = #tpu.dot_dimension_numbers<[1], [0], [0], [1], [0, 0, 1, 1], [], []>} : vector<192x128xbf16>, vector<128x128xbf16>, vector<192x128xf32> -> vector<192x128xf32>
    %155 = arith.addf %150, %154 : vector<192x128xf32>
    %c71_147 = arith.constant 71 : index
    %c0_148 = arith.constant 0 : index
    %156 = vector.load %arg8[%c71_147, %c0_148] : memref<464x128xbf16, #tpu.memory_space<vmem>>, vector<192x128xbf16>
    %c6_149 = arith.constant 6 : index
    %c0_150 = arith.constant 0 : index
    %c0_151 = arith.constant 0 : index
    %157 = vector.load %arg4[%c6_149, %c0_150, %c0_151] : memref<9x128x128xbf16, #tpu.memory_space<vmem>>, vector<1x128x128xbf16>
    %158 = vector.shape_cast %157 : vector<1x128x128xbf16> to vector<128x128xbf16>
    %cst_152 = arith.constant dense<0.000000e+00> : vector<192x128xf32>
    %159 = tpu.matmul %156, %158, %cst_152 {dimension_numbers = #tpu.dot_dimension_numbers<[1], [0], [0], [1], [0, 0, 1, 1], [], []>} : vector<192x128xbf16>, vector<128x128xbf16>, vector<192x128xf32> -> vector<192x128xf32>
    %160 = arith.addf %155, %159 : vector<192x128xf32>
    %c72_153 = arith.constant 72 : index
    %c0_154 = arith.constant 0 : index
    %161 = vector.load %arg8[%c72_153, %c0_154] : memref<464x128xbf16, #tpu.memory_space<vmem>>, vector<192x128xbf16>
    %c7_155 = arith.constant 7 : index
    %c0_156 = arith.constant 0 : index
    %c0_157 = arith.constant 0 : index
    %162 = vector.load %arg4[%c7_155, %c0_156, %c0_157] : memref<9x128x128xbf16, #tpu.memory_space<vmem>>, vector<1x128x128xbf16>
    %163 = vector.shape_cast %162 : vector<1x128x128xbf16> to vector<128x128xbf16>
    %cst_158 = arith.constant dense<0.000000e+00> : vector<192x128xf32>
    %164 = tpu.matmul %161, %163, %cst_158 {dimension_numbers = #tpu.dot_dimension_numbers<[1], [0], [0], [1], [0, 0, 1, 1], [], []>} : vector<192x128xbf16>, vector<128x128xbf16>, vector<192x128xf32> -> vector<192x128xf32>
    %165 = arith.addf %160, %164 : vector<192x128xf32>
    %c73_159 = arith.constant 73 : index
    %c0_160 = arith.constant 0 : index
    %166 = vector.load %arg8[%c73_159, %c0_160] : memref<464x128xbf16, #tpu.memory_space<vmem>>, vector<192x128xbf16>
    %c8_161 = arith.constant 8 : index
    %c0_162 = arith.constant 0 : index
    %c0_163 = arith.constant 0 : index
    %167 = vector.load %arg4[%c8_161, %c0_162, %c0_163] : memref<9x128x128xbf16, #tpu.memory_space<vmem>>, vector<1x128x128xbf16>
    %168 = vector.shape_cast %167 : vector<1x128x128xbf16> to vector<128x128xbf16>
    %cst_164 = arith.constant dense<0.000000e+00> : vector<192x128xf32>
    %169 = tpu.matmul %166, %168, %cst_164 {dimension_numbers = #tpu.dot_dimension_numbers<[1], [0], [0], [1], [0, 0, 1, 1], [], []>} : vector<192x128xbf16>, vector<128x128xbf16>, vector<192x128xf32> -> vector<192x128xf32>
    %170 = arith.addf %165, %169 : vector<192x128xf32>
    %171 = vector.broadcast %125 : vector<1x128xf32> to vector<192x128xf32>
    %172 = arith.mulf %170, %171 : vector<192x128xf32>
    %173 = vector.broadcast %126 : vector<1x128xf32> to vector<192x128xf32>
    %174 = arith.addf %172, %173 : vector<192x128xf32>
    %cst_165 = arith.constant 0.000000e+00 : f32
    %175 = vector.broadcast %cst_165 : f32 to vector<192x128xf32>
    %176 = arith.maximumf %174, %175 : vector<192x128xf32>
    %177 = vector.shape_cast %176 : vector<192x128xf32> to vector<8x24x128xf32>
    %c215_166 = arith.constant 215 : index
    %c0_167 = arith.constant 0 : index
    %178 = vector.load %arg8[%c215_166, %c0_167] : memref<464x128xbf16, #tpu.memory_space<vmem>>, vector<192x128xbf16>
    %c0_168 = arith.constant 0 : index
    %c0_169 = arith.constant 0 : index
    %c0_170 = arith.constant 0 : index
    %179 = vector.load %arg4[%c0_168, %c0_169, %c0_170] : memref<9x128x128xbf16, #tpu.memory_space<vmem>>, vector<1x128x128xbf16>
    %180 = vector.shape_cast %179 : vector<1x128x128xbf16> to vector<128x128xbf16>
    %cst_171 = arith.constant dense<0.000000e+00> : vector<192x128xf32>
    %181 = tpu.matmul %178, %180, %cst_171 {dimension_numbers = #tpu.dot_dimension_numbers<[1], [0], [0], [1], [0, 0, 1, 1], [], []>} : vector<192x128xbf16>, vector<128x128xbf16>, vector<192x128xf32> -> vector<192x128xf32>
    %c216_172 = arith.constant 216 : index
    %c0_173 = arith.constant 0 : index
    %182 = vector.load %arg8[%c216_172, %c0_173] : memref<464x128xbf16, #tpu.memory_space<vmem>>, vector<192x128xbf16>
    %c1_174 = arith.constant 1 : index
    %c0_175 = arith.constant 0 : index
    %c0_176 = arith.constant 0 : index
    %183 = vector.load %arg4[%c1_174, %c0_175, %c0_176] : memref<9x128x128xbf16, #tpu.memory_space<vmem>>, vector<1x128x128xbf16>
    %184 = vector.shape_cast %183 : vector<1x128x128xbf16> to vector<128x128xbf16>
    %cst_177 = arith.constant dense<0.000000e+00> : vector<192x128xf32>
    %185 = tpu.matmul %182, %184, %cst_177 {dimension_numbers = #tpu.dot_dimension_numbers<[1], [0], [0], [1], [0, 0, 1, 1], [], []>} : vector<192x128xbf16>, vector<128x128xbf16>, vector<192x128xf32> -> vector<192x128xf32>
    %186 = arith.addf %181, %185 : vector<192x128xf32>
    %c217_178 = arith.constant 217 : index
    %c0_179 = arith.constant 0 : index
    %187 = vector.load %arg8[%c217_178, %c0_179] : memref<464x128xbf16, #tpu.memory_space<vmem>>, vector<192x128xbf16>
    %c2_180 = arith.constant 2 : index
    %c0_181 = arith.constant 0 : index
    %c0_182 = arith.constant 0 : index
    %188 = vector.load %arg4[%c2_180, %c0_181, %c0_182] : memref<9x128x128xbf16, #tpu.memory_space<vmem>>, vector<1x128x128xbf16>
    %189 = vector.shape_cast %188 : vector<1x128x128xbf16> to vector<128x128xbf16>
    %cst_183 = arith.constant dense<0.000000e+00> : vector<192x128xf32>
    %190 = tpu.matmul %187, %189, %cst_183 {dimension_numbers = #tpu.dot_dimension_numbers<[1], [0], [0], [1], [0, 0, 1, 1], [], []>} : vector<192x128xbf16>, vector<128x128xbf16>, vector<192x128xf32> -> vector<192x128xf32>
    %191 = arith.addf %186, %190 : vector<192x128xf32>
    %c239_184 = arith.constant 239 : index
    %c0_185 = arith.constant 0 : index
    %192 = vector.load %arg8[%c239_184, %c0_185] : memref<464x128xbf16, #tpu.memory_space<vmem>>, vector<192x128xbf16>
    %c3_186 = arith.constant 3 : index
    %c0_187 = arith.constant 0 : index
    %c0_188 = arith.constant 0 : index
    %193 = vector.load %arg4[%c3_186, %c0_187, %c0_188] : memref<9x128x128xbf16, #tpu.memory_space<vmem>>, vector<1x128x128xbf16>
    %194 = vector.shape_cast %193 : vector<1x128x128xbf16> to vector<128x128xbf16>
    %cst_189 = arith.constant dense<0.000000e+00> : vector<192x128xf32>
    %195 = tpu.matmul %192, %194, %cst_189 {dimension_numbers = #tpu.dot_dimension_numbers<[1], [0], [0], [1], [0, 0, 1, 1], [], []>} : vector<192x128xbf16>, vector<128x128xbf16>, vector<192x128xf32> -> vector<192x128xf32>
    %196 = arith.addf %191, %195 : vector<192x128xf32>
    %c240_190 = arith.constant 240 : index
    %c0_191 = arith.constant 0 : index
    %197 = vector.load %arg8[%c240_190, %c0_191] : memref<464x128xbf16, #tpu.memory_space<vmem>>, vector<192x128xbf16>
    %c4_192 = arith.constant 4 : index
    %c0_193 = arith.constant 0 : index
    %c0_194 = arith.constant 0 : index
    %198 = vector.load %arg4[%c4_192, %c0_193, %c0_194] : memref<9x128x128xbf16, #tpu.memory_space<vmem>>, vector<1x128x128xbf16>
    %199 = vector.shape_cast %198 : vector<1x128x128xbf16> to vector<128x128xbf16>
    %cst_195 = arith.constant dense<0.000000e+00> : vector<192x128xf32>
    %200 = tpu.matmul %197, %199, %cst_195 {dimension_numbers = #tpu.dot_dimension_numbers<[1], [0], [0], [1], [0, 0, 1, 1], [], []>} : vector<192x128xbf16>, vector<128x128xbf16>, vector<192x128xf32> -> vector<192x128xf32>
    %201 = arith.addf %196, %200 : vector<192x128xf32>
    %c241_196 = arith.constant 241 : index
    %c0_197 = arith.constant 0 : index
    %202 = vector.load %arg8[%c241_196, %c0_197] : memref<464x128xbf16, #tpu.memory_space<vmem>>, vector<192x128xbf16>
    %c5_198 = arith.constant 5 : index
    %c0_199 = arith.constant 0 : index
    %c0_200 = arith.constant 0 : index
    %203 = vector.load %arg4[%c5_198, %c0_199, %c0_200] : memref<9x128x128xbf16, #tpu.memory_space<vmem>>, vector<1x128x128xbf16>
    %204 = vector.shape_cast %203 : vector<1x128x128xbf16> to vector<128x128xbf16>
    %cst_201 = arith.constant dense<0.000000e+00> : vector<192x128xf32>
    %205 = tpu.matmul %202, %204, %cst_201 {dimension_numbers = #tpu.dot_dimension_numbers<[1], [0], [0], [1], [0, 0, 1, 1], [], []>} : vector<192x128xbf16>, vector<128x128xbf16>, vector<192x128xf32> -> vector<192x128xf32>
    %206 = arith.addf %201, %205 : vector<192x128xf32>
    %c263_202 = arith.constant 263 : index
    %c0_203 = arith.constant 0 : index
    %207 = vector.load %arg8[%c263_202, %c0_203] : memref<464x128xbf16, #tpu.memory_space<vmem>>, vector<192x128xbf16>
    %c6_204 = arith.constant 6 : index
    %c0_205 = arith.constant 0 : index
    %c0_206 = arith.constant 0 : index
    %208 = vector.load %arg4[%c6_204, %c0_205, %c0_206] : memref<9x128x128xbf16, #tpu.memory_space<vmem>>, vector<1x128x128xbf16>
    %209 = vector.shape_cast %208 : vector<1x128x128xbf16> to vector<128x128xbf16>
    %cst_207 = arith.constant dense<0.000000e+00> : vector<192x128xf32>
    %210 = tpu.matmul %207, %209, %cst_207 {dimension_numbers = #tpu.dot_dimension_numbers<[1], [0], [0], [1], [0, 0, 1, 1], [], []>} : vector<192x128xbf16>, vector<128x128xbf16>, vector<192x128xf32> -> vector<192x128xf32>
    %211 = arith.addf %206, %210 : vector<192x128xf32>
    %c264_208 = arith.constant 264 : index
    %c0_209 = arith.constant 0 : index
    %212 = vector.load %arg8[%c264_208, %c0_209] : memref<464x128xbf16, #tpu.memory_space<vmem>>, vector<192x128xbf16>
    %c7_210 = arith.constant 7 : index
    %c0_211 = arith.constant 0 : index
    %c0_212 = arith.constant 0 : index
    %213 = vector.load %arg4[%c7_210, %c0_211, %c0_212] : memref<9x128x128xbf16, #tpu.memory_space<vmem>>, vector<1x128x128xbf16>
    %214 = vector.shape_cast %213 : vector<1x128x128xbf16> to vector<128x128xbf16>
    %cst_213 = arith.constant dense<0.000000e+00> : vector<192x128xf32>
    %215 = tpu.matmul %212, %214, %cst_213 {dimension_numbers = #tpu.dot_dimension_numbers<[1], [0], [0], [1], [0, 0, 1, 1], [], []>} : vector<192x128xbf16>, vector<128x128xbf16>, vector<192x128xf32> -> vector<192x128xf32>
    %216 = arith.addf %211, %215 : vector<192x128xf32>
    %c265_214 = arith.constant 265 : index
    %c0_215 = arith.constant 0 : index
    %217 = vector.load %arg8[%c265_214, %c0_215] : memref<464x128xbf16, #tpu.memory_space<vmem>>, vector<192x128xbf16>
    %c8_216 = arith.constant 8 : index
    %c0_217 = arith.constant 0 : index
    %c0_218 = arith.constant 0 : index
    %218 = vector.load %arg4[%c8_216, %c0_217, %c0_218] : memref<9x128x128xbf16, #tpu.memory_space<vmem>>, vector<1x128x128xbf16>
    %219 = vector.shape_cast %218 : vector<1x128x128xbf16> to vector<128x128xbf16>
    %cst_219 = arith.constant dense<0.000000e+00> : vector<192x128xf32>
    %220 = tpu.matmul %217, %219, %cst_219 {dimension_numbers = #tpu.dot_dimension_numbers<[1], [0], [0], [1], [0, 0, 1, 1], [], []>} : vector<192x128xbf16>, vector<128x128xbf16>, vector<192x128xf32> -> vector<192x128xf32>
    %221 = arith.addf %216, %220 : vector<192x128xf32>
    %222 = vector.broadcast %125 : vector<1x128xf32> to vector<192x128xf32>
    %223 = arith.mulf %221, %222 : vector<192x128xf32>
    %224 = vector.broadcast %126 : vector<1x128xf32> to vector<192x128xf32>
    %225 = arith.addf %223, %224 : vector<192x128xf32>
    %cst_220 = arith.constant 0.000000e+00 : f32
    %226 = vector.broadcast %cst_220 : f32 to vector<192x128xf32>
    %227 = arith.maximumf %225, %226 : vector<192x128xf32>
    %228 = vector.shape_cast %227 : vector<192x128xf32> to vector<8x24x128xf32>
    %229 = tpu.concatenate %177, %228 in 0 : vector<8x24x128xf32>, vector<8x24x128xf32> -> vector<16x24x128xf32>
    %230 = vector.extract_strided_slice %229 {offsets = [0, 0, 0], sizes = [16, 16, 128], strides = [1, 1, 1]} : vector<16x24x128xf32> to vector<16x16x128xf32>
    %231 = arith.truncf %230 : vector<16x16x128xf32> to vector<16x16x128xbf16>
    %c0_221 = arith.constant 0 : index
    %c0_222 = arith.constant 0 : index
    %c0_223 = arith.constant 0 : index
    %c0_224 = arith.constant 0 : index
    %232 = vector.load %arg6[%c0_221, %c0_222, %c0_223, %c0_224] : memref<1x16x16x128xbf16, #tpu.memory_space<vmem>>, vector<1x16x16x128xbf16>
    %233 = vector.shape_cast %232 : vector<1x16x16x128xbf16> to vector<16x16x128xbf16>
    %234 = vector.shape_cast %231 : vector<16x16x128xbf16> to vector<1x16x16x128xbf16>
    tpu.vector_store %arg6[%c0_221, %c0_222, %c0_223, %c0_224], %234 {strides = array<i32>} : memref<1x16x16x128xbf16, #tpu.memory_space<vmem>>, vector<1x16x16x128xbf16>,
    return
  }
  func.func @transform_0(%arg0: i32) -> (i32, i32, i32, i32) {
    %c0_i32 = arith.constant 0 : i32
    %c0_i32_0 = arith.constant 0 : i32
    %c0_i32_1 = arith.constant 0 : i32
    %c0_i32_2 = arith.constant 0 : i32
    return %arg0, %c0_i32, %c0_i32_0, %c0_i32_1 : i32, i32, i32, i32
  }
  func.func @transform_1(%arg0: i32) -> (i32, i32, i32) {
    %c0_i32 = arith.constant 0 : i32
    %c0_i32_0 = arith.constant 0 : i32
    %c0_i32_1 = arith.constant 0 : i32
    %c0_i32_2 = arith.constant 0 : i32
    return %c0_i32, %c0_i32_0, %c0_i32_1 : i32, i32, i32
  }
  func.func @transform_2(%arg0: i32) -> (i32, i32) {
    %c0_i32 = arith.constant 0 : i32
    %c0_i32_0 = arith.constant 0 : i32
    %c0_i32_1 = arith.constant 0 : i32
    return %c0_i32, %c0_i32_0 : i32, i32
  }
  func.func @transform_3(%arg0: i32) -> (i32, i32, i32) {
    %c0_i32 = arith.constant 0 : i32
    %c0_i32_0 = arith.constant 0 : i32
    %c0_i32_1 = arith.constant 0 : i32
    %c0_i32_2 = arith.constant 0 : i32
    return %c0_i32, %c0_i32_0, %c0_i32_1 : i32, i32, i32
  }
  func.func @transform_4(%arg0: i32) -> (i32, i32) {
    %c0_i32 = arith.constant 0 : i32
    %c0_i32_0 = arith.constant 0 : i32
    %c0_i32_1 = arith.constant 0 : i32
    return %c0_i32, %c0_i32_0 : i32, i32
  }
  func.func @transform_5(%arg0: i32) -> (i32, i32, i32, i32) {
    %c0_i32 = arith.constant 0 : i32
    %c0_i32_0 = arith.constant 0 : i32
    %c0_i32_1 = arith.constant 0 : i32
    %c0_i32_2 = arith.constant 0 : i32
    return %arg0, %c0_i32, %c0_i32_0, %c0_i32_1 : i32, i32, i32, i32
  }
}

module attributes {stable_mosaic.version = 11 : i64} {
  func.func @_encoder_block_kernel(%arg0: i32, %arg1: memref<1x16x8x256xbf16, #tpu.memory_space<vmem>>, %arg2: memref<9x128x128xbf16, #tpu.memory_space<vmem>>, %arg3: memref<2x128xf32, #tpu.memory_space<vmem>>, %arg4: memref<9x128x128xbf16, #tpu.memory_space<vmem>>, %arg5: memref<2x128xf32, #tpu.memory_space<vmem>>, %arg6: memref<1x8x8x128xbf16, #tpu.memory_space<vmem>>, %arg7: memref<184x128xbf16, #tpu.memory_space<vmem>>, %arg8: memref<184x128xbf16, #tpu.memory_space<vmem>>) attributes {dimension_semantics = [#tpu.dimension_semantics<parallel>], iteration_bounds = array<i64: 2>, scalar_prefetch = 0 : i64, scratch_operands = 2 : i64, tpu.core_type = #tpu.core_type<tc>, window_params = [{transform_indices = @transform_0, window_bounds = array<i64: 1, 16, 8, 256>}, {pipeline_mode = #tpu.pipeline_mode<synchronous>, transform_indices = @transform_1, window_bounds = array<i64: 9, 128, 128>}, {pipeline_mode = #tpu.pipeline_mode<synchronous>, transform_indices = @transform_2, window_bounds = array<i64: 2, 128>}, {pipeline_mode = #tpu.pipeline_mode<synchronous>, transform_indices = @transform_3, window_bounds = array<i64: 9, 128, 128>}, {pipeline_mode = #tpu.pipeline_mode<synchronous>, transform_indices = @transform_4, window_bounds = array<i64: 2, 128>}, {transform_indices = @transform_5, window_bounds = array<i64: 1, 8, 8, 128>}]} {
    %c0 = arith.constant 0 : index
    %c0_0 = arith.constant 0 : index
    %c0_1 = arith.constant 0 : index
    %c0_2 = arith.constant 0 : index
    %0 = vector.load %arg1[%c0, %c0_0, %c0_1, %c0_2] : memref<1x16x8x256xbf16, #tpu.memory_space<vmem>>, vector<1x16x8x256xbf16>
    %1 = vector.shape_cast %0 : vector<1x16x8x256xbf16> to vector<16x8x256xbf16>
    %2 = vector.extract_strided_slice %1 {offsets = [0, 0, 0], sizes = [16, 8, 128], strides = [1, 1, 1]} : vector<16x8x256xbf16> to vector<16x8x128xbf16>
    %3 = vector.extract_strided_slice %1 {offsets = [0, 0, 128], sizes = [16, 8, 128], strides = [1, 1, 1]} : vector<16x8x256xbf16> to vector<16x8x128xbf16>
    %4 = arith.maximumf %2, %3 : vector<16x8x128xbf16>
    %5 = vector.shape_cast %4 : vector<16x8x128xbf16> to vector<8x2x8x128xbf16>
    %6 = vector.extract_strided_slice %5 {offsets = [0, 0, 0, 0], sizes = [8, 1, 8, 128], strides = [1, 1, 1, 1]} : vector<8x2x8x128xbf16> to vector<8x1x8x128xbf16>
    %7 = vector.shape_cast %6 : vector<8x1x8x128xbf16> to vector<8x8x128xbf16>
    %8 = vector.extract_strided_slice %5 {offsets = [0, 1, 0, 0], sizes = [8, 1, 8, 128], strides = [1, 1, 1, 1]} : vector<8x2x8x128xbf16> to vector<8x1x8x128xbf16>
    %9 = vector.shape_cast %8 : vector<8x1x8x128xbf16> to vector<8x8x128xbf16>
    %10 = arith.maximumf %7, %9 : vector<8x8x128xbf16>
    %cst = arith.constant 0.000000e+00 : bf16
    %11 = vector.broadcast %cst : bf16 to vector<8x8x128xbf16>
    %12 = tpu.concatenate %10, %11 in 1 : vector<8x8x128xbf16>, vector<8x8x128xbf16> -> vector<8x16x128xbf16>
    %cst_3 = arith.constant 0.000000e+00 : bf16
    %13 = vector.broadcast %cst_3 : bf16 to vector<32x128xbf16>
    %c0_4 = arith.constant 0 : index
    %c0_5 = arith.constant 0 : index
    %14 = vector.load %arg7[%c0_4, %c0_5] : memref<184x128xbf16, #tpu.memory_space<vmem>>, vector<32x128xbf16>
    tpu.vector_store %arg7[%c0_4, %c0_5], %13 {strides = array<i32>} : memref<184x128xbf16, #tpu.memory_space<vmem>>, vector<32x128xbf16>,
    %15 = vector.shape_cast %12 : vector<8x16x128xbf16> to vector<128x128xbf16>
    %c32 = arith.constant 32 : index
    %c0_6 = arith.constant 0 : index
    %16 = vector.load %arg7[%c32, %c0_6] : memref<184x128xbf16, #tpu.memory_space<vmem>>, vector<128x128xbf16>
    tpu.vector_store %arg7[%c32, %c0_6], %15 {strides = array<i32>} : memref<184x128xbf16, #tpu.memory_space<vmem>>, vector<128x128xbf16>,
    %cst_7 = arith.constant 0.000000e+00 : bf16
    %17 = vector.broadcast %cst_7 : bf16 to vector<24x128xbf16>
    %c160 = arith.constant 160 : index
    %c0_8 = arith.constant 0 : index
    %18 = vector.load %arg7[%c160, %c0_8] : memref<184x128xbf16, #tpu.memory_space<vmem>>, vector<24x128xbf16>
    tpu.vector_store %arg7[%c160, %c0_8], %17 {strides = array<i32>} : memref<184x128xbf16, #tpu.memory_space<vmem>>, vector<24x128xbf16>,
    %c0_9 = arith.constant 0 : index
    %c0_10 = arith.constant 0 : index
    %19 = vector.load %arg3[%c0_9, %c0_10] : memref<2x128xf32, #tpu.memory_space<vmem>>, vector<1x128xf32>
    %c1 = arith.constant 1 : index
    %c0_11 = arith.constant 0 : index
    %20 = vector.load %arg3[%c1, %c0_11] : memref<2x128xf32, #tpu.memory_space<vmem>>, vector<1x128xf32>
    %c15 = arith.constant 15 : index
    %c0_12 = arith.constant 0 : index
    %21 = vector.load %arg7[%c15, %c0_12] : memref<184x128xbf16, #tpu.memory_space<vmem>>, vector<128x128xbf16>
    %c0_13 = arith.constant 0 : index
    %c0_14 = arith.constant 0 : index
    %c0_15 = arith.constant 0 : index
    %22 = vector.load %arg2[%c0_13, %c0_14, %c0_15] : memref<9x128x128xbf16, #tpu.memory_space<vmem>>, vector<1x128x128xbf16>
    %23 = vector.shape_cast %22 : vector<1x128x128xbf16> to vector<128x128xbf16>
    %cst_16 = arith.constant dense<0.000000e+00> : vector<128x128xf32>
    %24 = tpu.matmul %21, %23, %cst_16 {dimension_numbers = #tpu.dot_dimension_numbers<[1], [0], [0], [1], [0, 0, 1, 1], [], []>} : vector<128x128xbf16>, vector<128x128xbf16>, vector<128x128xf32> -> vector<128x128xf32>
    %c16 = arith.constant 16 : index
    %c0_17 = arith.constant 0 : index
    %25 = vector.load %arg7[%c16, %c0_17] : memref<184x128xbf16, #tpu.memory_space<vmem>>, vector<128x128xbf16>
    %c1_18 = arith.constant 1 : index
    %c0_19 = arith.constant 0 : index
    %c0_20 = arith.constant 0 : index
    %26 = vector.load %arg2[%c1_18, %c0_19, %c0_20] : memref<9x128x128xbf16, #tpu.memory_space<vmem>>, vector<1x128x128xbf16>
    %27 = vector.shape_cast %26 : vector<1x128x128xbf16> to vector<128x128xbf16>
    %cst_21 = arith.constant dense<0.000000e+00> : vector<128x128xf32>
    %28 = tpu.matmul %25, %27, %cst_21 {dimension_numbers = #tpu.dot_dimension_numbers<[1], [0], [0], [1], [0, 0, 1, 1], [], []>} : vector<128x128xbf16>, vector<128x128xbf16>, vector<128x128xf32> -> vector<128x128xf32>
    %29 = arith.addf %24, %28 : vector<128x128xf32>
    %c17 = arith.constant 17 : index
    %c0_22 = arith.constant 0 : index
    %30 = vector.load %arg7[%c17, %c0_22] : memref<184x128xbf16, #tpu.memory_space<vmem>>, vector<128x128xbf16>
    %c2 = arith.constant 2 : index
    %c0_23 = arith.constant 0 : index
    %c0_24 = arith.constant 0 : index
    %31 = vector.load %arg2[%c2, %c0_23, %c0_24] : memref<9x128x128xbf16, #tpu.memory_space<vmem>>, vector<1x128x128xbf16>
    %32 = vector.shape_cast %31 : vector<1x128x128xbf16> to vector<128x128xbf16>
    %cst_25 = arith.constant dense<0.000000e+00> : vector<128x128xf32>
    %33 = tpu.matmul %30, %32, %cst_25 {dimension_numbers = #tpu.dot_dimension_numbers<[1], [0], [0], [1], [0, 0, 1, 1], [], []>} : vector<128x128xbf16>, vector<128x128xbf16>, vector<128x128xf32> -> vector<128x128xf32>
    %34 = arith.addf %29, %33 : vector<128x128xf32>
    %c31 = arith.constant 31 : index
    %c0_26 = arith.constant 0 : index
    %35 = vector.load %arg7[%c31, %c0_26] : memref<184x128xbf16, #tpu.memory_space<vmem>>, vector<128x128xbf16>
    %c3 = arith.constant 3 : index
    %c0_27 = arith.constant 0 : index
    %c0_28 = arith.constant 0 : index
    %36 = vector.load %arg2[%c3, %c0_27, %c0_28] : memref<9x128x128xbf16, #tpu.memory_space<vmem>>, vector<1x128x128xbf16>
    %37 = vector.shape_cast %36 : vector<1x128x128xbf16> to vector<128x128xbf16>
    %cst_29 = arith.constant dense<0.000000e+00> : vector<128x128xf32>
    %38 = tpu.matmul %35, %37, %cst_29 {dimension_numbers = #tpu.dot_dimension_numbers<[1], [0], [0], [1], [0, 0, 1, 1], [], []>} : vector<128x128xbf16>, vector<128x128xbf16>, vector<128x128xf32> -> vector<128x128xf32>
    %39 = arith.addf %34, %38 : vector<128x128xf32>
    %c32_30 = arith.constant 32 : index
    %c0_31 = arith.constant 0 : index
    %40 = vector.load %arg7[%c32_30, %c0_31] : memref<184x128xbf16, #tpu.memory_space<vmem>>, vector<128x128xbf16>
    %c4 = arith.constant 4 : index
    %c0_32 = arith.constant 0 : index
    %c0_33 = arith.constant 0 : index
    %41 = vector.load %arg2[%c4, %c0_32, %c0_33] : memref<9x128x128xbf16, #tpu.memory_space<vmem>>, vector<1x128x128xbf16>
    %42 = vector.shape_cast %41 : vector<1x128x128xbf16> to vector<128x128xbf16>
    %cst_34 = arith.constant dense<0.000000e+00> : vector<128x128xf32>
    %43 = tpu.matmul %40, %42, %cst_34 {dimension_numbers = #tpu.dot_dimension_numbers<[1], [0], [0], [1], [0, 0, 1, 1], [], []>} : vector<128x128xbf16>, vector<128x128xbf16>, vector<128x128xf32> -> vector<128x128xf32>
    %44 = arith.addf %39, %43 : vector<128x128xf32>
    %c33 = arith.constant 33 : index
    %c0_35 = arith.constant 0 : index
    %45 = vector.load %arg7[%c33, %c0_35] : memref<184x128xbf16, #tpu.memory_space<vmem>>, vector<128x128xbf16>
    %c5 = arith.constant 5 : index
    %c0_36 = arith.constant 0 : index
    %c0_37 = arith.constant 0 : index
    %46 = vector.load %arg2[%c5, %c0_36, %c0_37] : memref<9x128x128xbf16, #tpu.memory_space<vmem>>, vector<1x128x128xbf16>
    %47 = vector.shape_cast %46 : vector<1x128x128xbf16> to vector<128x128xbf16>
    %cst_38 = arith.constant dense<0.000000e+00> : vector<128x128xf32>
    %48 = tpu.matmul %45, %47, %cst_38 {dimension_numbers = #tpu.dot_dimension_numbers<[1], [0], [0], [1], [0, 0, 1, 1], [], []>} : vector<128x128xbf16>, vector<128x128xbf16>, vector<128x128xf32> -> vector<128x128xf32>
    %49 = arith.addf %44, %48 : vector<128x128xf32>
    %c47 = arith.constant 47 : index
    %c0_39 = arith.constant 0 : index
    %50 = vector.load %arg7[%c47, %c0_39] : memref<184x128xbf16, #tpu.memory_space<vmem>>, vector<128x128xbf16>
    %c6 = arith.constant 6 : index
    %c0_40 = arith.constant 0 : index
    %c0_41 = arith.constant 0 : index
    %51 = vector.load %arg2[%c6, %c0_40, %c0_41] : memref<9x128x128xbf16, #tpu.memory_space<vmem>>, vector<1x128x128xbf16>
    %52 = vector.shape_cast %51 : vector<1x128x128xbf16> to vector<128x128xbf16>
    %cst_42 = arith.constant dense<0.000000e+00> : vector<128x128xf32>
    %53 = tpu.matmul %50, %52, %cst_42 {dimension_numbers = #tpu.dot_dimension_numbers<[1], [0], [0], [1], [0, 0, 1, 1], [], []>} : vector<128x128xbf16>, vector<128x128xbf16>, vector<128x128xf32> -> vector<128x128xf32>
    %54 = arith.addf %49, %53 : vector<128x128xf32>
    %c48 = arith.constant 48 : index
    %c0_43 = arith.constant 0 : index
    %55 = vector.load %arg7[%c48, %c0_43] : memref<184x128xbf16, #tpu.memory_space<vmem>>, vector<128x128xbf16>
    %c7 = arith.constant 7 : index
    %c0_44 = arith.constant 0 : index
    %c0_45 = arith.constant 0 : index
    %56 = vector.load %arg2[%c7, %c0_44, %c0_45] : memref<9x128x128xbf16, #tpu.memory_space<vmem>>, vector<1x128x128xbf16>
    %57 = vector.shape_cast %56 : vector<1x128x128xbf16> to vector<128x128xbf16>
    %cst_46 = arith.constant dense<0.000000e+00> : vector<128x128xf32>
    %58 = tpu.matmul %55, %57, %cst_46 {dimension_numbers = #tpu.dot_dimension_numbers<[1], [0], [0], [1], [0, 0, 1, 1], [], []>} : vector<128x128xbf16>, vector<128x128xbf16>, vector<128x128xf32> -> vector<128x128xf32>
    %59 = arith.addf %54, %58 : vector<128x128xf32>
    %c49 = arith.constant 49 : index
    %c0_47 = arith.constant 0 : index
    %60 = vector.load %arg7[%c49, %c0_47] : memref<184x128xbf16, #tpu.memory_space<vmem>>, vector<128x128xbf16>
    %c8 = arith.constant 8 : index
    %c0_48 = arith.constant 0 : index
    %c0_49 = arith.constant 0 : index
    %61 = vector.load %arg2[%c8, %c0_48, %c0_49] : memref<9x128x128xbf16, #tpu.memory_space<vmem>>, vector<1x128x128xbf16>
    %62 = vector.shape_cast %61 : vector<1x128x128xbf16> to vector<128x128xbf16>
    %cst_50 = arith.constant dense<0.000000e+00> : vector<128x128xf32>
    %63 = tpu.matmul %60, %62, %cst_50 {dimension_numbers = #tpu.dot_dimension_numbers<[1], [0], [0], [1], [0, 0, 1, 1], [], []>} : vector<128x128xbf16>, vector<128x128xbf16>, vector<128x128xf32> -> vector<128x128xf32>
    %64 = arith.addf %59, %63 : vector<128x128xf32>
    %65 = vector.broadcast %19 : vector<1x128xf32> to vector<128x128xf32>
    %66 = arith.mulf %64, %65 : vector<128x128xf32>
    %67 = vector.broadcast %20 : vector<1x128xf32> to vector<128x128xf32>
    %68 = arith.addf %66, %67 : vector<128x128xf32>
    %cst_51 = arith.constant 0.000000e+00 : f32
    %69 = vector.broadcast %cst_51 : f32 to vector<128x128xf32>
    %70 = arith.maximumf %68, %69 : vector<128x128xf32>
    %71 = vector.shape_cast %70 : vector<128x128xf32> to vector<8x16x128xf32>
    %72 = vector.extract_strided_slice %71 {offsets = [0, 0, 0], sizes = [8, 8, 128], strides = [1, 1, 1]} : vector<8x16x128xf32> to vector<8x8x128xf32>
    %73 = arith.truncf %72 : vector<8x8x128xf32> to vector<8x8x128xbf16>
    %cst_52 = arith.constant 0.000000e+00 : bf16
    %74 = vector.broadcast %cst_52 : bf16 to vector<8x8x128xbf16>
    %75 = tpu.concatenate %73, %74 in 1 : vector<8x8x128xbf16>, vector<8x8x128xbf16> -> vector<8x16x128xbf16>
    %cst_53 = arith.constant 0.000000e+00 : bf16
    %76 = vector.broadcast %cst_53 : bf16 to vector<32x128xbf16>
    %c0_54 = arith.constant 0 : index
    %c0_55 = arith.constant 0 : index
    %77 = vector.load %arg8[%c0_54, %c0_55] : memref<184x128xbf16, #tpu.memory_space<vmem>>, vector<32x128xbf16>
    tpu.vector_store %arg8[%c0_54, %c0_55], %76 {strides = array<i32>} : memref<184x128xbf16, #tpu.memory_space<vmem>>, vector<32x128xbf16>,
    %78 = vector.shape_cast %75 : vector<8x16x128xbf16> to vector<128x128xbf16>
    %c32_56 = arith.constant 32 : index
    %c0_57 = arith.constant 0 : index
    %79 = vector.load %arg8[%c32_56, %c0_57] : memref<184x128xbf16, #tpu.memory_space<vmem>>, vector<128x128xbf16>
    tpu.vector_store %arg8[%c32_56, %c0_57], %78 {strides = array<i32>} : memref<184x128xbf16, #tpu.memory_space<vmem>>, vector<128x128xbf16>,
    %cst_58 = arith.constant 0.000000e+00 : bf16
    %80 = vector.broadcast %cst_58 : bf16 to vector<24x128xbf16>
    %c160_59 = arith.constant 160 : index
    %c0_60 = arith.constant 0 : index
    %81 = vector.load %arg8[%c160_59, %c0_60] : memref<184x128xbf16, #tpu.memory_space<vmem>>, vector<24x128xbf16>
    tpu.vector_store %arg8[%c160_59, %c0_60], %80 {strides = array<i32>} : memref<184x128xbf16, #tpu.memory_space<vmem>>, vector<24x128xbf16>,
    %c0_61 = arith.constant 0 : index
    %c0_62 = arith.constant 0 : index
    %82 = vector.load %arg5[%c0_61, %c0_62] : memref<2x128xf32, #tpu.memory_space<vmem>>, vector<1x128xf32>
    %c1_63 = arith.constant 1 : index
    %c0_64 = arith.constant 0 : index
    %83 = vector.load %arg5[%c1_63, %c0_64] : memref<2x128xf32, #tpu.memory_space<vmem>>, vector<1x128xf32>
    %c15_65 = arith.constant 15 : index
    %c0_66 = arith.constant 0 : index
    %84 = vector.load %arg8[%c15_65, %c0_66] : memref<184x128xbf16, #tpu.memory_space<vmem>>, vector<128x128xbf16>
    %c0_67 = arith.constant 0 : index
    %c0_68 = arith.constant 0 : index
    %c0_69 = arith.constant 0 : index
    %85 = vector.load %arg4[%c0_67, %c0_68, %c0_69] : memref<9x128x128xbf16, #tpu.memory_space<vmem>>, vector<1x128x128xbf16>
    %86 = vector.shape_cast %85 : vector<1x128x128xbf16> to vector<128x128xbf16>
    %cst_70 = arith.constant dense<0.000000e+00> : vector<128x128xf32>
    %87 = tpu.matmul %84, %86, %cst_70 {dimension_numbers = #tpu.dot_dimension_numbers<[1], [0], [0], [1], [0, 0, 1, 1], [], []>} : vector<128x128xbf16>, vector<128x128xbf16>, vector<128x128xf32> -> vector<128x128xf32>
    %c16_71 = arith.constant 16 : index
    %c0_72 = arith.constant 0 : index
    %88 = vector.load %arg8[%c16_71, %c0_72] : memref<184x128xbf16, #tpu.memory_space<vmem>>, vector<128x128xbf16>
    %c1_73 = arith.constant 1 : index
    %c0_74 = arith.constant 0 : index
    %c0_75 = arith.constant 0 : index
    %89 = vector.load %arg4[%c1_73, %c0_74, %c0_75] : memref<9x128x128xbf16, #tpu.memory_space<vmem>>, vector<1x128x128xbf16>
    %90 = vector.shape_cast %89 : vector<1x128x128xbf16> to vector<128x128xbf16>
    %cst_76 = arith.constant dense<0.000000e+00> : vector<128x128xf32>
    %91 = tpu.matmul %88, %90, %cst_76 {dimension_numbers = #tpu.dot_dimension_numbers<[1], [0], [0], [1], [0, 0, 1, 1], [], []>} : vector<128x128xbf16>, vector<128x128xbf16>, vector<128x128xf32> -> vector<128x128xf32>
    %92 = arith.addf %87, %91 : vector<128x128xf32>
    %c17_77 = arith.constant 17 : index
    %c0_78 = arith.constant 0 : index
    %93 = vector.load %arg8[%c17_77, %c0_78] : memref<184x128xbf16, #tpu.memory_space<vmem>>, vector<128x128xbf16>
    %c2_79 = arith.constant 2 : index
    %c0_80 = arith.constant 0 : index
    %c0_81 = arith.constant 0 : index
    %94 = vector.load %arg4[%c2_79, %c0_80, %c0_81] : memref<9x128x128xbf16, #tpu.memory_space<vmem>>, vector<1x128x128xbf16>
    %95 = vector.shape_cast %94 : vector<1x128x128xbf16> to vector<128x128xbf16>
    %cst_82 = arith.constant dense<0.000000e+00> : vector<128x128xf32>
    %96 = tpu.matmul %93, %95, %cst_82 {dimension_numbers = #tpu.dot_dimension_numbers<[1], [0], [0], [1], [0, 0, 1, 1], [], []>} : vector<128x128xbf16>, vector<128x128xbf16>, vector<128x128xf32> -> vector<128x128xf32>
    %97 = arith.addf %92, %96 : vector<128x128xf32>
    %c31_83 = arith.constant 31 : index
    %c0_84 = arith.constant 0 : index
    %98 = vector.load %arg8[%c31_83, %c0_84] : memref<184x128xbf16, #tpu.memory_space<vmem>>, vector<128x128xbf16>
    %c3_85 = arith.constant 3 : index
    %c0_86 = arith.constant 0 : index
    %c0_87 = arith.constant 0 : index
    %99 = vector.load %arg4[%c3_85, %c0_86, %c0_87] : memref<9x128x128xbf16, #tpu.memory_space<vmem>>, vector<1x128x128xbf16>
    %100 = vector.shape_cast %99 : vector<1x128x128xbf16> to vector<128x128xbf16>
    %cst_88 = arith.constant dense<0.000000e+00> : vector<128x128xf32>
    %101 = tpu.matmul %98, %100, %cst_88 {dimension_numbers = #tpu.dot_dimension_numbers<[1], [0], [0], [1], [0, 0, 1, 1], [], []>} : vector<128x128xbf16>, vector<128x128xbf16>, vector<128x128xf32> -> vector<128x128xf32>
    %102 = arith.addf %97, %101 : vector<128x128xf32>
    %c32_89 = arith.constant 32 : index
    %c0_90 = arith.constant 0 : index
    %103 = vector.load %arg8[%c32_89, %c0_90] : memref<184x128xbf16, #tpu.memory_space<vmem>>, vector<128x128xbf16>
    %c4_91 = arith.constant 4 : index
    %c0_92 = arith.constant 0 : index
    %c0_93 = arith.constant 0 : index
    %104 = vector.load %arg4[%c4_91, %c0_92, %c0_93] : memref<9x128x128xbf16, #tpu.memory_space<vmem>>, vector<1x128x128xbf16>
    %105 = vector.shape_cast %104 : vector<1x128x128xbf16> to vector<128x128xbf16>
    %cst_94 = arith.constant dense<0.000000e+00> : vector<128x128xf32>
    %106 = tpu.matmul %103, %105, %cst_94 {dimension_numbers = #tpu.dot_dimension_numbers<[1], [0], [0], [1], [0, 0, 1, 1], [], []>} : vector<128x128xbf16>, vector<128x128xbf16>, vector<128x128xf32> -> vector<128x128xf32>
    %107 = arith.addf %102, %106 : vector<128x128xf32>
    %c33_95 = arith.constant 33 : index
    %c0_96 = arith.constant 0 : index
    %108 = vector.load %arg8[%c33_95, %c0_96] : memref<184x128xbf16, #tpu.memory_space<vmem>>, vector<128x128xbf16>
    %c5_97 = arith.constant 5 : index
    %c0_98 = arith.constant 0 : index
    %c0_99 = arith.constant 0 : index
    %109 = vector.load %arg4[%c5_97, %c0_98, %c0_99] : memref<9x128x128xbf16, #tpu.memory_space<vmem>>, vector<1x128x128xbf16>
    %110 = vector.shape_cast %109 : vector<1x128x128xbf16> to vector<128x128xbf16>
    %cst_100 = arith.constant dense<0.000000e+00> : vector<128x128xf32>
    %111 = tpu.matmul %108, %110, %cst_100 {dimension_numbers = #tpu.dot_dimension_numbers<[1], [0], [0], [1], [0, 0, 1, 1], [], []>} : vector<128x128xbf16>, vector<128x128xbf16>, vector<128x128xf32> -> vector<128x128xf32>
    %112 = arith.addf %107, %111 : vector<128x128xf32>
    %c47_101 = arith.constant 47 : index
    %c0_102 = arith.constant 0 : index
    %113 = vector.load %arg8[%c47_101, %c0_102] : memref<184x128xbf16, #tpu.memory_space<vmem>>, vector<128x128xbf16>
    %c6_103 = arith.constant 6 : index
    %c0_104 = arith.constant 0 : index
    %c0_105 = arith.constant 0 : index
    %114 = vector.load %arg4[%c6_103, %c0_104, %c0_105] : memref<9x128x128xbf16, #tpu.memory_space<vmem>>, vector<1x128x128xbf16>
    %115 = vector.shape_cast %114 : vector<1x128x128xbf16> to vector<128x128xbf16>
    %cst_106 = arith.constant dense<0.000000e+00> : vector<128x128xf32>
    %116 = tpu.matmul %113, %115, %cst_106 {dimension_numbers = #tpu.dot_dimension_numbers<[1], [0], [0], [1], [0, 0, 1, 1], [], []>} : vector<128x128xbf16>, vector<128x128xbf16>, vector<128x128xf32> -> vector<128x128xf32>
    %117 = arith.addf %112, %116 : vector<128x128xf32>
    %c48_107 = arith.constant 48 : index
    %c0_108 = arith.constant 0 : index
    %118 = vector.load %arg8[%c48_107, %c0_108] : memref<184x128xbf16, #tpu.memory_space<vmem>>, vector<128x128xbf16>
    %c7_109 = arith.constant 7 : index
    %c0_110 = arith.constant 0 : index
    %c0_111 = arith.constant 0 : index
    %119 = vector.load %arg4[%c7_109, %c0_110, %c0_111] : memref<9x128x128xbf16, #tpu.memory_space<vmem>>, vector<1x128x128xbf16>
    %120 = vector.shape_cast %119 : vector<1x128x128xbf16> to vector<128x128xbf16>
    %cst_112 = arith.constant dense<0.000000e+00> : vector<128x128xf32>
    %121 = tpu.matmul %118, %120, %cst_112 {dimension_numbers = #tpu.dot_dimension_numbers<[1], [0], [0], [1], [0, 0, 1, 1], [], []>} : vector<128x128xbf16>, vector<128x128xbf16>, vector<128x128xf32> -> vector<128x128xf32>
    %122 = arith.addf %117, %121 : vector<128x128xf32>
    %c49_113 = arith.constant 49 : index
    %c0_114 = arith.constant 0 : index
    %123 = vector.load %arg8[%c49_113, %c0_114] : memref<184x128xbf16, #tpu.memory_space<vmem>>, vector<128x128xbf16>
    %c8_115 = arith.constant 8 : index
    %c0_116 = arith.constant 0 : index
    %c0_117 = arith.constant 0 : index
    %124 = vector.load %arg4[%c8_115, %c0_116, %c0_117] : memref<9x128x128xbf16, #tpu.memory_space<vmem>>, vector<1x128x128xbf16>
    %125 = vector.shape_cast %124 : vector<1x128x128xbf16> to vector<128x128xbf16>
    %cst_118 = arith.constant dense<0.000000e+00> : vector<128x128xf32>
    %126 = tpu.matmul %123, %125, %cst_118 {dimension_numbers = #tpu.dot_dimension_numbers<[1], [0], [0], [1], [0, 0, 1, 1], [], []>} : vector<128x128xbf16>, vector<128x128xbf16>, vector<128x128xf32> -> vector<128x128xf32>
    %127 = arith.addf %122, %126 : vector<128x128xf32>
    %128 = vector.broadcast %82 : vector<1x128xf32> to vector<128x128xf32>
    %129 = arith.mulf %127, %128 : vector<128x128xf32>
    %130 = vector.broadcast %83 : vector<1x128xf32> to vector<128x128xf32>
    %131 = arith.addf %129, %130 : vector<128x128xf32>
    %cst_119 = arith.constant 0.000000e+00 : f32
    %132 = vector.broadcast %cst_119 : f32 to vector<128x128xf32>
    %133 = arith.maximumf %131, %132 : vector<128x128xf32>
    %134 = vector.shape_cast %133 : vector<128x128xf32> to vector<8x16x128xf32>
    %135 = vector.extract_strided_slice %134 {offsets = [0, 0, 0], sizes = [8, 8, 128], strides = [1, 1, 1]} : vector<8x16x128xf32> to vector<8x8x128xf32>
    %136 = arith.truncf %135 : vector<8x8x128xf32> to vector<8x8x128xbf16>
    %c0_120 = arith.constant 0 : index
    %c0_121 = arith.constant 0 : index
    %c0_122 = arith.constant 0 : index
    %c0_123 = arith.constant 0 : index
    %137 = vector.load %arg6[%c0_120, %c0_121, %c0_122, %c0_123] : memref<1x8x8x128xbf16, #tpu.memory_space<vmem>>, vector<1x8x8x128xbf16>
    %138 = vector.shape_cast %137 : vector<1x8x8x128xbf16> to vector<8x8x128xbf16>
    %139 = vector.shape_cast %136 : vector<8x8x128xbf16> to vector<1x8x8x128xbf16>
    tpu.vector_store %arg6[%c0_120, %c0_121, %c0_122, %c0_123], %139 {strides = array<i32>} : memref<1x8x8x128xbf16, #tpu.memory_space<vmem>>, vector<1x8x8x128xbf16>,
    return
  }
  func.func @transform_0(%arg0: i32) -> (i32, i32, i32, i32) {
    %c0_i32 = arith.constant 0 : i32
    %c0_i32_0 = arith.constant 0 : i32
    %c0_i32_1 = arith.constant 0 : i32
    %c0_i32_2 = arith.constant 0 : i32
    return %arg0, %c0_i32, %c0_i32_0, %c0_i32_1 : i32, i32, i32, i32
  }
  func.func @transform_1(%arg0: i32) -> (i32, i32, i32) {
    %c0_i32 = arith.constant 0 : i32
    %c0_i32_0 = arith.constant 0 : i32
    %c0_i32_1 = arith.constant 0 : i32
    %c0_i32_2 = arith.constant 0 : i32
    return %c0_i32, %c0_i32_0, %c0_i32_1 : i32, i32, i32
  }
  func.func @transform_2(%arg0: i32) -> (i32, i32) {
    %c0_i32 = arith.constant 0 : i32
    %c0_i32_0 = arith.constant 0 : i32
    %c0_i32_1 = arith.constant 0 : i32
    return %c0_i32, %c0_i32_0 : i32, i32
  }
  func.func @transform_3(%arg0: i32) -> (i32, i32, i32) {
    %c0_i32 = arith.constant 0 : i32
    %c0_i32_0 = arith.constant 0 : i32
    %c0_i32_1 = arith.constant 0 : i32
    %c0_i32_2 = arith.constant 0 : i32
    return %c0_i32, %c0_i32_0, %c0_i32_1 : i32, i32, i32
  }
  func.func @transform_4(%arg0: i32) -> (i32, i32) {
    %c0_i32 = arith.constant 0 : i32
    %c0_i32_0 = arith.constant 0 : i32
    %c0_i32_1 = arith.constant 0 : i32
    return %c0_i32, %c0_i32_0 : i32, i32
  }
  func.func @transform_5(%arg0: i32) -> (i32, i32, i32, i32) {
    %c0_i32 = arith.constant 0 : i32
    %c0_i32_0 = arith.constant 0 : i32
    %c0_i32_1 = arith.constant 0 : i32
    %c0_i32_2 = arith.constant 0 : i32
    return %arg0, %c0_i32, %c0_i32_0, %c0_i32_1 : i32, i32, i32, i32
  }
}

</mosaic_0001>

<bundles_post_ra>
// kernel: pallas_encoder.3
= control target key start
LH: loop header
LB: loop body
LE: loop exit
PB: predicated region body
PF: predicated region fallthrough
CT: control target
= control target key end

     0   :  { %10 = vsyncpa [#allocation5], 0  ;;  %s6370_s18 = smov 0   ;;  %s7016_s0 = inlined_call_operand.vmem [shape: bf16[2,16,8,256], index: 0, kind: input, shape index: {}]   ;;  %s7017_s1 = inlined_call_operand.vmem [shape: bf16[9,128,128], index: 1, kind: input, shape index: {}]   ;;  %s7018_s2 = inlined_call_operand.vmem [shape: f32[2,128], index: 2, kind: input, shape index: {}]   ;;  %s7019_s3 = inlined_call_operand.hbm [shape: bf16[9,128,128], index: 3, kind: input, shape index: {}]   ;;  %s7020_s4 = inlined_call_operand.vmem [shape: f32[2,128], index: 4, kind: input, shape index: {}]   ;;  %s7021_s5 = inlined_call_operand.vmem [shape: bf16[2,8,8,128], index: 5, kind: output, shape index: {}]  }
   0x1 LB: > { %s174_s21 = sshll.u32 %s7019_s3, 4  ;;  %s4562_s22 = sadd.s32 4294967295, %s6334_s18   ;;  %s6334_s18 = sphi %s6370_s18, %s16_s18   ;;  %s175_s21 = int_to_ptr.hbm [resolvable:$true] %s174_s21 }
   0x2   : > { %p4564_p0 = scmp.ge.s32.totalorder %s6334_s18, 1  ;;  %p157_p1 = scmp.lt.s32.totalorder %s6334_s18, 3 }
   0x3   : > { %p6276_p2 = scmp.eq.s32.totalorder %s4562_s22, 0  ;;  %s6336_s23 = smov [#allocation4]  }
   0x4   : > { %p158_p3 = pnand %p4564_p0, %p157_p1  ;;  %s176_s24 = sshll.u32 %s6336_s23, 4  ;;  %s177_s24 = int_to_ptr.vmem [resolvable:$true] %s176_s24 }
   0x5   : > { %s6337_s25 = smov 64   ;;  %s6338_s26 = smov 4  }
   0x6   : > { %p6272_p4 = pneg %p158_p3  ;;  %203 = sbr.rel (%p158_p3) target bundleno = 891 (0x37b), region = 40 }
   0x8   : > { %p6273_p5 = pnand %p6276_p2, %p6272_p4 }
   0xa   : > { %6275 = dma.hbm_to_vmem [thread:$0]  (!%p6273_p5), %s175_s21, 9216, %s177_s24, [#allocation5], %s6337_s25, %s6337_s25, %s6338_s26  }
   0xb   : > { %6329 = dma.done.wait (%p6276_p2), [#allocation5], 9216  }
   0xc   : > { %6331 = vsyncadd (%p6276_p2), [#allocation5], 4294958080  ;;  %p232_p6 = scmp.lt.s32.totalorder %s4562_s22, 1  ;;  %v5488_v0 = vld [vmem:[%s7017_s1 + $0x78] sm:$0xff]  ;;  %v5487_v2 = vld [vmem:[%s7017_s1 + $0x70] sm:$0xff]  ;;  %v6339_v4 = vmov 0  }
   0xd   : > { %v5480_v1 = vld [vmem:[%s7017_s1 + $0x38] sm:$0xff]  ;;  %6192 = vmatpush.bf16.msra.mxu2 %v5488_v0  ;;  %v5479_v3 = vld [vmem:[%s7017_s1 + $0x30] sm:$0xff]  ;;  %648 = vmatpush.bf16.msra.mxu0 %v5488_v0  ;;  %423 = vst [vmem:[#allocation2 + $0x8] sm:$0xf] %v6339_v4  ;;  %v5486_v5 = vld [vmem:[%s7017_s1 + $0x68] sm:$0xff]  ;;  %vm403_vm0 = vcmask 1043456  }
   0xe   : > { %s7023_s22 = smov (!%p232_p6, %s4562_s22), 1  ;;  %6200 = vmatpush.bf16.msra.mxu3 %v5480_v1  ;;  %837 = vmatpush.bf16.msra.mxu1 %v5480_v1  ;;  %424 = vst [vmem:[#allocation2 + $0xc] sm:$0xf] %v6339_v4  ;;  %v5478_v6 = vld [vmem:[%s7017_s1 + $0x28] sm:$0xff]  ;;  %v5485_v30 = vld [vmem:[%s7017_s1 + $0x60] sm:$0xff]  ;;  %v5484_v48 = vld [vmem:[%s7017_s1 + $0x58] sm:$0xff] }
   0xf   : > { %s5471_s27 = sshll.u32 %s7023_s22, 7  ;;  %422 = vst [vmem:[#allocation2 + $0x4] sm:$0xf] %v6339_v4  ;;  %v5477_v31 = vld [vmem:[%s7017_s1 + $0x20] sm:$0xff]  ;;  %v5476_v49 = vld [vmem:[%s7017_s1 + $0x18] sm:$0xff]  ;;  %v5483_v1 = vld [vmem:[%s7017_s1 + $0x50] sm:$0xff] }
  0x10   : > { %s6399_s13 = scalar_lea.vmem %s7016_s0, %s5471_s27  ;;  %497 = vst [vmem:[#allocation2 + $0x50] sm:$0xf] %v6339_v4  ;;  %vm700_vm1 = vsmask.f32 4352  ;;  %vm955_vm2 = vsmask.f32 7424 }
  0x11   : > { %v249_v7 = vld [vmem:[%s6399_s13 + $0x30] sm:$0xff]  ;;  %v250_v8 = vld [vmem:[%s6399_s13 + $0x38] sm:$0xff]  ;;  %6193 = vmatpush.bf16.msra.mxu2 %v5487_v2  ;;  %v247_v13 = vld [vmem:[%s6399_s13 + $0x20] sm:$0xff]  ;;  %649 = vmatpush.bf16.msra.mxu0 %v5487_v2  ;;  %498 = vst [vmem:[#allocation2 + $0x54] sm:$0xf] %v6339_v4  ;;  %s5472_s26 = sshll.u32 %s7023_s22, 5 }
  0x12   : > { %6201 = vmatpush.bf16.msra.mxu3 %v5479_v3  ;;  %v265_v9 = vunpack.c.l.bf16 %v249_v7  ;;  %v266_v10 = vunpack.c.l.bf16 %v250_v8  ;;  %v297_v11 = vrot.slane %v249_v7, 4  ;;  %v298_v12 = vrot.slane %v250_v8, 4  ;;  %v248_v14 = vld [vmem:[%s6399_s13 + $0x28] sm:$0xff]  ;;  %v251_v15 = vld [vmem:[%s6399_s13 + $0x40] sm:$0xff]  ;;  %838 = vmatpush.bf16.msra.mxu1 %v5479_v3  ;;  %499 = vst [vmem:[#allocation2 + $0x58] sm:$0xf] %v6339_v4  ;;  %s7004_s29 = scalar_lea.vmem %s7021_s5, %s5472_s26 }
  0x13   : > { %v252_v16 = vld [vmem:[%s6399_s13 + $0x48] sm:$0xff]  ;;  %v263_v17 = vunpack.c.l.bf16 %v247_v13  ;;  %v264_v18 = vunpack.c.l.bf16 %v248_v14  ;;  %v295_v19 = vrot.slane %v247_v13, 4  ;;  %v267_v22 = vunpack.c.l.bf16 %v251_v15  ;;  %v243_v24 = vld [vmem:[%s6399_s13] sm:$0xff]  ;;  %2464 = vst [vmem:[#allocation3 + $0x4] sm:$0xf] %v6339_v4  ;;  %v253_v40 = vld [vmem:[%s6399_s13 + $0x50] sm:$0xff] }
  0x14   : > { %v329_v20 = vunpack.c.l.bf16 %v297_v11  ;;  %v330_v21 = vunpack.c.l.bf16 %v298_v12  ;;  %v296_v23 = vrot.slane %v248_v14, 4  ;;  %v268_v25 = vunpack.c.l.bf16 %v252_v16  ;;  %v244_v29 = vld [vmem:[%s6399_s13 + $0x8] sm:$0xff]  ;;  %2465 = vst [vmem:[#allocation3 + $0x8] sm:$0xf] %v6339_v4  ;;  %v254_v53 = vld [vmem:[%s6399_s13 + $0x58] sm:$0xff]  ;;  %v5475_v2 = vld [vmem:[%s7017_s1 + $0x10] sm:$0xff] }
  0x15   : > { %v299_v26 = vrot.slane %v251_v15, 4  ;;  %v300_v27 = vrot.slane %v252_v16, 4  ;;  %v327_v28 = vunpack.c.l.bf16 %v295_v19  ;;  %6194 = vmatpush.bf16.msra.mxu2 %v5486_v5  ;;  %v259_v35 = vunpack.c.l.bf16 %v243_v24  ;;  %650 = vmatpush.bf16.msra.mxu0 %v5486_v5  ;;  %2466 = vst [vmem:[#allocation3 + $0xc] sm:$0xf] %v6339_v4  ;;  %v6007_v12 = vld [vmem:[#allocation2 + $0x4] sm:$0xf0]  }
  0x16   : > { %6202 = vmatpush.bf16.msra.mxu3 %v5478_v6  ;;  %v345_v32 = vmax.f32 %v265_v9, %v329_v20  ;;  %v346_v33 = vmax.f32 %v266_v10, %v330_v21  ;;  %v328_v34 = vunpack.c.l.bf16 %v296_v23  ;;  %839 = vmatpush.bf16.msra.mxu1 %v5478_v6  ;;  %v291_v39 = vrot.slane %v243_v24, 4  ;;  %2539 = vst [vmem:[#allocation3 + $0x50] sm:$0xf] %v6339_v4  ;;  %v5887_v11 = vld [vmem:[#allocation2 + $0x4] sm:$0x8]  ;;  %v245_v19 = vld [vmem:[%s6399_s13 + $0x10] sm:$0xff] }
  0x17   : > { %v331_v36 = vunpack.c.l.bf16 %v299_v26  ;;  %v332_v37 = vunpack.c.l.bf16 %v300_v27  ;;  %v343_v38 = vmax.f32 %v263_v17, %v327_v28  ;;  %v260_v43 = vunpack.c.l.bf16 %v244_v29  ;;  %2540 = vst [vmem:[#allocation3 + $0x54] sm:$0xf] %v6339_v4  ;;  %v5482_v20 = vld [vmem:[%s7017_s1 + $0x48] sm:$0xff] }
  0x18   : > { %v390_v41 = vmax.f32 %v345_v32, %v346_v33  ;;  %v344_v42 = vmax.f32 %v264_v18, %v328_v34  ;;  %v292_v44 = vrot.slane %v244_v29, 4  ;;  %v323_v47 = vunpack.c.l.bf16 %v291_v39  ;;  %2541 = vst [vmem:[#allocation3 + $0x58] sm:$0xf] %v6339_v4  ;;  %v5474_v21 = vld [vmem:[%s7017_s1 + $0x8] sm:$0xff] }
  0x19   : > { %v347_v45 = vmax.f32 %v267_v22, %v331_v36  ;;  %v348_v46 = vmax.f32 %v268_v25, %v332_v37  ;;  %6195 = vmatpush.bf16.msra.mxu2 %v5485_v30  ;;  %v301_v54 = vrot.slane %v253_v40, 4  ;;  %651 = vmatpush.bf16.msra.mxu0 %v5485_v30  ;;  %v269_v60 = vunpack.c.l.bf16 %v253_v40  ;;  %v246_v25 = vld [vmem:[%s6399_s13 + $0x18] sm:$0xff]  ;;  %v255_v30 = vld [vmem:[%s6399_s13 + $0x60] sm:$0xff] }
  0x1a   : > { %6203 = vmatpush.bf16.msra.mxu3 %v5477_v31  ;;  %v398_v50 = vpack.c.bf16 %v390_v41, %v390_v41  ;;  %v389_v51 = vmax.f32 %v343_v38, %v344_v42  ;;  %v324_v52 = vunpack.c.l.bf16 %v292_v44  ;;  %840 = vmatpush.bf16.msra.mxu1 %v5477_v31  ;;  %v339_v56 = vmax.f32 %v259_v35, %v323_v47  ;;  %v256_v31 = vld [vmem:[%s6399_s13 + $0x68] sm:$0xff]  ;;  %v5481_v40 = vld [vmem:[%s7017_s1 + $0x40] sm:$0xff] }
  0x1b   : > { %v391_v55 = vmax.f32 %v347_v45, %v348_v46  ;;  %v302_v0 = vrot.slane %v254_v53, 4  ;;  %v270_v5 = vunpack.c.l.bf16 %v254_v53  ;;  %v333_v6 = vunpack.c.l.bf16 %v301_v54  ;;  %v5473_v41 = vld [vmem:[%s7017_s1] sm:$0xff]  ;;  %v5504_v46 = vld [vmem:[%s7017_s1 + $0xb8] sm:$0xff] }
  0x1c   : > { %v412_v57 = vsel %vm403_vm0, %v398_v50, 0  ;;  %v397_v58 = vpack.c.bf16 %v389_v51, %v389_v51  ;;  %v340_v59 = vmax.f32 %v260_v43, %v324_v52  ;;  %v5888_v24 = vor.u32 %v6007_v12, %v5887_v11  ;;  %v5512_v51 = vld [vmem:[%s7017_s1 + $0xf8] sm:$0xff] }
  0x1d   : > { %v439_v61 = vunpack.c.l.b16 %v412_v57  ;;  %v440_v62 = vunpack.c.h.b16 %v412_v57  ;;  %v399_v63 = vpack.c.bf16 %v391_v55, %v391_v55  ;;  %6196 = vmatpush.bf16.msra.mxu2 %v5484_v48  ;;  %652 = vmatpush.bf16.msra.mxu0 %v5484_v48  ;;  %v334_v17 = vunpack.c.l.bf16 %v302_v0  ;;  %v5520_v55 = vld [vmem:[%s7017_s1 + $0x138] sm:$0xff] }
  0x1e   : > { %6204 = vmatpush.bf16.msra.mxu3 %v5476_v49  ;;  %v6449_v3 = vsel %vm403_vm0, %v397_v58, 0  ;;  %v387_v4 = vmax.f32 %v339_v56, %v340_v59  ;;  %841 = vmatpush.bf16.msra.mxu1 %v5476_v49  ;;  %v349_v18 = vmax.f32 %v269_v60, %v333_v6  ;;  %v261_v32 = vunpack.c.l.bf16 %v245_v19 }
  0x1f   : > { %v455_v7 = vpack.c.b16 %v439_v61, %v439_v61  ;;  %v456_v8 = vpack.c.b16 %v440_v62, %v440_v62  ;;  %v414_v9 = vsel %vm403_vm0, %v399_v63, 0  ;;  %v438_v10 = vunpack.c.h.b16 %v6449_v3 }
  0x20   : > { %v441_v13 = vunpack.c.l.b16 %v414_v9  ;;  %v395_v14 = vpack.c.bf16 %v387_v4, %v387_v4  ;;  %v442_v16 = vunpack.c.h.b16 %v414_v9  ;;  %v350_v28 = vmax.f32 %v270_v5, %v334_v17 }
  0x21   : > { %487 = vst [vmem:[#allocation2 + $0x28] sm:$0xf] %v455_v7  ;;  %v454_v15 = vpack.c.b16 %v438_v10, %v438_v10  ;;  %6197 = vmatpush.bf16.msra.mxu2 %v5483_v1  ;;  %653 = vmatpush.bf16.msra.mxu0 %v5483_v1  ;;  %v262_v33 = vunpack.c.l.bf16 %v246_v25  ;;  %v293_v34 = vrot.slane %v245_v19, 4  ;;  %v271_v35 = vunpack.c.l.bf16 %v255_v30  ;;  %v5877_v1 = vld [vmem:[#allocation2 + $0x8] sm:$0xff]   ;;  %v5511_v10 = vld [vmem:[%s7017_s1 + $0xf0] sm:$0xff] }
  0x22   : > { %6205 = vmatpush.bf16.msra.mxu3 %v5475_v2  ;;  %488 = vst [vmem:[#allocation2 + $0x2c] sm:$0xf] %v456_v8  ;;  %v457_v22 = vpack.c.b16 %v441_v13, %v441_v13  ;;  %v406_v23 = vsel %vm403_vm0, %v395_v14, 0  ;;  %842 = vmatpush.bf16.msra.mxu1 %v5475_v2  ;;  %v458_v27 = vpack.c.b16 %v442_v16, %v442_v16  ;;  %v294_v39 = vrot.slane %v246_v25, 4  ;;  %v5503_v2 = vld [vmem:[%s7017_s1 + $0xb0] sm:$0xff] }
  0x23   : > { %486 = vst [vmem:[#allocation2 + $0x24] sm:$0xf] %v454_v15  ;;  %v433_v26 = vunpack.c.l.b16 %v406_v23  ;;  %v434_v29 = vunpack.c.h.b16 %v406_v23  ;;  %v392_v37 = vmax.f32 %v349_v18, %v350_v28  ;;  %v325_v42 = vunpack.c.l.bf16 %v293_v34  ;;  %v5519_v15 = vld [vmem:[%s7017_s1 + $0x130] sm:$0xff]  ;;  %v5502_v23 = vld [vmem:[%s7017_s1 + $0xa8] sm:$0xff] }
  0x24   : > { %489 = vst [vmem:[#allocation2 + $0x30] sm:$0xf] %v457_v22  ;;  %v272_v43 = vunpack.c.l.bf16 %v256_v31  ;;  %v303_v44 = vrot.slane %v255_v30, 4  ;;  %v304_v45 = vrot.slane %v256_v31, 4  ;;  %v702_v47 = vshrl.u32 %v5888_v24, 16 }
  0x25   : > { %v449_v36 = vpack.c.b16 %v433_v26, %v433_v26  ;;  %490 = vst [vmem:[#allocation2 + $0x34] sm:$0xf] %v458_v27  ;;  %v450_v38 = vpack.c.b16 %v434_v29, %v434_v29  ;;  %6198 = vmatpush.bf16.msra.mxu2 %v5482_v20  ;;  %654 = vmatpush.bf16.msra.mxu0 %v5482_v20  ;;  %v705_v48 = vshll.u32 %v5888_v24, 16  ;;  %v326_v50 = vunpack.c.l.bf16 %v294_v39 }
  0x26   : > { %6206 = vmatpush.bf16.msra.mxu3 %v5474_v21  ;;  %843 = vmatpush.bf16.msra.mxu1 %v5474_v21  ;;  %v400_v49 = vpack.c.bf16 %v392_v37, %v392_v37  ;;  %v341_v52 = vmax.f32 %v261_v32, %v325_v42  ;;  %v335_v53 = vunpack.c.l.bf16 %v303_v44  ;;  %v336_v54 = vunpack.c.l.bf16 %v304_v45  ;;  %v5510_v32 = vld [vmem:[%s7017_s1 + $0xe8] sm:$0xff] }
  0x27   : > { %481 = vst [vmem:[#allocation2 + $0x10] sm:$0xf] %v449_v36  ;;  %v342_v57 = vmax.f32 %v262_v33, %v326_v50  ;;  %v6483_v4 = vrot.slane %v702_v47, 3  ;;  %v6485_v5 = vrot.slane %v705_v48, 4  ;;  %v437_v7 = vunpack.c.l.b16 %v6449_v3  ;;  %v5518_v33 = vld [vmem:[%s7017_s1 + $0x128] sm:$0xff]  ;;  %v5509_v47 = vld [vmem:[%s7017_s1 + $0xe0] sm:$0xff] }
  0x28   : > { %482 = vst [vmem:[#allocation2 + $0x14] sm:$0xf] %v450_v38  ;;  %v416_v56 = vsel %vm403_vm0, %v400_v49, 0  ;;  %v351_v62 = vmax.f32 %v271_v35, %v335_v53  ;;  %v352_v63 = vmax.f32 %v272_v43, %v336_v54  ;;  %v5517_v48 = vld [vmem:[%s7017_s1 + $0x120] sm:$0xff]  ;;  %v5500_v53 = vld [vmem:[%s7017_s1 + $0x98] sm:$0xff] }
  0x29   : > { %6199 = vmatpush.bf16.msra.mxu2 %v5481_v40  ;;  %v5881_v58 = vld [vmem:[#allocation2 + $0x28] sm:$0xff]   ;;  %v443_v60 = vunpack.c.l.b16 %v416_v56  ;;  %v444_v61 = vunpack.c.h.b16 %v416_v56  ;;  %655 = vmatpush.bf16.msra.mxu0 %v5481_v40  ;;  %v388_v6 = vmax.f32 %v341_v52, %v342_v57  ;;  %v453_v20 = vpack.c.b16 %v437_v7, %v437_v7  ;;  %v5536_v54 = vld [vmem:[%s7017_s1 + $0x178] sm:$0xff] }
  0x2a   : > { %6207 = vmatpush.bf16.msra.mxu3 %v5473_v41  ;;  %v6015_v59 = vld [vmem:[#allocation2 + $0x24] sm:$0xff]   ;;  %844 = vmatpush.bf16.msra.mxu1 %v5473_v41  ;;  %v393_v3 = vmax.f32 %v351_v62, %v352_v63  ;;  %v708_v31 = vor.u32 %v6485_v5, %v6483_v4  ;;  %v5508_v57 = vld [vmem:[%s7017_s1 + $0xd8] sm:$0xff] }
  0x2b   : > { %v6017_v0 = vld [vmem:[#allocation2 + $0x2c] sm:$0xff]   ;;  %v737_v8 = vshrl.u32 %v6015_v59, 16  ;;  %v740_v9 = vshll.u32 %v6015_v59, 16  ;;  %v459_v11 = vpack.c.b16 %v443_v60, %v443_v60  ;;  %v460_v12 = vpack.c.b16 %v444_v61, %v444_v61  ;;  %485 = vst [vmem:[#allocation2 + $0x20] sm:$0xf] %v453_v20  ;;  %v5501_v41 = vld [vmem:[%s7017_s1 + $0xa0] sm:$0xff] }
  0x2c   : > { %672 = vmatmul.bf16.vlgmr.msra.gmra.mxu2 %v5881_v58  ;;  %v746_v13 = vshrl.u32 %v6017_v0, 16  ;;  %v749_v14 = vshll.u32 %v6017_v0, 16  ;;  %v396_v16 = vpack.c.bf16 %v388_v6, %v388_v6  ;;  %656 = vmatmul.bf16.vlgmr.msra.gmra.mxu0 %v5877_v1  ;;  %v401_v25 = vpack.c.bf16 %v393_v3, %v393_v3  ;;  %v6530_v58 = vld [vmem:[#allocation2 + $0x30] sm:$0xff]   ;;  %v5516_v62 = vld [vmem:[%s7017_s1 + $0x118] sm:$0xff]  ;;  %v5534_v3 = vld [vmem:[%s7017_s1 + $0x168] sm:$0xff] }
  0x2d   : > { %1080 = vmatpush.bf16.msrb.mxu2 %v5504_v46  ;;  %1472 = vmatpush.bf16.msrb.mxu0 %v5520_v55  ;;  %v739_v17 = vrot.slane %v737_v8, 3  ;;  %v742_v18 = vrot.slane %v740_v9, 4  ;;  %491 = vst [vmem:[#allocation2 + $0x38] sm:$0xf] %v459_v11  ;;  %v5499_v61 = vld [vmem:[%s7017_s1 + $0x90] sm:$0xff] }
  0x2e   : > { %1342 = vmatpush.bf16.msrb.mxu3 %v5512_v51  ;;  %v6009_v19 = vld [vmem:[#allocation2 + $0xc] sm:$0xff]   ;;  %v748_v21 = vrot.slane %v746_v13, 3  ;;  %v751_v22 = vrot.slane %v749_v14, 4  ;;  %v408_v24 = vsel %vm403_vm0, %v396_v16, 0  ;;  %492 = vst [vmem:[#allocation2 + $0x3c] sm:$0xf] %v460_v12  ;;  %1722 = vmatpush.bf16.msrb.mxu1 %v5536_v54 }
  0x2f   : > { %v6498_v26 = vor.u32 %v742_v18, %v739_v17  ;;  %v710_v27 = vshrl.u32 %v6009_v19, 16  ;;  %v713_v28 = vshll.u32 %v6009_v19, 16  ;;  %v435_v29 = vunpack.c.l.b16 %v408_v24  ;;  %v6532_v59 = vld [vmem:[#allocation2 + $0x10] sm:$0xff]   ;;  %v5498_v12 = vld [vmem:[%s7017_s1 + $0x88] sm:$0xff]  ;;  %v5497_v17 = vld [vmem:[%s7017_s1 + $0x80] sm:$0xff] }
  0x30   : > { %v752_v30 = vor.u32 %v751_v22, %v748_v21  ;;  %v418_v34 = vsel %vm403_vm0, %v401_v25, 0  ;;  %v436_v35 = vunpack.c.h.b16 %v408_v24  ;;  %v5535_v9 = vld [vmem:[%s7017_s1 + $0x170] sm:$0xff]  ;;  %v5506_v13 = vld [vmem:[%s7017_s1 + $0xc8] sm:$0xff]  ;;  %v5505_v18 = vld [vmem:[%s7017_s1 + $0xc0] sm:$0xff] }
  0x31   : > { %1081 = vmatpush.bf16.msrb.mxu2 %v5503_v2  ;;  %1473 = vmatpush.bf16.msrb.mxu0 %v5519_v15  ;;  %v712_v36 = vrot.slane %v710_v27, 3  ;;  %v715_v37 = vrot.slane %v713_v28, 4  ;;  %v451_v38 = vpack.c.b16 %v435_v29, %v435_v29  ;;  %v445_v39 = vunpack.c.l.b16 %v418_v34  ;;  %v5507_v2 = vld [vmem:[%s7017_s1 + $0xd0] sm:$0xff]  ;;  %v5514_v19 = vld [vmem:[%s7017_s1 + $0x108] sm:$0xff]  ;;  %v5533_v24 = vld [vmem:[%s7017_s1 + $0x160] sm:$0xff] }
  0x32   : > { %1343 = vmatpush.bf16.msrb.mxu3 %v5511_v10  ;;  %v753_v40 = vsel %vm700_vm1, %v6498_v26, %v752_v30  ;;  %v452_v42 = vpack.c.b16 %v436_v35, %v436_v35  ;;  %v446_v43 = vunpack.c.h.b16 %v418_v34  ;;  %1723 = vmatpush.bf16.msrb.mxu1 %v5535_v9  ;;  %v5515_v16 = vld [vmem:[%s7017_s1 + $0x110] sm:$0xff]  ;;  %v5513_v29 = vld [vmem:[%s7017_s1 + $0x100] sm:$0xff]  ;;  %v5532_v34 = vld [vmem:[%s7017_s1 + $0x158] sm:$0xff] }
  0x33   : > { %861 = vmatmul.bf16.vlgmr.msra.gmra.mxu3 %v753_v40  ;;  %v716_v44 = vor.u32 %v715_v37, %v712_v36  ;;  %483 = vst [vmem:[#allocation2 + $0x18] sm:$0xf] %v451_v38  ;;  %v461_v45 = vpack.c.b16 %v445_v39, %v445_v39  ;;  %v5531_v38 = vld [vmem:[%s7017_s1 + $0x150] sm:$0xff]  ;;  %v5544_v40 = vld [vmem:[%s7017_s1 + $0x1b8] sm:$0xff]  ;;  %v6023_v54 = vld [vmem:[#allocation2 + $0xc] sm:$0x8] }
  0x34   : > { %v6019_v46 = vld [vmem:[#allocation2 + $0x34] sm:$0xff]   ;;  %484 = vst [vmem:[#allocation2 + $0x1c] sm:$0xf] %v452_v42  ;;  %v462_v49 = vpack.c.b16 %v446_v43, %v446_v43 }
  0x35   : > { %1082 = vmatpush.bf16.msrb.mxu2 %v5502_v23  ;;  %1474 = vmatpush.bf16.msrb.mxu0 %v5518_v33  ;;  %v717_v50 = vsel %vm700_vm1, %v708_v31, %v716_v44  ;;  %493 = vst [vmem:[#allocation2 + $0x40] sm:$0xf] %v461_v45  ;;  %v755_v51 = vshrl.u32 %v6019_v46, 16  ;;  %v758_v52 = vshll.u32 %v6019_v46, 16  ;;  %v6574_v25 = vld [vmem:[#allocation2 + $0x38] sm:$0xff]  }
  0x36   : > { %1344 = vmatpush.bf16.msrb.mxu3 %v5510_v32  ;;  %845 = vmatmul.bf16.vlgmr.msra.gmra.mxu1 %v717_v50  ;;  %494 = vst [vmem:[#allocation2 + $0x44] sm:$0xf] %v462_v49  ;;  %v5568_v45 = vld [vmem:[%s7017_s1 + $0x238] sm:$0xff]  ;;  %v5489_v49 = vld [vmem:[#allocation2 + $0x8] sm:$0xff]  ;;  %v6609_v50 = vld [vmem:[#allocation2 + $0x20] sm:$0xff]  }
  0x37   : > { %v757_v55 = vrot.slane %v755_v51, 3  ;;  %v760_v56 = vrot.slane %v758_v52, 4  ;;  %1724 = vmatpush.bf16.msrb.mxu1 %v5534_v3  ;;  %v5490_v52 = vld [vmem:[#allocation2 + $0x10] sm:$0xff] }
  0x39   : > { %1083 = vmatpush.bf16.msrb.mxu2 %v5501_v41  ;;  %1475 = vmatpush.bf16.msrb.mxu0 %v5517_v48  ;;  %v761_v63 = vor.u32 %v760_v56, %v757_v55  ;;  %v5552_v41 = vld [vmem:[%s7017_s1 + $0x1f8] sm:$0xff]  ;;  %v5529_v48 = vld [vmem:[%s7017_s1 + $0x140] sm:$0xff]  ;;  %v6209_v55 = vld [vmem:[#allocation2 + $0xc] sm:$0xf0]  }
  0x3a   : > { %1345 = vmatpush.bf16.msrb.mxu3 %v5509_v47  ;;  %v6011_v60 = vld [vmem:[#allocation2 + $0x14] sm:$0xff]  }
  0x3b   : > { %v719_v0 = vshrl.u32 %v6011_v60, 16  ;;  %v722_v1 = vshll.u32 %v6011_v60, 16  ;;  %v762_v6 = vsel %vm700_vm1, %v752_v30, %v761_v63  ;;  %v6013_v11 = vld [vmem:[#allocation2 + $0x1c] sm:$0xff]   ;;  %1725 = vmatpush.bf16.msrb.mxu1 %v5533_v24  ;;  %v6024_v60 = vor.u32 %v6209_v55, %v6023_v54 }
  0x3c   : > { %676 = vmatmul.bf16.gmra.mxu2 %v6530_v58  ;;  %660 = vmatmul.bf16.gmra.mxu0 %v6532_v59  ;;  %v6020_v8 = vld [vmem:[#allocation2 + $0x3c] sm:$0xff]   ;;  %v728_v20 = vshrl.u32 %v6013_v11, 16  ;;  %v731_v21 = vshll.u32 %v6013_v11, 16 }
  0x3d   : > { %1084 = vmatpush.bf16.msrb.mxu2 %v5500_v53  ;;  %v721_v4 = vrot.slane %v719_v0, 3  ;;  %v724_v5 = vrot.slane %v722_v1, 4  ;;  %1476 = vmatpush.bf16.msrb.mxu0 %v5516_v62  ;;  %v764_v14 = vshrl.u32 %v6020_v8, 16  ;;  %v767_v15 = vshll.u32 %v6020_v8, 16  ;;  %v6576_v27 = vld [vmem:[#allocation2 + $0x40] sm:$0xff]   ;;  %v6578_v28 = vld [vmem:[#allocation2 + $0x18] sm:$0xff]  }
  0x3e   : > { %1346 = vmatpush.bf16.msrb.mxu3 %v5508_v57  ;;  %v730_v30 = vrot.slane %v728_v20, 3  ;;  %v733_v31 = vrot.slane %v731_v21, 4  ;;  %v5696_v33 = vunpack.c.h.b16 %v6576_v27  ;;  %v959_v53 = vshll.u32 %v5489_v49, 16  ;;  %v6211_v57 = vld [vmem:[#allocation2 + $0x14] sm:$0xff]  }
  0x3f   : > { %v725_v7 = vor.u32 %v724_v5, %v721_v4  ;;  %v766_v22 = vrot.slane %v764_v14, 3  ;;  %v769_v23 = vrot.slane %v767_v15, 4  ;;  %1726 = vmatpush.bf16.msrb.mxu1 %v5532_v34  ;;  %v5521_v0 = vld [vmem:[#allocation2 + $0x10] sm:$0xff]  ;;  %v1215_v8 = vshrl.u32 %v6211_v57, 16  ;;  %v5542_v34 = vld [vmem:[%s7017_s1 + $0x1a8] sm:$0xff] }
  0x40   : > { %v734_v35 = vor.u32 %v733_v31, %v730_v30  ;;  %v699_v37 = vpack.c.b16 %v5696_v33, %v5696_v33  ;;  %v961_v62 = vrot.slane %v959_v53, 1  ;;  %v5551_v4 = vld [vmem:[%s7017_s1 + $0x1f0] sm:$0xff]  ;;  %v1218_v9 = vshll.u32 %v6211_v57, 16  ;;  %v6213_v30 = vld [vmem:[#allocation2 + $0x1c] sm:$0xff]  }
  0x41   : > { %1085 = vmatpush.bf16.msrb.mxu2 %v5499_v61  ;;  %v726_v10 = vsel %vm700_vm1, %v716_v44, %v725_v7  ;;  %1477 = vmatpush.bf16.msrb.mxu0 %v5515_v16  ;;  %v770_v32 = vor.u32 %v769_v23, %v766_v22  ;;  %v5530_v44 = vld [vmem:[%s7017_s1 + $0x148] sm:$0xff]  ;;  %v957_v61 = vshrl.u32 %v5489_v49, 16  ;;  %v5567_v5 = vld [vmem:[%s7017_s1 + $0x230] sm:$0xff]  ;;  %v1217_v15 = vrot.slane %v1215_v8, 3  ;;  %v5491_v22 = vld [vmem:[#allocation2 + $0x18] sm:$0xff] }
  0x42   : > { %1347 = vmatpush.bf16.msrb.mxu3 %v5507_v2  ;;  %v735_v39 = vsel %vm700_vm1, %v725_v7, %v734_v35  ;;  %v773_v42 = vshrl.u32 %v699_v37, 16  ;;  %v776_v43 = vshll.u32 %v699_v37, 16  ;;  %v744_v1 = vsel %vm700_vm1, %v734_v35, %v6498_v26  ;;  %v5543_v2 = vld [vmem:[%s7017_s1 + $0x1b0] sm:$0xff]  ;;  %v5522_v26 = vld [vmem:[#allocation2 + $0x18] sm:$0xff]  ;;  %v5550_v35 = vld [vmem:[%s7017_s1 + $0x1e8] sm:$0xff] }
  0x43   : > { %865 = vmatmul.bf16.gmra.mxu3 %v762_v6  ;;  %v771_v36 = vsel %vm700_vm1, %v761_v63, %v770_v32  ;;  %1727 = vmatpush.bf16.msrb.mxu1 %v5531_v38  ;;  %v964_v63 = vshll.u32 %v5490_v52, 16  ;;  %v1207_v6 = vshrl.u32 %v6024_v60, 16  ;;  %v1210_v7 = vshll.u32 %v6024_v60, 16  ;;  %v5549_v57 = vld [vmem:[%s7017_s1 + $0x1e0] sm:$0xff]  ;;  %v5493_v8 = vld [vmem:[#allocation2 + $0x28] sm:$0xff] }
  0x44   : > { %v775_v46 = vrot.slane %v773_v42, 3  ;;  %v778_v47 = vrot.slane %v776_v43, 4  ;;  %v1220_v16 = vrot.slane %v1218_v9, 4  ;;  %v968_v31 = vshrl.u32 %v5490_v52, 16  ;;  %v6215_v52 = vld [vmem:[#allocation2 + $0x24] sm:$0xff]  }
  0x45   : > { %1086 = vmatpush.bf16.msrb.mxu2 %v5498_v12  ;;  %1478 = vmatpush.bf16.msrb.mxu0 %v5514_v19  ;;  %v966_v11 = vrot.slane %v964_v63, 1  ;;  %v1601_v12 = vshll.u32 %v5521_v0, 16  ;;  %v1212_v14 = vrot.slane %v1210_v7, 4  ;;  %v1606_v19 = vshll.u32 %v5522_v26, 16 }
  0x46   : > { %1348 = vmatpush.bf16.msrb.mxu3 %v5506_v13  ;;  %849 = vmatmul.bf16.gmra.mxu1 %v726_v10  ;;  %v779_v51 = vor.u32 %v778_v47, %v775_v46  ;;  %v962_v10 = vor.u32 %v961_v62, %v957_v61  ;;  %v1209_v13 = vrot.slane %v1207_v6, 3  ;;  %v1221_v21 = vor.u32 %v1220_v16, %v1217_v15  ;;  %v5492_v47 = vld [vmem:[#allocation2 + $0x20] sm:$0xff]  ;;  %v5540_v15 = vld [vmem:[%s7017_s1 + $0x198] sm:$0xff] }
  0x47   : > { %1728 = vmatpush.bf16.msrb.mxu1 %v5530_v44  ;;  %v1608_v24 = vrot.slane %v1606_v19, 1  ;;  %v1227_v37 = vshll.u32 %v6213_v30, 16  ;;  %v970_v38 = vor.u32 %v968_v31, %v966_v11  ;;  %v1610_v44 = vshrl.u32 %v5522_v26, 16  ;;  %v5565_v61 = vld [vmem:[%s7017_s1 + $0x220] sm:$0xff]  ;;  %v6217_v26 = vld [vmem:[#allocation2 + $0x2c] sm:$0xff]   ;;  %v5548_v16 = vld [vmem:[%s7017_s1 + $0x1d8] sm:$0xff] }
  0x48   : > { %v780_v56 = vsel %vm700_vm1, %v770_v32, %v779_v51  ;;  %v967_v3 = vsel %vm955_vm2, %v962_v10, %v966_v11  ;;  %v1213_v20 = vor.u32 %v1212_v14, %v1209_v13  ;;  %v972_v32 = vshll.u32 %v5491_v22, 16  ;;  %v5564_v31 = vld [vmem:[%s7017_s1 + $0x218] sm:$0xff] }
  0x49   : > { %1087 = vmatpush.bf16.msrb.mxu2 %v5497_v17  ;;  %1479 = vmatpush.bf16.msrb.mxu0 %v5513_v29  ;;  %v1599_v17 = vshrl.u32 %v5521_v0, 16  ;;  %v1229_v42 = vrot.slane %v1227_v37, 4  ;;  %v976_v53 = vshrl.u32 %v5491_v22, 16  ;;  %v980_v54 = vshll.u32 %v5492_v47, 16  ;;  %v5524_v0 = vld [vmem:[#allocation2 + $0x28] sm:$0xff] }
  0x4a   : > { %1349 = vmatpush.bf16.msrb.mxu3 %v5505_v18  ;;  %v1603_v18 = vrot.slane %v1601_v12, 1  ;;  %v1222_v29 = vsel %vm700_vm1, %v1213_v20, %v1221_v21  ;;  %v1236_v60 = vshll.u32 %v6215_v52, 16  ;;  %v1622_v6 = vshll.u32 %v5524_v0, 16  ;;  %v6667_v37 = vld [vmem:[#allocation2 + $0x28] sm:$0xff]  }
  0x4b   : > { %1729 = vmatpush.bf16.msrb.mxu1 %v5529_v48  ;;  %v1612_v48 = vor.u32 %v1610_v44, %v1608_v24  ;;  %v982_v63 = vrot.slane %v980_v54, 1  ;;  %v984_v12 = vshrl.u32 %v5492_v47, 16  ;;  %v988_v13 = vshll.u32 %v5493_v8, 16 }
  0x4c   : > { %680 = vmatmul.bf16.gmra.mxu2 %v6574_v25  ;;  %664 = vmatmul.bf16.gmra.mxu0 %v6578_v28  ;;  %v1604_v23 = vor.u32 %v1603_v18, %v1599_v17  ;;  %v1624_v10 = vrot.slane %v1622_v6, 1  ;;  %v1245_v17 = vshll.u32 %v6217_v26, 16  ;;  %v258_v18 = vld [vmem:[%s6399_s13 + $0x78] sm:$0xff] }
  0x4d   : > { %1984 = vmatpush.bf16.msra.mxu2 %v5544_v40  ;;  %2364 = vmatpush.bf16.msra.mxu0 %v5568_v45  ;;  %v5523_v40 = vld [vmem:[#allocation2 + $0x20] sm:$0xff]  ;;  %v986_v20 = vor.u32 %v984_v12, %v982_v63  ;;  %v306_v22 = vrot.slane %v258_v18, 4 }
  0x4e   : > { %2114 = vmatpush.bf16.msra.mxu3 %v5552_v41  ;;  %v1609_v33 = vsel %vm955_vm2, %v1604_v23, %v1608_v24  ;;  %v1614_v45 = vshll.u32 %v5523_v40, 16  ;;  %v274_v24 = vunpack.c.l.bf16 %v258_v18  ;;  %v5546_v18 = vld [vmem:[%s7017_s1 + $0x1c8] sm:$0xff] }
  0x50   : > { %v1616_v49 = vrot.slane %v1614_v45, 1 }
  0x51   : > { %1985 = vmatpush.bf16.msra.mxu2 %v5543_v2  ;;  %2365 = vmatpush.bf16.msra.mxu0 %v5567_v5  ;;  %v1238_v2 = vrot.slane %v1236_v60, 4  ;;  %v1618_v5 = vshrl.u32 %v5523_v40, 16 }
  0x52   : > { %2115 = vmatpush.bf16.msra.mxu3 %v5551_v4  ;;  %v1617_v55 = vsel %vm955_vm2, %v1612_v48, %v1616_v49  ;;  %v6219_v48 = vld [vmem:[#allocation2 + $0x34] sm:$0xff]  }
  0x53   : > { %869 = vmatmul.bf16.gmra.mxu3 %v771_v36  ;;  %v1224_v36 = vshrl.u32 %v6213_v30, 16  ;;  %v1620_v9 = vor.u32 %v1618_v5, %v1616_v49  ;;  %v5525_v30 = vld [vmem:[#allocation2 + $0x30] sm:$0xff] }
  0x54   : > { %v1634_v5 = vshrl.u32 %v5525_v30, 16 }
  0x55   : > { %1986 = vmatpush.bf16.msra.mxu2 %v5542_v34  ;;  %v1226_v41 = vrot.slane %v1224_v36, 3  ;;  %v1625_v14 = vsel %vm955_vm2, %v1620_v9, %v1624_v10  ;;  %v1247_v34 = vrot.slane %v1245_v17, 4  ;;  %v5495_v9 = vld [vmem:[#allocation2 + $0x38] sm:$0xff] }
  0x56   : > { %853 = vmatmul.bf16.gmra.mxu1 %v735_v39  ;;  %v974_v39 = vrot.slane %v972_v32, 1  ;;  %2116 = vmatpush.bf16.msra.mxu3 %v5550_v35  ;;  %v338_v32 = vunpack.c.l.bf16 %v306_v22 }
  0x57   : > { %v1230_v46 = vor.u32 %v1229_v42, %v1226_v41  ;;  %v5494_v42 = vld [vmem:[#allocation2 + $0x30] sm:$0xff] }
  0x58   : > { %v975_v43 = vsel %vm955_vm2, %v970_v38, %v974_v39  ;;  %v978_v62 = vor.u32 %v976_v53, %v974_v39  ;;  %v354_v36 = vmax.f32 %v274_v24, %v338_v32  ;;  %v1626_v38 = vshrl.u32 %v5524_v0, 16  ;;  %v5562_v32 = vld [vmem:[%s7017_s1 + $0x208] sm:$0xff] }
  0x59   : > { %v1231_v51 = vsel %vm700_vm1, %v1221_v21, %v1230_v46  ;;  %v990_v21 = vrot.slane %v988_v13, 1  ;;  %v1630_v39 = vshll.u32 %v5525_v30, 16 }
  0x5a   : > { %2117 = vmatpush.bf16.msra.mxu3 %v5549_v57  ;;  %v983_v4 = vsel %vm955_vm2, %v978_v62, %v982_v63  ;;  %v1628_v44 = vor.u32 %v1626_v38, %v1624_v10  ;;  %v1251_v57 = vshrl.u32 %v6219_v48, 16  ;;  %v5526_v62 = vld [vmem:[#allocation2 + $0x38] sm:$0xff]  ;;  %v5563_v63 = vld [vmem:[%s7017_s1 + $0x210] sm:$0xff] }
  0x5b   : > { %v1632_v45 = vrot.slane %v1630_v39, 1  ;;  %v1638_v6 = vshll.u32 %v5526_v62, 16  ;;  %v1642_v38 = vshrl.u32 %v5526_v62, 16 }
  0x5c   : > { %684 = vmatmul.bf16.gmra.mxu2 %v6576_v27  ;;  %668 = vmatmul.bf16.gmra.mxu0 %v6609_v50  ;;  %v1253_v0 = vrot.slane %v1251_v57, 3 }
  0x5d   : > { %v1633_v54 = vsel %vm955_vm2, %v1628_v44, %v1632_v45  ;;  %v1640_v12 = vrot.slane %v1638_v6, 1 }
  0x5e   : > { %2118 = vmatpush.bf16.msra.mxu3 %v5548_v16  ;;  %v1004_v16 = vshll.u32 %v5495_v9, 16 }
  0x5f   : > { %v1644_v44 = vor.u32 %v1642_v38, %v1640_v12 }
  0x63   : > { %873 = vmatmul.bf16.gmra.mxu3 %v780_v56  ;;  %v5541_v56 = vld [vmem:[%s7017_s1 + $0x1a0] sm:$0xff] }
  0x64   : > { %1987 = vmatpush.bf16.msra.mxu2 %v5541_v56  ;;  %v5547_v56 = vld [vmem:[%s7017_s1 + $0x1d0] sm:$0xff] }
  0x65   : > { %2119 = vmatpush.bf16.msra.mxu3 %v5547_v56 }
  0x66   : > { %857 = vmatmul.bf16.gmra.mxu1 %v744_v1 }
  0x68   : > { %1988 = vmatpush.bf16.msra.mxu2 %v5540_v15  ;;  %v1000_v15 = vshrl.u32 %v5494_v42, 16 }
  0x69   : > { %2120 = vmatpush.bf16.msra.mxu3 %v5546_v18  ;;  %v1537_v18 = vld [vmem:[#allocation2 + $0x50] sm:$0x1] }
  0x6c   : > { %1088 = vmatmul.bf16.vlgmr.msrb.gmra.mxu2 %v967_v3  ;;  %1480 = vmatmul.bf16.vlgmr.msrb.gmra.mxu0 %v6532_v59  ;;  %v5566_v59 = vld [vmem:[%s7017_s1 + $0x228] sm:$0xff]  ;;  %v1242_v3 = vshrl.u32 %v6217_v26, 16  ;;  %v1636_v26 = vor.u32 %v1634_v5, %v1632_v45 }
  0x6d   : > { %2366 = vmatpush.bf16.msra.mxu0 %v5566_v59  ;;  %v991_v59 = vsel %vm955_vm2, %v986_v20, %v990_v21 }
  0x6e   : > { %v1641_v17 = vsel %vm955_vm2, %v1636_v26, %v1640_v12 }
  0x71   : > { %2367 = vmatpush.bf16.msra.mxu0 %v5565_v61 }
  0x73   : > { %1350 = vmatmul.bf16.vlgmr.msrb.gmra.mxu3 %v1222_v29 }
  0x75   : > { %2368 = vmatpush.bf16.msra.mxu0 %v5564_v31  ;;  %v5527_v31 = vld [vmem:[#allocation2 + $0x40] sm:$0xff] }
  0x76   : > { %1730 = vmatmul.bf16.vlgmr.msrb.gmra.mxu1 %v1609_v33  ;;  %v1244_v33 = vrot.slane %v1242_v3, 3  ;;  %v1646_v39 = vshll.u32 %v5527_v31, 16 }
  0x78   : > { %v1248_v41 = vor.u32 %v1247_v34, %v1244_v33  ;;  %v1648_v45 = vrot.slane %v1646_v39, 1 }
  0x79   : > { %2369 = vmatpush.bf16.msra.mxu0 %v5563_v63 }
  0x7c   : > { %1092 = vmatmul.bf16.gmra.mxu2 %v975_v43  ;;  %1484 = vmatmul.bf16.gmra.mxu0 %v6578_v28  ;;  %v1233_v28 = vshrl.u32 %v6215_v52, 16  ;;  %v996_v52 = vshll.u32 %v5494_v42, 16 }
  0x7d   : > { %2370 = vmatpush.bf16.msra.mxu0 %v5562_v32 }
  0x7e   : > { %v1235_v1 = vrot.slane %v1233_v28, 3  ;;  %v1254_v28 = vshll.u32 %v6219_v48, 16  ;;  %v998_v61 = vrot.slane %v996_v52, 1  ;;  %v1008_v48 = vshrl.u32 %v5495_v9, 16 }
  0x80   : > { %v1239_v7 = vor.u32 %v1238_v2, %v1235_v1  ;;  %v1256_v1 = vrot.slane %v1254_v28, 4  ;;  %v1002_v22 = vor.u32 %v1000_v15, %v998_v61 }
  0x82   : > { %v1240_v11 = vsel %vm700_vm1, %v1230_v46, %v1239_v7  ;;  %v1249_v47 = vsel %vm700_vm1, %v1239_v7, %v1248_v41  ;;  %v1257_v7 = vor.u32 %v1256_v1, %v1253_v0 }
  0x83   : > { %1354 = vmatmul.bf16.gmra.mxu3 %v1231_v51  ;;  %v992_v51 = vshrl.u32 %v5493_v8, 16 }
  0x84   : > { %v1258_v13 = vsel %vm700_vm1, %v1248_v41, %v1257_v7  ;;  %v5496_v41 = vld [vmem:[#allocation2 + $0x40] sm:$0xff] }
  0x85   : > { %v994_v60 = vor.u32 %v992_v51, %v990_v21 }
  0x86   : > { %1734 = vmatmul.bf16.gmra.mxu1 %v1617_v55  ;;  %v5539_v55 = vld [vmem:[%s7017_s1 + $0x190] sm:$0xff] }
  0x87   : > { %1989 = vmatpush.bf16.msra.mxu2 %v5539_v55  ;;  %v999_v2 = vsel %vm955_vm2, %v994_v60, %v998_v61 }
  0x8c   : > { %1096 = vmatmul.bf16.gmra.mxu2 %v983_v4  ;;  %1488 = vmatmul.bf16.gmra.mxu0 %v6609_v50  ;;  %v257_v50 = vld [vmem:[%s6399_s13 + $0x70] sm:$0xff] }
  0x8d   : > { %v305_v19 = vrot.slane %v257_v50, 4  ;;  %v273_v23 = vunpack.c.l.bf16 %v257_v50 }
  0x8f   : > { %v337_v29 = vunpack.c.l.bf16 %v305_v19 }
  0x91   : > { %v353_v35 = vmax.f32 %v273_v23, %v337_v29  ;;  %v1006_v23 = vrot.slane %v1004_v16, 1 }
  0x93   : > { %1358 = vmatmul.bf16.gmra.mxu3 %v1240_v11  ;;  %v394_v40 = vmax.f32 %v353_v35, %v354_v36  ;;  %v1007_v35 = vsel %vm955_vm2, %v1002_v22, %v1006_v23  ;;  %v1010_v28 = vor.u32 %v1008_v48, %v1006_v23 }
  0x95   : > { %v402_v43 = vpack.c.bf16 %v394_v40, %v394_v40 }
  0x96   : > { %1738 = vmatmul.bf16.gmra.mxu1 %v1625_v14  ;;  %v6221_v14 = vld [vmem:[#allocation2 + $0x3c] sm:$0xff]  }
  0x97   : > { %v420_v46 = vsel %vm403_vm0, %v402_v43, 0  ;;  %v1260_v20 = vshrl.u32 %v6221_v14, 16  ;;  %v1263_v21 = vshll.u32 %v6221_v14, 16 }
  0x98   : > { %v447_v49 = vunpack.c.l.b16 %v420_v46  ;;  %v448_v8 = vunpack.c.h.b16 %v420_v46 }
  0x99   : > { %v1262_v33 = vrot.slane %v1260_v20, 3  ;;  %v1265_v34 = vrot.slane %v1263_v21, 4  ;;  %v1016_v20 = vshrl.u32 %v5496_v41, 16 }
  0x9a   : > { %v463_v53 = vpack.c.b16 %v447_v49, %v447_v49  ;;  %v464_v10 = vpack.c.b16 %v448_v8, %v448_v8  ;;  %v1012_v49 = vshll.u32 %v5496_v41, 16 }
  0x9b   : > { %v1266_v40 = vor.u32 %v1265_v34, %v1262_v33 }
  0x9c   : > { %1100 = vmatmul.bf16.gmra.mxu2 %v991_v59  ;;  %1492 = vmatmul.bf16.gmra.mxu0 %v6667_v37  ;;  %495 = vst [vmem:[#allocation2 + $0x48] sm:$0xf] %v463_v53  ;;  %v1649_v53 = vsel %vm955_vm2, %v1644_v44, %v1648_v45  ;;  %v1014_v60 = vrot.slane %v1012_v49, 1  ;;  %v6226_v44 = vld [vmem:[#allocation2 + $0x1c] sm:$0xff]  }
  0x9d   : > { %496 = vst [vmem:[#allocation2 + $0x4c] sm:$0xf] %v464_v10  ;;  %v1267_v46 = vsel %vm700_vm1, %v1257_v7, %v1266_v40 }
  0x9e   : > { %v1015_v6 = vsel %vm955_vm2, %v1010_v28, %v1014_v60  ;;  %v1018_v33 = vor.u32 %v1016_v20, %v1014_v60  ;;  %v5554_v28 = vld [vmem:[#allocation2 + $0x20] sm:$0xff] }
  0xa3   : > { %1362 = vmatmul.bf16.gmra.mxu3 %v1249_v47  ;;  %v6222_v47 = vld [vmem:[#allocation2 + $0x44] sm:$0xff]  }
  0xa4   : > { %v1269_v56 = vshrl.u32 %v6222_v47, 16  ;;  %v1272_v57 = vshll.u32 %v6222_v47, 16  ;;  %v894_v62 = vld [vmem:[#allocation2 + $0x48] sm:$0x1]  ;;  %v5553_v47 = vld [vmem:[#allocation2 + $0x18] sm:$0xff] }
  0xa5   : > { %v6713_v1 = vld [vmem:[#allocation2 + $0x48] sm:$0xff]  ;;  %v945_v7 = vunpack.c.l.b16 %v894_v62  ;;  %v2243_v60 = vshll.u32 %v5553_v47, 16 }
  0xa6   : > { %1742 = vmatmul.bf16.gmra.mxu1 %v1633_v54  ;;  %v5537_v54 = vld [vmem:[%s7017_s1 + $0x180] sm:$0xff]  ;;  %v1274_v5 = vrot.slane %v1272_v57, 4  ;;  %v6719_v8 = vld [vmem:[#allocation2 + $0x48] sm:$0xff]   ;;  %v1654_v26 = vshll.u32 %v6713_v1, 16  ;;  %v1658_v49 = vshrl.u32 %v6713_v1, 16 }
  0xa7   : > { %v954_v14 = vpack.c.b16 %v945_v7, %v945_v7 }
  0xa9   : > { %v657_v4 = vpop.f32.mrf.mxu0  ;;  %v1020_v21 = vshll.u32 %v954_v14, 16 }
  0xab   : > { %v1022_v34 = vrot.slane %v1020_v21, 1  ;;  %v6228_v21 = vld [vmem:[#allocation2 + $0x24] sm:$0xff]  }
  0xac   : > { %1104 = vmatmul.bf16.gmra.mxu2 %v999_v2  ;;  %1496 = vmatmul.bf16.gmra.mxu0 %v6530_v58  ;;  %v5538_v58 = vld [vmem:[%s7017_s1 + $0x188] sm:$0xff]  ;;  %v5561_v2 = vld [vmem:[%s7017_s1 + $0x200] sm:$0xff] }
  0xad   : > { %1990 = vmatpush.bf16.msra.mxu2 %v5538_v58  ;;  %2371 = vmatpush.bf16.msra.mxu0 %v5561_v2 }
  0xaf   : > { %v673_v11 = vpop.f32.mrf.mxu2 }
  0xb1   : > { %v659_v50 = vpop.f32.mrf.mxu0  ;;  %1991 = vmatpush.bf16.msra.mxu2 %v5537_v54 }
  0xb3   : > { %1366 = vmatmul.bf16.gmra.mxu3 %v1258_v13  ;;  %v846_v3 = vpop.f32.mrf.mxu1  ;;  %v5728_v13 = vunpack.c.h.b16 %v6719_v8 }
  0xb4   : > { %v6692_v19 = vadd.f32 %v846_v3, %v657_v4  ;;  %v1271_v4 = vrot.slane %v1269_v56, 3  ;;  %v1656_v3 = vrot.slane %v1654_v26, 1  ;;  %v1860_v56 = vshll.u32 %v6226_v44, 16 }
  0xb5   : > { %v1205_v58 = vpack.c.b16 %v5728_v13, %v5728_v13  ;;  %v2248_v26 = vshll.u32 %v5554_v28, 16 }
  0xb6   : > { %v862_v24 = vpop.f32.mrf.mxu3  ;;  %1746 = vmatmul.bf16.gmra.mxu1 %v1641_v17  ;;  %v1275_v12 = vor.u32 %v1274_v5, %v1271_v4  ;;  %v1862_v7 = vrot.slane %v1860_v56, 4 }
  0xb7   : > { %v6694_v29 = vadd.f32 %v862_v24, %v673_v11  ;;  %v675_v30 = vpop.f32.mrf.mxu2  ;;  %v1650_v11 = vshrl.u32 %v5527_v31, 16  ;;  %v1281_v32 = vshll.u32 %v1205_v58, 16 }
  0xb8   : > { %v1276_v17 = vsel %vm700_vm1, %v1266_v40, %v1275_v12  ;;  %v1588_v30 = vunpack.c.l.b16 %v1537_v18 }
  0xb9   : > { %v661_v59 = vpop.f32.mrf.mxu0  ;;  %v1652_v50 = vor.u32 %v1650_v11, %v1648_v45  ;;  %v2245_v11 = vrot.slane %v2243_v60, 1 }
  0xba   : > { %v1597_v40 = vpack.c.b16 %v1588_v30, %v1588_v30  ;;  %v1866_v30 = vshrl.u32 %v6228_v21, 16 }
  0xbb   : > { %v848_v36 = vpop.f32.mrf.mxu1  ;;  %v1657_v24 = vsel %vm955_vm2, %v1652_v50, %v1656_v3 }
  0xbc   : > { %1108 = vmatmul.bf16.gmra.mxu2 %v1007_v35  ;;  %1500 = vmatmul.bf16.gmra.mxu0 %v6574_v25  ;;  %v5545_v25 = vld [vmem:[%s7017_s1 + $0x1c0] sm:$0xff]  ;;  %v6224_v36 = vld [vmem:[#allocation2 + $0x14] sm:$0xf0]  }
  0xbd   : > { %2121 = vmatpush.bf16.msra.mxu3 %v5545_v25  ;;  %v1857_v25 = vshrl.u32 %v6226_v44, 16 }
  0xbe   : > { %v864_v42 = vpop.f32.mrf.mxu3 }
  0xbf   : > { %v677_v43 = vpop.f32.mrf.mxu2  ;;  %v1283_v42 = vrot.slane %v1281_v32, 4 }
  0xc1   : > { %v663_v51 = vpop.f32.mrf.mxu0 }
  0xc2   : > { %v1662_v51 = vshll.u32 %v1597_v40, 16 }
  0xc3   : > { %1370 = vmatmul.bf16.gmra.mxu3 %v1267_v46  ;;  %v850_v52 = vpop.f32.mrf.mxu1 }
  0xc4   : > { %v6709_v55 = vadd.f32 %v850_v52, %v661_v59  ;;  %v6062_v59 = vld [vmem:[#allocation2 + $0x14] sm:$0x8]  ;;  %v1664_v2 = vrot.slane %v1662_v51, 1 }
  0xc5   : > { %v6063_v45 = vor.u32 %v6224_v36, %v6062_v59  ;;  %v5932_v59 = vld [vmem:[#allocation2 + $0x18] sm:$0xff]  }
  0xc6   : > { %v866_v61 = vpop.f32.mrf.mxu3  ;;  %1750 = vmatmul.bf16.gmra.mxu1 %v1649_v53 }
  0xc7   : > { %v6711_v63 = vadd.f32 %v866_v61, %v677_v43  ;;  %v679_v0 = vpop.f32.mrf.mxu2  ;;  %v1023_v43 = vsel %vm955_vm2, %v1018_v33, %v1022_v34  ;;  %v1849_v53 = vshrl.u32 %v6063_v45, 16  ;;  %v1852_v54 = vshll.u32 %v6063_v45, 16  ;;  %v5584_v61 = vld [vmem:[#allocation4 + $0x78] sm:$0xff]  ;;  %v5555_v33 = vld [vmem:[#allocation2 + $0x28] sm:$0xff] }
  0xc8   : > { %v1660_v0 = vor.u32 %v1658_v49, %v1656_v3  ;;  %2690 = vmatpush.bf16.msra.mxu1 %v5584_v61  ;;  %v5583_v34 = vld [vmem:[#allocation4 + $0x70] sm:$0xff] }
  0xc9   : > { %v665_v9 = vpop.f32.mrf.mxu0  ;;  %v1851_v1 = vrot.slane %v1849_v53, 3  ;;  %v1854_v5 = vrot.slane %v1852_v54, 4  ;;  %v6230_v54 = vld [vmem:[#allocation2 + $0x2c] sm:$0xff]  }
  0xca   : > { %v1665_v14 = vsel %vm955_vm2, %v1660_v0, %v1664_v2  ;;  %v1878_v60 = vshll.u32 %v6230_v54, 16  ;;  %v5582_v0 = vld [vmem:[#allocation4 + $0x68] sm:$0xff] }
  0xcb   : > { %v852_v10 = vpop.f32.mrf.mxu1 }
  0xcc   : > { %1112 = vmatmul.bf16.gmra.mxu2 %v1015_v6  ;;  %1504 = vmatmul.bf16.gmra.mxu0 %v6576_v27  ;;  %v1278_v27 = vshrl.u32 %v1205_v58, 16  ;;  %v1859_v6 = vrot.slane %v1857_v25, 3  ;;  %v2241_v10 = vshrl.u32 %v5553_v47, 16 }
  0xcd   : > { %2691 = vmatpush.bf16.msra.mxu1 %v5583_v34 }
  0xce   : > { %v868_v15 = vpop.f32.mrf.mxu3  ;;  %v1280_v41 = vrot.slane %v1278_v27, 3  ;;  %v1863_v50 = vor.u32 %v1862_v7, %v1859_v6  ;;  %v1869_v27 = vshll.u32 %v6228_v21, 16  ;;  %v1880_v6 = vrot.slane %v1878_v60, 4 }
  0xcf   : > { %v681_v16 = vpop.f32.mrf.mxu2 }
  0xd0   : > { %v1284_v52 = vor.u32 %v1283_v42, %v1280_v41  ;;  %v1871_v40 = vrot.slane %v1869_v27, 4  ;;  %v2252_v42 = vshrl.u32 %v5554_v28, 16  ;;  %v1875_v28 = vshrl.u32 %v6230_v54, 16  ;;  %v5557_v27 = vld [vmem:[#allocation2 + $0x38] sm:$0xff] }
  0xd1   : > { %v667_v22 = vpop.f32.mrf.mxu0  ;;  %2692 = vmatpush.bf16.msra.mxu1 %v5582_v0 }
  0xd2   : > { %v1285_v4 = vsel %vm700_vm1, %v1275_v12, %v1284_v52  ;;  %v2246_v12 = vor.u32 %v2245_v11, %v2241_v10 }
  0xd3   : > { %1374 = vmatmul.bf16.gmra.mxu3 %v1276_v17  ;;  %v854_v23 = vpop.f32.mrf.mxu1  ;;  %v2250_v17 = vrot.slane %v2248_v26, 1 }
  0xd4   : > { %v6726_v31 = vadd.f32 %v854_v23, %v665_v9 }
  0xd5   : > { %v2251_v23 = vsel %vm955_vm2, %v2246_v12, %v2250_v17  ;;  %v2254_v47 = vor.u32 %v2252_v42, %v2250_v17 }
  0xd6   : > { %v870_v35 = vpop.f32.mrf.mxu3  ;;  %1754 = vmatmul.bf16.gmra.mxu1 %v1657_v24 }
  0xd7   : > { %v6728_v38 = vadd.f32 %v870_v35, %v681_v16  ;;  %v683_v39 = vpop.f32.mrf.mxu2  ;;  %v1855_v16 = vor.u32 %v1854_v5, %v1851_v1  ;;  %v1877_v5 = vrot.slane %v1875_v28, 3  ;;  %v5580_v28 = vld [vmem:[#allocation4 + $0x58] sm:$0xff] }
  0xd8   : > { %v1868_v39 = vrot.slane %v1866_v30, 3 }
  0xd9   : > { %v669_v46 = vpop.f32.mrf.mxu0  ;;  %v1864_v20 = vsel %vm700_vm1, %v1855_v16, %v1863_v50  ;;  %v1881_v26 = vor.u32 %v1880_v6, %v1877_v5 }
  0xda   : > { %v1872_v45 = vor.u32 %v1871_v40, %v1868_v39  ;;  %v2272_v40 = vshll.u32 %v5557_v27, 16 }
  0xdb   : > { %v856_v48 = vpop.f32.mrf.mxu1 }
  0xdc   : > { %1116 = vmatmul.bf16.gmra.mxu2 %v1023_v43  ;;  %1508 = vmatmul.bf16.gmra.mxu0 %v6719_v8  ;;  %v2256_v43 = vshll.u32 %v5555_v33, 16  ;;  %v1873_v53 = vsel %vm700_vm1, %v1863_v50, %v1872_v45  ;;  %v1882_v17 = vsel %vm700_vm1, %v1872_v45, %v1881_v26  ;;  %v2274_v45 = vrot.slane %v2272_v40, 1 }
  0xde   : > { %v872_v57 = vpop.f32.mrf.mxu3  ;;  %v2258_v48 = vrot.slane %v2256_v43, 1 }
  0xdf   : > { %v685_v62 = vpop.f32.mrf.mxu2 }
  0xe1   : > { %v671_v9 = vpop.f32.mrf.mxu0 }
  0xe2   : > { %v2260_v9 = vshrl.u32 %v5555_v33, 16 }
  0xe3   : > { %1378 = vmatmul.bf16.gmra.mxu3 %v1285_v4  ;;  %v858_v13 = vpop.f32.mrf.mxu1  ;;  %v5933_v4 = vld [vmem:[#allocation2 + $0x20] sm:$0xff]  }
  0xe4   : > { %v6735_v15 = vadd.f32 %v858_v13, %v669_v46 }
  0xe6   : > { %v874_v3 = vpop.f32.mrf.mxu3  ;;  %1758 = vmatmul.bf16.gmra.mxu1 %v1665_v14  ;;  %v2262_v14 = vor.u32 %v2260_v9, %v2258_v48 }
  0xe7   : > { %v6737_v58 = vadd.f32 %v874_v3, %v685_v62  ;;  %v687_v18 = vpop.f32.mrf.mxu2  ;;  %v5556_v62 = vld [vmem:[#allocation2 + $0x30] sm:$0xff] }
  0xe8   : > { %v2264_v10 = vshll.u32 %v5556_v62, 16  ;;  %v6232_v18 = vld [vmem:[#allocation2 + $0x34] sm:$0xff]   ;;  %v2268_v39 = vshrl.u32 %v5556_v62, 16 }
  0xe9   : > { %v1481_v22 = vpop.f32.mrf.mxu0 }
  0xea   : > { %v2266_v16 = vrot.slane %v2264_v10, 1 }
  0xeb   : > { %v860_v24 = vpop.f32.mrf.mxu1 }
  0xec   : > { %1992 = vmatmul.bf16.vlgmr.msra.gmra.mxu2 %v1864_v20  ;;  %2372 = vmatmul.bf16.vlgmr.msra.gmra.mxu0 %v2251_v23  ;;  %v1884_v23 = vshrl.u32 %v6232_v18, 16  ;;  %v1887_v24 = vshll.u32 %v6232_v18, 16 }
  0xee   : > { %v876_v32 = vpop.f32.mrf.mxu3 }
  0xef   : > { %v1089_v35 = vpop.f32.mrf.mxu2  ;;  %v5581_v32 = vld [vmem:[#allocation4 + $0x60] sm:$0xff] }
  0xf0   : > { %v1121_v36 = vadd.f32 %v1089_v35, %v6692_v19  ;;  %v2259_v19 = vsel %vm955_vm2, %v2254_v47, %v2258_v48  ;;  %2693 = vmatpush.bf16.msra.mxu1 %v5581_v32  ;;  %v1886_v35 = vrot.slane %v1884_v23, 3  ;;  %v5579_v23 = vld [vmem:[#allocation4 + $0x50] sm:$0xff] }
  0xf1   : > { %v1483_v41 = vpop.f32.mrf.mxu0 }
  0xf3   : > { %2122 = vmatmul.bf16.vlgmr.msra.gmra.mxu3 %v5932_v59  ;;  %v1731_v44 = vpop.f32.mrf.mxu1  ;;  %v1889_v59 = vrot.slane %v1887_v24, 4 }
  0xf4   : > { %2694 = vmatpush.bf16.msra.mxu1 %v5580_v28 }
  0xf5   : > { %v1890_v42 = vor.u32 %v1889_v59, %v1886_v35 }
  0xf6   : > { %v1351_v46 = vpop.f32.mrf.mxu3 }
  0xf7   : > { %v1383_v49 = vadd.f32 %v1351_v46, %v1121_v36  ;;  %v1091_v51 = vpop.f32.mrf.mxu2 }
  0xf8   : > { %v6234_v51 = vld [vmem:[#allocation2 + $0x3c] sm:$0xff]   ;;  %2695 = vmatpush.bf16.msra.mxu1 %v5579_v23 }
  0xf9   : > { %v1513_v52 = vadd.f32 %v1481_v22, %v1383_v49  ;;  %v1485_v25 = vpop.f32.mrf.mxu0  ;;  %v1891_v49 = vsel %vm700_vm1, %v1881_v26, %v1890_v42 }
  0xfb   : > { %v6744_v56 = vadd.f32 %v1731_v44, %v1513_v52  ;;  %v1733_v57 = vpop.f32.mrf.mxu1  ;;  %v2270_v44 = vor.u32 %v2268_v39, %v2266_v16 }
  0xfc   : > { %1996 = vmatmul.bf16.gmra.mxu2 %v1873_v53  ;;  %2376 = vmatmul.bf16.gmra.mxu0 %v2259_v19  ;;  %v5558_v57 = vld [vmem:[#allocation2 + $0x40] sm:$0xff] }
  0xfd   : > { %v2275_v52 = vsel %vm955_vm2, %v2270_v44, %v2274_v45  ;;  %v2280_v5 = vshll.u32 %v5558_v57, 16  ;;  %v2284_v35 = vshrl.u32 %v5558_v57, 16  ;;  %v5937_v57 = vld [vmem:[#allocation2 + $0x40] sm:$0xff]  }
  0xfe   : > { %v1353_v61 = vpop.f32.mrf.mxu3 }
  0xff   : > { %v1093_v2 = vpop.f32.mrf.mxu2  ;;  %v5935_v61 = vld [vmem:[#allocation2 + $0x30] sm:$0xff]  }
 0x100   : > { %v1122_v1 = vadd.f32 %v1093_v2, %v6709_v55  ;;  %v2267_v55 = vsel %vm955_vm2, %v2262_v14, %v2266_v16 }
 0x101   : > { %v1487_v7 = vpop.f32.mrf.mxu0 }
 0x103   : > { %2126 = vmatmul.bf16.gmra.mxu3 %v5933_v4  ;;  %v1735_v11 = vpop.f32.mrf.mxu1 }
 0x106   : > { %v1355_v13 = vpop.f32.mrf.mxu3 }
 0x107   : > { %v1384_v50 = vadd.f32 %v1355_v13, %v1122_v1  ;;  %v1095_v3 = vpop.f32.mrf.mxu2  ;;  %v2276_v1 = vshrl.u32 %v5557_v27, 16 }
 0x109   : > { %v1514_v12 = vadd.f32 %v1485_v25, %v1384_v50  ;;  %v1489_v20 = vpop.f32.mrf.mxu0  ;;  %v1896_v25 = vshll.u32 %v6234_v51, 16  ;;  %v2278_v10 = vor.u32 %v2276_v1, %v2274_v45  ;;  %v6236_v50 = vld [vmem:[#allocation2 + $0x44] sm:$0xff]  }
 0x10a   : > { %v1902_v18 = vshrl.u32 %v6236_v50, 16 }
 0x10b   : > { %v6749_v21 = vadd.f32 %v1735_v11, %v1514_v12  ;;  %v1737_v22 = vpop.f32.mrf.mxu1  ;;  %v1898_v2 = vrot.slane %v1896_v25, 4  ;;  %v2282_v11 = vrot.slane %v2280_v5, 1  ;;  %v5578_v25 = vld [vmem:[#allocation4 + $0x48] sm:$0xff] }
 0x10c   : > { %2000 = vmatmul.bf16.gmra.mxu2 %v1882_v17  ;;  %2380 = vmatmul.bf16.gmra.mxu0 %v2267_v55  ;;  %v5559_v22 = vld [vmem:[#allocation2 + $0x48] sm:$0xff]  ;;  %v1904_v32 = vrot.slane %v1902_v18, 3 }
 0x10d   : > { %v2288_v59 = vshll.u32 %v5559_v22, 16  ;;  %2696 = vmatpush.bf16.msra.mxu1 %v5578_v25 }
 0x10e   : > { %v1357_v30 = vpop.f32.mrf.mxu3 }
 0x10f   : > { %v1097_v33 = vpop.f32.mrf.mxu2  ;;  %v5936_v30 = vld [vmem:[#allocation2 + $0x38] sm:$0xff]  }
 0x110   : > { %v1123_v34 = vadd.f32 %v1097_v33, %v6726_v31 }
 0x111   : > { %v1491_v36 = vpop.f32.mrf.mxu0 }
 0x113   : > { %2130 = vmatmul.bf16.gmra.mxu3 %v6667_v37  ;;  %v1739_v41 = vpop.f32.mrf.mxu1  ;;  %v1893_v37 = vshrl.u32 %v6234_v51, 16 }
 0x115   : > { %v1895_v0 = vrot.slane %v1893_v37, 3  ;;  %v5560_v37 = vld [vmem:[#allocation2 + $0x50] sm:$0xff] }
 0x116   : > { %v1359_v43 = vpop.f32.mrf.mxu3 }
 0x117   : > { %v1385_v46 = vadd.f32 %v1359_v43, %v1123_v34  ;;  %v1099_v47 = vpop.f32.mrf.mxu2  ;;  %v1899_v7 = vor.u32 %v1898_v2, %v1895_v0  ;;  %v2292_v0 = vshrl.u32 %v5559_v22, 16  ;;  %v2296_v2 = vshll.u32 %v5560_v37, 16 }
 0x118   : > { %v6237_v47 = vld [vmem:[#allocation2 + $0x4c] sm:$0xff]  }
 0x119   : > { %v1515_v48 = vadd.f32 %v1489_v20, %v1385_v46  ;;  %v1493_v31 = vpop.f32.mrf.mxu0  ;;  %v1900_v16 = vsel %vm700_vm1, %v1890_v42, %v1899_v7  ;;  %v1905_v20 = vshll.u32 %v6236_v50, 16  ;;  %v2290_v42 = vrot.slane %v2288_v59, 1 }
 0x11b   : > { %v6755_v53 = vadd.f32 %v1739_v41, %v1515_v48  ;;  %v1741_v54 = vpop.f32.mrf.mxu1  ;;  %v1907_v33 = vrot.slane %v1905_v20, 4  ;;  %v2286_v41 = vor.u32 %v2284_v35, %v2282_v11  ;;  %v2300_v35 = vshrl.u32 %v5560_v37, 16 }
 0x11c   : > { %2004 = vmatmul.bf16.gmra.mxu2 %v1891_v49  ;;  %2384 = vmatmul.bf16.gmra.mxu0 %v2275_v52  ;;  %v1914_v52 = vshll.u32 %v6237_v47, 16 }
 0x11d   : > { %v1908_v39 = vor.u32 %v1907_v33, %v1904_v32 }
 0x11e   : > { %v1361_v19 = vpop.f32.mrf.mxu3 }
 0x11f   : > { %v1101_v60 = vpop.f32.mrf.mxu2  ;;  %v1909_v46 = vsel %vm700_vm1, %v1899_v7, %v1908_v39 }
 0x120   : > { %v1124_v62 = vadd.f32 %v1101_v60, %v6735_v15  ;;  %v2283_v15 = vsel %vm955_vm2, %v2278_v10, %v2282_v11  ;;  %v2298_v10 = vrot.slane %v2296_v2, 1 }
 0x121   : > { %v1495_v4 = vpop.f32.mrf.mxu0 }
 0x122   : > { %v6768_v4 = vld [vmem:[#allocation2 + $0x50] sm:$0xff]  }
 0x123   : > { %2134 = vmatmul.bf16.gmra.mxu3 %v5935_v61  ;;  %v1743_v6 = vpop.f32.mrf.mxu1  ;;  %v1916_v61 = vrot.slane %v1914_v52, 4  ;;  %v5599_v52 = vld [vmem:[#allocation4 + $0xb0] sm:$0xff] }
 0x126   : > { %v1363_v9 = vpop.f32.mrf.mxu3 }
 0x127   : > { %v1386_v26 = vadd.f32 %v1363_v9, %v1124_v62  ;;  %v1103_v13 = vpop.f32.mrf.mxu2  ;;  %v2294_v9 = vor.u32 %v2292_v0, %v2290_v42  ;;  %v5573_v0 = vld [vmem:[#allocation4 + $0x20] sm:$0xff] }
 0x128   : > { %v2179_v13 = vld [vmem:[#allocation2 + $0x58] sm:$0x1] }
 0x129   : > { %v1516_v14 = vadd.f32 %v1493_v31, %v1386_v26  ;;  %v1497_v3 = vpop.f32.mrf.mxu0  ;;  %v1911_v31 = vshrl.u32 %v6237_v47, 16 }
 0x12b   : > { %v6760_v12 = vadd.f32 %v1743_v6, %v1516_v14  ;;  %v1745_v17 = vpop.f32.mrf.mxu1  ;;  %v1913_v60 = vrot.slane %v1911_v31, 3  ;;  %v5760_v6 = vunpack.c.h.b16 %v6768_v4 }
 0x12c   : > { %2008 = vmatmul.bf16.gmra.mxu2 %v1900_v16  ;;  %2388 = vmatmul.bf16.gmra.mxu0 %v2283_v15  ;;  %v2230_v15 = vunpack.c.l.b16 %v2179_v13 }
 0x12d   : > { %v1917_v5 = vor.u32 %v1916_v61, %v1913_v60  ;;  %v1847_v16 = vpack.c.b16 %v5760_v6, %v5760_v6  ;;  %v5596_v6 = vld [vmem:[#allocation4 + $0x98] sm:$0xff] }
 0x12e   : > { %v1365_v55 = vpop.f32.mrf.mxu3  ;;  %v2239_v23 = vpack.c.b16 %v2230_v15, %v2230_v15  ;;  %v5570_v15 = vld [vmem:[#allocation4 + $0x8] sm:$0xff] }
 0x12f   : > { %v1105_v24 = vpop.f32.mrf.mxu2  ;;  %v1918_v14 = vsel %vm700_vm1, %v1908_v39, %v1917_v5  ;;  %v1920_v20 = vshrl.u32 %v1847_v16, 16  ;;  %v1923_v55 = vshll.u32 %v1847_v16, 16 }
 0x130   : > { %v1125_v27 = vadd.f32 %v1105_v24, %v6694_v29  ;;  %v2291_v29 = vsel %vm955_vm2, %v2286_v41, %v2290_v42  ;;  %v5577_v24 = vld [vmem:[#allocation4 + $0x40] sm:$0xff]  ;;  %v2304_v59 = vshll.u32 %v2239_v23, 16  ;;  %v2302_v41 = vor.u32 %v2300_v35, %v2298_v10  ;;  %v5615_v35 = vld [vmem:[#allocation4 + $0x130] sm:$0xff] }
 0x131   : > { %v1499_v34 = vpop.f32.mrf.mxu0  ;;  %2697 = vmatpush.bf16.msra.mxu1 %v5577_v24  ;;  %v1922_v32 = vrot.slane %v1920_v20, 3  ;;  %v1925_v33 = vrot.slane %v1923_v55, 4  ;;  %v5569_v23 = vld [vmem:[#allocation4] sm:$0xff] }
 0x132   : > { %v2306_v42 = vrot.slane %v2304_v59, 1  ;;  %v5605_v24 = vld [vmem:[#allocation4 + $0xe0] sm:$0xff]  ;;  %v5604_v59 = vld [vmem:[#allocation4 + $0xd8] sm:$0xff] }
 0x133   : > { %2138 = vmatmul.bf16.gmra.mxu3 %v5936_v30  ;;  %v1747_v36 = vpop.f32.mrf.mxu1  ;;  %v1926_v39 = vor.u32 %v1925_v33, %v1922_v32  ;;  %v6789_v32 = vld [vmem:[%s7018_s2] ss:$0 sm:$0xff] }
 0x135   : > { %v1927_v47 = vsel %vm700_vm1, %v1917_v5, %v1926_v39 }
 0x136   : > { %v1367_v40 = vpop.f32.mrf.mxu3 }
 0x137   : > { %v1387_v43 = vadd.f32 %v1367_v40, %v1125_v27  ;;  %v1107_v44 = vpop.f32.mrf.mxu2 }
 0x139   : > { %v1517_v45 = vadd.f32 %v1497_v3, %v1387_v43  ;;  %v1501_v48 = vpop.f32.mrf.mxu0  ;;  %v2299_v3 = vsel %vm955_vm2, %v2294_v9, %v2298_v10  ;;  %v5608_v9 = vld [vmem:[#allocation4 + $0xf8] sm:$0xff] }
 0x13a   : > { %v5616_v10 = vld [vmem:[#allocation4 + $0x138] sm:$0xff]  ;;  %3382 = vmatpush.bf16.msrb.mxu0 %v5608_v9 }
 0x13b   : > { %v6765_v49 = vadd.f32 %v1747_v36, %v1517_v45  ;;  %v1749_v51 = vpop.f32.mrf.mxu1  ;;  %v5600_v45 = vld [vmem:[#allocation4 + $0xb8] sm:$0xff]  ;;  %3512 = vmatpush.bf16.msrb.mxu1 %v5616_v10 }
 0x13c   : > { %2012 = vmatmul.bf16.gmra.mxu2 %v1909_v46  ;;  %2392 = vmatmul.bf16.gmra.mxu0 %v2291_v29  ;;  %v2307_v51 = vsel %vm955_vm2, %v2302_v41, %v2306_v42  ;;  %v5603_v41 = vld [vmem:[#allocation4 + $0xd0] sm:$0xff] }
 0x13d   : > { %3120 = vmatpush.bf16.msrb.mxu3 %v5600_v45 }
 0x13e   : > { %v1369_v54 = vpop.f32.mrf.mxu3 }
 0x13f   : > { %v1109_v19 = vpop.f32.mrf.mxu2  ;;  %v5575_v54 = vld [vmem:[#allocation4 + $0x30] sm:$0xff]  ;;  %3513 = vmatpush.bf16.msrb.mxu1 %v5615_v35 }
 0x140   : > { %v1126_v28 = vadd.f32 %v1109_v19, %v6711_v63  ;;  %v5598_v19 = vld [vmem:[#allocation4 + $0xa8] sm:$0xff] }
 0x141   : > { %v1503_v62 = vpop.f32.mrf.mxu0  ;;  %3121 = vmatpush.bf16.msrb.mxu3 %v5599_v52 }
 0x142   : > { %v5597_v62 = vld [vmem:[#allocation4 + $0xa0] sm:$0xff] }
 0x143   : > { %2142 = vmatmul.bf16.gmra.mxu3 %v5937_v57  ;;  %v1751_v1 = vpop.f32.mrf.mxu1 }
 0x145   : > { %3122 = vmatpush.bf16.msrb.mxu3 %v5598_v19 }
 0x146   : > { %v1371_v7 = vpop.f32.mrf.mxu3 }
 0x147   : > { %v1388_v11 = vadd.f32 %v1371_v7, %v1126_v28  ;;  %v1111_v26 = vpop.f32.mrf.mxu2  ;;  %v5574_v28 = vld [vmem:[#allocation4 + $0x28] sm:$0xff] }
 0x149   : > { %v1518_v63 = vadd.f32 %v1501_v48, %v1388_v11  ;;  %v1505_v50 = vpop.f32.mrf.mxu0  ;;  %v5940_v48 = vld [vmem:[#allocation3 + $0x8] sm:$0xff]   ;;  %3123 = vmatpush.bf16.msrb.mxu3 %v5597_v62 }
 0x14a   : > { %2698 = vmatmul.bf16.vlgmr.msra.gmra.mxu1 %v5940_v48 }
 0x14b   : > { %v6773_v17 = vadd.f32 %v1751_v1, %v1518_v63  ;;  %v1753_v18 = vpop.f32.mrf.mxu1  ;;  %v5571_v63 = vld [vmem:[#allocation4 + $0x10] sm:$0xff] }
 0x14c   : > { %2016 = vmatmul.bf16.gmra.mxu2 %v1918_v14  ;;  %2396 = vmatmul.bf16.gmra.mxu0 %v2299_v3  ;;  %v5607_v14 = vld [vmem:[#allocation4 + $0xf0] sm:$0xff]  ;;  %v5594_v3 = vld [vmem:[#allocation4 + $0x88] sm:$0xff] }
 0x14d   : > { %3124 = vmatpush.bf16.msrb.mxu3 %v5596_v6  ;;  %3383 = vmatpush.bf16.msrb.mxu0 %v5607_v14  ;;  %v5606_v18 = vld [vmem:[#allocation4 + $0xe8] sm:$0xff] }
 0x14e   : > { %v1373_v22 = vpop.f32.mrf.mxu3 }
 0x14f   : > { %v1113_v30 = vpop.f32.mrf.mxu2  ;;  %v5593_v22 = vld [vmem:[#allocation4 + $0x80] sm:$0xff] }
 0x150   : > { %v1127_v27 = vadd.f32 %v1113_v30, %v6728_v38  ;;  %v5576_v38 = vld [vmem:[#allocation4 + $0x38] sm:$0xff] }
 0x151   : > { %v1507_v34 = vpop.f32.mrf.mxu0  ;;  %2878 = vmatpush.bf16.msrb.mxu2 %v5576_v38  ;;  %3384 = vmatpush.bf16.msrb.mxu0 %v5606_v18 }
 0x153   : > { %2146 = vmatmul.bf16.gmra.mxu3 %v6719_v8  ;;  %v1755_v36 = vpop.f32.mrf.mxu1 }
 0x155   : > { %2879 = vmatpush.bf16.msrb.mxu2 %v5575_v54  ;;  %3385 = vmatpush.bf16.msrb.mxu0 %v5605_v24  ;;  %v5601_v54 = vld [vmem:[#allocation4 + $0xc0] sm:$0xff] }
 0x156   : > { %v1375_v40 = vpop.f32.mrf.mxu3 }
 0x157   : > { %v1389_v43 = vadd.f32 %v1375_v40, %v1127_v27  ;;  %v1115_v44 = vpop.f32.mrf.mxu2 }
 0x159   : > { %v1519_v46 = vadd.f32 %v1505_v50, %v1389_v43  ;;  %v1509_v29 = vpop.f32.mrf.mxu0  ;;  %2880 = vmatpush.bf16.msrb.mxu2 %v5574_v28  ;;  %3386 = vmatpush.bf16.msrb.mxu0 %v5604_v59 }
 0x15b   : > { %v6779_v31 = vadd.f32 %v1755_v36, %v1519_v46  ;;  %v1757_v8 = vpop.f32.mrf.mxu1  ;;  %v5602_v46 = vld [vmem:[#allocation4 + $0xc8] sm:$0xff] }
 0x15c   : > { %2020 = vmatmul.bf16.gmra.mxu2 %v1927_v47  ;;  %2400 = vmatmul.bf16.gmra.mxu0 %v2307_v51  ;;  %v6100_v51 = vld [vmem:[#allocation3 + $0x4] sm:$0xf0]  }
 0x15d   : > { %2881 = vmatpush.bf16.msrb.mxu2 %v5573_v0  ;;  %3387 = vmatpush.bf16.msrb.mxu0 %v5603_v41  ;;  %v5614_v0 = vld [vmem:[#allocation4 + $0x128] sm:$0xff] }
 0x15e   : > { %v1377_v37 = vpop.f32.mrf.mxu3  ;;  %3514 = vmatpush.bf16.msrb.mxu1 %v5614_v0 }
 0x15f   : > { %v1117_v25 = vpop.f32.mrf.mxu2 }
 0x160   : > { %v1128_v57 = vadd.f32 %v1117_v25, %v6737_v58  ;;  %v5572_v58 = vld [vmem:[#allocation4 + $0x18] sm:$0xff] }
 0x161   : > { %v1511_v60 = vpop.f32.mrf.mxu0  ;;  %2882 = vmatpush.bf16.msrb.mxu2 %v5572_v58  ;;  %3388 = vmatpush.bf16.msrb.mxu0 %v5602_v46 }
 0x163   : > { %2150 = vmatmul.bf16.gmra.mxu3 %v6768_v4  ;;  %v1759_v61 = vpop.f32.mrf.mxu1  ;;  %v5595_v4 = vld [vmem:[#allocation4 + $0x90] sm:$0xff] }
 0x164   : > { %3125 = vmatpush.bf16.msrb.mxu3 %v5595_v4 }
 0x165   : > { %2883 = vmatpush.bf16.msrb.mxu2 %v5571_v63  ;;  %3389 = vmatpush.bf16.msrb.mxu0 %v5601_v54 }
 0x166   : > { %v1379_v2 = vpop.f32.mrf.mxu3 }
 0x167   : > { %v1390_v1 = vadd.f32 %v1379_v2, %v1128_v57  ;;  %v1119_v5 = vpop.f32.mrf.mxu2  ;;  %v5585_v57 = vld [vmem:[#allocation3 + $0x8] sm:$0xff] }
 0x168   : > { %3126 = vmatpush.bf16.msrb.mxu3 %v5594_v3  ;;  %v2997_v10 = vshrl.u32 %v5585_v57, 16 }
 0x169   : > { %v1520_v7 = vadd.f32 %v1509_v29, %v1390_v1  ;;  %v2373_v11 = vpop.f32.mrf.mxu0  ;;  %2884 = vmatpush.bf16.msrb.mxu2 %v5570_v15  ;;  %v5950_v29 = vld [vmem:[#allocation3 + $0x4] sm:$0x8] }
 0x16a   : > { %v5951_v28 = vor.u32 %v6100_v51, %v5950_v29 }
 0x16b   : > { %v6783_v26 = vadd.f32 %v1759_v61, %v1520_v7  ;;  %v1761_v13 = vpop.f32.mrf.mxu1 }
 0x16c   : > { %3127 = vmatpush.bf16.msrb.mxu3 %v5593_v22  ;;  %v2743_v1 = vshrl.u32 %v5951_v28, 16  ;;  %v2746_v5 = vshll.u32 %v5951_v28, 16 }
 0x16d   : > { %2885 = vmatpush.bf16.msrb.mxu2 %v5569_v23 }
 0x16e   : > { %v1381_v16 = vpop.f32.mrf.mxu3  ;;  %v2748_v4 = vrot.slane %v2746_v5, 4 }
 0x16f   : > { %v1993_v50 = vpop.f32.mrf.mxu2 }
 0x170   : > { %v2025_v55 = vadd.f32 %v1993_v50, %v6744_v56  ;;  %v6794_v56 = vld [vmem:[%s7018_s2 + $0x1] ss:$0 sm:$0xff] }
 0x171   : > { %v2375_v20 = vpop.f32.mrf.mxu0 }
 0x176   : > { %v2123_v30 = vpop.f32.mrf.mxu3 }
 0x177   : > { %v2155_v27 = vadd.f32 %v2123_v30, %v2025_v55  ;;  %v1995_v33 = vpop.f32.mrf.mxu2 }
 0x179   : > { %v2405_v34 = vadd.f32 %v2373_v11, %v2155_v27  ;;  %v2377_v36 = vpop.f32.mrf.mxu0  ;;  %v2745_v11 = vrot.slane %v2743_v1, 3 }
 0x17b   : > { %v2414_v39 = vmul.f32 %v6789_v32, %v2405_v34  ;;  %v2749_v23 = vor.u32 %v2748_v4, %v2745_v11 }
 0x17d   : > { %v2423_v40 = vadd.f32 %v6794_v56, %v2414_v39  ;;  %v6116_v39 = vld [vmem:[#allocation3 + $0xc] sm:$0x8] }
 0x17e   : > { %v2125_v42 = vpop.f32.mrf.mxu3 }
 0x17f   : > { %v2431_v43 = vmax.f32 %v2423_v40, 0.0  ;;  %v1997_v44 = vpop.f32.mrf.mxu2 }
 0x180   : > { %v2026_v48 = vadd.f32 %v1997_v44, %v6749_v21  ;;  %v2999_v21 = vshll.u32 %v5585_v57, 16 }
 0x181   : > { %v2439_v45 = vpack.c.bf16 %v2431_v43, %v2431_v43  ;;  %v2379_v47 = vpop.f32.mrf.mxu0 }
 0x182   : > { %v3001_v58 = vrot.slane %v2999_v21, 1 }
 0x183   : > { %v2448_v38 = vsel %vm403_vm0, %v2439_v45, 0 }
 0x184   : > { %v2475_v8 = vunpack.c.l.b16 %v2448_v38  ;;  %v2476_v52 = vunpack.c.h.b16 %v2448_v38  ;;  %v3002_v20 = vor.u32 %v3001_v58, %v2997_v10 }
 0x186   : > { %v2491_v37 = vpack.c.b16 %v2475_v8, %v2475_v8  ;;  %v2492_v25 = vpack.c.b16 %v2476_v52, %v2476_v52  ;;  %v2127_v19 = vpop.f32.mrf.mxu3 }
 0x187   : > { %v2156_v60 = vadd.f32 %v2127_v19, %v2026_v48  ;;  %v1999_v61 = vpop.f32.mrf.mxu2  ;;  %v5613_v48 = vld [vmem:[#allocation4 + $0x120] sm:$0xff] }
 0x188   : > { %2523 = vst [vmem:[#allocation3 + $0x10] sm:$0xf] %v2491_v37  ;;  %3515 = vmatpush.bf16.msrb.mxu1 %v5613_v48 }
 0x189   : > { %2524 = vst [vmem:[#allocation3 + $0x14] sm:$0xf] %v2492_v25  ;;  %v2406_v62 = vadd.f32 %v2377_v36, %v2156_v60  ;;  %v2381_v2 = vpop.f32.mrf.mxu0 }
 0x18b   : > { %v2415_v6 = vmul.f32 %v6789_v32, %v2406_v62 }
 0x18d   : > { %v2424_v7 = vadd.f32 %v6794_v56, %v2415_v6 }
 0x18e   : > { %v2129_v9 = vpop.f32.mrf.mxu3 }
 0x18f   : > { %v2432_v13 = vmax.f32 %v2424_v7, 0.0  ;;  %v2001_v63 = vpop.f32.mrf.mxu2  ;;  %v6102_v14 = vld [vmem:[#allocation3 + $0xc] sm:$0xff]  }
 0x190   : > { %v6802_v16 = vld [vmem:[#allocation3 + $0x10] sm:$0xff]   ;;  %v2751_v15 = vshrl.u32 %v6102_v14, 16  ;;  %v2754_v18 = vshll.u32 %v6102_v14, 16  ;;  %v2027_v30 = vadd.f32 %v2001_v63, %v6755_v53 }
 0x191   : > { %v5586_v50 = vld [vmem:[#allocation3 + $0x10] sm:$0xff]  ;;  %v2440_v3 = vpack.c.bf16 %v2432_v13, %v2432_v13  ;;  %2702 = vmatmul.bf16.gmra.mxu1 %v6802_v16  ;;  %v2383_v22 = vpop.f32.mrf.mxu0 }
 0x192   : > { %v3004_v55 = vshll.u32 %v5586_v50, 16  ;;  %v2753_v27 = vrot.slane %v2751_v15, 3  ;;  %v2756_v33 = vrot.slane %v2754_v18, 4  ;;  %v6239_v40 = vld [vmem:[#allocation3 + $0xc] sm:$0xf0]   ;;  %v3008_v62 = vshrl.u32 %v5586_v50, 16 }
 0x193   : > { %v2450_v24 = vsel %vm403_vm0, %v2440_v3, 0  ;;  %v6117_v53 = vor.u32 %v6239_v40, %v6116_v39  ;;  %v5612_v39 = vld [vmem:[#allocation4 + $0x118] sm:$0xff] }
 0x194   : > { %v2477_v34 = vunpack.c.l.b16 %v2450_v24  ;;  %v2478_v35 = vunpack.c.h.b16 %v2450_v24  ;;  %v3006_v59 = vrot.slane %v3004_v55, 1  ;;  %v2757_v36 = vor.u32 %v2756_v33, %v2753_v27  ;;  %3516 = vmatpush.bf16.msrb.mxu1 %v5612_v39 }
 0x195   : > { %v3247_v8 = vshrl.u32 %v6117_v53, 16  ;;  %v3250_v52 = vshll.u32 %v6117_v53, 16 }
 0x196   : > { %v2493_v41 = vpack.c.b16 %v2477_v34, %v2477_v34  ;;  %v2494_v42 = vpack.c.b16 %v2478_v35, %v2478_v35  ;;  %v2131_v43 = vpop.f32.mrf.mxu3  ;;  %v3007_v44 = vsel %vm955_vm2, %v3002_v20, %v3006_v59  ;;  %v2758_v46 = vsel %vm700_vm1, %v2749_v23, %v2757_v36 }
 0x197   : > { %v2157_v45 = vadd.f32 %v2131_v43, %v2027_v30  ;;  %3128 = vmatmul.bf16.vlgmr.msrb.gmra.mxu3 %v3007_v44  ;;  %v2003_v47 = vpop.f32.mrf.mxu2  ;;  %2886 = vmatmul.bf16.vlgmr.msrb.gmra.mxu2 %v2758_v46  ;;  %v3249_v0 = vrot.slane %v3247_v8, 3  ;;  %v3010_v9 = vor.u32 %v3008_v62, %v3006_v59 }
 0x198   : > { %2525 = vst [vmem:[#allocation3 + $0x18] sm:$0xf] %v2493_v41 }
 0x199   : > { %2526 = vst [vmem:[#allocation3 + $0x1c] sm:$0xf] %v2494_v42  ;;  %v2407_v38 = vadd.f32 %v2381_v2, %v2157_v45  ;;  %v2385_v29 = vpop.f32.mrf.mxu0  ;;  %v3252_v2 = vrot.slane %v3250_v52, 4 }
 0x19b   : > { %v2416_v51 = vmul.f32 %v6789_v32, %v2407_v38  ;;  %v3253_v55 = vor.u32 %v3252_v2, %v3249_v0 }
 0x19d   : > { %v2425_v54 = vadd.f32 %v6794_v56, %v2416_v51 }
 0x19e   : > { %v2133_v37 = vpop.f32.mrf.mxu3 }
 0x19f   : > { %v2433_v25 = vmax.f32 %v2425_v54, 0.0  ;;  %v2005_v19 = vpop.f32.mrf.mxu2  ;;  %v6104_v57 = vld [vmem:[#allocation3 + $0x14] sm:$0xff]  }
 0x1a0   : > { %v6241_v28 = vld [vmem:[#allocation3 + $0x14] sm:$0xff]   ;;  %v2760_v1 = vshrl.u32 %v6104_v57, 16  ;;  %v2763_v5 = vshll.u32 %v6104_v57, 16  ;;  %v2028_v7 = vadd.f32 %v2005_v19, %v6760_v12 }
 0x1a1   : > { %v6811_v60 = vld [vmem:[#allocation3 + $0x18] sm:$0xff]   ;;  %v2441_v21 = vpack.c.bf16 %v2433_v25, %v2433_v25  ;;  %v3255_v6 = vshrl.u32 %v6241_v28, 16  ;;  %v2387_v58 = vpop.f32.mrf.mxu0  ;;  %v3258_v11 = vshll.u32 %v6241_v28, 16 }
 0x1a2   : > { %v5587_v61 = vld [vmem:[#allocation3 + $0x18] sm:$0xff]  ;;  %2706 = vmatmul.bf16.gmra.mxu1 %v6811_v60  ;;  %v2762_v13 = vrot.slane %v2760_v1, 3  ;;  %v2765_v63 = vrot.slane %v2763_v5, 4 }
 0x1a3   : > { %v3012_v10 = vshll.u32 %v5587_v61, 16  ;;  %v2452_v4 = vsel %vm403_vm0, %v2441_v21, 0  ;;  %v3257_v14 = vrot.slane %v3255_v6, 3  ;;  %v3260_v18 = vrot.slane %v3258_v11, 4 }
 0x1a4   : > { %v2479_v50 = vunpack.c.l.b16 %v2452_v4  ;;  %v2480_v3 = vunpack.c.h.b16 %v2452_v4  ;;  %v2766_v20 = vor.u32 %v2765_v63, %v2762_v13  ;;  %v3016_v38 = vshrl.u32 %v5587_v61, 16 }
 0x1a5   : > { %v3014_v15 = vrot.slane %v3012_v10, 1  ;;  %v3261_v30 = vor.u32 %v3260_v18, %v3257_v14  ;;  %v5611_v14 = vld [vmem:[#allocation4 + $0x110] sm:$0xff] }
 0x1a6   : > { %v2495_v22 = vpack.c.b16 %v2479_v50, %v2479_v50  ;;  %v2496_v23 = vpack.c.b16 %v2480_v3, %v2480_v3  ;;  %v2135_v24 = vpop.f32.mrf.mxu3  ;;  %v2767_v33 = vsel %vm700_vm1, %v2757_v36, %v2766_v20  ;;  %3517 = vmatpush.bf16.msrb.mxu1 %v5611_v14 }
 0x1a7   : > { %v3015_v12 = vsel %vm955_vm2, %v3010_v9, %v3014_v15  ;;  %v2158_v27 = vadd.f32 %v2135_v24, %v2028_v7  ;;  %v2007_v34 = vpop.f32.mrf.mxu2  ;;  %2890 = vmatmul.bf16.gmra.mxu2 %v2767_v33  ;;  %v3262_v35 = vsel %vm700_vm1, %v3253_v55, %v3261_v30  ;;  %v3018_v54 = vor.u32 %v3016_v38, %v3014_v15 }
 0x1a8   : > { %3132 = vmatmul.bf16.gmra.mxu3 %v3015_v12  ;;  %2527 = vst [vmem:[#allocation3 + $0x20] sm:$0xf] %v2495_v22  ;;  %3390 = vmatmul.bf16.vlgmr.msrb.gmra.mxu0 %v3262_v35 }
 0x1a9   : > { %2528 = vst [vmem:[#allocation3 + $0x24] sm:$0xf] %v2496_v23  ;;  %v2408_v59 = vadd.f32 %v2385_v29, %v2158_v27  ;;  %v2389_v40 = vpop.f32.mrf.mxu0 }
 0x1ab   : > { %v2417_v41 = vmul.f32 %v6789_v32, %v2408_v59 }
 0x1ad   : > { %v2426_v42 = vadd.f32 %v6794_v56, %v2417_v41 }
 0x1ae   : > { %v2137_v43 = vpop.f32.mrf.mxu3 }
 0x1af   : > { %v2434_v44 = vmax.f32 %v2426_v42, 0.0  ;;  %v2009_v45 = vpop.f32.mrf.mxu2  ;;  %v6106_v46 = vld [vmem:[#allocation3 + $0x1c] sm:$0xff]  }
 0x1b0   : > { %v6243_v36 = vld [vmem:[#allocation3 + $0x1c] sm:$0xff]   ;;  %v2769_v29 = vshrl.u32 %v6106_v46, 16  ;;  %v2772_v51 = vshll.u32 %v6106_v46, 16  ;;  %v2029_v52 = vadd.f32 %v2009_v45, %v6765_v49 }
 0x1b1   : > { %v6821_v47 = vld [vmem:[#allocation3 + $0x20] sm:$0xff]   ;;  %v2442_v48 = vpack.c.bf16 %v2434_v44, %v2434_v44  ;;  %v3264_v8 = vshrl.u32 %v6243_v36, 16  ;;  %v2391_v25 = vpop.f32.mrf.mxu0  ;;  %v3267_v19 = vshll.u32 %v6243_v36, 16 }
 0x1b2   : > { %v5588_v53 = vld [vmem:[#allocation3 + $0x20] sm:$0xff]  ;;  %2710 = vmatmul.bf16.gmra.mxu1 %v6821_v47  ;;  %v2771_v28 = vrot.slane %v2769_v29, 3  ;;  %v2774_v62 = vrot.slane %v2772_v51, 4 }
 0x1b3   : > { %v3020_v37 = vshll.u32 %v5588_v53, 16  ;;  %v2454_v57 = vsel %vm403_vm0, %v2442_v48, 0  ;;  %v3266_v0 = vrot.slane %v3264_v8, 3  ;;  %v3269_v1 = vrot.slane %v3267_v19, 4 }
 0x1b4   : > { %v2481_v2 = vunpack.c.l.b16 %v2454_v57  ;;  %v2482_v21 = vunpack.c.h.b16 %v2454_v57  ;;  %v2775_v5 = vor.u32 %v2774_v62, %v2771_v28  ;;  %v3024_v27 = vshrl.u32 %v5588_v53, 16  ;;  %v5610_v62 = vld [vmem:[#allocation4 + $0x108] sm:$0xff] }
 0x1b5   : > { %v3022_v61 = vrot.slane %v3020_v37, 1  ;;  %v3270_v49 = vor.u32 %v3269_v1, %v3266_v0  ;;  %3518 = vmatpush.bf16.msrb.mxu1 %v5610_v62 }
 0x1b6   : > { %v2497_v6 = vpack.c.b16 %v2481_v2, %v2481_v2  ;;  %v2498_v7 = vpack.c.b16 %v2482_v21, %v2482_v21  ;;  %v2139_v9 = vpop.f32.mrf.mxu3  ;;  %v2776_v11 = vsel %vm700_vm1, %v2766_v20, %v2775_v5 }
 0x1b7   : > { %v3023_v10 = vsel %vm955_vm2, %v3018_v54, %v3022_v61  ;;  %v2159_v58 = vadd.f32 %v2139_v9, %v2029_v52  ;;  %v2011_v4 = vpop.f32.mrf.mxu2  ;;  %2894 = vmatmul.bf16.gmra.mxu2 %v2776_v11  ;;  %v3271_v13 = vsel %vm700_vm1, %v3261_v30, %v3270_v49  ;;  %v3026_v39 = vor.u32 %v3024_v27, %v3022_v61 }
 0x1b8   : > { %3136 = vmatmul.bf16.gmra.mxu3 %v3023_v10  ;;  %2529 = vst [vmem:[#allocation3 + $0x28] sm:$0xf] %v2497_v6  ;;  %3394 = vmatmul.bf16.gmra.mxu0 %v3271_v13 }
 0x1b9   : > { %2530 = vst [vmem:[#allocation3 + $0x2c] sm:$0xf] %v2498_v7  ;;  %v2409_v63 = vadd.f32 %v2389_v40, %v2159_v58  ;;  %v2393_v50 = vpop.f32.mrf.mxu0 }
 0x1bb   : > { %v2418_v3 = vmul.f32 %v6789_v32, %v2409_v63 }
 0x1bd   : > { %v2427_v15 = vadd.f32 %v6794_v56, %v2418_v3 }
 0x1be   : > { %v2141_v18 = vpop.f32.mrf.mxu3 }
 0x1bf   : > { %v2435_v55 = vmax.f32 %v2427_v15, 0.0  ;;  %v2013_v22 = vpop.f32.mrf.mxu2  ;;  %v6108_v23 = vld [vmem:[#allocation3 + $0x24] sm:$0xff]  }
 0x1c0   : > { %v6245_v20 = vld [vmem:[#allocation3 + $0x24] sm:$0xff]   ;;  %v2778_v33 = vshrl.u32 %v6108_v23, 16  ;;  %v2781_v34 = vshll.u32 %v6108_v23, 16  ;;  %v2030_v59 = vadd.f32 %v2013_v22, %v6773_v17 }
 0x1c1   : > { %v6831_v24 = vld [vmem:[#allocation3 + $0x28] sm:$0xff]   ;;  %v2443_v30 = vpack.c.bf16 %v2435_v55, %v2435_v55  ;;  %v3273_v35 = vshrl.u32 %v6245_v20, 16  ;;  %v2395_v41 = vpop.f32.mrf.mxu0  ;;  %v3276_v42 = vshll.u32 %v6245_v20, 16 }
 0x1c2   : > { %v5589_v12 = vld [vmem:[#allocation3 + $0x28] sm:$0xff]  ;;  %2714 = vmatmul.bf16.gmra.mxu1 %v6831_v24  ;;  %v2780_v44 = vrot.slane %v2778_v33, 3  ;;  %v2783_v45 = vrot.slane %v2781_v34, 4 }
 0x1c3   : > { %v3028_v40 = vshll.u32 %v5589_v12, 16  ;;  %v2456_v43 = vsel %vm403_vm0, %v2443_v30, 0  ;;  %v3275_v46 = vrot.slane %v3273_v35, 3  ;;  %v3278_v48 = vrot.slane %v3276_v42, 4 }
 0x1c4   : > { %v2483_v36 = vunpack.c.l.b16 %v2456_v43  ;;  %v2484_v38 = vunpack.c.h.b16 %v2456_v43  ;;  %v2784_v29 = vor.u32 %v2783_v45, %v2780_v44 }
 0x1c5   : > { %v3030_v53 = vrot.slane %v3028_v40, 1  ;;  %v3279_v17 = vor.u32 %v3278_v48, %v3275_v46  ;;  %v5609_v46 = vld [vmem:[#allocation4 + $0x100] sm:$0xff]  ;;  %v5648_v48 = vld [vmem:[#allocation4 + $0x1f8] sm:$0xff] }
 0x1c6   : > { %v2499_v51 = vpack.c.b16 %v2483_v36, %v2483_v36  ;;  %v2500_v8 = vpack.c.b16 %v2484_v38, %v2484_v38  ;;  %v2143_v52 = vpop.f32.mrf.mxu3  ;;  %v2785_v25 = vsel %vm700_vm1, %v2775_v5, %v2784_v29  ;;  %v5632_v36 = vld [vmem:[#allocation4 + $0x178] sm:$0xff]  ;;  %3519 = vmatpush.bf16.msrb.mxu1 %v5609_v46  ;;  %4154 = vmatpush.bf16.msra.mxu0 %v5648_v48  ;;  %v5627_v46 = vld [vmem:[#allocation4 + $0x150] sm:$0xff] }
 0x1c7   : > { %v3031_v54 = vsel %vm955_vm2, %v3026_v39, %v3030_v53  ;;  %v2160_v37 = vadd.f32 %v2143_v52, %v2030_v59  ;;  %v2015_v19 = vpop.f32.mrf.mxu2  ;;  %2898 = vmatmul.bf16.gmra.mxu2 %v2785_v25  ;;  %v3280_v57 = vsel %vm700_vm1, %v3270_v49, %v3279_v17  ;;  %v3032_v49 = vshrl.u32 %v5589_v12, 16  ;;  %v6856_v43 = vpop.f32.mrf.mxu1  ;;  %v5640_v38 = vld [vmem:[#allocation4 + $0x1b8] sm:$0xff] }
 0x1c8   : > { %3140 = vmatmul.bf16.gmra.mxu3 %v3031_v54  ;;  %2531 = vst [vmem:[#allocation3 + $0x30] sm:$0xf] %v2499_v51  ;;  %3398 = vmatmul.bf16.gmra.mxu0 %v3280_v57 }
 0x1c9   : > { %2532 = vst [vmem:[#allocation3 + $0x34] sm:$0xf] %v2500_v8  ;;  %v2410_v28 = vadd.f32 %v2393_v50, %v2160_v37  ;;  %v2397_v0 = vpop.f32.mrf.mxu0  ;;  %v3034_v14 = vor.u32 %v3032_v49, %v3030_v53  ;;  %3762 = vmatpush.bf16.msra.mxu2 %v5632_v36  ;;  %4024 = vmatpush.bf16.msra.mxu3 %v5640_v38  ;;  %v5639_v8 = vld [vmem:[#allocation4 + $0x1b0] sm:$0xff] }
 0x1ca   : > { %v5647_v36 = vld [vmem:[#allocation4 + $0x1f0] sm:$0xff] }
 0x1cb   : > { %v2419_v2 = vmul.f32 %v6789_v32, %v2410_v28  ;;  %v5635_v38 = vld [vmem:[#allocation4 + $0x190] sm:$0xff]  ;;  %4155 = vmatpush.bf16.msra.mxu0 %v5647_v36 }
 0x1cd   : > { %v2428_v21 = vadd.f32 %v6794_v56, %v2419_v2  ;;  %4025 = vmatpush.bf16.msra.mxu3 %v5639_v8 }
 0x1ce   : > { %v2145_v61 = vpop.f32.mrf.mxu3 }
 0x1cf   : > { %v2436_v1 = vmax.f32 %v2428_v21, 0.0  ;;  %v2017_v6 = vpop.f32.mrf.mxu2  ;;  %v6110_v7 = vld [vmem:[#allocation3 + $0x2c] sm:$0xff]   ;;  %v2701_v57 = vpop.f32.mrf.mxu1 }
 0x1d0   : > { %v6247_v5 = vld [vmem:[#allocation3 + $0x2c] sm:$0xff]   ;;  %v2787_v11 = vshrl.u32 %v6110_v7, 16  ;;  %v2790_v4 = vshll.u32 %v6110_v7, 16  ;;  %v2031_v63 = vadd.f32 %v2017_v6, %v6779_v31  ;;  %v5664_v6 = vld [vmem:[#allocation4 + $0x238] sm:$0xff]  ;;  %v5630_v7 = vld [vmem:[#allocation4 + $0x168] sm:$0xff] }
 0x1d1   : > { %v6841_v9 = vld [vmem:[#allocation3 + $0x30] sm:$0xff]   ;;  %v2444_v58 = vpack.c.bf16 %v2436_v1, %v2436_v1  ;;  %v3282_v13 = vshrl.u32 %v6247_v5, 16  ;;  %v2399_v3 = vpop.f32.mrf.mxu0  ;;  %v3285_v15 = vshll.u32 %v6247_v5, 16  ;;  %v5638_v5 = vld [vmem:[#allocation4 + $0x1a8] sm:$0xff]  ;;  %4404 = vmatpush.bf16.msra.mxu1 %v5664_v6 }
 0x1d2   : > { %v6843_v10 = vld [vmem:[#allocation3 + $0x30] sm:$0xff]  ;;  %2718 = vmatmul.bf16.gmra.mxu1 %v6841_v9  ;;  %v2789_v55 = vrot.slane %v2787_v11, 3  ;;  %v2792_v22 = vrot.slane %v2790_v4, 4  ;;  %v5629_v3 = vld [vmem:[#allocation4 + $0x160] sm:$0xff]  ;;  %4026 = vmatpush.bf16.msra.mxu3 %v5638_v5 }
 0x1d3   : > { %v3036_v50 = vshll.u32 %v6843_v10, 16  ;;  %v2458_v18 = vsel %vm403_vm0, %v2444_v58, 0  ;;  %v3284_v23 = vrot.slane %v3282_v13, 3  ;;  %v3287_v30 = vrot.slane %v3285_v15, 4 }
 0x1d4   : > { %v2485_v20 = vunpack.c.l.b16 %v2458_v18  ;;  %v2486_v12 = vunpack.c.h.b16 %v2458_v18  ;;  %v6849_v33 = vor.u32 %v2792_v22, %v2789_v55 }
 0x1d5   : > { %v3038_v27 = vrot.slane %v3036_v50, 1  ;;  %v6852_v39 = vor.u32 %v3287_v30, %v3284_v23  ;;  %v5637_v23 = vld [vmem:[#allocation4 + $0x1a0] sm:$0xff] }
 0x1d6   : > { %v2501_v34 = vpack.c.b16 %v2485_v20, %v2485_v20  ;;  %v2502_v35 = vpack.c.b16 %v2486_v12, %v2486_v12  ;;  %v2147_v59 = vpop.f32.mrf.mxu3  ;;  %v2794_v41 = vsel %vm700_vm1, %v2784_v29, %v6849_v33  ;;  %v5631_v29 = vld [vmem:[#allocation4 + $0x170] sm:$0xff]  ;;  %4027 = vmatpush.bf16.msra.mxu3 %v5637_v23  ;;  %v5644_v23 = vld [vmem:[#allocation4 + $0x1d8] sm:$0xff] }
 0x1d7   : > { %v3039_v31 = vsel %vm955_vm2, %v3034_v14, %v3038_v27  ;;  %v2161_v40 = vadd.f32 %v2147_v59, %v2031_v63  ;;  %v2019_v42 = vpop.f32.mrf.mxu2  ;;  %2902 = vmatmul.bf16.gmra.mxu2 %v2794_v41  ;;  %v3289_v44 = vsel %vm700_vm1, %v3279_v17, %v6852_v39 }
 0x1d8   : > { %3144 = vmatmul.bf16.gmra.mxu3 %v3039_v31  ;;  %2533 = vst [vmem:[#allocation3 + $0x38] sm:$0xf] %v2501_v34  ;;  %3402 = vmatmul.bf16.gmra.mxu0 %v3289_v44  ;;  %v5628_v42 = vld [vmem:[#allocation4 + $0x158] sm:$0xff] }
 0x1d9   : > { %2534 = vst [vmem:[#allocation3 + $0x3c] sm:$0xf] %v2502_v35  ;;  %v2411_v45 = vadd.f32 %v2397_v0, %v2161_v40  ;;  %v6860_v53 = vpop.f32.mrf.mxu0  ;;  %3763 = vmatpush.bf16.msra.mxu2 %v5631_v29  ;;  %v3040_v0 = vshrl.u32 %v6843_v10, 16  ;;  %v5636_v44 = vld [vmem:[#allocation4 + $0x198] sm:$0xff] }
 0x1da   : > { %4028 = vmatpush.bf16.msra.mxu3 %v5636_v44 }
 0x1db   : > { %v2420_v51 = vmul.f32 %v6789_v32, %v2411_v45  ;;  %v3042_v58 = vor.u32 %v3040_v0, %v3038_v27 }
 0x1dd   : > { %v2429_v52 = vadd.f32 %v6794_v56, %v2420_v51  ;;  %3764 = vmatpush.bf16.msra.mxu2 %v5630_v7 }
 0x1de   : > { %v2149_v54 = vpop.f32.mrf.mxu3  ;;  %4029 = vmatpush.bf16.msra.mxu3 %v5635_v38 }
 0x1df   : > { %v2437_v17 = vmax.f32 %v2429_v52, 0.0  ;;  %v2021_v37 = vpop.f32.mrf.mxu2  ;;  %v6112_v25 = vld [vmem:[#allocation3 + $0x34] sm:$0xff]  }
 0x1e0   : > { %v6249_v19 = vld [vmem:[#allocation3 + $0x34] sm:$0xff]   ;;  %v2796_v21 = vshrl.u32 %v6112_v25, 16  ;;  %v2799_v61 = vshll.u32 %v6112_v25, 16  ;;  %v2032_v49 = vadd.f32 %v2021_v37, %v6783_v26  ;;  %v5626_v37 = vld [vmem:[#allocation4 + $0x148] sm:$0xff] }
 0x1e1   : > { %v6864_v28 = vld [vmem:[#allocation3 + $0x38] sm:$0xff]   ;;  %v2445_v2 = vpack.c.bf16 %v2437_v17, %v2437_v17  ;;  %v3291_v1 = vshrl.u32 %v6249_v19, 16  ;;  %v3294_v4 = vshll.u32 %v6249_v19, 16  ;;  %v2403_v13 = vpop.f32.mrf.mxu0  ;;  %3765 = vmatpush.bf16.msra.mxu2 %v5629_v3  ;;  %v5663_v17 = vld [vmem:[#allocation4 + $0x230] sm:$0xff]  ;;  %v5634_v25 = vld [vmem:[#allocation4 + $0x188] sm:$0xff] }
 0x1e2   : > { %v6866_v62 = vld [vmem:[#allocation3 + $0x38] sm:$0xff]  ;;  %2722 = vmatmul.bf16.gmra.mxu1 %v6864_v28  ;;  %v2798_v10 = vrot.slane %v2796_v21, 3  ;;  %v2801_v14 = vrot.slane %v2799_v61, 4  ;;  %v5646_v21 = vld [vmem:[#allocation4 + $0x1e8] sm:$0xff]  ;;  %4030 = vmatpush.bf16.msra.mxu3 %v5634_v25 }
 0x1e3   : > { %v3044_v11 = vshll.u32 %v6866_v62, 16  ;;  %v2460_v63 = vsel %vm403_vm0, %v2445_v2, 0  ;;  %v3293_v50 = vrot.slane %v3291_v1, 3  ;;  %v3296_v22 = vrot.slane %v3294_v4, 4  ;;  %4405 = vmatpush.bf16.msra.mxu1 %v5663_v17  ;;  %4156 = vmatpush.bf16.msra.mxu0 %v5646_v21  ;;  %v5625_v13 = vld [vmem:[#allocation4 + $0x140] sm:$0xff] }
 0x1e4   : > { %v2487_v15 = vunpack.c.l.b16 %v2460_v63  ;;  %v2488_v18 = vunpack.c.h.b16 %v2460_v63  ;;  %v6873_v26 = vor.u32 %v2801_v14, %v2798_v10  ;;  %v3048_v52 = vshrl.u32 %v6866_v62, 16  ;;  %v5645_v63 = vld [vmem:[#allocation4 + $0x1e0] sm:$0xff] }
 0x1e5   : > { %v3046_v55 = vrot.slane %v3044_v11, 1  ;;  %v6876_v34 = vor.u32 %v3296_v22, %v3293_v50  ;;  %3766 = vmatpush.bf16.msra.mxu2 %v5628_v42  ;;  %v5633_v3 = vld [vmem:[#allocation4 + $0x180] sm:$0xff]  ;;  %v5662_v42 = vld [vmem:[#allocation4 + $0x228] sm:$0xff] }
 0x1e6   : > { %v2503_v20 = vpack.c.b16 %v2487_v15, %v2487_v15  ;;  %v2504_v12 = vpack.c.b16 %v2488_v18, %v2488_v18  ;;  %v2151_v27 = vpop.f32.mrf.mxu3  ;;  %v2803_v59 = vsel %vm700_vm1, %v6849_v33, %v6873_v26  ;;  %4031 = vmatpush.bf16.msra.mxu3 %v5633_v3 }
 0x1e7   : > { %v3047_v30 = vsel %vm955_vm2, %v3042_v58, %v3046_v55  ;;  %v2162_v35 = vadd.f32 %v2151_v27, %v2032_v49  ;;  %v2023_v31 = vpop.f32.mrf.mxu2  ;;  %2906 = vmatmul.bf16.gmra.mxu2 %v2803_v59  ;;  %v3298_v40 = vsel %vm700_vm1, %v6852_v39, %v6876_v34  ;;  %v3050_v19 = vor.u32 %v3048_v52, %v3046_v55  ;;  %v5643_v27 = vld [vmem:[#allocation4 + $0x1d0] sm:$0xff] }
 0x1e8   : > { %3148 = vmatmul.bf16.gmra.mxu3 %v3047_v30  ;;  %2535 = vst [vmem:[#allocation3 + $0x40] sm:$0xf] %v2503_v20  ;;  %3406 = vmatmul.bf16.gmra.mxu0 %v3298_v40 }
 0x1e9   : > { %2536 = vst [vmem:[#allocation3 + $0x44] sm:$0xf] %v2504_v12  ;;  %v2412_v41 = vadd.f32 %v6860_v53, %v2162_v35  ;;  %3767 = vmatpush.bf16.msra.mxu2 %v5627_v46  ;;  %4157 = vmatpush.bf16.msra.mxu0 %v5645_v63 }
 0x1ea   : > { %4406 = vmatpush.bf16.msra.mxu1 %v5662_v42 }
 0x1eb   : > { %v2421_v45 = vmul.f32 %v6789_v32, %v2412_v41 }
 0x1ed   : > { %v2430_v33 = vadd.f32 %v6794_v56, %v2421_v45  ;;  %3768 = vmatpush.bf16.msra.mxu2 %v5626_v37  ;;  %4158 = vmatpush.bf16.msra.mxu0 %v5644_v23  ;;  %v5642_v45 = vld [vmem:[#allocation4 + $0x1c8] sm:$0xff]  ;;  %v6256_v37 = vld [vmem:[#allocation3 + $0x1c] sm:$0xff]  }
 0x1ee   : > { %v2153_v48 = vpop.f32.mrf.mxu3  ;;  %v3900_v21 = vshll.u32 %v6256_v37, 16 }
 0x1ef   : > { %v2438_v51 = vmax.f32 %v2430_v33, 0.0  ;;  %v6113_v29 = vld [vmem:[#allocation3 + $0x3c] sm:$0xff]  }
 0x1f0   : > { %v6251_v39 = vld [vmem:[#allocation3 + $0x3c] sm:$0xff]   ;;  %v2805_v56 = vshrl.u32 %v6113_v29, 16  ;;  %v2808_v54 = vshll.u32 %v6113_v29, 16 }
 0x1f1   : > { %v6887_v8 = vld [vmem:[#allocation3 + $0x40] sm:$0xff]   ;;  %v2446_v32 = vpack.c.bf16 %v2438_v51, %v2438_v51  ;;  %v3300_v0 = vshrl.u32 %v6251_v39, 16  ;;  %v3303_v2 = vshll.u32 %v6251_v39, 16  ;;  %3769 = vmatpush.bf16.msra.mxu2 %v5625_v13  ;;  %4159 = vmatpush.bf16.msra.mxu0 %v5643_v27 }
 0x1f2   : > { %v6889_v53 = vld [vmem:[#allocation3 + $0x40] sm:$0xff]  ;;  %2726 = vmatmul.bf16.gmra.mxu1 %v6887_v8  ;;  %v5792_v1 = vunpack.c.h.b16 %v6887_v8  ;;  %v2807_v62 = vrot.slane %v2805_v56, 3  ;;  %v2810_v6 = vrot.slane %v2808_v54, 4  ;;  %v6254_v56 = vld [vmem:[#allocation3 + $0x14] sm:$0xf0]  }
 0x1f3   : > { %v3052_v57 = vshll.u32 %v6889_v53, 16  ;;  %v2462_v61 = vsel %vm403_vm0, %v2446_v32, 0  ;;  %v3302_v58 = vrot.slane %v3300_v0, 3  ;;  %v3305_v4 = vrot.slane %v3303_v2, 4  ;;  %v5641_v54 = vld [vmem:[#allocation4 + $0x1c0] sm:$0xff] }
 0x1f4   : > { %v2489_v7 = vunpack.c.l.b16 %v2462_v61  ;;  %v2490_v5 = vunpack.c.h.b16 %v2462_v61  ;;  %v2811_v11 = vor.u32 %v2810_v6, %v2807_v62  ;;  %v2741_v15 = vpack.c.b16 %v5792_v1, %v5792_v1  ;;  %v5618_v0 = vld [vmem:[#allocation3 + $0x18] sm:$0xff] }
 0x1f5   : > { %v3054_v49 = vrot.slane %v3052_v57, 1  ;;  %v3306_v55 = vor.u32 %v3305_v4, %v3302_v58  ;;  %v3056_v38 = vshrl.u32 %v6889_v53, 16  ;;  %4160 = vmatpush.bf16.msra.mxu0 %v5642_v45  ;;  %v5617_v53 = vld [vmem:[#allocation3 + $0x10] sm:$0xff]  ;;  %v3897_v2 = vshrl.u32 %v6256_v37, 16  ;;  %v5995_v37 = vld [vmem:[#allocation3 + $0x18] sm:$0xff]  }
 0x1f6   : > { %v2505_v10 = vpack.c.b16 %v2489_v7, %v2489_v7  ;;  %v2506_v14 = vpack.c.b16 %v2490_v5, %v2490_v5  ;;  %v2812_v18 = vsel %vm700_vm1, %v6873_v26, %v2811_v11  ;;  %v2814_v20 = vshrl.u32 %v2741_v15, 16 }
 0x1f7   : > { %v3055_v50 = vsel %vm955_vm2, %v3050_v19, %v3054_v49  ;;  %2910 = vmatmul.bf16.gmra.mxu2 %v2812_v18  ;;  %v3307_v22 = vsel %vm700_vm1, %v6876_v34, %v3306_v55  ;;  %v2817_v12 = vshll.u32 %v2741_v15, 16  ;;  %v6155_v19 = vld [vmem:[#allocation3 + $0x14] sm:$0x8]  ;;  %v3641_v62 = vshll.u32 %v5617_v53, 16 }
 0x1f8   : > { %3152 = vmatmul.bf16.gmra.mxu3 %v3055_v50  ;;  %2537 = vst [vmem:[#allocation3 + $0x48] sm:$0xf] %v2505_v10  ;;  %3410 = vmatmul.bf16.gmra.mxu0 %v3307_v22  ;;  %v2816_v30 = vrot.slane %v2814_v20, 3  ;;  %v6156_v57 = vor.u32 %v6254_v56, %v6155_v19  ;;  %v3899_v58 = vrot.slane %v3897_v2, 3  ;;  %v5661_v10 = vld [vmem:[#allocation4 + $0x220] sm:$0xff]  ;;  %v3639_v3 = vshrl.u32 %v5617_v53, 16 }
 0x1f9   : > { %2538 = vst [vmem:[#allocation3 + $0x4c] sm:$0xf] %v2506_v14  ;;  %v2819_v35 = vrot.slane %v2817_v12, 4  ;;  %4161 = vmatpush.bf16.msra.mxu0 %v5641_v54  ;;  %v3643_v63 = vrot.slane %v3641_v62, 1  ;;  %4407 = vmatpush.bf16.msra.mxu1 %v5661_v10  ;;  %v5620_v19 = vld [vmem:[#allocation3 + $0x28] sm:$0xff] }
 0x1fa   : > { %v3889_v7 = vshrl.u32 %v6156_v57, 16  ;;  %v3892_v5 = vshll.u32 %v6156_v57, 16  ;;  %v3662_v62 = vshll.u32 %v5620_v19, 16 }
 0x1fb   : > { %v2820_v33 = vor.u32 %v2819_v35, %v2816_v30  ;;  %v3644_v22 = vor.u32 %v3643_v63, %v3639_v3 }
 0x1fc   : > { %v3891_v14 = vrot.slane %v3889_v7, 3  ;;  %v3894_v50 = vrot.slane %v3892_v5, 4 }
 0x1fd   : > { %v2821_v52 = vsel %vm700_vm1, %v2811_v11, %v2820_v33  ;;  %v3902_v11 = vrot.slane %v3900_v21, 4 }
 0x1fe   : > { %v3895_v20 = vor.u32 %v3894_v50, %v3891_v14 }
 0x1ff   : > { %v2935_v59 = vld [vmem:[#allocation3 + $0x48] sm:$0x1]  ;;  %v3903_v18 = vor.u32 %v3902_v11, %v3899_v58 }
 0x200   : > { %v6252_v26 = vld [vmem:[#allocation3 + $0x44] sm:$0xff]   ;;  %v2986_v31 = vunpack.c.l.b16 %v2935_v59 }
 0x201   : > { %v3309_v40 = vshrl.u32 %v6252_v26, 16  ;;  %v3312_v41 = vshll.u32 %v6252_v26, 16  ;;  %v6902_v34 = vld [vmem:[#allocation3 + $0x48] sm:$0xff]   ;;  %v3904_v27 = vsel %vm700_vm1, %v3895_v20, %v3903_v18  ;;  %v5619_v26 = vld [vmem:[#allocation3 + $0x20] sm:$0xff] }
 0x202   : > { %3520 = vmatmul.bf16.vlgmr.msrb.gmra.mxu1 %v6802_v16  ;;  %v2995_v44 = vpack.c.b16 %v2986_v31, %v2986_v31  ;;  %v5824_v29 = vunpack.c.h.b16 %v6902_v34  ;;  %v3058_v16 = vor.u32 %v3056_v38, %v3054_v49  ;;  %v3646_v49 = vshll.u32 %v5618_v0, 16 }
 0x203   : > { %v3311_v46 = vrot.slane %v3309_v40, 3  ;;  %v3314_v36 = vrot.slane %v3312_v41, 4  ;;  %v3654_v45 = vshll.u32 %v5619_v26, 16 }
 0x204   : > { %v3060_v48 = vshll.u32 %v2995_v44, 16  ;;  %v3245_v25 = vpack.c.b16 %v5824_v29, %v5824_v29  ;;  %v3648_v15 = vrot.slane %v3646_v49, 1  ;;  %v5659_v49 = vld [vmem:[#allocation4 + $0x210] sm:$0xff] }
 0x205   : > { %v3315_v51 = vor.u32 %v3314_v36, %v3311_v46  ;;  %v5660_v36 = vld [vmem:[#allocation4 + $0x218] sm:$0xff]  ;;  %v3656_v29 = vrot.slane %v3654_v45, 1  ;;  %v3666_v45 = vshrl.u32 %v5620_v19, 16 }
 0x206   : > { %v3062_v39 = vrot.slane %v3060_v48, 1  ;;  %v3318_v61 = vshrl.u32 %v3245_v25, 16  ;;  %v3321_v1 = vshll.u32 %v3245_v25, 16  ;;  %v3649_v12 = vsel %vm955_vm2, %v3644_v22, %v3648_v15  ;;  %4408 = vmatpush.bf16.msra.mxu1 %v5660_v36 }
 0x207   : > { %v3316_v32 = vsel %vm700_vm1, %v3306_v55, %v3315_v51  ;;  %2914 = vmatmul.bf16.gmra.mxu2 %v2821_v52 }
 0x208   : > { %v3063_v17 = vsel %vm955_vm2, %v3058_v16, %v3062_v39  ;;  %3414 = vmatmul.bf16.gmra.mxu0 %v3316_v32  ;;  %v3320_v4 = vrot.slane %v3318_v61, 3  ;;  %v3323_v13 = vrot.slane %v3321_v1, 4 }
 0x209   : > { %3156 = vmatmul.bf16.gmra.mxu3 %v3063_v17  ;;  %v6260_v17 = vld [vmem:[#allocation3 + $0x2c] sm:$0xff]  }
 0x20a   : > { %v3324_v55 = vor.u32 %v3323_v13, %v3320_v4  ;;  %v3918_v2 = vshll.u32 %v6260_v17, 16  ;;  %v3658_v4 = vshrl.u32 %v5619_v26, 16  ;;  %v3664_v13 = vrot.slane %v3662_v62, 1  ;;  %4409 = vmatpush.bf16.msra.mxu1 %v5659_v49 }
 0x20c   : > { %v3325_v30 = vsel %vm700_vm1, %v3315_v51, %v3324_v55  ;;  %v3650_v51 = vshrl.u32 %v5618_v0, 16  ;;  %v3915_v0 = vshrl.u32 %v6260_v17, 16  ;;  %v3920_v5 = vrot.slane %v3918_v2, 4 }
 0x20d   : > { %v3660_v10 = vor.u32 %v3658_v4, %v3656_v29  ;;  %v6266_v4 = vld [vmem:[#allocation3 + $0x44] sm:$0xff]  }
 0x20e   : > { %v2703_v6 = vpop.f32.mrf.mxu1  ;;  %v3652_v39 = vor.u32 %v3650_v51, %v3648_v15  ;;  %v3917_v7 = vrot.slane %v3915_v0, 3  ;;  %v5657_v0 = vld [vmem:[#allocation4 + $0x200] sm:$0xff] }
 0x20f   : > { %v3665_v3 = vsel %vm955_vm2, %v3660_v10, %v3664_v13  ;;  %v5623_v10 = vld [vmem:[#allocation3 + $0x40] sm:$0xff] }
 0x210   : > { %v3657_v56 = vsel %vm955_vm2, %v3652_v39, %v3656_v29  ;;  %v3921_v63 = vor.u32 %v3920_v5, %v3917_v7  ;;  %v6264_v29 = vld [vmem:[#allocation3 + $0x3c] sm:$0xff]  }
 0x212   : > { %3524 = vmatmul.bf16.gmra.mxu1 %v6811_v60  ;;  %v6258_v60 = vld [vmem:[#allocation3 + $0x24] sm:$0xff]  }
 0x213   : > { %v3906_v40 = vshrl.u32 %v6258_v60, 16  ;;  %v3909_v41 = vshll.u32 %v6258_v60, 16 }
 0x215   : > { %v3908_v33 = vrot.slane %v3906_v40, 3  ;;  %v3911_v46 = vrot.slane %v3909_v41, 4  ;;  %v5658_v40 = vld [vmem:[#allocation4 + $0x208] sm:$0xff] }
 0x216   : > { %v2705_v23 = vpop.f32.mrf.mxu1  ;;  %4410 = vmatpush.bf16.msra.mxu1 %v5658_v40 }
 0x217   : > { %3770 = vmatmul.bf16.vlgmr.msra.gmra.mxu2 %v3649_v12  ;;  %v3912_v16 = vor.u32 %v3911_v46, %v3908_v33  ;;  %v5621_v23 = vld [vmem:[#allocation3 + $0x30] sm:$0xff]  ;;  %v3668_v46 = vor.u32 %v3666_v45, %v3664_v13 }
 0x218   : > { %3418 = vmatmul.bf16.gmra.mxu0 %v3325_v30 }
 0x219   : > { %4032 = vmatmul.bf16.vlgmr.msra.gmra.mxu3 %v3904_v27  ;;  %v3913_v54 = vsel %vm700_vm1, %v3903_v18, %v3912_v16  ;;  %v3922_v15 = vsel %vm700_vm1, %v3912_v16, %v3921_v63  ;;  %v6262_v18 = vld [vmem:[#allocation3 + $0x34] sm:$0xff]  }
 0x21a   : > { %v3129_v35 = vpop.f32.mrf.mxu3  ;;  %v2887_v59 = vpop.f32.mrf.mxu2  ;;  %v3924_v12 = vshrl.u32 %v6262_v18, 16  ;;  %v3927_v27 = vshll.u32 %v6262_v18, 16  ;;  %4411 = vmatpush.bf16.msra.mxu1 %v5657_v0 }
 0x21b   : > { %v2888_v31 = vadd.f32 %v2887_v59, %v6856_v43  ;;  %v3670_v59 = vshll.u32 %v5621_v23, 16 }
 0x21c   : > { %v3926_v26 = vrot.slane %v3924_v12, 3 }
 0x21d   : > { %v3161_v44 = vadd.f32 %v3129_v35, %v2888_v31  ;;  %v3929_v31 = vrot.slane %v3927_v27, 4  ;;  %v3672_v33 = vrot.slane %v3670_v59, 1 }
 0x21f   : > { %v2707_v42 = vpop.f32.mrf.mxu1 }
 0x222   : > { %3528 = vmatmul.bf16.gmra.mxu1 %v6821_v47  ;;  %v3131_v38 = vpop.f32.mrf.mxu3  ;;  %v2889_v48 = vpop.f32.mrf.mxu2 }
 0x223   : > { %v3673_v48 = vsel %vm955_vm2, %v3668_v46, %v3672_v33 }
 0x225   : > { %v3391_v32 = vpop.f32.mrf.mxu0 }
 0x226   : > { %v6915_v43 = vadd.f32 %v3391_v32, %v3161_v44 }
 0x227   : > { %v2709_v52 = vpop.f32.mrf.mxu1  ;;  %3774 = vmatmul.bf16.gmra.mxu2 %v3657_v56  ;;  %v3933_v56 = vshrl.u32 %v6264_v29, 16 }
 0x228   : > { %4162 = vmatmul.bf16.vlgmr.msra.gmra.mxu0 %v5995_v37  ;;  %v5622_v52 = vld [vmem:[#allocation3 + $0x38] sm:$0xff] }
 0x229   : > { %4036 = vmatmul.bf16.gmra.mxu3 %v3913_v54  ;;  %v3936_v54 = vshll.u32 %v6264_v29, 16  ;;  %v3935_v19 = vrot.slane %v3933_v56, 3 }
 0x22a   : > { %v2891_v53 = vpop.f32.mrf.mxu2 }
 0x22b   : > { %v3133_v25 = vpop.f32.mrf.mxu3  ;;  %v2892_v57 = vadd.f32 %v2891_v53, %v2703_v6  ;;  %v3678_v53 = vshll.u32 %v5622_v52, 16 }
 0x22d   : > { %v3393_v61 = vpop.f32.mrf.mxu0  ;;  %v3162_v1 = vadd.f32 %v3133_v25, %v2892_v57  ;;  %v3938_v57 = vrot.slane %v3936_v54, 4  ;;  %v3680_v62 = vrot.slane %v3678_v53, 1  ;;  %v5649_v54 = vld [vmem:[#allocation3 + $0x18] sm:$0xff] }
 0x22f   : > { %v2711_v21 = vpop.f32.mrf.mxu1 }
 0x232   : > { %3532 = vmatmul.bf16.gmra.mxu1 %v6831_v24  ;;  %v2893_v11 = vpop.f32.mrf.mxu2 }
 0x233   : > { %v3135_v58 = vpop.f32.mrf.mxu3 }
 0x235   : > { %v3395_v6 = vpop.f32.mrf.mxu0 }
 0x236   : > { %v6920_v50 = vadd.f32 %v3395_v6, %v3162_v1  ;;  %v3674_v1 = vshrl.u32 %v5621_v23, 16  ;;  %v3942_v6 = vshrl.u32 %v6266_v4, 16 }
 0x237   : > { %v2713_v14 = vpop.f32.mrf.mxu1  ;;  %3778 = vmatmul.bf16.gmra.mxu2 %v3665_v3  ;;  %v3945_v3 = vshll.u32 %v6266_v4, 16 }
 0x238   : > { %4166 = vmatmul.bf16.gmra.mxu0 %v6821_v47  ;;  %v3930_v47 = vor.u32 %v3929_v31, %v3926_v26  ;;  %v3676_v7 = vor.u32 %v3674_v1, %v3672_v33  ;;  %v3944_v23 = vrot.slane %v3942_v6, 3 }
 0x239   : > { %4040 = vmatmul.bf16.gmra.mxu3 %v3922_v15 }
 0x23a   : > { %v2895_v22 = vpop.f32.mrf.mxu2  ;;  %v3931_v51 = vsel %vm700_vm1, %v3921_v63, %v3930_v47  ;;  %v3681_v58 = vsel %vm955_vm2, %v3676_v7, %v3680_v62 }
 0x23b   : > { %v3137_v55 = vpop.f32.mrf.mxu3  ;;  %v2896_v20 = vadd.f32 %v2895_v22, %v2707_v42  ;;  %v3686_v22 = vshll.u32 %v5623_v10, 16 }
 0x23d   : > { %v3397_v30 = vpop.f32.mrf.mxu0  ;;  %v3163_v35 = vadd.f32 %v3137_v55, %v2896_v20  ;;  %v3947_v20 = vrot.slane %v3945_v3, 4 }
 0x23e   : > { %v3682_v30 = vshrl.u32 %v5622_v52, 16 }
 0x23f   : > { %v2715_v60 = vpop.f32.mrf.mxu1 }
 0x240   : > { %v3684_v59 = vor.u32 %v3682_v30, %v3680_v62 }
 0x242   : > { %3536 = vmatmul.bf16.gmra.mxu1 %v6841_v9  ;;  %v2897_v44 = vpop.f32.mrf.mxu2 }
 0x243   : > { %v3139_v41 = vpop.f32.mrf.mxu3  ;;  %v6267_v44 = vld [vmem:[#allocation3 + $0x4c] sm:$0xff]  }
 0x245   : > { %v3399_v42 = vpop.f32.mrf.mxu0 }
 0x246   : > { %v6926_v38 = vadd.f32 %v3399_v42, %v3163_v35  ;;  %v3688_v35 = vrot.slane %v3686_v22, 1  ;;  %v3954_v42 = vshll.u32 %v6267_v44, 16 }
 0x247   : > { %v2717_v36 = vpop.f32.mrf.mxu1  ;;  %3782 = vmatmul.bf16.gmra.mxu2 %v3673_v48 }
 0x248   : > { %4170 = vmatmul.bf16.gmra.mxu0 %v6831_v24  ;;  %v3939_v24 = vor.u32 %v3938_v57, %v3935_v19  ;;  %v3689_v40 = vsel %vm955_vm2, %v3684_v59, %v3688_v35  ;;  %v3951_v36 = vshrl.u32 %v6267_v44, 16  ;;  %v3956_v52 = vrot.slane %v3954_v42, 4  ;;  %v3577_v19 = vld [vmem:[#allocation3 + $0x50] sm:$0x1] }
 0x249   : > { %4044 = vmatmul.bf16.gmra.mxu3 %v3931_v51 }
 0x24a   : > { %v2899_v39 = vpop.f32.mrf.mxu2  ;;  %v3940_v11 = vsel %vm700_vm1, %v3930_v47, %v3939_v24  ;;  %v5624_v47 = vld [vmem:[#allocation3 + $0x48] sm:$0xff] }
 0x24b   : > { %v3141_v16 = vpop.f32.mrf.mxu3  ;;  %v2900_v32 = vadd.f32 %v2899_v39, %v2711_v21  ;;  %v3953_v39 = vrot.slane %v3951_v36, 3 }
 0x24d   : > { %v3401_v37 = vpop.f32.mrf.mxu0  ;;  %v3164_v25 = vadd.f32 %v3141_v16, %v2900_v32  ;;  %v3694_v16 = vshll.u32 %v5624_v47, 16  ;;  %v6948_v32 = vld [vmem:[#allocation3 + $0x50] sm:$0xff]   ;;  %v3957_v53 = vor.u32 %v3956_v52, %v3953_v39 }
 0x24e   : > { %v3690_v37 = vshrl.u32 %v5623_v10, 16  ;;  %v5856_v57 = vunpack.c.h.b16 %v6948_v32 }
 0x24f   : > { %v2719_v17 = vpop.f32.mrf.mxu1 }
 0x250   : > { %v3692_v0 = vor.u32 %v3690_v37, %v3688_v35 }
 0x252   : > { %3540 = vmatmul.bf16.gmra.mxu1 %v6864_v28  ;;  %v2901_v61 = vpop.f32.mrf.mxu2 }
 0x253   : > { %v3143_v2 = vpop.f32.mrf.mxu3  ;;  %v4283_v61 = vshll.u32 %v5649_v54, 16 }
 0x255   : > { %v3403_v21 = vpop.f32.mrf.mxu0  ;;  %v4285_v4 = vrot.slane %v4283_v61, 1 }
 0x256   : > { %v6932_v49 = vadd.f32 %v3403_v21, %v3164_v25  ;;  %v3696_v25 = vrot.slane %v3694_v16, 1 }
 0x257   : > { %v2721_v5 = vpop.f32.mrf.mxu1  ;;  %3786 = vmatmul.bf16.gmra.mxu2 %v3681_v58  ;;  %v3887_v58 = vpack.c.b16 %v5856_v57, %v5856_v57 }
 0x258   : > { %4174 = vmatmul.bf16.gmra.mxu0 %v6841_v9  ;;  %v3948_v9 = vor.u32 %v3947_v20, %v3944_v23  ;;  %v3697_v62 = vsel %vm955_vm2, %v3692_v0, %v3696_v25 }
 0x259   : > { %4048 = vmatmul.bf16.gmra.mxu3 %v3940_v11  ;;  %v3960_v3 = vshrl.u32 %v3887_v58, 16 }
 0x25a   : > { %v2903_v63 = vpop.f32.mrf.mxu2  ;;  %v3949_v41 = vsel %vm700_vm1, %v3939_v24, %v3948_v9  ;;  %v3628_v24 = vunpack.c.l.b16 %v3577_v19  ;;  %v3958_v5 = vsel %vm700_vm1, %v3948_v9, %v3957_v53  ;;  %v3698_v9 = vshrl.u32 %v5624_v47, 16  ;;  %v5652_v19 = vld [vmem:[#allocation3 + $0x30] sm:$0xff] }
 0x25b   : > { %v3145_v13 = vpop.f32.mrf.mxu3  ;;  %v2904_v14 = vadd.f32 %v2903_v63, %v2715_v60  ;;  %v4281_v63 = vshrl.u32 %v5649_v54, 16 }
 0x25c   : > { %v3637_v10 = vpack.c.b16 %v3628_v24, %v3628_v24 }
 0x25d   : > { %v3405_v18 = vpop.f32.mrf.mxu0  ;;  %v3165_v55 = vadd.f32 %v3145_v13, %v2904_v14  ;;  %v4286_v22 = vor.u32 %v4285_v4, %v4281_v63  ;;  %v5653_v63 = vld [vmem:[#allocation3 + $0x38] sm:$0xff] }
 0x25e   : > { %v3963_v18 = vshll.u32 %v3887_v58, 16 }
 0x25f   : > { %v6937_v15 = vpop.f32.mrf.mxu1 }
 0x260   : > { %v3965_v35 = vrot.slane %v3963_v18, 4 }
 0x262   : > { %3544 = vmatmul.bf16.gmra.mxu1 %v6887_v8  ;;  %v2905_v27 = vpop.f32.mrf.mxu2 }
 0x263   : > { %v3147_v12 = vpop.f32.mrf.mxu3  ;;  %v3702_v27 = vshll.u32 %v3637_v10, 16 }
 0x265   : > { %v3407_v31 = vpop.f32.mrf.mxu0 }
 0x266   : > { %v6940_v60 = vadd.f32 %v3407_v31, %v3165_v55  ;;  %v3700_v31 = vor.u32 %v3698_v9, %v3696_v25 }
 0x267   : > { %v2725_v26 = vpop.f32.mrf.mxu1  ;;  %3790 = vmatmul.bf16.gmra.mxu2 %v3689_v40 }
 0x268   : > { %4178 = vmatmul.bf16.gmra.mxu0 %v6864_v28 }
 0x269   : > { %4052 = vmatmul.bf16.gmra.mxu3 %v3949_v41  ;;  %v5651_v41 = vld [vmem:[#allocation3 + $0x28] sm:$0xff] }
 0x26a   : > { %v2907_v33 = vpop.f32.mrf.mxu2  ;;  %v4296_v36 = vshll.u32 %v5651_v41, 16 }
 0x26b   : > { %v3149_v45 = vpop.f32.mrf.mxu3  ;;  %v2908_v46 = vadd.f32 %v2907_v33, %v2719_v17  ;;  %v5650_v17 = vld [vmem:[#allocation3 + $0x20] sm:$0xff] }
 0x26c   : > { %v4288_v21 = vshll.u32 %v5650_v17, 16  ;;  %v4298_v16 = vrot.slane %v4296_v36, 1 }
 0x26d   : > { %v3409_v51 = vpop.f32.mrf.mxu0  ;;  %v3166_v29 = vadd.f32 %v3149_v45, %v2908_v46 }
 0x26e   : > { %v4290_v6 = vrot.slane %v4288_v21, 1 }
 0x26f   : > { %v6945_v48 = vpop.f32.mrf.mxu1 }
 0x270   : > { %v4291_v30 = vsel %vm955_vm2, %v4286_v22, %v4290_v6  ;;  %v4308_v22 = vshrl.u32 %v5652_v19, 16 }
 0x272   : > { %3548 = vmatmul.bf16.gmra.mxu1 %v6902_v34  ;;  %v2909_v28 = vpop.f32.mrf.mxu2 }
 0x273   : > { %v3151_v56 = vpop.f32.mrf.mxu3 }
 0x275   : > { %v3411_v1 = vpop.f32.mrf.mxu0 }
 0x276   : > { %v6952_v7 = vadd.f32 %v3411_v1, %v3166_v29  ;;  %v4292_v29 = vshrl.u32 %v5650_v17, 16  ;;  %v4300_v1 = vshrl.u32 %v5651_v41, 16 }
 0x277   : > { %v2729_v2 = vpop.f32.mrf.mxu1  ;;  %3794 = vmatmul.bf16.gmra.mxu2 %v3697_v62 }
 0x278   : > { %4182 = vmatmul.bf16.gmra.mxu0 %v6887_v8  ;;  %v3962_v8 = vrot.slane %v3960_v3, 3  ;;  %v4294_v56 = vor.u32 %v4292_v29, %v4290_v6  ;;  %v4312_v6 = vshll.u32 %v5653_v63, 16 }
 0x279   : > { %4056 = vmatmul.bf16.gmra.mxu3 %v3958_v5  ;;  %v4302_v5 = vor.u32 %v4300_v1, %v4298_v16 }
 0x27a   : > { %v2911_v13 = vpop.f32.mrf.mxu2  ;;  %v3966_v40 = vor.u32 %v3965_v35, %v3962_v8  ;;  %v4299_v37 = vsel %vm955_vm2, %v4294_v56, %v4298_v16 }
 0x27b   : > { %v3153_v11 = vpop.f32.mrf.mxu3  ;;  %v2912_v14 = vadd.f32 %v2911_v13, %v6937_v15  ;;  %v3704_v15 = vrot.slane %v3702_v27, 1 }
 0x27d   : > { %v3167_v23 = vadd.f32 %v3153_v11, %v2912_v14  ;;  %v3413_v12 = vpop.f32.mrf.mxu0  ;;  %v3705_v33 = vsel %vm955_vm2, %v3700_v31, %v3704_v15 }
 0x27f   : > { %v3521_v55 = vpop.f32.mrf.mxu1 }
 0x280   : > { %v3553_v20 = vadd.f32 %v3521_v55, %v6915_v43  ;;  %v3967_v43 = vsel %vm700_vm1, %v3957_v53, %v3966_v40 }
 0x282   : > { %4412 = vmatmul.bf16.vlgmr.msra.gmra.mxu1 %v4291_v30  ;;  %v2913_v26 = vpop.f32.mrf.mxu2 }
 0x283   : > { %v3155_v59 = vpop.f32.mrf.mxu3 }
 0x284   : > { %v5654_v59 = vld [vmem:[#allocation3 + $0x40] sm:$0xff] }
 0x285   : > { %v3415_v45 = vpop.f32.mrf.mxu0  ;;  %v4320_v40 = vshll.u32 %v5654_v59, 16 }
 0x286   : > { %v6960_v46 = vadd.f32 %v3415_v45, %v3167_v23  ;;  %v4314_v23 = vrot.slane %v4312_v6, 1 }
 0x287   : > { %v3523_v44 = vpop.f32.mrf.mxu1  ;;  %3798 = vmatmul.bf16.gmra.mxu2 %v3705_v33  ;;  %v4316_v33 = vshrl.u32 %v5653_v63, 16  ;;  %v4219_v63 = vld [vmem:[#allocation3 + $0x58] sm:$0x1] }
 0x288   : > { %4186 = vmatmul.bf16.gmra.mxu0 %v6902_v34 }
 0x289   : > { %4060 = vmatmul.bf16.gmra.mxu3 %v3967_v43  ;;  %v4322_v43 = vrot.slane %v4320_v40, 1 }
 0x28a   : > { %v2915_v47 = vpop.f32.mrf.mxu2 }
 0x28b   : > { %v2916_v42 = vadd.f32 %v2915_v47, %v6945_v48  ;;  %v4304_v48 = vshll.u32 %v5652_v19, 16 }
 0x28c   : > { %v3157_v51 = vpop.f32.mrf.mxu3 }
 0x28d   : > { %v3168_v39 = vadd.f32 %v3157_v51, %v2916_v42  ;;  %v3417_v28 = vpop.f32.mrf.mxu0  ;;  %v4306_v62 = vrot.slane %v4304_v48, 1 }
 0x28f   : > { %v3525_v52 = vpop.f32.mrf.mxu1  ;;  %v4307_v11 = vsel %vm955_vm2, %v4302_v5, %v4306_v62 }
 0x290   : > { %v3554_v54 = vadd.f32 %v3525_v52, %v6920_v50  ;;  %v5655_v52 = vld [vmem:[#allocation3 + $0x48] sm:$0xff] }
 0x292   : > { %4416 = vmatmul.bf16.gmra.mxu1 %v4299_v37  ;;  %v2917_v25 = vpop.f32.mrf.mxu2  ;;  %v4328_v37 = vshll.u32 %v5655_v52, 16 }
 0x294   : > { %v3159_v53 = vpop.f32.mrf.mxu3 }
 0x295   : > { %v3419_v34 = vpop.f32.mrf.mxu0 }
 0x296   : > { %v6967_v0 = vadd.f32 %v3419_v34, %v3168_v39  ;;  %v4330_v34 = vrot.slane %v4328_v37, 1 }
 0x297   : > { %v3527_v57 = vpop.f32.mrf.mxu1 }
 0x298   : > { %4190 = vmatmul.bf16.gmra.mxu0 %v6948_v32  ;;  %v4324_v57 = vshrl.u32 %v5654_v59, 16 }
 0x29a   : > { %v3771_v17 = vpop.f32.mrf.mxu2 }
 0x29b   : > { %v3803_v2 = vadd.f32 %v3771_v17, %v3553_v20 }
 0x29c   : > { %v4033_v61 = vpop.f32.mrf.mxu3 }
 0x29d   : > { %v4065_v50 = vadd.f32 %v4033_v61, %v3803_v2  ;;  %v3421_v58 = vpop.f32.mrf.mxu0 }
 0x29f   : > { %v3529_v24 = vpop.f32.mrf.mxu1 }
 0x2a0   : > { %v3555_v21 = vadd.f32 %v3529_v24, %v6926_v38  ;;  %v4310_v38 = vor.u32 %v4308_v22, %v4306_v62  ;;  %v5656_v24 = vld [vmem:[#allocation3 + $0x50] sm:$0xff] }
 0x2a2   : > { %4420 = vmatmul.bf16.gmra.mxu1 %v4307_v11  ;;  %v3773_v4 = vpop.f32.mrf.mxu2  ;;  %v4315_v8 = vsel %vm955_vm2, %v4310_v38, %v4314_v23  ;;  %v4336_v11 = vshll.u32 %v5656_v24, 16 }
 0x2a3   : > { %v4332_v4 = vshrl.u32 %v5655_v52, 16 }
 0x2a4   : > { %v4035_v13 = vpop.f32.mrf.mxu3 }
 0x2a5   : > { %v4163_v14 = vpop.f32.mrf.mxu0  ;;  %v4334_v6 = vor.u32 %v4332_v4, %v4330_v34 }
 0x2a6   : > { %v6972_v32 = vadd.f32 %v4163_v14, %v4065_v50 }
 0x2a7   : > { %v3531_v10 = vpop.f32.mrf.mxu1 }
 0x2aa   : > { %v3775_v3 = vpop.f32.mrf.mxu2 }
 0x2ab   : > { %v3804_v18 = vadd.f32 %v3775_v3, %v3554_v54  ;;  %v4338_v3 = vrot.slane %v4336_v11, 1 }
 0x2ac   : > { %v4037_v55 = vpop.f32.mrf.mxu3 }
 0x2ad   : > { %v4066_v20 = vadd.f32 %v4037_v55, %v3804_v18  ;;  %v4165_v30 = vpop.f32.mrf.mxu0  ;;  %v4270_v55 = vunpack.c.l.b16 %v4219_v63 }
 0x2af   : > { %v3533_v12 = vpop.f32.mrf.mxu1 }
 0x2b0   : > { %v3556_v27 = vadd.f32 %v3533_v12, %v6932_v49  ;;  %v4318_v49 = vor.u32 %v4316_v33, %v4314_v23  ;;  %v4279_v12 = vpack.c.b16 %v4270_v55, %v4270_v55 }
 0x2b2   : > { %4424 = vmatmul.bf16.gmra.mxu1 %v4315_v8  ;;  %v3777_v35 = vpop.f32.mrf.mxu2  ;;  %v4323_v29 = vsel %vm955_vm2, %v4318_v49, %v4322_v43  ;;  %v4340_v8 = vshrl.u32 %v5656_v24, 16 }
 0x2b3   : > { %v4344_v35 = vshll.u32 %v4279_v12, 16 }
 0x2b4   : > { %v4039_v9 = vpop.f32.mrf.mxu3 }
 0x2b5   : > { %v4167_v31 = vpop.f32.mrf.mxu0 }
 0x2b6   : > { %v6976_v15 = vadd.f32 %v4167_v31, %v4066_v20  ;;  %v4339_v20 = vsel %vm955_vm2, %v4334_v6, %v4338_v3  ;;  %v4346_v31 = vrot.slane %v4344_v35, 1 }
 0x2b7   : > { %v3535_v26 = vpop.f32.mrf.mxu1 }
 0x2b8   : > { %v4342_v26 = vor.u32 %v4340_v8, %v4338_v3 }
 0x2ba   : > { %v3779_v41 = vpop.f32.mrf.mxu2  ;;  %v4347_v33 = vsel %vm955_vm2, %v4342_v26, %v4346_v31 }
 0x2bb   : > { %v3805_v44 = vadd.f32 %v3779_v41, %v3555_v21 }
 0x2bc   : > { %v4041_v45 = vpop.f32.mrf.mxu3 }
 0x2bd   : > { %v4067_v36 = vadd.f32 %v4041_v45, %v3805_v44  ;;  %v4169_v51 = vpop.f32.mrf.mxu0 }
 0x2bf   : > { %v3537_v47 = vpop.f32.mrf.mxu1 }
 0x2c0   : > { %v3557_v42 = vadd.f32 %v3537_v47, %v6940_v60  ;;  %v4326_v60 = vor.u32 %v4324_v57, %v4322_v43 }
 0x2c2   : > { %4428 = vmatmul.bf16.gmra.mxu1 %v4323_v29  ;;  %v3781_v16 = vpop.f32.mrf.mxu2  ;;  %v4331_v1 = vsel %vm955_vm2, %v4326_v60, %v4330_v34 }
 0x2c4   : > { %v4043_v39 = vpop.f32.mrf.mxu3 }
 0x2c5   : > { %v4171_v54 = vpop.f32.mrf.mxu0 }
 0x2c6   : > { %v6980_v28 = vadd.f32 %v4171_v54, %v4067_v36 }
 0x2c7   : > { %v3539_v56 = vpop.f32.mrf.mxu1 }
 0x2ca   : > { %v3783_v25 = vpop.f32.mrf.mxu2 }
 0x2cb   : > { %v3806_v53 = vadd.f32 %v3783_v25, %v3556_v27 }
 0x2cc   : > { %v4045_v19 = vpop.f32.mrf.mxu3 }
 0x2cd   : > { %v4068_v48 = vadd.f32 %v4045_v19, %v3806_v53  ;;  %v4173_v61 = vpop.f32.mrf.mxu0 }
 0x2cf   : > { %v3541_v17 = vpop.f32.mrf.mxu1 }
 0x2d0   : > { %v3558_v2 = vadd.f32 %v3541_v17, %v6952_v7 }
 0x2d2   : > { %4432 = vmatmul.bf16.gmra.mxu1 %v4331_v1  ;;  %v3785_v62 = vpop.f32.mrf.mxu2  ;;  %v6293_v1 = vld [vmem:[%s7020_s4 + $0x1] ss:$0 sm:$0xff] }
 0x2d4   : > { %v4047_v50 = vpop.f32.mrf.mxu3 }
 0x2d5   : > { %v4175_v21 = vpop.f32.mrf.mxu0 }
 0x2d6   : > { %v6984_v58 = vadd.f32 %v4175_v21, %v4068_v48  ;;  %v6292_v48 = vld [vmem:[%s7020_s4] ss:$0 sm:$0xff] }
 0x2d7   : > { %v3543_v5 = vpop.f32.mrf.mxu1 }
 0x2da   : > { %v3787_v13 = vpop.f32.mrf.mxu2 }
 0x2db   : > { %v3807_v10 = vadd.f32 %v3787_v13, %v3557_v42 }
 0x2dc   : > { %v4049_v14 = vpop.f32.mrf.mxu3 }
 0x2dd   : > { %v4069_v7 = vadd.f32 %v4049_v14, %v3807_v10  ;;  %v4177_v23 = vpop.f32.mrf.mxu0 }
 0x2df   : > { %v3545_v18 = vpop.f32.mrf.mxu1 }
 0x2e0   : > { %v3559_v22 = vadd.f32 %v3545_v18, %v6960_v46 }
 0x2e2   : > { %4436 = vmatmul.bf16.gmra.mxu1 %v4339_v20  ;;  %v3789_v38 = vpop.f32.mrf.mxu2 }
 0x2e4   : > { %v4051_v27 = vpop.f32.mrf.mxu3 }
 0x2e5   : > { %v4179_v9 = vpop.f32.mrf.mxu0 }
 0x2e6   : > { %v6988_v59 = vadd.f32 %v4179_v9, %v4069_v7 }
 0x2e7   : > { %v3547_v30 = vpop.f32.mrf.mxu1 }
 0x2ea   : > { %v3791_v40 = vpop.f32.mrf.mxu2 }
 0x2eb   : > { %v3808_v41 = vadd.f32 %v3791_v40, %v3558_v2 }
 0x2ec   : > { %v4053_v44 = vpop.f32.mrf.mxu3 }
 0x2ed   : > { %v4070_v45 = vadd.f32 %v4053_v44, %v3808_v41  ;;  %v4181_v36 = vpop.f32.mrf.mxu0 }
 0x2ef   : > { %v3549_v46 = vpop.f32.mrf.mxu1 }
 0x2f0   : > { %v3560_v43 = vadd.f32 %v3549_v46, %v6967_v0 }
 0x2f2   : > { %4440 = vmatmul.bf16.gmra.mxu1 %v4347_v33  ;;  %v3793_v47 = vpop.f32.mrf.mxu2 }
 0x2f4   : > { %v4055_v49 = vpop.f32.mrf.mxu3 }
 0x2f5   : > { %v4183_v51 = vpop.f32.mrf.mxu0 }
 0x2f6   : > { %v4200_v29 = vadd.f32 %v4183_v51, %v4070_v45 }
 0x2f7   : > { %v3551_v42 = vpop.f32.mrf.mxu1 }
 0x2fa   : > { %v3795_v16 = vpop.f32.mrf.mxu2 }
 0x2fb   : > { %v3809_v39 = vadd.f32 %v3795_v16, %v3559_v22 }
 0x2fc   : > { %v4057_v52 = vpop.f32.mrf.mxu3 }
 0x2fd   : > { %v4071_v56 = vadd.f32 %v4057_v52, %v3809_v39  ;;  %v4185_v37 = vpop.f32.mrf.mxu0 }
 0x2ff   : > { %v4413_v54 = vpop.f32.mrf.mxu1 }
 0x300   : > { %v4445_v0 = vadd.f32 %v4413_v54, %v6972_v32 }
 0x302   : > { %v3797_v25 = vpop.f32.mrf.mxu2  ;;  %v4454_v61 = vmul.f32 %v6292_v48, %v4445_v0 }
 0x304   : > { %v4059_v53 = vpop.f32.mrf.mxu3  ;;  %v4463_v21 = vadd.f32 %v6293_v1, %v4454_v61 }
 0x305   : > { %v4187_v57 = vpop.f32.mrf.mxu0 }
 0x306   : > { %v4201_v34 = vadd.f32 %v4187_v57, %v4071_v56  ;;  %v4471_v63 = vmax.f32 %v4463_v21, 0.0 }
 0x307   : > { %v4415_v19 = vpop.f32.mrf.mxu1 }
 0x30a   : > { %v3799_v17 = vpop.f32.mrf.mxu2 }
 0x30b   : > { %v3810_v60 = vadd.f32 %v3799_v17, %v3560_v43 }
 0x30c   : > { %v4061_v2 = vpop.f32.mrf.mxu3 }
 0x30d   : > { %v4072_v62 = vadd.f32 %v4061_v2, %v3810_v60  ;;  %v4189_v5 = vpop.f32.mrf.mxu0 }
 0x30f   : > { %v4417_v50 = vpop.f32.mrf.mxu1 }
 0x310   : > { %v4446_v24 = vadd.f32 %v4417_v50, %v6976_v15 }
 0x312   : > { %v4455_v11 = vmul.f32 %v6292_v48, %v4446_v24  ;;  %v3801_v4 = vpop.f32.mrf.mxu2 }
 0x314   : > { %v4464_v32 = vadd.f32 %v6293_v1, %v4455_v11  ;;  %v4063_v13 = vpop.f32.mrf.mxu3 }
 0x315   : > { %v4191_v3 = vpop.f32.mrf.mxu0 }
 0x316   : > { %v4472_v10 = vmax.f32 %v4464_v32, 0.0  ;;  %v4202_v7 = vadd.f32 %v4191_v3, %v4072_v62 }
 0x317   : > { %v4419_v14 = vpop.f32.mrf.mxu1 }
 0x318   : > { %v5860_v6 = vpack.c.bf16 %v4472_v10, %v4471_v63 }
 0x31a   : > { %5861 = vst [vmem:[%s7004_s29] sm:$0xff] %v5860_v6  }
 0x31d   : > { %v4193_v18 = vpop.f32.mrf.mxu0 }
 0x31f   : > { %v4421_v15 = vpop.f32.mrf.mxu1 }
 0x320   : > { %v4447_v22 = vadd.f32 %v4421_v15, %v6980_v28 }
 0x322   : > { %v4456_v23 = vmul.f32 %v6292_v48, %v4447_v22 }
 0x324   : > { %v4465_v38 = vadd.f32 %v6293_v1, %v4456_v23 }
 0x326   : > { %v4473_v8 = vmax.f32 %v4465_v38, 0.0 }
 0x327   : > { %v4423_v55 = vpop.f32.mrf.mxu1 }
 0x32f   : > { %v4425_v20 = vpop.f32.mrf.mxu1 }
 0x330   : > { %v4448_v12 = vadd.f32 %v4425_v20, %v6984_v58 }
 0x332   : > { %v4457_v27 = vmul.f32 %v6292_v48, %v4448_v12 }
 0x334   : > { %v4466_v30 = vadd.f32 %v6293_v1, %v4457_v27 }
 0x336   : > { %v4474_v35 = vmax.f32 %v4466_v30, 0.0 }
 0x337   : > { %v4427_v9 = vpop.f32.mrf.mxu1 }
 0x338   : > { %v5865_v26 = vpack.c.bf16 %v4474_v35, %v4473_v8 }
 0x33a   : > { %6003 = vst [vmem:[%s7004_s29 + $0x8] sm:$0xff] %v5865_v26  }
 0x33f   : > { %v4429_v31 = vpop.f32.mrf.mxu1 }
 0x340   : > { %v4449_v41 = vadd.f32 %v4429_v31, %v6988_v59 }
 0x342   : > { %v4458_v44 = vmul.f32 %v6292_v48, %v4449_v41 }
 0x344   : > { %v4467_v46 = vadd.f32 %v6293_v1, %v4458_v44 }
 0x346   : > { %v4475_v58 = vmax.f32 %v4467_v46, 0.0 }
 0x347   : > { %v4431_v40 = vpop.f32.mrf.mxu1 }
 0x34f   : > { %v4433_v45 = vpop.f32.mrf.mxu1 }
 0x350   : > { %v4450_v28 = vadd.f32 %v4433_v45, %v4200_v29 }
 0x352   : > { %v4459_v33 = vmul.f32 %v6292_v48, %v4450_v28 }
 0x354   : > { %v4468_v43 = vadd.f32 %v6293_v1, %v4459_v33 }
 0x356   : > { %v4476_v36 = vmax.f32 %v4468_v43, 0.0 }
 0x357   : > { %v4435_v47 = vpop.f32.mrf.mxu1 }
 0x358   : > { %v5870_v49 = vpack.c.bf16 %v4476_v36, %v4475_v58 }
 0x35a   : > { %6004 = vst [vmem:[%s7004_s29 + $0x10] sm:$0xff] %v5870_v49  }
 0x35f   : > { %v4437_v42 = vpop.f32.mrf.mxu1 }
 0x360   : > { %v4451_v16 = vadd.f32 %v4437_v42, %v4201_v34 }
 0x362   : > { %v4460_v39 = vmul.f32 %v6292_v48, %v4451_v16 }
 0x364   : > { %v4469_v54 = vadd.f32 %v6293_v1, %v4460_v39 }
 0x366   : > { %v4477_v25 = vmax.f32 %v4469_v54, 0.0 }
 0x367   : > { %v4439_v51 = vpop.f32.mrf.mxu1 }
 0x36f   : > { %v4441_v52 = vpop.f32.mrf.mxu1 }
 0x370   : > { %v4452_v56 = vadd.f32 %v4441_v52, %v4202_v7 }
 0x372   : > { %v4461_v59 = vmul.f32 %v6292_v48, %v4452_v56 }
 0x374   : > { %v4470_v37 = vadd.f32 %v6293_v1, %v4461_v59 }
 0x376   : > { %v4478_v29 = vmax.f32 %v4470_v37, 0.0 }
 0x377   : > { %v4443_v53 = vpop.f32.mrf.mxu1 }
 0x378   : > { %v5875_v19 = vpack.c.bf16 %v4478_v29, %v4477_v25 }
 0x37a   : > { %6005 = vst [vmem:[%s7004_s29 + $0x18] sm:$0xff] %v5875_v19  }
 0x37b PF: > { %s16_s18 = sadd.s32 1, %s6334_s18  }
 0x37c   : > { %p13_p7 = scmp.ge.s32.totalorder %s16_s18, 4  }
 0x37e   :  { %15 = sbr.rel (!%p13_p7) target bundleno = 1 (0x1), region = 91 }
 0x383   :  { %4516 = vsyncpa [#allocation5], 1 }
 0x384   :  { %4518 = vsyncpa [#allocation5 + $0x1], 1 }

// kernel: pallas_encoder.2
= control target key start
LH: loop header
LB: loop body
LE: loop exit
PB: predicated region body
PF: predicated region fallthrough
CT: control target
= control target key end

     0   :  { %10 = vsyncpa [#allocation5], 0  ;;  %s13643_s18 = smov 0   ;;  %s16029_s0 = inlined_call_operand.vmem [shape: bf16[2,16,16,128], index: 0, kind: input, shape index: {}]   ;;  %s16030_s1 = inlined_call_operand.vmem [shape: bf16[9,128,128], index: 1, kind: input, shape index: {}]   ;;  %s16031_s2 = inlined_call_operand.vmem [shape: f32[2,128], index: 2, kind: input, shape index: {}]   ;;  %s16032_s3 = inlined_call_operand.hbm [shape: bf16[9,128,128], index: 3, kind: input, shape index: {}]   ;;  %s16033_s4 = inlined_call_operand.vmem [shape: f32[2,128], index: 4, kind: input, shape index: {}]   ;;  %s16034_s5 = inlined_call_operand.vmem [shape: bf16[2,16,16,128], index: 5, kind: output, shape index: {}]  }
   0x1 LB: > { %s174_s21 = sshll.u32 %s16032_s3, 4  ;;  %s13652_s22 = sadd.s32 4294967295, %s13607_s18   ;;  %s13607_s18 = sphi %s13643_s18, %s16_s18   ;;  %s175_s21 = int_to_ptr.hbm [resolvable:$true] %s174_s21 }
   0x2   : > { %p10110_p0 = scmp.ge.s32.totalorder %s13607_s18, 1  ;;  %p157_p1 = scmp.lt.s32.totalorder %s13607_s18, 3 }
   0x3   : > { %p13441_p2 = scmp.eq.s32.totalorder %s13652_s22, 0  ;;  %s13609_s23 = smov [#allocation4]  }
   0x4   : > { %p158_p3 = pnand %p10110_p0, %p157_p1  ;;  %s176_s24 = sshll.u32 %s13609_s23, 4  ;;  %s177_s24 = int_to_ptr.vmem [resolvable:$true] %s176_s24 }
   0x5   : > { %s13610_s25 = smov 64   ;;  %s13611_s26 = smov 4  }
   0x6   : > { %p13437_p4 = pneg %p158_p3  ;;  %203 = sbr.rel (%p158_p3) target bundleno = 1934 (0x78e), region = 40 }
   0x8   : > { %p13438_p5 = pnand %p13441_p2, %p13437_p4 }
   0xa   : > { %13440 = dma.hbm_to_vmem [thread:$0]  (!%p13438_p5), %s175_s21, 9216, %s177_s24, [#allocation5], %s13610_s25, %s13610_s25, %s13611_s26  }
   0xb   : > { %13602 = dma.done.wait (%p13441_p2), [#allocation5], 9216  }
   0xc   : > { %13604 = vsyncadd (%p13441_p2), [#allocation5], 4294958080  ;;  %v13612_v0 = vmov 0   ;;  %v11418_v3 = vld [vmem:[%s16030_s1 + $0x78] sm:$0xff]  ;;  %v11417_v7 = vld [vmem:[%s16030_s1 + $0x70] sm:$0xff]  ;;  %p232_p6 = scmp.lt.s32.totalorder %s13652_s22, 1 }
   0xd   : > { %v346_v1 = vunpack.c.l.b16 %v13612_v0  ;;  %341 = vst [vmem:[#allocation2 + $0x8] sm:$0xf] %v13612_v0  ;;  %v11410_v4 = vld [vmem:[%s16030_s1 + $0x38] sm:$0xff]  ;;  %645 = vmatpush.bf16.msra.mxu0 %v11418_v3  ;;  %v11409_v8 = vld [vmem:[%s16030_s1 + $0x30] sm:$0xff]  ;;  %v11416_v11 = vld [vmem:[%s16030_s1 + $0x68] sm:$0xff] }
   0xe   : > { %342 = vst [vmem:[#allocation2 + $0xc] sm:$0xf] %v13612_v0  ;;  %v11438_v5 = vld [vmem:[%s16030_s1 + $0xb8] sm:$0xff]  ;;  %898 = vmatpush.bf16.msra.mxu1 %v11410_v4  ;;  %v11437_v9 = vld [vmem:[%s16030_s1 + $0xb0] sm:$0xff]  ;;  %v11408_v12 = vld [vmem:[%s16030_s1 + $0x28] sm:$0xff]  ;;  %s16039_s22 = smov (!%p232_p6, %s13652_s22), 1 }
   0xf   : > { %343 = vst [vmem:[#allocation2 + $0x10] sm:$0xf] %v13612_v0  ;;  %v13661_v2 = vpack.c.b16 %v346_v1, %v346_v1  ;;  %v11446_v6 = vld [vmem:[%s16030_s1 + $0xf8] sm:$0xff]  ;;  %1225 = vmatpush.bf16.msra.mxu2 %v11438_v5  ;;  %v11445_v10 = vld [vmem:[%s16030_s1 + $0xf0] sm:$0xff]  ;;  %v11436_v13 = vld [vmem:[%s16030_s1 + $0xa8] sm:$0xff]  ;;  %s11401_s21 = sshll.u32 %s16039_s22, 7 }
  0x10   : > { %344 = vst [vmem:[#allocation2 + $0x14] sm:$0xf] %v13612_v0  ;;  %1583 = vmatpush.bf16.msra.mxu3 %v11446_v6  ;;  %v11444_v14 = vld [vmem:[%s16030_s1 + $0xe8] sm:$0xff]  ;;  %v11415_v15 = vld [vmem:[%s16030_s1 + $0x60] sm:$0xff]  ;;  %v11414_v23 = vld [vmem:[%s16030_s1 + $0x58] sm:$0xff]  ;;  %s13823_s6 = scalar_lea.vmem %s16029_s0, %s11401_s21  ;;  %s15592_s27 = scalar_lea.vmem %s16034_s5, %s11401_s21 }
  0x11   : > { %415 = vst [vmem:[#allocation2 + $0x20] sm:$0xf] %v13661_v2  ;;  %646 = vmatpush.bf16.msra.mxu0 %v11417_v7  ;;  %v11407_v16 = vld [vmem:[%s16030_s1 + $0x20] sm:$0xff]  ;;  %v11406_v24 = vld [vmem:[%s16030_s1 + $0x18] sm:$0xff]  ;;  %v11413_v29 = vld [vmem:[%s16030_s1 + $0x50] sm:$0xff] }
  0x12   : > { %418 = vst [vmem:[#allocation2 + $0x2c] sm:$0xf] %v13661_v2  ;;  %899 = vmatpush.bf16.msra.mxu1 %v11409_v8  ;;  %v11435_v18 = vld [vmem:[%s16030_s1 + $0xa0] sm:$0xff]  ;;  %v11434_v25 = vld [vmem:[%s16030_s1 + $0x98] sm:$0xff]  ;;  %v11405_v30 = vld [vmem:[%s16030_s1 + $0x10] sm:$0xff] }
  0x13   : > { %421 = vst [vmem:[#allocation2 + $0x38] sm:$0xf] %v13661_v2  ;;  %1226 = vmatpush.bf16.msra.mxu2 %v11437_v9  ;;  %v11443_v19 = vld [vmem:[%s16030_s1 + $0xe0] sm:$0xff]  ;;  %v11442_v27 = vld [vmem:[%s16030_s1 + $0xd8] sm:$0xff]  ;;  %v11433_v35 = vld [vmem:[%s16030_s1 + $0x90] sm:$0xff] }
  0x14   : > { %424 = vst [vmem:[#allocation2 + $0x44] sm:$0xf] %v13661_v2  ;;  %1584 = vmatpush.bf16.msra.mxu3 %v11445_v10  ;;  %v467_v17 = vld [vmem:[#allocation2 + $0x8] sm:$0x8]  ;;  %v11441_v36 = vld [vmem:[%s16030_s1 + $0xd0] sm:$0xff]  ;;  %v11411_v46 = vld [vmem:[%s16030_s1 + $0x40] sm:$0xff] }
  0x15   : > { %427 = vst [vmem:[#allocation2 + $0x50] sm:$0xf] %v13661_v2  ;;  %647 = vmatpush.bf16.msra.mxu0 %v11416_v11  ;;  %v13721_v20 = vld [vmem:[#allocation2 + $0xc] sm:$0xf]  ;;  %v707_v21 = vunpack.c.l.b16 %v467_v17  ;;  %v11403_v47 = vld [vmem:[%s16030_s1] sm:$0xff]  ;;  %v11482_v54 = vld [vmem:[%s16030_s1 + $0x1b8] sm:$0xff] }
  0x16   : > { %430 = vst [vmem:[#allocation2 + $0x5c] sm:$0xf] %v13661_v2  ;;  %900 = vmatpush.bf16.msra.mxu1 %v11408_v12  ;;  %v549_v22 = vunpack.c.l.b16 %v13721_v20  ;;  %v11412_v37 = vld [vmem:[%s16030_s1 + $0x48] sm:$0xff]  ;;  %v11431_v50 = vld [vmem:[%s16030_s1 + $0x80] sm:$0xff]  ;;  %vm721_vm0 = vsmask.f32 4352 }
  0x17   : > { %433 = vst [vmem:[#allocation2 + $0x68] sm:$0xf] %v13661_v2  ;;  %1227 = vmatpush.bf16.msra.mxu2 %v11436_v13  ;;  %v12394_v28 = vld [vmem:[#allocation2 + $0x10] sm:$0xff]   ;;  %v11404_v38 = vld [vmem:[%s16030_s1 + $0x8] sm:$0xff]  ;;  %v11439_v51 = vld [vmem:[%s16030_s1 + $0xc0] sm:$0xff] }
  0x18   : > { %436 = vst [vmem:[#allocation2 + $0x74] sm:$0xf] %v13661_v2  ;;  %1585 = vmatpush.bf16.msra.mxu3 %v11444_v14  ;;  %v708_v26 = vpack.c.b16 %v549_v22, %v707_v21  ;;  %v731_v33 = vshrl.u32 %v12394_v28, 16  ;;  %v734_v34 = vshll.u32 %v12394_v28, 16  ;;  %v11432_v43 = vld [vmem:[%s16030_s1 + $0x88] sm:$0xff]  ;;  %v11757_v45 = vunpack.c.l.b16 %v12394_v28  ;;  %v11454_v55 = vld [vmem:[%s16030_s1 + $0x138] sm:$0xff] }
  0x19   : > { %439 = vst [vmem:[#allocation2 + $0x80] sm:$0xf] %v13661_v2  ;;  %648 = vmatpush.bf16.msra.mxu0 %v11415_v15  ;;  %v11440_v44 = vld [vmem:[%s16030_s1 + $0xc8] sm:$0xff]  ;;  %v11490_v56 = vld [vmem:[%s16030_s1 + $0x1f8] sm:$0xff]  ;;  %v11692_v58 = vld [vmem:[%s13823_s6] sm:$0xff]  }
  0x1a   : > { %442 = vst [vmem:[#allocation2 + $0x8c] sm:$0xf] %v13661_v2  ;;  %901 = vmatpush.bf16.msra.mxu1 %v11407_v16  ;;  %v723_v31 = vshrl.u32 %v708_v26, 16  ;;  %v726_v32 = vshll.u32 %v708_v26, 16  ;;  %v733_v41 = vrot.slane %v731_v33, 3  ;;  %v736_v42 = vrot.slane %v734_v34, 4 }
  0x1b   : > { %445 = vst [vmem:[#allocation2 + $0x98] sm:$0xf] %v13661_v2  ;;  %1228 = vmatpush.bf16.msra.mxu2 %v11435_v18  ;;  %v573_v52 = vpack.c.b16 %v11757_v45, %v549_v22  ;;  %v11474_v57 = vld [vmem:[%s16030_s1 + $0x178] sm:$0xff]  ;;  %v12379_v59 = vld [vmem:[%s13823_s6 + $0x8] sm:$0xff]   ;;  %v11693_v60 = vunpack.c.l.b16 %v11692_v58  ;;  %v11694_v61 = vunpack.c.h.b16 %v11692_v58  ;;  %v13841_v3 = vld [vmem:[%s13823_s6 + $0x10] sm:$0xff]  }
  0x1c   : > { %448 = vst [vmem:[#allocation2 + $0xa4] sm:$0xf] %v13661_v2  ;;  %1586 = vmatpush.bf16.msra.mxu3 %v11443_v19  ;;  %v725_v39 = vrot.slane %v723_v31, 3  ;;  %v728_v40 = vrot.slane %v726_v32, 4  ;;  %v13790_v49 = vor.u32 %v736_v42, %v733_v41  ;;  %v11697_v62 = vunpack.c.l.b16 %v12379_v59  ;;  %v11419_v4 = vld [vmem:[#allocation2 + $0xc] sm:$0xff] }
  0x1d   : > { %451 = vst [vmem:[#allocation2 + $0xb0] sm:$0xf] %v13661_v2  ;;  %649 = vmatpush.bf16.msra.mxu0 %v11414_v23  ;;  %v11698_v63 = vunpack.c.h.b16 %v12379_v59  ;;  %v347_v1 = vpack.c.b16 %v11693_v60, %v11693_v60  ;;  %v348_v5 = vpack.c.b16 %v11694_v61, %v11694_v61  ;;  %v11701_v6 = vunpack.c.l.b16 %v13841_v3  ;;  %v11481_v10 = vld [vmem:[%s16030_s1 + $0x1b0] sm:$0xff] }
  0x1e   : > { %454 = vst [vmem:[#allocation2 + $0xbc] sm:$0xf] %v13661_v2  ;;  %902 = vmatpush.bf16.msra.mxu1 %v11406_v24  ;;  %v729_v48 = vor.u32 %v728_v40, %v725_v39  ;;  %v350_v7 = vpack.c.b16 %v11697_v62, %v11697_v62  ;;  %v1068_v9 = vshll.u32 %v11419_v4, 16  ;;  %v13853_v11 = vld [vmem:[%s16030_s1 + $0x130] sm:$0xff]  ;;  %v1066_v13 = vshrl.u32 %v11419_v4, 16 }
  0x1f   : > { %457 = vst [vmem:[#allocation2 + $0xc8] sm:$0xf] %v13661_v2  ;;  %1229 = vmatpush.bf16.msra.mxu2 %v11434_v25  ;;  %v351_v8 = vpack.c.b16 %v11698_v63, %v11698_v63  ;;  %v11489_v12 = vld [vmem:[%s16030_s1 + $0x1f0] sm:$0xff]  ;;  %vm1064_vm1 = vsmask.f32 7424  ;;  %v11702_v58 = vunpack.c.h.b16 %v13841_v3 }
  0x20   : > { %460 = vst [vmem:[#allocation2 + $0xd4] sm:$0xf] %v13661_v2  ;;  %1587 = vmatpush.bf16.msra.mxu3 %v11442_v27  ;;  %v738_v53 = vsel %vm721_vm0, %v729_v48, %v13790_v49  ;;  %v1070_v14 = vrot.slane %v1068_v9, 1  ;;  %v12797_v15 = vld [vmem:[#allocation2 + $0x14] sm:$0x8] }
  0x21   : > { %461 = vst [vmem:[#allocation2 + $0xd8] sm:$0xf] %v13612_v0  ;;  %650 = vmatpush.bf16.msra.mxu0 %v11413_v29  ;;  %v353_v60 = vpack.c.b16 %v11702_v58, %v11702_v58 }
  0x22   : > { %462 = vst [vmem:[#allocation2 + $0xdc] sm:$0xf] %v13612_v0  ;;  %903 = vmatpush.bf16.msra.mxu1 %v11405_v30  ;;  %v1071_v22 = vor.u32 %v1070_v14, %v1066_v13  ;;  %v13880_v13 = vld [vmem:[%s16030_s1 + $0x1a8] sm:$0xff] }
  0x23   : > { %463 = vst [vmem:[#allocation2 + $0xe0] sm:$0xf] %v13612_v0  ;;  %1230 = vmatpush.bf16.msra.mxu2 %v11433_v35  ;;  %v13885_v14 = vld [vmem:[%s16030_s1 + $0x128] sm:$0xff] }
  0x24   : > { %464 = vst [vmem:[#allocation2 + $0xe4] sm:$0xf] %v13612_v0  ;;  %1588 = vmatpush.bf16.msra.mxu3 %v11441_v36 }
  0x25   : > { %5211 = vst [vmem:[#allocation3 + $0x8] sm:$0xf] %v13612_v0  ;;  %651 = vmatpush.bf16.msra.mxu0 %v11412_v37 }
  0x26   : > { %5212 = vst [vmem:[#allocation3 + $0xc] sm:$0xf] %v13612_v0  ;;  %904 = vmatpush.bf16.msra.mxu1 %v11404_v38 }
  0x27   : > { %5213 = vst [vmem:[#allocation3 + $0x10] sm:$0xf] %v13612_v0  ;;  %1231 = vmatpush.bf16.msra.mxu2 %v11432_v43 }
  0x28   : > { %5214 = vst [vmem:[#allocation3 + $0x14] sm:$0xf] %v13612_v0  ;;  %1589 = vmatpush.bf16.msra.mxu3 %v11440_v44 }
  0x29   : > { %5281 = vst [vmem:[#allocation3 + $0x20] sm:$0xf] %v13661_v2  ;;  %652 = vmatpush.bf16.msra.mxu0 %v11411_v46 }
  0x2a   : > { %5284 = vst [vmem:[#allocation3 + $0x2c] sm:$0xf] %v13661_v2  ;;  %905 = vmatpush.bf16.msra.mxu1 %v11403_v47 }
  0x2b   : > { %5287 = vst [vmem:[#allocation3 + $0x38] sm:$0xf] %v13661_v2  ;;  %1232 = vmatpush.bf16.msra.mxu2 %v11431_v50 }
  0x2c   : > { %5290 = vst [vmem:[#allocation3 + $0x44] sm:$0xf] %v13661_v2  ;;  %1590 = vmatpush.bf16.msra.mxu3 %v11439_v51  ;;  %653 = vmatmul.bf16.vlgmr.msra.gmra.mxu0 %v573_v52 }
  0x2d   : > { %5293 = vst [vmem:[#allocation3 + $0x50] sm:$0xf] %v13661_v2  ;;  %906 = vmatmul.bf16.vlgmr.msra.gmra.mxu1 %v738_v53  ;;  %1749 = vmatpush.bf16.msrb.mxu0 %v11454_v55 }
  0x2e   : > { %5296 = vst [vmem:[#allocation3 + $0x5c] sm:$0xf] %v13661_v2  ;;  %2091 = vmatpush.bf16.msrb.mxu1 %v11474_v57 }
  0x2f   : > { %5299 = vst [vmem:[#allocation3 + $0x68] sm:$0xf] %v13661_v2  ;;  %2449 = vmatpush.bf16.msrb.mxu2 %v11482_v54 }
  0x30   : > { %5302 = vst [vmem:[#allocation3 + $0x74] sm:$0xf] %v13661_v2  ;;  %2615 = vmatpush.bf16.msrb.mxu3 %v11490_v56 }
  0x31   : > { %5305 = vst [vmem:[#allocation3 + $0x80] sm:$0xf] %v13661_v2  ;;  %1750 = vmatpush.bf16.msrb.mxu0 %v13853_v11 }
  0x32   : > { %5308 = vst [vmem:[#allocation3 + $0x8c] sm:$0xf] %v13661_v2 }
  0x33   : > { %5311 = vst [vmem:[#allocation3 + $0x98] sm:$0xf] %v13661_v2  ;;  %2450 = vmatpush.bf16.msrb.mxu2 %v11481_v10 }
  0x34   : > { %5314 = vst [vmem:[#allocation3 + $0xa4] sm:$0xf] %v13661_v2  ;;  %2616 = vmatpush.bf16.msrb.mxu3 %v11489_v12 }
  0x35   : > { %5317 = vst [vmem:[#allocation3 + $0xb0] sm:$0xf] %v13661_v2  ;;  %1751 = vmatpush.bf16.msrb.mxu0 %v13885_v14 }
  0x36   : > { %5320 = vst [vmem:[#allocation3 + $0xbc] sm:$0xf] %v13661_v2 }
  0x37   : > { %5323 = vst [vmem:[#allocation3 + $0xc8] sm:$0xf] %v13661_v2  ;;  %2451 = vmatpush.bf16.msrb.mxu2 %v13880_v13 }
  0x38   : > { %5326 = vst [vmem:[#allocation3 + $0xd4] sm:$0xf] %v13661_v2  ;;  %v352_v2 = vpack.c.b16 %v11701_v6, %v11701_v6 }
  0x39   : > { %5327 = vst [vmem:[#allocation3 + $0xd8] sm:$0xf] %v13612_v0 }
  0x3a   : > { %5328 = vst [vmem:[#allocation3 + $0xdc] sm:$0xf] %v13612_v0 }
  0x3b   : > { %5329 = vst [vmem:[#allocation3 + $0xe0] sm:$0xf] %v13612_v0 }
  0x3c   : > { %5330 = vst [vmem:[#allocation3 + $0xe4] sm:$0xf] %v13612_v0  ;;  %v11473_v0 = vld [vmem:[%s16030_s1 + $0x170] sm:$0xff] }
  0x3d   : > { %413 = vst [vmem:[#allocation2 + $0x18] sm:$0xf] %v347_v1  ;;  %2092 = vmatpush.bf16.msrb.mxu1 %v11473_v0  ;;  %v12381_v1 = vld [vmem:[%s13823_s6 + $0x18] sm:$0xff]  }
  0x3e   : > { %414 = vst [vmem:[#allocation2 + $0x1c] sm:$0xf] %v348_v5  ;;  %v11705_v5 = vunpack.c.l.b16 %v12381_v1  ;;  %v11706_v6 = vunpack.c.h.b16 %v12381_v1 }
  0x3f   : > { %416 = vst [vmem:[#allocation2 + $0x24] sm:$0xf] %v350_v7 }
  0x40   : > { %417 = vst [vmem:[#allocation2 + $0x28] sm:$0xf] %v351_v8  ;;  %v354_v9 = vpack.c.b16 %v11705_v5, %v11705_v5  ;;  %v355_v10 = vpack.c.b16 %v11706_v6, %v11706_v6 }
  0x41   : > { %419 = vst [vmem:[#allocation2 + $0x30] sm:$0xf] %v352_v2 }
  0x42   : > { %420 = vst [vmem:[#allocation2 + $0x34] sm:$0xf] %v353_v60 }
  0x43   : > { %422 = vst [vmem:[#allocation2 + $0x3c] sm:$0xf] %v354_v9 }
  0x44   : > { %v11420_v16 = vld [vmem:[#allocation2 + $0x14] sm:$0xff]  ;;  %423 = vst [vmem:[#allocation2 + $0x40] sm:$0xf] %v355_v10 }
  0x45   : > { %v13282_v17 = vld [vmem:[#allocation2 + $0x14] sm:$0xf0]   ;;  %v13284_v19 = vld [vmem:[#allocation2 + $0x1c] sm:$0xff]   ;;  %v1073_v23 = vshll.u32 %v11420_v16, 16  ;;  %v1077_v51 = vshrl.u32 %v11420_v16, 16 }
  0x46   : > { %v13263_v18 = vld [vmem:[#allocation2 + $0x14] sm:$0xff]   ;;  %v12798_v20 = vor.u32 %v13282_v17, %v12797_v15  ;;  %v1416_v28 = vshrl.u32 %v13284_v19, 16  ;;  %v1419_v29 = vshll.u32 %v13284_v19, 16  ;;  %v12396_v42 = vld [vmem:[#allocation2 + $0x20] sm:$0xff]   ;;  %v11488_v17 = vld [vmem:[%s16030_s1 + $0x1e8] sm:$0xff] }
  0x47   : > { %v12395_v21 = vld [vmem:[#allocation2 + $0x18] sm:$0xff]   ;;  %658 = vmatmul.bf16.gmra.mxu0 %v13263_v18  ;;  %v1075_v30 = vrot.slane %v1073_v23, 1  ;;  %v13286_v41 = vld [vmem:[#allocation2 + $0x24] sm:$0xff]   ;;  %v749_v46 = vshrl.u32 %v12396_v42, 16  ;;  %v752_v47 = vshll.u32 %v12396_v42, 16  ;;  %2617 = vmatpush.bf16.msrb.mxu3 %v11488_v17 }
  0x48   : > { %v740_v24 = vshrl.u32 %v12395_v21, 16  ;;  %v743_v25 = vshll.u32 %v12395_v21, 16  ;;  %v1408_v26 = vshrl.u32 %v12798_v20, 16  ;;  %v1411_v27 = vshll.u32 %v12798_v20, 16  ;;  %v11421_v44 = vld [vmem:[#allocation2 + $0x1c] sm:$0xff]  ;;  %v13288_v8 = vld [vmem:[#allocation2 + $0x2c] sm:$0xff]  }
  0x49   : > { %v1418_v35 = vrot.slane %v1416_v28, 3  ;;  %v1421_v36 = vrot.slane %v1419_v29, 4  ;;  %v1076_v37 = vsel %vm1064_vm1, %v1071_v22, %v1075_v30  ;;  %v1425_v48 = vshrl.u32 %v13286_v41, 16  ;;  %v13265_v53 = vld [vmem:[#allocation2 + $0x1c] sm:$0xff]   ;;  %v13871_v2 = vld [vmem:[#allocation2 + $0x28] sm:$0xff]   ;;  %v11424_v1 = vld [vmem:[#allocation2 + $0x34] sm:$0xff] }
  0x4a   : > { %v742_v31 = vrot.slane %v740_v24, 3  ;;  %v745_v32 = vrot.slane %v743_v25, 4  ;;  %v1410_v33 = vrot.slane %v1408_v26, 3  ;;  %v1413_v34 = vrot.slane %v1411_v27, 4  ;;  %1233 = vmatmul.bf16.vlgmr.msra.gmra.mxu2 %v1076_v37  ;;  %v13873_v3 = vld [vmem:[#allocation2 + $0x24] sm:$0xff]  ;;  %v11423_v37 = vld [vmem:[#allocation2 + $0x2c] sm:$0xff] }
  0x4b   : > { %v1422_v40 = vor.u32 %v1421_v36, %v1418_v35  ;;  %v1428_v50 = vshll.u32 %v13286_v41, 16  ;;  %v1081_v52 = vshll.u32 %v11421_v44, 16  ;;  %v751_v54 = vrot.slane %v749_v46, 3  ;;  %v13893_v18 = vld [vmem:[%s16030_s1 + $0x168] sm:$0xff]  ;;  %v13290_v36 = vld [vmem:[#allocation2 + $0x34] sm:$0xff]   ;;  %v13909_v41 = vld [vmem:[%s16030_s1 + $0x1a0] sm:$0xff] }
  0x4c   : > { %v746_v38 = vor.u32 %v745_v32, %v742_v31  ;;  %v1414_v39 = vor.u32 %v1413_v34, %v1410_v33  ;;  %v754_v55 = vrot.slane %v752_v47, 4  ;;  %v1427_v56 = vrot.slane %v1425_v48, 3  ;;  %2093 = vmatpush.bf16.msrb.mxu1 %v13893_v18  ;;  %v13267_v21 = vld [vmem:[#allocation2 + $0x24] sm:$0xff]   ;;  %v12398_v33 = vld [vmem:[#allocation2 + $0x30] sm:$0xff]   ;;  %2452 = vmatpush.bf16.msrb.mxu2 %v13909_v41 }
  0x4d   : > { %v1430_v57 = vrot.slane %v1428_v50, 4  ;;  %v1083_v59 = vrot.slane %v1081_v52, 1  ;;  %v758_v12 = vshrl.u32 %v13871_v2, 16  ;;  %v761_v0 = vshll.u32 %v13871_v2, 16  ;;  %v12382_v31 = vld [vmem:[%s13823_s6 + $0x20] sm:$0xff]   ;;  %v13269_v50 = vld [vmem:[#allocation2 + $0x2c] sm:$0xff]  }
  0x4e   : > { %v747_v43 = vsel %vm721_vm0, %v13790_v49, %v746_v38  ;;  %v1423_v45 = vsel %vm721_vm0, %v1414_v39, %v1422_v40  ;;  %v1079_v49 = vor.u32 %v1077_v51, %v1075_v30  ;;  %v755_v61 = vor.u32 %v754_v55, %v751_v54  ;;  %v13914_v42 = vld [vmem:[%s16030_s1 + $0x120] sm:$0xff]  ;;  %v13271_v10 = vld [vmem:[#allocation2 + $0x34] sm:$0xff]  }
  0x4f   : > { %911 = vmatmul.bf16.gmra.mxu1 %v747_v43  ;;  %1591 = vmatmul.bf16.vlgmr.msra.gmra.mxu3 %v1423_v45  ;;  %v1431_v62 = vor.u32 %v1430_v57, %v1427_v56  ;;  %v1434_v15 = vshrl.u32 %v13288_v8, 16  ;;  %v1437_v16 = vshll.u32 %v13288_v8, 16  ;;  %v1085_v19 = vshrl.u32 %v11421_v44, 16  ;;  %v11487_v43 = vld [vmem:[%s16030_s1 + $0x1e0] sm:$0xff] }
  0x50   : > { %v1084_v63 = vsel %vm1064_vm1, %v1079_v49, %v1083_v59  ;;  %v756_v4 = vsel %vm721_vm0, %v746_v38, %v755_v61  ;;  %v1089_v20 = vshll.u32 %v13873_v3, 16  ;;  %v760_v22 = vrot.slane %v758_v12, 3  ;;  %v13922_v46 = vld [vmem:[%s16030_s1 + $0x160] sm:$0xff]  ;;  %1752 = vmatpush.bf16.msrb.mxu0 %v13914_v42  ;;  %2618 = vmatpush.bf16.msrb.mxu3 %v11487_v43  ;;  %v13960_v43 = vld [vmem:[%s16030_s1 + $0x158] sm:$0xff] }
  0x51   : > { %v1432_v7 = vsel %vm721_vm0, %v1422_v40, %v1431_v62  ;;  %v763_v23 = vrot.slane %v761_v0, 4  ;;  %v1436_v24 = vrot.slane %v1434_v15, 3  ;;  %v1439_v25 = vrot.slane %v1437_v16, 4  ;;  %2094 = vmatpush.bf16.msrb.mxu1 %v13922_v46 }
  0x52   : > { %v1087_v26 = vor.u32 %v1085_v19, %v1083_v59  ;;  %v1091_v27 = vrot.slane %v1089_v20, 1  ;;  %v11709_v34 = vunpack.c.l.b16 %v12382_v31  ;;  %v767_v39 = vshrl.u32 %v12398_v33, 16 }
  0x53   : > { %v13899_v28 = vor.u32 %v763_v23, %v760_v22  ;;  %v1440_v29 = vor.u32 %v1439_v25, %v1436_v24  ;;  %v770_v40 = vshll.u32 %v12398_v33, 16  ;;  %v1443_v44 = vshrl.u32 %v13290_v36, 16  ;;  %v12383_v23 = vld [vmem:[%s13823_s6 + $0x28] sm:$0xff]   ;;  %v12400_v25 = vld [vmem:[#allocation2 + $0x40] sm:$0xff]  }
  0x54   : > { %v1092_v30 = vsel %vm1064_vm1, %v1087_v26, %v1091_v27  ;;  %v356_v38 = vpack.c.b16 %v11709_v34, %v11709_v34  ;;  %v1446_v45 = vshll.u32 %v13290_v36, 16  ;;  %v1093_v47 = vshrl.u32 %v13873_v3, 16  ;;  %v13947_v36 = vld [vmem:[%s16030_s1 + $0x198] sm:$0xff] }
  0x55   : > { %v765_v32 = vsel %vm721_vm0, %v755_v61, %v13899_v28  ;;  %v1441_v35 = vsel %vm721_vm0, %v1431_v62, %v1440_v29  ;;  %v1097_v48 = vshll.u32 %v11423_v37, 16  ;;  %v769_v51 = vrot.slane %v767_v39, 3  ;;  %v13292_v62 = vld [vmem:[#allocation2 + $0x3c] sm:$0xff]   ;;  %2453 = vmatpush.bf16.msrb.mxu2 %v13947_v36  ;;  %2095 = vmatpush.bf16.msrb.mxu1 %v13960_v43 }
  0x56   : > { %425 = vst [vmem:[#allocation2 + $0x48] sm:$0xf] %v356_v38  ;;  %v772_v52 = vrot.slane %v770_v40, 4  ;;  %v1448_v54 = vrot.slane %v1446_v45, 4  ;;  %v1095_v55 = vor.u32 %v1093_v47, %v1091_v27  ;;  %v11710_v60 = vunpack.c.h.b16 %v12382_v31  ;;  %v13941_v31 = vld [vmem:[#allocation2 + $0x3c] sm:$0xff] }
  0x57   : > { %662 = vmatmul.bf16.gmra.mxu0 %v13265_v53  ;;  %v1445_v53 = vrot.slane %v1443_v44, 3  ;;  %v1099_v56 = vrot.slane %v1097_v48, 1  ;;  %v1455_v8 = vshll.u32 %v13292_v62, 16  ;;  %v1101_v3 = vshrl.u32 %v11423_v37, 16  ;;  %v13952_v37 = vld [vmem:[%s16030_s1 + $0x118] sm:$0xff] }
  0x58   : > { %v773_v57 = vor.u32 %v772_v52, %v769_v51  ;;  %v1105_v9 = vshll.u32 %v11424_v1, 16  ;;  %v11713_v26 = vunpack.c.l.b16 %v12383_v23  ;;  %v11714_v27 = vunpack.c.h.b16 %v12383_v23  ;;  %v11486_v38 = vld [vmem:[%s16030_s1 + $0x1d8] sm:$0xff]  ;;  %1753 = vmatpush.bf16.msrb.mxu0 %v13952_v37 }
  0x59   : > { %v1449_v58 = vor.u32 %v1448_v54, %v1445_v53  ;;  %v1100_v49 = vsel %vm1064_vm1, %v1095_v55, %v1099_v56  ;;  %v1457_v16 = vrot.slane %v1455_v8, 4  ;;  %v1103_v17 = vor.u32 %v1101_v3, %v1099_v56  ;;  %2619 = vmatpush.bf16.msrb.mxu3 %v11486_v38  ;;  %v13273_v47 = vld [vmem:[#allocation2 + $0x3c] sm:$0xff]   ;;  %v13981_v8 = vld [vmem:[%s16030_s1 + $0x110] sm:$0xff] }
  0x5a   : > { %1238 = vmatmul.bf16.gmra.mxu2 %v1084_v63  ;;  %v13931_v59 = vsel %vm721_vm0, %v13899_v28, %v773_v57  ;;  %v12399_v63 = vld [vmem:[#allocation2 + $0x38] sm:$0xff]   ;;  %v1107_v19 = vrot.slane %v1105_v9, 1  ;;  %v359_v33 = vpack.c.b16 %v11714_v27, %v11714_v27  ;;  %v785_v34 = vshrl.u32 %v12400_v25, 16  ;;  %v11485_v3 = vld [vmem:[%s16030_s1 + $0x1d0] sm:$0xff] }
  0x5b   : > { %v1450_v61 = vsel %vm721_vm0, %v1440_v29, %v1449_v58  ;;  %v776_v5 = vshrl.u32 %v12399_v63, 16  ;;  %v779_v6 = vshll.u32 %v12399_v63, 16  ;;  %v1109_v44 = vshrl.u32 %v11424_v1, 16 }
  0x5c   : > { %v1108_v22 = vsel %vm1064_vm1, %v1103_v17, %v1107_v19  ;;  %429 = vst [vmem:[#allocation2 + $0x58] sm:$0xf] %v359_v33  ;;  %v1113_v45 = vshll.u32 %v13941_v31, 16  ;;  %v787_v48 = vrot.slane %v785_v34, 3  ;;  %1754 = vmatpush.bf16.msrb.mxu0 %v13981_v8 }
  0x5d   : > { %v778_v12 = vrot.slane %v776_v5, 3  ;;  %v781_v0 = vrot.slane %v779_v6, 4  ;;  %v1111_v53 = vor.u32 %v1109_v44, %v1107_v19  ;;  %v11426_v1 = vld [vmem:[#allocation2 + $0x44] sm:$0xff]  ;;  %2620 = vmatpush.bf16.msrb.mxu3 %v11485_v3 }
  0x5e   : > { %v1115_v54 = vrot.slane %v1113_v45, 1 }
  0x5f   : > { %915 = vmatmul.bf16.gmra.mxu1 %v756_v4  ;;  %1596 = vmatmul.bf16.gmra.mxu3 %v1432_v7  ;;  %v357_v4 = vpack.c.b16 %v11710_v60, %v11710_v60  ;;  %v1452_v7 = vshrl.u32 %v13292_v62, 16  ;;  %v782_v20 = vor.u32 %v781_v0, %v778_v12  ;;  %v13989_v12 = vld [vmem:[%s16030_s1 + $0x150] sm:$0xff]  ;;  %v1117_v0 = vshrl.u32 %v13941_v31, 16 }
  0x60   : > { %2096 = vmatpush.bf16.msrb.mxu1 %v13989_v12 }
  0x61   : > { %426 = vst [vmem:[#allocation2 + $0x4c] sm:$0xf] %v357_v4  ;;  %v1454_v15 = vrot.slane %v1452_v7, 3  ;;  %v13938_v24 = vsel %vm721_vm0, %v773_v57, %v782_v20  ;;  %v1116_v57 = vsel %vm1064_vm1, %v1111_v53, %v1115_v54  ;;  %v13976_v7 = vld [vmem:[%s16030_s1 + $0x190] sm:$0xff] }
  0x62   : > { %2454 = vmatpush.bf16.msrb.mxu2 %v13976_v7 }
  0x67   : > { %666 = vmatmul.bf16.gmra.mxu0 %v13267_v21  ;;  %v1458_v21 = vor.u32 %v1457_v16, %v1454_v15  ;;  %v1121_v15 = vshll.u32 %v11426_v1, 16  ;;  %v13275_v16 = vld [vmem:[#allocation2 + $0x44] sm:$0xff]  }
  0x68   : > { %v12401_v60 = vld [vmem:[#allocation2 + $0x48] sm:$0xff]  }
  0x69   : > { %v1459_v29 = vsel %vm721_vm0, %v1449_v58, %v1458_v21  ;;  %v12384_v58 = vld [vmem:[%s13823_s6 + $0x30] sm:$0xff]   ;;  %v794_v5 = vshrl.u32 %v12401_v60, 16  ;;  %v797_v6 = vshll.u32 %v12401_v60, 16  ;;  %v1123_v23 = vrot.slane %v1121_v15, 1 }
  0x6a   : > { %1242 = vmatmul.bf16.gmra.mxu2 %v1092_v30  ;;  %v13294_v30 = vld [vmem:[#allocation2 + $0x44] sm:$0xff]   ;;  %v13296_v63 = vld [vmem:[#allocation2 + $0x4c] sm:$0xff]  }
  0x6b   : > { %v1461_v39 = vshrl.u32 %v13294_v30, 16  ;;  %v1464_v40 = vshll.u32 %v13294_v30, 16  ;;  %v1470_v9 = vshrl.u32 %v13296_v63, 16  ;;  %v796_v17 = vrot.slane %v794_v5, 3  ;;  %v14002_v34 = vld [vmem:[#allocation2 + $0x4c] sm:$0xff] }
  0x6c   : > { %v799_v19 = vrot.slane %v797_v6, 4  ;;  %v11718_v30 = vunpack.c.h.b16 %v12384_v58 }
  0x6d   : > { %v1463_v51 = vrot.slane %v1461_v39, 3  ;;  %v1466_v52 = vrot.slane %v1464_v40, 4 }
  0x6f   : > { %919 = vmatmul.bf16.gmra.mxu1 %v765_v32  ;;  %1600 = vmatmul.bf16.gmra.mxu3 %v1441_v35  ;;  %v358_v32 = vpack.c.b16 %v11713_v26, %v11713_v26  ;;  %v788_v35 = vshll.u32 %v12400_v25, 16  ;;  %v1467_v56 = vor.u32 %v1466_v52, %v1463_v51  ;;  %v800_v25 = vor.u32 %v799_v19, %v796_v17  ;;  %v13277_v52 = vld [vmem:[#allocation2 + $0x4c] sm:$0xff]  }
  0x70   : > { %v1129_v51 = vshll.u32 %v14002_v34, 16 }
  0x71   : > { %428 = vst [vmem:[#allocation2 + $0x54] sm:$0xf] %v358_v32  ;;  %v1468_v62 = vsel %vm721_vm0, %v1458_v21, %v1467_v56 }
  0x77   : > { %671 = vmatmul.bf16.gmra.mxu0 %v13269_v50  ;;  %v790_v50 = vrot.slane %v788_v35, 4  ;;  %v361_v35 = vpack.c.b16 %v11718_v30, %v11718_v30 }
  0x78   : > { %v13298_v32 = vld [vmem:[#allocation2 + $0x54] sm:$0xff]  }
  0x79   : > { %v791_v55 = vor.u32 %v790_v50, %v787_v48  ;;  %v14000_v33 = vld [vmem:[#allocation2 + $0x50] sm:$0xff]   ;;  %432 = vst [vmem:[#allocation2 + $0x64] sm:$0xf] %v361_v35  ;;  %v1482_v48 = vshll.u32 %v13298_v32, 16  ;;  %v1125_v50 = vshrl.u32 %v11426_v1, 16  ;;  %v14017_v1 = vld [vmem:[#allocation2 + $0x58] sm:$0xff]  }
  0x7a   : > { %1246 = vmatmul.bf16.gmra.mxu2 %v1100_v49  ;;  %v803_v44 = vshrl.u32 %v14000_v33, 16  ;;  %v806_v45 = vshll.u32 %v14000_v33, 16  ;;  %v812_v17 = vshrl.u32 %v14017_v1, 16  ;;  %v815_v19 = vshll.u32 %v14017_v1, 16 }
  0x7b   : > { %v13969_v49 = vsel %vm721_vm0, %v782_v20, %v791_v55  ;;  %v1472_v20 = vrot.slane %v1470_v9, 3 }
  0x7c   : > { %v805_v53 = vrot.slane %v803_v44, 3  ;;  %v814_v35 = vrot.slane %v812_v17, 3 }
  0x7f   : > { %924 = vmatmul.bf16.gmra.mxu1 %v13931_v59  ;;  %1604 = vmatmul.bf16.gmra.mxu3 %v1450_v61  ;;  %v11717_v61 = vunpack.c.l.b16 %v12384_v58  ;;  %v1131_v58 = vrot.slane %v1129_v51, 1 }
  0x81   : > { %v360_v4 = vpack.c.b16 %v11717_v61, %v11717_v61 }
  0x83   : > { %431 = vst [vmem:[#allocation2 + $0x60] sm:$0xf] %v360_v4  ;;  %v12385_v4 = vld [vmem:[%s13823_s6 + $0x38] sm:$0xff]  }
  0x84   : > { %v11721_v6 = vunpack.c.l.b16 %v12385_v4  ;;  %v11722_v3 = vunpack.c.h.b16 %v12385_v4 }
  0x86   : > { %v362_v15 = vpack.c.b16 %v11721_v6, %v11721_v6 }
  0x87   : > { %675 = vmatmul.bf16.gmra.mxu0 %v13271_v10  ;;  %v1473_v10 = vshll.u32 %v13296_v63, 16 }
  0x88   : > { %434 = vst [vmem:[#allocation2 + $0x6c] sm:$0xf] %v362_v15 }
  0x89   : > { %v1475_v21 = vrot.slane %v1473_v10, 4 }
  0x8a   : > { %1251 = vmatmul.bf16.gmra.mxu2 %v1108_v22  ;;  %v1119_v22 = vor.u32 %v1117_v0, %v1115_v54  ;;  %v808_v54 = vrot.slane %v806_v45, 4  ;;  %v13300_v10 = vld [vmem:[#allocation2 + $0x5c] sm:$0xff]   ;;  %v14020_v0 = vld [vmem:[#allocation2 + $0x54] sm:$0xff] }
  0x8b   : > { %v1476_v26 = vor.u32 %v1475_v21, %v1472_v20  ;;  %v14028_v20 = vld [vmem:[%s16030_s1 + $0x188] sm:$0xff] }
  0x8c   : > { %v1124_v27 = vsel %vm1064_vm1, %v1119_v22, %v1123_v23  ;;  %v809_v60 = vor.u32 %v808_v54, %v805_v53  ;;  %v14033_v21 = vld [vmem:[%s16030_s1 + $0x108] sm:$0xff]  ;;  %2455 = vmatpush.bf16.msrb.mxu2 %v14028_v20 }
  0x8d   : > { %v1477_v31 = vsel %vm721_vm0, %v1467_v56, %v1476_v26  ;;  %v1484_v56 = vrot.slane %v1482_v48, 4  ;;  %v11484_v22 = vld [vmem:[%s16030_s1 + $0x1c8] sm:$0xff]  ;;  %1755 = vmatpush.bf16.msrb.mxu0 %v14033_v21 }
  0x8e   : > { %v14015_v5 = vsel %vm721_vm0, %v800_v25, %v809_v60  ;;  %2621 = vmatpush.bf16.msrb.mxu3 %v11484_v22 }
  0x8f   : > { %928 = vmatmul.bf16.gmra.mxu1 %v13938_v24  ;;  %1609 = vmatmul.bf16.gmra.mxu3 %v1459_v29  ;;  %v13997_v29 = vsel %vm721_vm0, %v791_v55, %v800_v25  ;;  %v1491_v25 = vshll.u32 %v13300_v10, 16 }
  0x91   : > { %v1493_v44 = vrot.slane %v1491_v25, 4  ;;  %v14071_v25 = vld [vmem:[%s16030_s1 + $0x180] sm:$0xff] }
  0x92   : > { %2456 = vmatpush.bf16.msrb.mxu2 %v14071_v25 }
  0x97   : > { %679 = vmatmul.bf16.gmra.mxu0 %v13273_v47  ;;  %v1479_v47 = vshrl.u32 %v13298_v32, 16  ;;  %v13279_v32 = vld [vmem:[#allocation2 + $0x54] sm:$0xff]  }
  0x99   : > { %v1481_v55 = vrot.slane %v1479_v47, 3 }
  0x9a   : > { %1255 = vmatmul.bf16.gmra.mxu2 %v1116_v57  ;;  %v1127_v57 = vor.u32 %v1125_v50, %v1123_v23  ;;  %v1488_v23 = vshrl.u32 %v13300_v10, 16 }
  0x9b   : > { %v1485_v61 = vor.u32 %v1484_v56, %v1481_v55  ;;  %v13302_v55 = vld [vmem:[#allocation2 + $0x64] sm:$0xff]  }
  0x9d   : > { %v1486_v9 = vsel %vm721_vm0, %v1476_v26, %v1485_v61  ;;  %v1133_v26 = vshrl.u32 %v14002_v34, 16 }
  0x9f   : > { %932 = vmatmul.bf16.gmra.mxu1 %v13969_v49  ;;  %1613 = vmatmul.bf16.gmra.mxu3 %v1468_v62  ;;  %v1132_v62 = vsel %vm1064_vm1, %v1127_v57, %v1131_v58  ;;  %v1135_v34 = vor.u32 %v1133_v26, %v1131_v58  ;;  %v14056_v57 = vld [vmem:[#allocation2 + $0x60] sm:$0xff]  }
  0xa0   : > { %v14058_v58 = vld [vmem:[#allocation2 + $0x5c] sm:$0xff]  ;;  %v821_v4 = vshrl.u32 %v14056_v57, 16  ;;  %v824_v6 = vshll.u32 %v14056_v57, 16 }
  0xa1   : > { %v1145_v10 = vshll.u32 %v14058_v58, 16 }
  0xa2   : > { %v823_v22 = vrot.slane %v821_v4, 3  ;;  %v13461_v4 = vld [vmem:[%s16030_s1 + $0x30] sm:$0xff] }
  0xa7   : > { %684 = vmatmul.bf16.gmra.mxu0 %v13275_v16  ;;  %v363_v16 = vpack.c.b16 %v11722_v3, %v11722_v3  ;;  %v1497_v3 = vshrl.u32 %v13302_v55, 16 }
  0xa9   : > { %v654_v38 = vpop.f32.mrf.mxu0  ;;  %435 = vst [vmem:[#allocation2 + $0x70] sm:$0xf] %v363_v16  ;;  %v13280_v16 = vld [vmem:[#allocation2 + $0x5c] sm:$0xff]   ;;  %v1499_v26 = vrot.slane %v1497_v3, 3 }
  0xaa   : > { %1259 = vmatmul.bf16.gmra.mxu2 %v1124_v27  ;;  %v907_v39 = vpop.f32.mrf.mxu1  ;;  %v1137_v27 = vshll.u32 %v14020_v0, 16 }
  0xab   : > { %v14005_v40 = vadd.f32 %v907_v39, %v654_v38  ;;  %v817_v38 = vrot.slane %v815_v19, 4  ;;  %v1490_v39 = vrot.slane %v1488_v23, 3  ;;  %v826_v23 = vrot.slane %v824_v6, 4 }
  0xac   : > { %v1139_v47 = vrot.slane %v1137_v27, 1 }
  0xad   : > { %v818_v48 = vor.u32 %v817_v38, %v814_v35  ;;  %v14048_v50 = vor.u32 %v1493_v44, %v1490_v39  ;;  %v491_v38 = vld [vmem:[#allocation2 + $0x68] sm:$0xf]  ;;  %v14083_v44 = vrot.slane %v1145_v10, 1 }
  0xae   : > { %v1140_v51 = vsel %vm1064_vm1, %v1135_v34, %v1139_v47  ;;  %v13459_v34 = vld [vmem:[%s16030_s1 + $0x38] sm:$0xff] }
  0xaf   : > { %937 = vmatmul.bf16.gmra.mxu1 %v13997_v29  ;;  %1617 = vmatmul.bf16.gmra.mxu3 %v1477_v31  ;;  %v14045_v31 = vld [vmem:[%s16030_s1 + $0x148] sm:$0xff]  ;;  %v14052_v53 = vsel %vm721_vm0, %v809_v60, %v818_v48  ;;  %v1495_v54 = vsel %vm721_vm0, %v1485_v61, %v14048_v50  ;;  %v1141_v61 = vshrl.u32 %v14020_v0, 16  ;;  %v11483_v0 = vld [vmem:[%s16030_s1 + $0x1c0] sm:$0xff] }
  0xb0   : > { %2097 = vmatpush.bf16.msrb.mxu1 %v14045_v31  ;;  %2622 = vmatpush.bf16.msrb.mxu3 %v11483_v0  ;;  %v11798_v0 = vunpack.c.h.b16 %v14056_v57 }
  0xb1   : > { %v14011_v63 = vpop.f32.mrf.mxu0  ;;  %v1143_v39 = vor.u32 %v1141_v61, %v1139_v47  ;;  %3385 = vmatpush.bf16.msra.mxu2 %v13459_v34  ;;  %v13460_v47 = vld [vmem:[%s16030_s1 + $0xb8] sm:$0xff]  ;;  %v13462_v61 = vld [vmem:[%s16030_s1 + $0xb0] sm:$0xff] }
  0xb2   : > { %v909_v30 = vpop.f32.mrf.mxu1 }
  0xb4   : > { %3646 = vmatpush.bf16.msra.mxu3 %v13460_v47 }
  0xb5   : > { %3386 = vmatpush.bf16.msra.mxu2 %v13461_v4 }
  0xb7   : > { %688 = vmatmul.bf16.gmra.mxu0 %v13277_v52 }
  0xb8   : > { %3647 = vmatpush.bf16.msra.mxu3 %v13462_v61 }
  0xba   : > { %1264 = vmatmul.bf16.gmra.mxu2 %v1132_v62 }
  0xbf   : > { %941 = vmatmul.bf16.gmra.mxu1 %v14015_v5  ;;  %1622 = vmatmul.bf16.gmra.mxu3 %v1486_v9  ;;  %v1500_v9 = vshll.u32 %v13302_v55, 16 }
  0xc1   : > { %v1502_v27 = vrot.slane %v1500_v9, 4 }
  0xc4   : > { %v659_v45 = vpop.f32.mrf.mxu0 }
  0xc5   : > { %v910_v45 = vadd.f32 %v909_v30, %v14011_v63  ;;  %v1148_v63 = vsel %vm1064_vm1, %v1143_v39, %v14083_v44  ;;  %v13465_v39 = vld [vmem:[%s16030_s1 + $0xa8] sm:$0xff] }
  0xc6   : > { %3648 = vmatpush.bf16.msra.mxu3 %v13465_v39 }
  0xc7   : > { %692 = vmatmul.bf16.gmra.mxu0 %v13279_v32 }
  0xca   : > { %1268 = vmatmul.bf16.gmra.mxu2 %v1140_v51 }
  0xcc   : > { %v912_v52 = vpop.f32.mrf.mxu1  ;;  %v660_v56 = vpop.f32.mrf.mxu0 }
  0xcd   : > { %v1234_v62 = vpop.f32.mrf.mxu2  ;;  %v14091_v52 = vor.u32 %v826_v23, %v823_v22  ;;  %v14123_v22 = vld [vmem:[#allocation2 + $0x64] sm:$0xff] }
  0xce   : > { %v1286_v60 = vadd.f32 %v1234_v62, %v14005_v40  ;;  %v14076_v40 = vld [vmem:[%s16030_s1 + $0x100] sm:$0xff]  ;;  %v13464_v23 = vld [vmem:[%s16030_s1 + $0x28] sm:$0xff]  ;;  %v1153_v34 = vshll.u32 %v14123_v22, 16 }
  0xcf   : > { %945 = vmatmul.bf16.gmra.mxu1 %v14052_v53  ;;  %1626 = vmatmul.bf16.gmra.mxu3 %v1495_v54  ;;  %v572_v54 = vunpack.c.l.b16 %v491_v38  ;;  %v14103_v62 = vld [vmem:[%s16030_s1 + $0x140] sm:$0xff]  ;;  %v14112_v3 = vsel %vm721_vm0, %v818_v48, %v14091_v52  ;;  %v13463_v48 = vld [vmem:[%s16030_s1 + $0x78] sm:$0xff] }
  0xd0   : > { %1756 = vmatpush.bf16.msrb.mxu0 %v14076_v40  ;;  %2098 = vmatpush.bf16.msrb.mxu1 %v14103_v62 }
  0xd1   : > { %v720_v9 = vpack.c.b16 %v572_v54, %v572_v54  ;;  %3387 = vmatpush.bf16.msra.mxu2 %v13464_v23  ;;  %v983_v23 = vld [vmem:[#allocation2 + $0x6c] sm:$0x1] }
  0xd2   : > { %v1592_v15 = vpop.f32.mrf.mxu3 }
  0xd3   : > { %v14066_v17 = vadd.f32 %v1592_v15, %v1286_v60 }
  0xd4   : > { %v913_v19 = vpop.f32.mrf.mxu1  ;;  %v663_v35 = vpop.f32.mrf.mxu0  ;;  %3181 = vmatpush.bf16.msra.mxu1 %v13463_v48  ;;  %v14150_v48 = vld [vmem:[#allocation2 + $0x70] sm:$0xff]  }
  0xd5   : > { %v14081_v32 = vadd.f32 %v913_v19, %v660_v56  ;;  %v1236_v51 = vpop.f32.mrf.mxu2  ;;  %v14096_v56 = vor.u32 %v1502_v27, %v1499_v26  ;;  %v830_v26 = vshrl.u32 %v720_v9, 16  ;;  %v833_v27 = vshll.u32 %v720_v9, 16 }
  0xd6   : > { %v1287_v55 = vadd.f32 %v1236_v51, %v910_v45  ;;  %v1149_v45 = vshrl.u32 %v14058_v58, 16  ;;  %v13466_v51 = vld [vmem:[%s16030_s1 + $0x70] sm:$0xff] }
  0xd7   : > { %697 = vmatmul.bf16.gmra.mxu0 %v13280_v16  ;;  %v1504_v10 = vsel %vm721_vm0, %v14048_v50, %v14096_v56  ;;  %v13303_v16 = vld [vmem:[#allocation2 + $0x6c] sm:$0xff]   ;;  %v832_v4 = vrot.slane %v830_v26, 3 }
  0xd8   : > { %v1509_v38 = vshll.u32 %v13303_v16, 16  ;;  %3182 = vmatpush.bf16.msra.mxu1 %v13466_v51 }
  0xda   : > { %v1594_v30 = vpop.f32.mrf.mxu3  ;;  %1272 = vmatmul.bf16.gmra.mxu2 %v1148_v63  ;;  %v1511_v61 = vrot.slane %v1509_v38, 4  ;;  %v13471_v38 = vld [vmem:[%s16030_s1 + $0x98] sm:$0xff] }
  0xdb   : > { %v14108_v6 = vadd.f32 %v1594_v30, %v1287_v55  ;;  %v13467_v55 = vld [vmem:[%s16030_s1 + $0x20] sm:$0xff]  ;;  %v584_v30 = vpack.c.b16 %v572_v54, %v11798_v0  ;;  %v13469_v54 = vld [vmem:[%s16030_s1 + $0x68] sm:$0xff] }
  0xdc   : > { %v916_v60 = vpop.f32.mrf.mxu1  ;;  %v665_v19 = vpop.f32.mrf.mxu0  ;;  %3388 = vmatpush.bf16.msra.mxu2 %v13467_v55  ;;  %3183 = vmatpush.bf16.msra.mxu1 %v13469_v54  ;;  %v13475_v54 = vld [vmem:[%s16030_s1 + $0x58] sm:$0xff] }
  0xdd   : > { %v14120_v15 = vadd.f32 %v916_v60, %v663_v35  ;;  %v1239_v50 = vpop.f32.mrf.mxu2  ;;  %v1506_v35 = vshrl.u32 %v13303_v16, 16  ;;  %v835_v60 = vrot.slane %v833_v27, 4  ;;  %v1151_v16 = vor.u32 %v1149_v45, %v14083_v44 }
  0xde   : > { %v14148_v19 = vrot.slane %v1153_v34, 1  ;;  %v13470_v50 = vld [vmem:[%s16030_s1 + $0x18] sm:$0xff]  ;;  %v1050_v45 = vunpack.c.l.b16 %v983_v23  ;;  %v13472_v34 = vld [vmem:[%s16030_s1 + $0x60] sm:$0xff] }
  0xdf   : > { %950 = vmatmul.bf16.gmra.mxu1 %v14112_v3  ;;  %1630 = vmatmul.bf16.gmra.mxu3 %v1504_v10  ;;  %v1508_v9 = vrot.slane %v1506_v35, 3  ;;  %v13468_v10 = vld [vmem:[%s16030_s1 + $0xa0] sm:$0xff]  ;;  %v836_v26 = vor.u32 %v835_v60, %v832_v4  ;;  %v11846_v35 = vunpack.c.h.b16 %v14150_v48 }
  0xe0   : > { %3649 = vmatpush.bf16.msra.mxu3 %v13468_v10  ;;  %3389 = vmatpush.bf16.msra.mxu2 %v13470_v50  ;;  %v1156_v39 = vsel %vm1064_vm1, %v1151_v16, %v14148_v19  ;;  %v13474_v10 = vld [vmem:[%s16030_s1 + $0x90] sm:$0xff]  ;;  %v1063_v16 = vpack.c.b16 %v1050_v45, %v1050_v45  ;;  %v14191_v23 = vld [vmem:[#allocation2 + $0x20] sm:$0xff] }
  0xe1   : > { %v14159_v27 = vor.u32 %v1511_v61, %v1508_v9  ;;  %3184 = vmatpush.bf16.msra.mxu1 %v13472_v34  ;;  %v1406_v9 = vpack.c.b16 %v11846_v35, %v11846_v35  ;;  %v13478_v34 = vld [vmem:[%s16030_s1 + $0x50] sm:$0xff] }
  0xe2   : > { %v1597_v47 = vpop.f32.mrf.mxu3  ;;  %v1161_v45 = vshll.u32 %v1063_v16, 16 }
  0xe3   : > { %v1513_v4 = vsel %vm721_vm0, %v14096_v56, %v14159_v27  ;;  %v13476_v56 = vld [vmem:[%s16030_s1 + $0x8] sm:$0xff]  ;;  %v1518_v35 = vshll.u32 %v1406_v9, 16 }
  0xe4   : > { %v918_v63 = vpop.f32.mrf.mxu1  ;;  %v667_v58 = vpop.f32.mrf.mxu0  ;;  %3650 = vmatpush.bf16.msra.mxu3 %v13471_v38  ;;  %v13477_v38 = vld [vmem:[%s16030_s1 + $0x88] sm:$0xff] }
  0xe5   : > { %v1240_v0 = vpop.f32.mrf.mxu2  ;;  %v837_v63 = vsel %vm721_vm0, %v14091_v52, %v836_v26  ;;  %3185 = vmatpush.bf16.msra.mxu1 %v13475_v54  ;;  %v1520_v54 = vrot.slane %v1518_v35, 4 }
  0xe6   : > { %v1288_v44 = vadd.f32 %v1240_v0, %v14081_v32  ;;  %v13473_v32 = vld [vmem:[%s16030_s1 + $0x10] sm:$0xff]  ;;  %v14196_v0 = vld [vmem:[%s16030_s1 + $0x238] sm:$0xff] }
  0xe7   : > { %701 = vmatmul.bf16.gmra.mxu0 %v584_v30  ;;  %3390 = vmatpush.bf16.msra.mxu2 %v13473_v32  ;;  %v11455_v30 = vld [vmem:[#allocation2 + $0x18] sm:$0xff]  ;;  %16036 = vst [vmem:[#allocation7_spill] sm:$0xff] %v14196_v0  ;;  %v2168_v32 = vld [vmem:[#allocation2 + $0x20] sm:$0x8] }
  0xe8   : > { %3651 = vmatpush.bf16.msra.mxu3 %v13474_v10  ;;  %v1934_v50 = vshll.u32 %v11455_v30, 16  ;;  %2957 = vmatpush.bf16.msra.mxu0 %v14196_v0  ;;  %v1939_v10 = vshll.u32 %v14191_v23, 16 }
  0xe9   : > { %3186 = vmatpush.bf16.msra.mxu1 %v13478_v34  ;;  %v13480_v34 = vld [vmem:[%s16030_s1 + $0x80] sm:$0xff] }
  0xea   : > { %v1598_v51 = vpop.f32.mrf.mxu3  ;;  %1277 = vmatmul.bf16.gmra.mxu2 %v1156_v39  ;;  %v1157_v39 = vshrl.u32 %v14123_v22, 16 }
  0xeb   : > { %v14173_v47 = vadd.f32 %v1598_v51, %v1288_v44  ;;  %3391 = vmatpush.bf16.msra.mxu2 %v13476_v56  ;;  %v1515_v44 = vshrl.u32 %v1406_v9, 16  ;;  %v1936_v9 = vrot.slane %v1934_v50, 1 }
  0xec   : > { %v920_v55 = vpop.f32.mrf.mxu1  ;;  %v669_v61 = vpop.f32.mrf.mxu0  ;;  %3652 = vmatpush.bf16.msra.mxu3 %v13477_v38  ;;  %v12405_v38 = vld [vmem:[#allocation2 + $0x18] sm:$0xff]   ;;  %v1159_v0 = vor.u32 %v1157_v39, %v14148_v19  ;;  %v13482_v19 = vld [vmem:[%s16030_s1 + $0x40] sm:$0xff] }
  0xed   : > { %v14180_v60 = vadd.f32 %v920_v55, %v667_v58  ;;  %v1243_v58 = vpop.f32.mrf.mxu2  ;;  %v13479_v55 = vld [vmem:[%s16030_s1] sm:$0xff]  ;;  %v1517_v16 = vrot.slane %v1515_v44, 3  ;;  %v1941_v44 = vrot.slane %v1939_v10, 1  ;;  %v11457_v10 = vld [vmem:[#allocation2 + $0x28] sm:$0xff] }
  0xee   : > { %v1289_v26 = vadd.f32 %v1243_v58, %v14120_v15  ;;  %v14207_v15 = vld [vmem:[#allocation2 + $0x24] sm:$0xf] }
  0xef   : > { %954 = vmatmul.bf16.gmra.mxu1 %v837_v63  ;;  %1635 = vmatmul.bf16.gmra.mxu3 %v1513_v4  ;;  %v1932_v4 = vshrl.u32 %v11455_v30, 16  ;;  %v13481_v30 = vld [vmem:[%s16030_s1 + $0x48] sm:$0xff]  ;;  %v1521_v35 = vor.u32 %v1520_v54, %v1517_v16  ;;  %v13483_v16 = vld [vmem:[%s16030_s1 + $0x138] sm:$0xff] }
  0xf0   : > { %3392 = vmatpush.bf16.msra.mxu2 %v13479_v55  ;;  %3653 = vmatpush.bf16.msra.mxu3 %v13480_v34  ;;  %v1163_v55 = vrot.slane %v1161_v45, 1 }
  0xf1   : > { %3187 = vmatpush.bf16.msra.mxu1 %v13481_v30 }
  0xf2   : > { %v1601_v51 = vpop.f32.mrf.mxu3 }
  0xf3   : > { %v14212_v63 = vadd.f32 %v1601_v51, %v1289_v26  ;;  %v2235_v26 = vunpack.c.l.b16 %v2168_v32  ;;  %v2236_v51 = vunpack.c.l.b16 %v14207_v15  ;;  %v1522_v15 = vsel %vm721_vm0, %v14159_v27, %v1521_v35  ;;  %v14240_v35 = vld [vmem:[%s16030_s1 + $0x230] sm:$0xff] }
  0xf4   : > { %v922_v22 = vpop.f32.mrf.mxu1  ;;  %v672_v58 = vpop.f32.mrf.mxu0  ;;  %2958 = vmatpush.bf16.msra.mxu0 %v14240_v35 }
  0xf5   : > { %v923_v56 = vadd.f32 %v922_v22, %v669_v61  ;;  %v1245_v50 = vpop.f32.mrf.mxu2  ;;  %v1937_v61 = vor.u32 %v1936_v9, %v1932_v4  ;;  %v1164_v22 = vsel %vm1064_vm1, %v1159_v0, %v1163_v55  ;;  %v2260_v58 = vpack.c.b16 %v2236_v51, %v2235_v26  ;;  %3188 = vmatpush.bf16.msra.mxu1 %v13482_v19  ;;  %v12406_v19 = vld [vmem:[#allocation2 + $0x20] sm:$0xff]  }
  0xf6   : > { %v1943_v50 = vshrl.u32 %v14191_v23, 16 }
  0xf7   : > { %1757 = vmatmul.bf16.vlgmr.msrb.gmra.mxu0 %v12405_v38  ;;  %v1942_v32 = vsel %vm1064_vm1, %v1937_v61, %v1941_v44  ;;  %v2274_v4 = vshrl.u32 %v2260_v58, 16  ;;  %v2277_v9 = vshll.u32 %v2260_v58, 16  ;;  %v1947_v61 = vshll.u32 %v11457_v10, 16 }
  0xf9   : > { %v2276_v34 = vrot.slane %v2274_v4, 3  ;;  %v2279_v55 = vrot.slane %v2277_v9, 4  ;;  %v1949_v23 = vrot.slane %v1947_v61, 1 }
  0xfa   : > { %v1603_v39 = vpop.f32.mrf.mxu3  ;;  %1281 = vmatmul.bf16.gmra.mxu2 %v1164_v22 }
  0xfc   : > { %v925_v45 = vpop.f32.mrf.mxu1  ;;  %v673_v38 = vpop.f32.mrf.mxu0 }
  0xfd   : > { %v1247_v0 = vpop.f32.mrf.mxu2  ;;  %v11849_v45 = vunpack.c.l.b16 %v13871_v2 }
  0xfe   : > { %v1290_v54 = vadd.f32 %v1247_v0, %v14180_v60  ;;  %v2280_v60 = vor.u32 %v2279_v55, %v2276_v34  ;;  %v1951_v55 = vshrl.u32 %v11457_v10, 16 }
  0xff   : > { %2099 = vmatmul.bf16.vlgmr.msrb.gmra.mxu1 %v1942_v32  ;;  %1639 = vmatmul.bf16.gmra.mxu3 %v1522_v15  ;;  %v1945_v32 = vor.u32 %v1943_v50, %v1941_v44  ;;  %v12407_v50 = vld [vmem:[#allocation2 + $0x28] sm:$0xff]  }
 0x100   : > { %4040 = vmatpush.bf16.msrb.mxu1 %v13483_v16  ;;  %v2289_v4 = vsel %vm721_vm0, %v2280_v60, %v13899_v28 }
 0x101   : > { %v1950_v16 = vsel %vm1064_vm1, %v1945_v32, %v1949_v23 }
 0x102   : > { %v1605_v26 = vpop.f32.mrf.mxu3 }
 0x103   : > { %v14234_v30 = vadd.f32 %v1605_v26, %v1290_v54 }
 0x104   : > { %v926_v27 = vpop.f32.mrf.mxu1  ;;  %4041 = vmatpush.bf16.msrb.mxu1 %v13853_v11  ;;  %v676_v58 = vpop.f32.mrf.mxu0 }
 0x105   : > { %v927_v22 = vadd.f32 %v926_v27, %v673_v38  ;;  %v1249_v39 = vpop.f32.mrf.mxu2  ;;  %v2543_v38 = vpack.c.b16 %v11849_v45, %v2236_v51  ;;  %v13485_v51 = vld [vmem:[%s16030_s1 + $0x1b8] sm:$0xff] }
 0x106   : > { %v1291_v15 = vadd.f32 %v1249_v39, %v923_v56  ;;  %v11458_v56 = vld [vmem:[#allocation2 + $0x30] sm:$0xff] }
 0x107   : > { %1762 = vmatmul.bf16.gmra.mxu0 %v12406_v19  ;;  %v1955_v26 = vshll.u32 %v11458_v56, 16  ;;  %v12856_v39 = vld [vmem:[#allocation2 + $0x2c] sm:$0xff]  }
 0x108   : > { %4042 = vmatpush.bf16.msrb.mxu1 %v13885_v14  ;;  %v13484_v14 = vld [vmem:[%s16030_s1 + $0x178] sm:$0xff] }
 0x109   : > { %v1957_v19 = vrot.slane %v1955_v26, 1  ;;  %v12409_v26 = vld [vmem:[#allocation2 + $0x38] sm:$0xff]  }
 0x10a   : > { %v1607_v9 = vpop.f32.mrf.mxu3  ;;  %2457 = vmatmul.bf16.vlgmr.msrb.gmra.mxu2 %v2289_v4 }
 0x10b   : > { %v14248_v11 = vadd.f32 %v1607_v9, %v1291_v15  ;;  %4317 = vmatpush.bf16.msrb.mxu2 %v13484_v14 }
 0x10c   : > { %v929_v0 = vpop.f32.mrf.mxu1  ;;  %4043 = vmatpush.bf16.msrb.mxu1 %v13914_v42  ;;  %v678_v54 = vpop.f32.mrf.mxu0  ;;  %v13486_v42 = vld [vmem:[%s16030_s1 + $0x170] sm:$0xff] }
 0x10d   : > { %v930_v2 = vadd.f32 %v929_v0, %v676_v58  ;;  %v1252_v28 = vpop.f32.mrf.mxu2  ;;  %v1953_v58 = vor.u32 %v1951_v55, %v1949_v23 }
 0x10f   : > { %2104 = vmatmul.bf16.gmra.mxu1 %v1950_v16  ;;  %2623 = vmatmul.bf16.vlgmr.msrb.gmra.mxu3 %v2543_v38  ;;  %v1958_v32 = vsel %vm1064_vm1, %v1953_v58, %v1957_v19  ;;  %v12408_v38 = vld [vmem:[#allocation2 + $0x30] sm:$0xff]  }
 0x110   : > { %4044 = vmatpush.bf16.msrb.mxu1 %v13952_v37  ;;  %4610 = vmatpush.bf16.msrb.mxu3 %v13485_v51  ;;  %v13487_v37 = vld [vmem:[%s16030_s1 + $0x1b0] sm:$0xff] }
 0x111   : > { %4318 = vmatpush.bf16.msrb.mxu2 %v13486_v42 }
 0x112   : > { %v1610_v44 = vpop.f32.mrf.mxu3 }
 0x114   : > { %v931_v34 = vpop.f32.mrf.mxu1  ;;  %4045 = vmatpush.bf16.msrb.mxu1 %v13981_v8  ;;  %v680_v27 = vpop.f32.mrf.mxu0  ;;  %4611 = vmatpush.bf16.msrb.mxu3 %v13487_v37 }
 0x115   : > { %4319 = vmatpush.bf16.msrb.mxu2 %v13893_v18  ;;  %v1253_v61 = vpop.f32.mrf.mxu2  ;;  %v14299_v34 = vld [vmem:[%s16030_s1 + $0x220] sm:$0xff] }
 0x116   : > { %v1292_v60 = vadd.f32 %v1253_v61, %v927_v22 }
 0x117   : > { %1766 = vmatmul.bf16.gmra.mxu0 %v12407_v50 }
 0x118   : > { %4046 = vmatpush.bf16.msrb.mxu1 %v14033_v21  ;;  %4612 = vmatpush.bf16.msrb.mxu3 %v13880_v13  ;;  %v14280_v21 = vld [vmem:[%s16030_s1 + $0x228] sm:$0xff] }
 0x119   : > { %4320 = vmatpush.bf16.msrb.mxu2 %v13922_v46  ;;  %v11459_v46 = vld [vmem:[#allocation2 + $0x38] sm:$0xff]  ;;  %2959 = vmatpush.bf16.msra.mxu0 %v14280_v21 }
 0x11a   : > { %v1611_v8 = vpop.f32.mrf.mxu3  ;;  %2462 = vmatmul.bf16.gmra.mxu2 %v13931_v59  ;;  %v1963_v15 = vshll.u32 %v11459_v46, 16 }
 0x11b   : > { %v14270_v10 = vadd.f32 %v1611_v8, %v1292_v60 }
 0x11c   : > { %v933_v45 = vpop.f32.mrf.mxu1  ;;  %4047 = vmatpush.bf16.msrb.mxu1 %v14076_v40  ;;  %v682_v23 = vpop.f32.mrf.mxu0  ;;  %4613 = vmatpush.bf16.msrb.mxu3 %v13909_v41  ;;  %v1959_v40 = vshrl.u32 %v11458_v56, 16  ;;  %v1965_v16 = vrot.slane %v1963_v15, 1 }
 0x11d   : > { %v934_v18 = vadd.f32 %v933_v45, %v680_v27  ;;  %4321 = vmatpush.bf16.msrb.mxu2 %v13960_v43  ;;  %v1256_v13 = vpop.f32.mrf.mxu2  ;;  %2960 = vmatpush.bf16.msra.mxu0 %v14299_v34 }
 0x11e   : > { %v1293_v22 = vadd.f32 %v1256_v13, %v930_v2  ;;  %v12858_v2 = vld [vmem:[#allocation2 + $0x34] sm:$0xff]  }
 0x11f   : > { %2108 = vmatmul.bf16.gmra.mxu1 %v1958_v32  ;;  %2628 = vmatmul.bf16.gmra.mxu3 %v12856_v39 }
 0x120   : > { %4614 = vmatpush.bf16.msrb.mxu3 %v13947_v36  ;;  %v1961_v36 = vor.u32 %v1959_v40, %v1957_v19  ;;  %v12860_v19 = vld [vmem:[#allocation2 + $0x3c] sm:$0xff]  }
 0x121   : > { %4322 = vmatpush.bf16.msrb.mxu2 %v13989_v12 }
 0x122   : > { %v1614_v59 = vpop.f32.mrf.mxu3  ;;  %v1966_v14 = vsel %vm1064_vm1, %v1961_v36, %v1965_v16 }
 0x123   : > { %v14285_v41 = vadd.f32 %v1614_v59, %v1293_v22 }
 0x124   : > { %v935_v43 = vpop.f32.mrf.mxu1  ;;  %v685_v9 = vpop.f32.mrf.mxu0  ;;  %4615 = vmatpush.bf16.msrb.mxu3 %v13976_v7 }
 0x125   : > { %v936_v4 = vadd.f32 %v935_v43, %v682_v23  ;;  %4323 = vmatpush.bf16.msrb.mxu2 %v14045_v31  ;;  %v1258_v0 = vpop.f32.mrf.mxu2  ;;  %v11460_v31 = vld [vmem:[#allocation2 + $0x40] sm:$0xff] }
 0x126   : > { %v1971_v44 = vshll.u32 %v11460_v31, 16  ;;  %v12410_v43 = vld [vmem:[#allocation2 + $0x40] sm:$0xff]  }
 0x127   : > { %1770 = vmatmul.bf16.gmra.mxu0 %v12408_v38 }
 0x128   : > { %4616 = vmatpush.bf16.msrb.mxu3 %v14028_v20  ;;  %v1973_v50 = vrot.slane %v1971_v44, 1 }
 0x129   : > { %4324 = vmatpush.bf16.msrb.mxu2 %v14103_v62  ;;  %v1967_v62 = vshrl.u32 %v11459_v46, 16  ;;  %v1975_v46 = vshrl.u32 %v11460_v31, 16 }
 0x12a   : > { %v1616_v12 = vpop.f32.mrf.mxu3  ;;  %2466 = vmatmul.bf16.gmra.mxu2 %v13938_v24 }
 0x12b   : > { %v1969_v27 = vor.u32 %v1967_v62, %v1965_v16  ;;  %v1977_v15 = vor.u32 %v1975_v46, %v1973_v50  ;;  %v14325_v46 = vld [vmem:[%s16030_s1 + $0x210] sm:$0xff] }
 0x12c   : > { %v938_v54 = vpop.f32.mrf.mxu1  ;;  %v686_v28 = vpop.f32.mrf.mxu0  ;;  %4617 = vmatpush.bf16.msrb.mxu3 %v14071_v25 }
 0x12d   : > { %v1260_v7 = vpop.f32.mrf.mxu2  ;;  %v1974_v8 = vsel %vm1064_vm1, %v1969_v27, %v1973_v50  ;;  %v12864_v50 = vld [vmem:[#allocation2 + $0x4c] sm:$0xff]  }
 0x12e   : > { %v1294_v56 = vadd.f32 %v1260_v7, %v934_v18  ;;  %v11461_v18 = vld [vmem:[#allocation2 + $0x48] sm:$0xff] }
 0x12f   : > { %2112 = vmatmul.bf16.gmra.mxu1 %v1966_v14  ;;  %2632 = vmatmul.bf16.gmra.mxu3 %v12858_v2  ;;  %v1979_v22 = vshll.u32 %v11461_v18, 16  ;;  %v11462_v14 = vld [vmem:[#allocation2 + $0x50] sm:$0xff] }
 0x132   : > { %v1618_v51 = vpop.f32.mrf.mxu3 }
 0x133   : > { %v14294_v42 = vadd.f32 %v1618_v51, %v1294_v56 }
 0x134   : > { %v939_v20 = vpop.f32.mrf.mxu1  ;;  %v689_v55 = vpop.f32.mrf.mxu0 }
 0x135   : > { %v940_v24 = vadd.f32 %v939_v20, %v686_v28  ;;  %v1262_v25 = vpop.f32.mrf.mxu2  ;;  %v14313_v28 = vld [vmem:[%s16030_s1 + $0x218] sm:$0xff]  ;;  %v1983_v20 = vshrl.u32 %v11461_v18, 16 }
 0x136   : > { %v1295_v37 = vadd.f32 %v1262_v25, %v936_v4  ;;  %v1981_v4 = vrot.slane %v1979_v22, 1  ;;  %2961 = vmatpush.bf16.msra.mxu0 %v14313_v28 }
 0x137   : > { %1775 = vmatmul.bf16.gmra.mxu0 %v12409_v26 }
 0x138   : > { %v1982_v16 = vsel %vm1064_vm1, %v1977_v15, %v1981_v4  ;;  %v1985_v26 = vor.u32 %v1983_v20, %v1981_v4 }
 0x13a   : > { %v1620_v61 = vpop.f32.mrf.mxu3  ;;  %2470 = vmatmul.bf16.gmra.mxu2 %v13969_v49  ;;  %v12862_v49 = vld [vmem:[#allocation2 + $0x44] sm:$0xff]   ;;  %2962 = vmatpush.bf16.msra.mxu0 %v14325_v46 }
 0x13b   : > { %v14302_v58 = vadd.f32 %v1620_v61, %v1295_v37 }
 0x13c   : > { %v942_v60 = vpop.f32.mrf.mxu1  ;;  %v691_v45 = vpop.f32.mrf.mxu0 }
 0x13d   : > { %v943_v39 = vadd.f32 %v942_v60, %v689_v55  ;;  %v1265_v32 = vpop.f32.mrf.mxu2 }
 0x13f   : > { %2117 = vmatmul.bf16.gmra.mxu1 %v1974_v8  ;;  %2636 = vmatmul.bf16.gmra.mxu3 %v12860_v19  ;;  %v11463_v8 = vld [vmem:[#allocation2 + $0x58] sm:$0xff] }
 0x142   : > { %v1623_v23 = vpop.f32.mrf.mxu3 }
 0x143   : > { %v1991_v23 = vshrl.u32 %v11462_v14, 16 }
 0x144   : > { %v944_v13 = vpop.f32.mrf.mxu1  ;;  %v693_v59 = vpop.f32.mrf.mxu0 }
 0x145   : > { %v1266_v40 = vpop.f32.mrf.mxu2  ;;  %v1995_v13 = vshll.u32 %v11463_v8, 16 }
 0x146   : > { %v1296_v9 = vadd.f32 %v1266_v40, %v940_v24  ;;  %v12411_v24 = vld [vmem:[#allocation2 + $0x48] sm:$0xff]  }
 0x147   : > { %1779 = vmatmul.bf16.gmra.mxu0 %v12410_v43  ;;  %v1997_v40 = vrot.slane %v1995_v13, 1 }
 0x14a   : > { %v1624_v38 = vpop.f32.mrf.mxu3  ;;  %2475 = vmatmul.bf16.gmra.mxu2 %v13997_v29  ;;  %v1987_v29 = vshll.u32 %v11462_v14, 16 }
 0x14b   : > { %v14306_v0 = vadd.f32 %v1624_v38, %v1296_v9  ;;  %v12866_v38 = vld [vmem:[#allocation2 + $0x54] sm:$0xff]  }
 0x14c   : > { %v946_v36 = vpop.f32.mrf.mxu1  ;;  %v695_v2 = vpop.f32.mrf.mxu0  ;;  %v1989_v25 = vrot.slane %v1987_v29, 1 }
 0x14d   : > { %v947_v12 = vadd.f32 %v946_v36, %v693_v59  ;;  %v1269_v54 = vpop.f32.mrf.mxu2 }
 0x14e   : > { %v1297_v7 = vadd.f32 %v1269_v54, %v943_v39  ;;  %v1990_v61 = vsel %vm1064_vm1, %v1985_v26, %v1989_v25  ;;  %v1993_v43 = vor.u32 %v1991_v23, %v1989_v25  ;;  %v11464_v54 = vld [vmem:[#allocation2 + $0x60] sm:$0xff]  ;;  %v14348_v23 = vld [vmem:[%s16030_s1 + $0x208] sm:$0xff] }
 0x14f   : > { %2121 = vmatmul.bf16.gmra.mxu1 %v1982_v16  ;;  %2641 = vmatmul.bf16.gmra.mxu3 %v12862_v49  ;;  %v12868_v25 = vld [vmem:[#allocation2 + $0x5c] sm:$0xff]  }
 0x150   : > { %v1998_v36 = vsel %vm1064_vm1, %v1993_v43, %v1997_v40  ;;  %2963 = vmatpush.bf16.msra.mxu0 %v14348_v23 }
 0x152   : > { %v1627_v31 = vpop.f32.mrf.mxu3 }
 0x153   : > { %v14316_v56 = vadd.f32 %v1627_v31, %v1297_v7  ;;  %v1999_v7 = vshrl.u32 %v11463_v8, 16  ;;  %v2003_v31 = vshll.u32 %v11464_v54, 16 }
 0x154   : > { %v948_v51 = vpop.f32.mrf.mxu1  ;;  %v698_v44 = vpop.f32.mrf.mxu0 }
 0x155   : > { %v949_v62 = vadd.f32 %v948_v51, %v695_v2  ;;  %v1271_v55 = vpop.f32.mrf.mxu2  ;;  %v2005_v44 = vrot.slane %v2003_v31, 1 }
 0x157   : > { %1783 = vmatmul.bf16.gmra.mxu0 %v12411_v24  ;;  %v14335_v24 = vld [vmem:[#allocation2 + $0x68] sm:$0xff]  }
 0x15a   : > { %v1629_v27 = vpop.f32.mrf.mxu3  ;;  %2479 = vmatmul.bf16.gmra.mxu2 %v14015_v5 }
 0x15c   : > { %v951_v37 = vpop.f32.mrf.mxu1  ;;  %v699_v19 = vpop.f32.mrf.mxu0 }
 0x15d   : > { %v1273_v60 = vpop.f32.mrf.mxu2  ;;  %v12386_v37 = vld [vmem:[%s13823_s6 + $0x40] sm:$0xff]  }
 0x15e   : > { %v1298_v39 = vadd.f32 %v1273_v60, %v947_v12  ;;  %v11725_v8 = vunpack.c.l.b16 %v12386_v37 }
 0x15f   : > { %2125 = vmatmul.bf16.gmra.mxu1 %v1990_v61  ;;  %2645 = vmatmul.bf16.gmra.mxu3 %v12864_v50 }
 0x162   : > { %v1631_v45 = vpop.f32.mrf.mxu3 }
 0x163   : > { %v14320_v32 = vadd.f32 %v1631_v45, %v1298_v39  ;;  %v11726_v39 = vunpack.c.h.b16 %v12386_v37 }
 0x164   : > { %v952_v18 = vpop.f32.mrf.mxu1  ;;  %v702_v59 = vpop.f32.mrf.mxu0 }
 0x165   : > { %v953_v22 = vadd.f32 %v952_v18, %v699_v19  ;;  %v1275_v5 = vpop.f32.mrf.mxu2  ;;  %v11465_v18 = vld [vmem:[#allocation2 + $0x68] sm:$0xff]  ;;  %v365_v13 = vpack.c.b16 %v11726_v39, %v11726_v39 }
 0x166   : > { %v1299_v15 = vadd.f32 %v1275_v5, %v949_v62  ;;  %v2001_v62 = vor.u32 %v1999_v7, %v1997_v40  ;;  %v12870_v7 = vld [vmem:[#allocation2 + $0x64] sm:$0xff]   ;;  %v2015_v37 = vshrl.u32 %v11465_v18, 16 }
 0x167   : > { %1788 = vmatmul.bf16.gmra.mxu0 %v14000_v33  ;;  %438 = vst [vmem:[#allocation2 + $0x7c] sm:$0xf] %v365_v13 }
 0x168   : > { %v2006_v50 = vsel %vm1064_vm1, %v2001_v62, %v2005_v44 }
 0x16a   : > { %v1633_v4 = vpop.f32.mrf.mxu3  ;;  %2483 = vmatmul.bf16.gmra.mxu2 %v14052_v53 }
 0x16b   : > { %v14329_v9 = vadd.f32 %v1633_v4, %v1299_v15  ;;  %v2007_v15 = vshrl.u32 %v11464_v54, 16  ;;  %v2011_v4 = vshll.u32 %v11465_v18, 16  ;;  %v2363_v54 = vshrl.u32 %v14150_v48, 16 }
 0x16c   : > { %v955_v49 = vpop.f32.mrf.mxu1  ;;  %v704_v12 = vpop.f32.mrf.mxu0 }
 0x16d   : > { %v956_v16 = vadd.f32 %v955_v49, %v702_v59  ;;  %v1278_v2 = vpop.f32.mrf.mxu2 }
 0x16e   : > { %v2009_v2 = vor.u32 %v2007_v15, %v2005_v44  ;;  %v14360_v44 = vld [vmem:[#allocation2 + $0x70] sm:$0xff] }
 0x16f   : > { %2130 = vmatmul.bf16.gmra.mxu1 %v1998_v36  ;;  %2649 = vmatmul.bf16.gmra.mxu3 %v12866_v38 }
 0x172   : > { %v1636_v14 = vpop.f32.mrf.mxu3 }
 0x174   : > { %v957_v33 = vpop.f32.mrf.mxu1  ;;  %v1758_v51 = vpop.f32.mrf.mxu0 }
 0x175   : > { %v1810_v20 = vadd.f32 %v1758_v51, %v14066_v17  ;;  %v1279_v29 = vpop.f32.mrf.mxu2  ;;  %v2354_v17 = vshrl.u32 %v14335_v24, 16 }
 0x176   : > { %v1300_v53 = vadd.f32 %v1279_v29, %v953_v22  ;;  %v2366_v29 = vshll.u32 %v14150_v48, 16 }
 0x177   : > { %1792 = vmatmul.bf16.gmra.mxu0 %v14017_v1  ;;  %v2357_v1 = vshll.u32 %v14335_v24, 16  ;;  %v2356_v59 = vrot.slane %v2354_v17, 3  ;;  %v2019_v17 = vshll.u32 %v14360_v44, 16 }
 0x179   : > { %v2359_v5 = vrot.slane %v2357_v1, 4  ;;  %v2021_v18 = vrot.slane %v2019_v17, 1 }
 0x17a   : > { %v1637_v55 = vpop.f32.mrf.mxu3  ;;  %2488 = vmatmul.bf16.gmra.mxu2 %v14112_v3  ;;  %v364_v3 = vpack.c.b16 %v11725_v8, %v11725_v8 }
 0x17b   : > { %v14337_v26 = vadd.f32 %v1637_v55, %v1300_v53  ;;  %v2360_v36 = vor.u32 %v2359_v5, %v2356_v59  ;;  %v2368_v55 = vrot.slane %v2366_v29, 4  ;;  %v2023_v29 = vshrl.u32 %v14360_v44, 16 }
 0x17c   : > { %v2100_v27 = vpop.f32.mrf.mxu1  ;;  %v1760_v19 = vpop.f32.mrf.mxu0  ;;  %437 = vst [vmem:[#allocation2 + $0x78] sm:$0xf] %v364_v3 }
 0x17d   : > { %v2152_v61 = vadd.f32 %v2100_v27, %v1810_v20  ;;  %v1811_v60 = vadd.f32 %v1760_v19, %v14108_v6  ;;  %v1282_v45 = vpop.f32.mrf.mxu2  ;;  %v2361_v14 = vsel %vm721_vm0, %v14091_v52, %v2360_v36  ;;  %v2365_v52 = vrot.slane %v2363_v54, 3  ;;  %v14368_v19 = vld [vmem:[%s16030_s1 + $0x200] sm:$0xff] }
 0x17e   : > { %v1301_v22 = vadd.f32 %v1282_v45, %v956_v16  ;;  %v2013_v16 = vrot.slane %v2011_v4, 1  ;;  %2964 = vmatpush.bf16.msra.mxu0 %v14368_v19  ;;  %v2025_v17 = vor.u32 %v2023_v29, %v2021_v18 }
 0x17f   : > { %2134 = vmatmul.bf16.gmra.mxu1 %v2006_v50  ;;  %2654 = vmatmul.bf16.gmra.mxu3 %v12868_v25 }
 0x180   : > { %v2014_v51 = vsel %vm1064_vm1, %v2009_v2, %v2013_v16  ;;  %v2017_v45 = vor.u32 %v2015_v37, %v2013_v16  ;;  %v13490_v2 = vld [vmem:[%s16030_s1 + $0xe8] sm:$0xff] }
 0x182   : > { %v1640_v6 = vpop.f32.mrf.mxu3 }
 0x183   : > { %v14351_v43 = vadd.f32 %v1640_v6, %v1301_v22  ;;  %v1850_v13 = vld [vmem:[#allocation2 + $0x78] sm:$0x1] }
 0x184   : > { %v2102_v40 = vpop.f32.mrf.mxu1  ;;  %v1763_v49 = vpop.f32.mrf.mxu0  ;;  %v14377_v5 = vld [vmem:[#allocation2 + $0x78] sm:$0xff]   ;;  %v1917_v4 = vunpack.c.l.b16 %v1850_v13 }
 0x185   : > { %v2153_v38 = vadd.f32 %v2102_v40, %v1811_v60  ;;  %v1284_v12 = vpop.f32.mrf.mxu2  ;;  %v2369_v60 = vor.u32 %v2368_v55, %v2365_v52  ;;  %v12872_v40 = vld [vmem:[#allocation2 + $0x6c] sm:$0xff]  }
 0x186   : > { %v2375_v12 = vshll.u32 %v14377_v5, 16 }
 0x187   : > { %1796 = vmatmul.bf16.gmra.mxu0 %v14056_v57  ;;  %v2370_v22 = vsel %vm721_vm0, %v2360_v36, %v2369_v60  ;;  %v2372_v36 = vshrl.u32 %v14377_v5, 16 }
 0x18a   : > { %v1642_v33 = vpop.f32.mrf.mxu3  ;;  %2492 = vmatmul.bf16.gmra.mxu2 %v2361_v14  ;;  %v1930_v14 = vpack.c.b16 %v1917_v4, %v1917_v4 }
 0x18b   : > { %v2374_v33 = vrot.slane %v2372_v36, 3 }
 0x18c   : > { %v2105_v31 = vpop.f32.mrf.mxu1  ;;  %v1764_v20 = vpop.f32.mrf.mxu0 }
 0x18d   : > { %v1812_v62 = vadd.f32 %v1764_v20, %v14173_v47  ;;  %v2458_v57 = vpop.f32.mrf.mxu2  ;;  %v13491_v20 = vld [vmem:[%s16030_s1 + $0xe0] sm:$0xff] }
 0x18e   : > { %v2510_v53 = vadd.f32 %v2458_v57, %v2152_v61  ;;  %v13488_v61 = vld [vmem:[%s16030_s1 + $0xf8] sm:$0xff] }
 0x18f   : > { %2138 = vmatmul.bf16.gmra.mxu1 %v2014_v51  ;;  %2658 = vmatmul.bf16.gmra.mxu3 %v12870_v7  ;;  %v2377_v7 = vrot.slane %v2375_v12, 4  ;;  %v2192_v51 = vld [vmem:[#allocation2 + $0x80] sm:$0xf] }
 0x190   : > { %3939 = vmatpush.bf16.msrb.mxu0 %v13488_v61  ;;  %v14397_v55 = vunpack.c.l.b16 %v2192_v51 }
 0x192   : > { %v2624_v25 = vpop.f32.mrf.mxu3 }
 0x193   : > { %v14362_v27 = vadd.f32 %v2624_v25, %v2510_v53  ;;  %v14394_v53 = vor.u32 %v2377_v7, %v2374_v33  ;;  %v11491_v25 = vld [vmem:[#allocation2 + $0x24] sm:$0xff] }
 0x194   : > { %v2106_v50 = vpop.f32.mrf.mxu1  ;;  %v1767_v1 = vpop.f32.mrf.mxu0  ;;  %v2800_v61 = vshll.u32 %v11491_v25, 16  ;;  %v3084_v33 = vld [vmem:[#allocation2 + $0x68] sm:$0x8] }
 0x195   : > { %v2154_v47 = vadd.f32 %v2106_v50, %v1812_v62  ;;  %v1813_v8 = vadd.f32 %v1767_v1, %v14212_v63  ;;  %v2460_v39 = vpop.f32.mrf.mxu2  ;;  %v13489_v63 = vld [vmem:[%s16030_s1 + $0xf0] sm:$0xff]  ;;  %v2027_v62 = vshll.u32 %v1930_v14, 16  ;;  %v13492_v50 = vld [vmem:[%s16030_s1 + $0xd8] sm:$0xff]  ;;  %v3085_v14 = vld [vmem:[#allocation2 + $0x6c] sm:$0xf] }
 0x196   : > { %v2511_v3 = vadd.f32 %v2460_v39, %v2153_v38  ;;  %3940 = vmatpush.bf16.msrb.mxu0 %v13489_v63  ;;  %v2272_v39 = vpack.c.b16 %v14397_v55, %v14397_v55  ;;  %v2802_v63 = vrot.slane %v2800_v61, 1  ;;  %v3133_v29 = vunpack.c.l.b16 %v3085_v14  ;;  %v14431_v61 = vld [vmem:[#allocation2 + $0x34] sm:$0xff] }
 0x197   : > { %1801 = vmatmul.bf16.gmra.mxu0 %v14335_v24  ;;  %v2022_v24 = vsel %vm1064_vm1, %v2017_v45, %v2021_v18  ;;  %v2029_v1 = vrot.slane %v2027_v62, 1  ;;  %v3243_v62 = vunpack.c.l.b16 %v3084_v33 }
 0x19a   : > { %v2626_v59 = vpop.f32.mrf.mxu3  ;;  %2496 = vmatmul.bf16.gmra.mxu2 %v2370_v22  ;;  %3941 = vmatpush.bf16.msrb.mxu0 %v13490_v2 }
 0x19b   : > { %v14382_v6 = vadd.f32 %v2626_v59, %v2511_v3  ;;  %v13493_v3 = vld [vmem:[%s16030_s1 + $0xd0] sm:$0xff] }
 0x19c   : > { %v2109_v15 = vpop.f32.mrf.mxu1  ;;  %v1769_v49 = vpop.f32.mrf.mxu0 }
 0x19d   : > { %v2155_v38 = vadd.f32 %v2109_v15, %v1813_v8  ;;  %v2463_v16 = vpop.f32.mrf.mxu2  ;;  %v14403_v8 = vld [vmem:[#allocation2 + $0x2c] sm:$0xff]  ;;  %v2381_v15 = vshrl.u32 %v2272_v39, 16 }
 0x19e   : > { %3942 = vmatpush.bf16.msrb.mxu0 %v13491_v20  ;;  %v13494_v49 = vld [vmem:[%s16030_s1 + $0xc8] sm:$0xff] }
 0x19f   : > { %2143 = vmatmul.bf16.gmra.mxu1 %v2022_v24  ;;  %2662 = vmatmul.bf16.gmra.mxu3 %v12872_v40  ;;  %v2805_v40 = vshll.u32 %v14403_v8, 16  ;;  %v2384_v24 = vshll.u32 %v2272_v39, 16  ;;  %v2383_v7 = vrot.slane %v2381_v15, 3  ;;  %v2809_v15 = vshrl.u32 %v14403_v8, 16 }
 0x1a1   : > { %v2807_v16 = vrot.slane %v2805_v40, 1 }
 0x1a2   : > { %v2629_v31 = vpop.f32.mrf.mxu3  ;;  %3943 = vmatpush.bf16.msrb.mxu0 %v13492_v50  ;;  %v12478_v50 = vld [vmem:[#allocation2 + $0x70] sm:$0xff]  }
 0x1a3   : > { %v2386_v31 = vrot.slane %v2384_v24, 4  ;;  %v2813_v24 = vshll.u32 %v14431_v61, 16 }
 0x1a4   : > { %v2111_v54 = vpop.f32.mrf.mxu1  ;;  %v1771_v57 = vpop.f32.mrf.mxu0 }
 0x1a5   : > { %v1814_v52 = vadd.f32 %v1771_v57, %v14234_v30  ;;  %v2464_v37 = vpop.f32.mrf.mxu2  ;;  %v2379_v30 = vsel %vm721_vm0, %v2369_v60, %v14394_v53  ;;  %v2798_v60 = vshrl.u32 %v11491_v25, 16  ;;  %v2387_v25 = vor.u32 %v2386_v31, %v2383_v7  ;;  %v16037_v7 = vld [vmem:[#allocation7_spill] sm:$0xff] }
 0x1a6   : > { %v2512_v44 = vadd.f32 %v2464_v37, %v2154_v47  ;;  %3944 = vmatpush.bf16.msrb.mxu0 %v13493_v3  ;;  %v2030_v47 = vsel %vm1064_vm1, %v2025_v17, %v2029_v1  ;;  %v11893_v37 = vunpack.c.l.b16 %v12478_v50  ;;  %v11890_v1 = vunpack.c.h.b16 %v14377_v5  ;;  %v14448_v31 = vld [vmem:[#allocation2 + $0x74] sm:$0xff] }
 0x1a7   : > { %1805 = vmatmul.bf16.gmra.mxu0 %v14150_v48  ;;  %v12873_v48 = vld [vmem:[#allocation2 + $0x74] sm:$0xff]   ;;  %v2803_v2 = vor.u32 %v2802_v63, %v2798_v60  ;;  %v2388_v39 = vsel %vm721_vm0, %v14394_v53, %v2387_v25  ;;  %v3266_v60 = vshrl.u32 %v12478_v50, 16  ;;  %v11511_v63 = vld [vmem:[#allocation2 + $0x6c] sm:$0xff] }
 0x1a8   : > { %v3157_v3 = vpack.c.b16 %v11893_v37, %v3133_v29 }
 0x1aa   : > { %v2630_v45 = vpop.f32.mrf.mxu3  ;;  %2501 = vmatmul.bf16.gmra.mxu2 %v2379_v30  ;;  %3945 = vmatpush.bf16.msrb.mxu0 %v13494_v49  ;;  %v13496_v30 = vld [vmem:[%s16030_s1 + $0x1f8] sm:$0xff]  ;;  %v3269_v49 = vshll.u32 %v12478_v50, 16 }
 0x1ab   : > { %v14412_v13 = vadd.f32 %v2630_v45, %v2512_v44  ;;  %v3244_v44 = vpack.c.b16 %v3133_v29, %v3243_v62 }
 0x1ac   : > { %v2113_v18 = vpop.f32.mrf.mxu1  ;;  %v1773_v59 = vpop.f32.mrf.mxu0 }
 0x1ad   : > { %v14415_v22 = vadd.f32 %v2113_v18, %v1814_v52  ;;  %v1815_v4 = vadd.f32 %v1773_v59, %v14248_v11  ;;  %v2467_v36 = vpop.f32.mrf.mxu2  ;;  %v13495_v11 = vld [vmem:[%s16030_s1 + $0xc0] sm:$0xff]  ;;  %v2808_v52 = vsel %vm1064_vm1, %v2803_v2, %v2807_v16  ;;  %v12387_v59 = vld [vmem:[%s13823_s6 + $0x48] sm:$0xff]   ;;  %v3261_v5 = vshll.u32 %v3244_v44, 16 }
 0x1ae   : > { %v2513_v12 = vadd.f32 %v2467_v36, %v2155_v38  ;;  %3946 = vmatpush.bf16.msrb.mxu0 %v13495_v11  ;;  %v11729_v36 = vunpack.c.l.b16 %v12387_v59  ;;  %v2811_v11 = vor.u32 %v2809_v15, %v2807_v16 }
 0x1af   : > { %2147 = vmatmul.bf16.gmra.mxu1 %v2030_v47  ;;  %2667 = vmatmul.bf16.gmra.mxu3 %v12873_v48  ;;  %v2554_v48 = vpack.c.b16 %v14397_v55, %v11890_v1  ;;  %v3258_v47 = vshrl.u32 %v3244_v44, 16  ;;  %v3263_v62 = vrot.slane %v3261_v5, 4  ;;  %v14464_v5 = vld [vmem:[#allocation2 + $0x3c] sm:$0xff] }
 0x1b0   : > { %v366_v14 = vpack.c.b16 %v11729_v36, %v11729_v36  ;;  %v12388_v36 = vld [vmem:[%s13823_s6 + $0x50] sm:$0xff]  }
 0x1b1   : > { %v3260_v29 = vrot.slane %v3258_v47, 3 }
 0x1b2   : > { %v2633_v51 = vpop.f32.mrf.mxu3  ;;  %440 = vst [vmem:[#allocation2 + $0x84] sm:$0xf] %v366_v14 }
 0x1b3   : > { %v14425_v20 = vadd.f32 %v2633_v51, %v2513_v12  ;;  %v11730_v12 = vunpack.c.h.b16 %v12387_v59  ;;  %v3537_v51 = vshll.u32 %v11511_v63, 16 }
 0x1b4   : > { %v2115_v54 = vpop.f32.mrf.mxu1  ;;  %v1776_v38 = vpop.f32.mrf.mxu0 }
 0x1b5   : > { %v14427_v57 = vadd.f32 %v2115_v54, %v1815_v4  ;;  %v2469_v17 = vpop.f32.mrf.mxu2  ;;  %v13497_v4 = vld [vmem:[%s16030_s1 + $0x1f0] sm:$0xff]  ;;  %v367_v33 = vpack.c.b16 %v11730_v12, %v11730_v12  ;;  %v2815_v54 = vrot.slane %v2813_v24, 1  ;;  %v3268_v38 = vrot.slane %v3266_v60, 3  ;;  %v13500_v60 = vld [vmem:[%s16030_s1 + $0x1d8] sm:$0xff] }
 0x1b6   : > { %v3539_v16 = vrot.slane %v3537_v51, 1  ;;  %v3542_v17 = vshll.u32 %v14448_v31, 16  ;;  %v13501_v12 = vld [vmem:[%s16030_s1 + $0x1d0] sm:$0xff] }
 0x1b7   : > { %2965 = vmatmul.bf16.vlgmr.msra.gmra.mxu0 %v2808_v52  ;;  %v3271_v52 = vrot.slane %v3269_v49, 4  ;;  %441 = vst [vmem:[#allocation2 + $0x88] sm:$0xf] %v367_v33  ;;  %v2817_v49 = vshrl.u32 %v14431_v61, 16  ;;  %v14481_v33 = vld [vmem:[#allocation2 + $0x7c] sm:$0xff]  ;;  %v13502_v61 = vld [vmem:[%s16030_s1 + $0x1c8] sm:$0xff] }
 0x1b8   : > { %4711 = vmatpush.bf16.msra.mxu0 %v13496_v30  ;;  %v2816_v30 = vsel %vm1064_vm1, %v2811_v11, %v2815_v54  ;;  %v3544_v59 = vrot.slane %v3542_v17, 1  ;;  %v13308_v17 = vld [vmem:[#allocation2 + $0x7c] sm:$0xff]  }
 0x1ba   : > { %v2635_v45 = vpop.f32.mrf.mxu3  ;;  %2505 = vmatmul.bf16.gmra.mxu2 %v2388_v39  ;;  %v13499_v39 = vld [vmem:[%s16030_s1 + $0x1e0] sm:$0xff] }
 0x1bb   : > { %v3264_v45 = vor.u32 %v3263_v62, %v3260_v29  ;;  %v3550_v29 = vshll.u32 %v14481_v33, 16 }
 0x1bc   : > { %v2118_v18 = vpop.f32.mrf.mxu1  ;;  %v1777_v40 = vpop.f32.mrf.mxu0  ;;  %4712 = vmatpush.bf16.msra.mxu0 %v13497_v4 }
 0x1bd   : > { %v1816_v55 = vadd.f32 %v1777_v40, %v14270_v10  ;;  %v2471_v2 = vpop.f32.mrf.mxu2  ;;  %v13498_v10 = vld [vmem:[%s16030_s1 + $0x1e8] sm:$0xff] }
 0x1be   : > { %v2514_v8 = vadd.f32 %v2471_v2, %v14415_v22  ;;  %v3535_v22 = vshrl.u32 %v11511_v63, 16  ;;  %v11733_v2 = vunpack.c.l.b16 %v12388_v36 }
 0x1bf   : > { %3189 = vmatmul.bf16.vlgmr.msra.gmra.mxu1 %v3157_v3  ;;  %2671 = vmatmul.bf16.gmra.mxu3 %v2554_v48  ;;  %v3272_v3 = vor.u32 %v3271_v52, %v3268_v38 }
 0x1c0   : > { %4988 = vmatpush.bf16.msra.mxu1 %v16037_v7  ;;  %4713 = vmatpush.bf16.msra.mxu0 %v13498_v10  ;;  %v3540_v47 = vor.u32 %v3539_v16, %v3535_v22  ;;  %v2819_v7 = vor.u32 %v2817_v49, %v2815_v54  ;;  %v3546_v10 = vshrl.u32 %v14448_v31, 16  ;;  %v13503_v54 = vld [vmem:[%s16030_s1 + $0x1c0] sm:$0xff]  ;;  %v3552_v22 = vrot.slane %v3550_v29, 1  ;;  %v12389_v29 = vld [vmem:[%s13823_s6 + $0x58] sm:$0xff]  }
 0x1c1   : > { %v3273_v63 = vsel %vm721_vm0, %v3264_v45, %v3272_v3  ;;  %v14495_v31 = vld [vmem:[#allocation2 + $0x44] sm:$0xff]  ;;  %v2825_v45 = vshrl.u32 %v14464_v5, 16 }
 0x1c2   : > { %v2637_v25 = vpop.f32.mrf.mxu3 }
 0x1c3   : > { %v14453_v50 = vadd.f32 %v2637_v25, %v2514_v8 }
 0x1c4   : > { %v2119_v37 = vpop.f32.mrf.mxu1  ;;  %4989 = vmatpush.bf16.msra.mxu1 %v14240_v35  ;;  %v1780_v44 = vpop.f32.mrf.mxu0  ;;  %4714 = vmatpush.bf16.msra.mxu0 %v13499_v39 }
 0x1c5   : > { %v2158_v1 = vadd.f32 %v2119_v37, %v1816_v55  ;;  %v1817_v48 = vadd.f32 %v1780_v44, %v14285_v41  ;;  %v2473_v18 = vpop.f32.mrf.mxu2  ;;  %v13306_v41 = vld [vmem:[#allocation2 + $0x74] sm:$0xff]   ;;  %v2821_v55 = vshll.u32 %v14464_v5, 16  ;;  %v3282_v37 = vsel %vm721_vm0, %v3272_v3, %v14394_v53  ;;  %v12480_v44 = vld [vmem:[#allocation2 + $0x80] sm:$0xff]  }
 0x1c6   : > { %v2515_v35 = vadd.f32 %v2473_v18, %v14427_v57  ;;  %v3284_v18 = vshrl.u32 %v12480_v44, 16 }
 0x1c7   : > { %2970 = vmatmul.bf16.gmra.mxu0 %v2816_v30  ;;  %v2823_v8 = vrot.slane %v2821_v55, 1  ;;  %v3554_v55 = vshrl.u32 %v14481_v33, 16  ;;  %v13310_v33 = vld [vmem:[#allocation2 + $0x84] sm:$0xff]  }
 0x1c8   : > { %4990 = vmatpush.bf16.msra.mxu1 %v14280_v21  ;;  %4715 = vmatpush.bf16.msra.mxu0 %v13500_v60  ;;  %v3545_v21 = vsel %vm1064_vm1, %v3540_v47, %v3544_v59  ;;  %v11734_v47 = vunpack.c.h.b16 %v12388_v36 }
 0x1ca   : > { %v2639_v40 = vpop.f32.mrf.mxu3  ;;  %3393 = vmatmul.bf16.vlgmr.msra.gmra.mxu2 %v3273_v63  ;;  %v369_v60 = vpack.c.b16 %v11734_v47, %v11734_v47 }
 0x1cb   : > { %v14470_v15 = vadd.f32 %v2639_v40, %v2515_v35  ;;  %v3287_v35 = vshll.u32 %v12480_v44, 16  ;;  %v2827_v40 = vor.u32 %v2825_v45, %v2823_v8 }
 0x1cc   : > { %v2122_v24 = vpop.f32.mrf.mxu1  ;;  %4991 = vmatpush.bf16.msra.mxu1 %v14299_v34  ;;  %v1782_v4 = vpop.f32.mrf.mxu0  ;;  %4716 = vmatpush.bf16.msra.mxu0 %v13501_v12  ;;  %v368_v34 = vpack.c.b16 %v11733_v2, %v11733_v2  ;;  %444 = vst [vmem:[#allocation2 + $0x94] sm:$0xf] %v369_v60 }
 0x1cd   : > { %v2159_v57 = vadd.f32 %v2122_v24, %v1817_v48  ;;  %v2476_v14 = vpop.f32.mrf.mxu2  ;;  %v2829_v48 = vshll.u32 %v14495_v31, 16  ;;  %v3286_v24 = vrot.slane %v3284_v18, 3 }
 0x1ce   : > { %443 = vst [vmem:[#allocation2 + $0x90] sm:$0xf] %v368_v34  ;;  %v3556_v34 = vor.u32 %v3554_v55, %v3552_v22 }
 0x1cf   : > { %3194 = vmatmul.bf16.gmra.mxu1 %v13306_v41  ;;  %3654 = vmatmul.bf16.vlgmr.msra.gmra.mxu3 %v3545_v21  ;;  %v2831_v41 = vrot.slane %v2829_v48, 1  ;;  %v3289_v21 = vrot.slane %v3287_v35, 4 }
 0x1d0   : > { %4992 = vmatpush.bf16.msra.mxu1 %v14313_v28  ;;  %4717 = vmatpush.bf16.msra.mxu0 %v13502_v61  ;;  %v2824_v28 = vsel %vm1064_vm1, %v2819_v7, %v2823_v8  ;;  %v14513_v8 = vld [vmem:[#allocation2 + $0x4c] sm:$0xff] }
 0x1d1   : > { %v3290_v2 = vor.u32 %v3289_v21, %v3286_v24 }
 0x1d2   : > { %v2642_v51 = vpop.f32.mrf.mxu3 }
 0x1d3   : > { %v3291_v61 = vsel %vm721_vm0, %v14394_v53, %v3290_v2  ;;  %v12481_v51 = vld [vmem:[#allocation2 + $0x88] sm:$0xff]  }
 0x1d4   : > { %v2124_v11 = vpop.f32.mrf.mxu1  ;;  %4993 = vmatpush.bf16.msra.mxu1 %v14325_v46  ;;  %v1784_v62 = vpop.f32.mrf.mxu0  ;;  %4718 = vmatpush.bf16.msra.mxu0 %v13503_v54  ;;  %v3548_v46 = vor.u32 %v3546_v10, %v3544_v59 }
 0x1d5   : > { %v1818_v38 = vadd.f32 %v1784_v62, %v14294_v42  ;;  %v2477_v52 = vpop.f32.mrf.mxu2 }
 0x1d6   : > { %v2516_v25 = vadd.f32 %v2477_v52, %v2158_v1  ;;  %v3553_v42 = vsel %vm1064_vm1, %v3548_v46, %v3552_v22  ;;  %v2837_v52 = vshll.u32 %v14513_v8, 16  ;;  %v11737_v22 = vunpack.c.l.b16 %v12389_v29 }
 0x1d7   : > { %2974 = vmatmul.bf16.gmra.mxu0 %v2824_v28  ;;  %v3293_v28 = vshrl.u32 %v12481_v51, 16 }
 0x1d8   : > { %4994 = vmatpush.bf16.msra.mxu1 %v14348_v23 }
 0x1d9   : > { %v3295_v45 = vrot.slane %v3293_v28, 3 }
 0x1da   : > { %v2643_v16 = vpop.f32.mrf.mxu3  ;;  %3398 = vmatmul.bf16.gmra.mxu2 %v3282_v37  ;;  %v11738_v37 = vunpack.c.h.b16 %v12389_v29  ;;  %v11516_v29 = vld [vmem:[#allocation2 + $0x94] sm:$0xff] }
 0x1db   : > { %v14499_v30 = vadd.f32 %v2643_v16, %v2516_v25  ;;  %v3296_v25 = vshll.u32 %v12481_v51, 16  ;;  %v370_v16 = vpack.c.b16 %v11737_v22, %v11737_v22 }
 0x1dc   : > { %v2126_v39 = vpop.f32.mrf.mxu1  ;;  %4995 = vmatpush.bf16.msra.mxu1 %v14368_v19  ;;  %v1786_v1 = vpop.f32.mrf.mxu0  ;;  %v14506_v19 = vld [vmem:[#allocation2 + $0x84] sm:$0xff] }
 0x1dd   : > { %v2160_v23 = vadd.f32 %v2126_v39, %v1818_v38  ;;  %v1819_v3 = vadd.f32 %v1786_v1, %v14302_v58  ;;  %v2480_v59 = vpop.f32.mrf.mxu2  ;;  %v3558_v58 = vshll.u32 %v14506_v19, 16  ;;  %v2833_v38 = vshrl.u32 %v14495_v31, 16  ;;  %v11515_v39 = vld [vmem:[#allocation2 + $0x8c] sm:$0xff]  ;;  %446 = vst [vmem:[#allocation2 + $0x9c] sm:$0xf] %v370_v16 }
 0x1de   : > { %v2517_v63 = vadd.f32 %v2480_v59, %v2159_v57  ;;  %v2832_v57 = vsel %vm1064_vm1, %v2827_v40, %v2831_v41  ;;  %v2839_v1 = vrot.slane %v2837_v52, 1  ;;  %v3298_v48 = vrot.slane %v3296_v25, 4 }
 0x1df   : > { %3198 = vmatmul.bf16.gmra.mxu1 %v13308_v17  ;;  %3659 = vmatmul.bf16.gmra.mxu3 %v3553_v42  ;;  %v3560_v7 = vrot.slane %v3558_v58, 1  ;;  %v371_v17 = vpack.c.b16 %v11738_v37, %v11738_v37  ;;  %v2835_v42 = vor.u32 %v2833_v38, %v2831_v41  ;;  %v12482_v58 = vld [vmem:[#allocation2 + $0x90] sm:$0xff]  }
 0x1e0   : > { %v3302_v51 = vshrl.u32 %v12482_v58, 16 }
 0x1e1   : > { %v3561_v62 = vsel %vm1064_vm1, %v3556_v34, %v3560_v7  ;;  %447 = vst [vmem:[#allocation2 + $0xa0] sm:$0xf] %v371_v17  ;;  %v2840_v60 = vsel %vm1064_vm1, %v2835_v42, %v2839_v1 }
 0x1e2   : > { %v2646_v5 = vpop.f32.mrf.mxu3 }
 0x1e3   : > { %v14508_v4 = vadd.f32 %v2646_v5, %v2517_v63  ;;  %v3299_v63 = vor.u32 %v3298_v48, %v3295_v45  ;;  %v14527_v5 = vld [vmem:[#allocation2 + $0x54] sm:$0xff] }
 0x1e4   : > { %v2128_v49 = vpop.f32.mrf.mxu1  ;;  %v1789_v12 = vpop.f32.mrf.mxu0 }
 0x1e5   : > { %v2161_v36 = vadd.f32 %v2128_v49, %v1819_v3  ;;  %v2482_v14 = vpop.f32.mrf.mxu2  ;;  %v3566_v3 = vshll.u32 %v11515_v39, 16  ;;  %v3300_v49 = vsel %vm721_vm0, %v3290_v2, %v3299_v63 }
 0x1e7   : > { %2978 = vmatmul.bf16.gmra.mxu0 %v2832_v57  ;;  %v3568_v21 = vrot.slane %v3566_v3, 1 }
 0x1ea   : > { %v2648_v11 = vpop.f32.mrf.mxu3  ;;  %3402 = vmatmul.bf16.gmra.mxu2 %v3291_v61  ;;  %v12390_v61 = vld [vmem:[%s13823_s6 + $0x60] sm:$0xff]  }
 0x1eb   : > { %v3305_v11 = vshll.u32 %v12482_v58, 16 }
 0x1ec   : > { %v2131_v10 = vpop.f32.mrf.mxu1  ;;  %v1790_v54 = vpop.f32.mrf.mxu0 }
 0x1ed   : > { %v1820_v46 = vadd.f32 %v1790_v54, %v14306_v0  ;;  %v2484_v53 = vpop.f32.mrf.mxu2  ;;  %v3562_v0 = vshrl.u32 %v14506_v19, 16  ;;  %v13312_v19 = vld [vmem:[#allocation2 + $0x8c] sm:$0xff]   ;;  %v3304_v54 = vrot.slane %v3302_v51, 3  ;;  %v3307_v38 = vrot.slane %v3305_v11, 4 }
 0x1ee   : > { %v2518_v44 = vadd.f32 %v2484_v53, %v2160_v23  ;;  %v3578_v51 = vshrl.u32 %v11516_v29, 16 }
 0x1ef   : > { %3202 = vmatmul.bf16.gmra.mxu1 %v13310_v33  ;;  %3663 = vmatmul.bf16.gmra.mxu3 %v3561_v62  ;;  %v3564_v24 = vor.u32 %v3562_v0, %v3560_v7  ;;  %v2845_v7 = vshll.u32 %v14527_v5, 16  ;;  %v11741_v33 = vunpack.c.l.b16 %v12390_v61  ;;  %v3308_v53 = vor.u32 %v3307_v38, %v3304_v54  ;;  %v12483_v0 = vld [vmem:[#allocation2 + $0x98] sm:$0xff]   ;;  %v12484_v38 = vld [vmem:[#allocation2 + $0xa0] sm:$0xff]  }
 0x1f1   : > { %v3569_v14 = vsel %vm1064_vm1, %v3564_v24, %v3568_v21  ;;  %v372_v10 = vpack.c.b16 %v11741_v33, %v11741_v33  ;;  %v2847_v28 = vrot.slane %v2845_v7, 1  ;;  %v3309_v48 = vsel %vm721_vm0, %v3299_v63, %v3308_v53 }
 0x1f2   : > { %v2650_v31 = vpop.f32.mrf.mxu3  ;;  %v11742_v63 = vunpack.c.h.b16 %v12390_v61 }
 0x1f3   : > { %v14522_v18 = vadd.f32 %v2650_v31, %v2518_v44  ;;  %449 = vst [vmem:[#allocation2 + $0xa8] sm:$0xf] %v372_v10 }
 0x1f4   : > { %v2132_v35 = vpop.f32.mrf.mxu1  ;;  %v1793_v59 = vpop.f32.mrf.mxu0 }
 0x1f5   : > { %v2162_v47 = vadd.f32 %v2132_v35, %v1820_v46  ;;  %v1821_v23 = vadd.f32 %v1793_v59, %v14316_v56  ;;  %v2486_v40 = vpop.f32.mrf.mxu2  ;;  %v3570_v46 = vshrl.u32 %v11515_v39, 16  ;;  %v13314_v35 = vld [vmem:[#allocation2 + $0x94] sm:$0xff]  }
 0x1f6   : > { %v2519_v41 = vadd.f32 %v2486_v40, %v2161_v36  ;;  %v2841_v36 = vshrl.u32 %v14513_v8, 16  ;;  %v3574_v8 = vshll.u32 %v11516_v29, 16  ;;  %v3311_v40 = vshrl.u32 %v12483_v0, 16 }
 0x1f7   : > { %2983 = vmatmul.bf16.gmra.mxu0 %v2840_v60  ;;  %v3572_v42 = vor.u32 %v3570_v46, %v3568_v21  ;;  %v12391_v46 = vld [vmem:[%s13823_s6 + $0x68] sm:$0xff]  }
 0x1f8   : > { %v2843_v62 = vor.u32 %v2841_v36, %v2839_v1  ;;  %v3576_v45 = vrot.slane %v3574_v8, 1  ;;  %v14538_v1 = vld [vmem:[#allocation2 + $0x5c] sm:$0xff] }
 0x1fa   : > { %v2652_v55 = vpop.f32.mrf.mxu3  ;;  %3406 = vmatmul.bf16.gmra.mxu2 %v3300_v49  ;;  %v2848_v37 = vsel %vm1064_vm1, %v2843_v62, %v2847_v28  ;;  %v3577_v59 = vsel %vm1064_vm1, %v3572_v42, %v3576_v45  ;;  %v373_v49 = vpack.c.b16 %v11742_v63, %v11742_v63  ;;  %v3580_v10 = vor.u32 %v3578_v51, %v3576_v45  ;;  %v13318_v51 = vld [vmem:[#allocation2 + $0xa4] sm:$0xff]  }
 0x1fb   : > { %v14530_v12 = vadd.f32 %v2652_v55, %v2519_v41  ;;  %v3314_v41 = vshll.u32 %v12483_v0, 16  ;;  %v11745_v45 = vunpack.c.l.b16 %v12391_v46 }
 0x1fc   : > { %v2135_v57 = vpop.f32.mrf.mxu1  ;;  %v1795_v34 = vpop.f32.mrf.mxu0  ;;  %450 = vst [vmem:[#allocation2 + $0xac] sm:$0xf] %v373_v49 }
 0x1fd   : > { %v2163_v56 = vadd.f32 %v2135_v57, %v1821_v23  ;;  %v2489_v2 = vpop.f32.mrf.mxu2  ;;  %v2849_v23 = vshrl.u32 %v14527_v5, 16  ;;  %v3316_v34 = vrot.slane %v3314_v41, 4 }
 0x1ff   : > { %3207 = vmatmul.bf16.gmra.mxu1 %v13312_v19  ;;  %3667 = vmatmul.bf16.gmra.mxu3 %v3569_v14  ;;  %v14547_v19 = vld [vmem:[#allocation2 + $0x9c] sm:$0xff]  ;;  %v2851_v58 = vor.u32 %v2849_v23, %v2847_v28  ;;  %v3313_v14 = vrot.slane %v3311_v40, 3  ;;  %v14553_v28 = vld [vmem:[#allocation2 + $0x64] sm:$0xff] }
 0x200   : > { %v3586_v41 = vshrl.u32 %v14547_v19, 16 }
 0x202   : > { %v2655_v52 = vpop.f32.mrf.mxu3 }
 0x204   : > { %v2137_v25 = vpop.f32.mrf.mxu1  ;;  %v1797_v22 = vpop.f32.mrf.mxu0 }
 0x205   : > { %v1822_v16 = vadd.f32 %v1797_v22, %v14320_v32  ;;  %v2490_v17 = vpop.f32.mrf.mxu2  ;;  %v13316_v25 = vld [vmem:[#allocation2 + $0x9c] sm:$0xff]   ;;  %v3320_v22 = vshrl.u32 %v12484_v38, 16 }
 0x206   : > { %v2520_v44 = vadd.f32 %v2490_v17, %v2162_v47  ;;  %v2853_v47 = vshll.u32 %v14538_v1, 16  ;;  %v2861_v17 = vshll.u32 %v14553_v28, 16 }
 0x207   : > { %2987 = vmatmul.bf16.gmra.mxu0 %v2848_v37  ;;  %v3322_v23 = vrot.slane %v3320_v22, 3 }
 0x208   : > { %v2855_v57 = vrot.slane %v2853_v47, 1 }
 0x20a   : > { %v2656_v31 = vpop.f32.mrf.mxu3  ;;  %3411 = vmatmul.bf16.gmra.mxu2 %v3309_v48  ;;  %v2856_v33 = vsel %vm1064_vm1, %v2851_v58, %v2855_v57  ;;  %v11746_v48 = vunpack.c.h.b16 %v12391_v46  ;;  %v14578_v46 = vld [vmem:[#allocation2 + $0xac] sm:$0xff] }
 0x20b   : > { %v14541_v39 = vadd.f32 %v2656_v31, %v2520_v44  ;;  %v3323_v44 = vshll.u32 %v12484_v38, 16  ;;  %v374_v31 = vpack.c.b16 %v11745_v45, %v11745_v45  ;;  %v3598_v45 = vshll.u32 %v14578_v46, 16 }
 0x20c   : > { %v2139_v3 = vpop.f32.mrf.mxu1  ;;  %v1799_v32 = vpop.f32.mrf.mxu0 }
 0x20d   : > { %v2164_v60 = vadd.f32 %v2139_v3, %v1822_v16  ;;  %v1823_v24 = vadd.f32 %v1799_v32, %v14329_v9  ;;  %v2493_v21 = vpop.f32.mrf.mxu2  ;;  %v3582_v9 = vshll.u32 %v14547_v19, 16  ;;  %v2857_v16 = vshrl.u32 %v14538_v1, 16  ;;  %v14561_v3 = vld [vmem:[#allocation2 + $0xa4] sm:$0xff]  ;;  %452 = vst [vmem:[#allocation2 + $0xb4] sm:$0xf] %v374_v31 }
 0x20e   : > { %v2521_v55 = vadd.f32 %v2493_v21, %v2163_v56  ;;  %v3317_v56 = vor.u32 %v3316_v34, %v3313_v14  ;;  %v2863_v32 = vrot.slane %v2861_v17, 1  ;;  %v3325_v47 = vrot.slane %v3323_v44, 4 }
 0x20f   : > { %3211 = vmatmul.bf16.gmra.mxu1 %v13314_v35  ;;  %3672 = vmatmul.bf16.gmra.mxu3 %v3577_v59  ;;  %v3584_v62 = vrot.slane %v3582_v9, 1  ;;  %v375_v35 = vpack.c.b16 %v11746_v48, %v11746_v48  ;;  %v2859_v59 = vor.u32 %v2857_v16, %v2855_v57  ;;  %v12485_v9 = vld [vmem:[#allocation2 + $0xa8] sm:$0xff]  }
 0x210   : > { %v3318_v54 = vsel %vm721_vm0, %v3308_v53, %v3317_v56  ;;  %v3326_v49 = vor.u32 %v3325_v47, %v3322_v23  ;;  %v3329_v38 = vshrl.u32 %v12485_v9, 16 }
 0x211   : > { %v3585_v8 = vsel %vm1064_vm1, %v3580_v10, %v3584_v62  ;;  %453 = vst [vmem:[#allocation2 + $0xb8] sm:$0xf] %v375_v35  ;;  %v3588_v14 = vor.u32 %v3586_v41, %v3584_v62 }
 0x212   : > { %v2659_v5 = vpop.f32.mrf.mxu3 }
 0x213   : > { %v14549_v36 = vadd.f32 %v2659_v5, %v2521_v55  ;;  %v14569_v5 = vld [vmem:[#allocation2 + $0x6c] sm:$0xff] }
 0x214   : > { %v2141_v7 = vpop.f32.mrf.mxu1  ;;  %v1802_v11 = vpop.f32.mrf.mxu0  ;;  %v2869_v62 = vshll.u32 %v14569_v5, 16 }
 0x215   : > { %v2165_v61 = vadd.f32 %v2141_v7, %v1823_v24  ;;  %v2495_v2 = vpop.f32.mrf.mxu2  ;;  %v3590_v24 = vshll.u32 %v14561_v3, 16  ;;  %v3327_v7 = vsel %vm721_vm0, %v3317_v56, %v3326_v49 }
 0x216   : > { %v2871_v22 = vrot.slane %v2869_v62, 1 }
 0x217   : > { %2991 = vmatmul.bf16.gmra.mxu0 %v2856_v33  ;;  %v3592_v34 = vrot.slane %v3590_v24, 1 }
 0x219   : > { %v3593_v2 = vsel %vm1064_vm1, %v3588_v14, %v3592_v34  ;;  %v2873_v14 = vshrl.u32 %v14569_v5, 16 }
 0x21a   : > { %v2661_v52 = vpop.f32.mrf.mxu3  ;;  %3415 = vmatmul.bf16.gmra.mxu2 %v3318_v54  ;;  %v12392_v54 = vld [vmem:[%s13823_s6 + $0x70] sm:$0xff]  }
 0x21b   : > { %v3332_v52 = vshll.u32 %v12485_v9, 16 }
 0x21c   : > { %v2144_v29 = vpop.f32.mrf.mxu1  ;;  %v1803_v37 = vpop.f32.mrf.mxu0 }
 0x21d   : > { %v1824_v42 = vadd.f32 %v1803_v37, %v14337_v26  ;;  %v2497_v53 = vpop.f32.mrf.mxu2  ;;  %v3331_v37 = vrot.slane %v3329_v38, 3  ;;  %v3334_v16 = vrot.slane %v3332_v52, 4  ;;  %v14608_v38 = vld [vmem:[#allocation2 + $0xb4] sm:$0xff]  ;;  %v2875_v52 = vor.u32 %v2873_v14, %v2871_v22 }
 0x21e   : > { %v2522_v0 = vadd.f32 %v2497_v53, %v2164_v60  ;;  %v2864_v60 = vsel %vm1064_vm1, %v2859_v59, %v2863_v32 }
 0x21f   : > { %3215 = vmatmul.bf16.gmra.mxu1 %v13316_v25  ;;  %3676 = vmatmul.bf16.gmra.mxu3 %v3585_v8  ;;  %v11749_v25 = vunpack.c.l.b16 %v12392_v54  ;;  %v3335_v31 = vor.u32 %v3334_v16, %v3331_v37 }
 0x221   : > { %v376_v29 = vpack.c.b16 %v11749_v25, %v11749_v25 }
 0x222   : > { %v2663_v1 = vpop.f32.mrf.mxu3 }
 0x223   : > { %v14563_v40 = vadd.f32 %v2663_v1, %v2522_v0  ;;  %455 = vst [vmem:[#allocation2 + $0xc0] sm:$0xf] %v376_v29  ;;  %v14592_v0 = vld [vmem:[%s16031_s2 + $0x1] ss:$0 sm:$0xff]  ;;  %v14595_v1 = vld [vmem:[#allocation2 + $0x74] sm:$0xff] }
 0x224   : > { %v2145_v26 = vpop.f32.mrf.mxu1  ;;  %v1806_v21 = vpop.f32.mrf.mxu0 }
 0x225   : > { %v2166_v63 = vadd.f32 %v2145_v26, %v1824_v42  ;;  %v1825_v55 = vadd.f32 %v1806_v21, %v14351_v43  ;;  %v2499_v58 = vpop.f32.mrf.mxu2  ;;  %v3594_v42 = vshrl.u32 %v14561_v3, 16  ;;  %v3600_v3 = vrot.slane %v3598_v45, 1  ;;  %v12486_v21 = vld [vmem:[#allocation2 + $0xb0] sm:$0xff]  }
 0x226   : > { %v2523_v57 = vadd.f32 %v2499_v58, %v2165_v61  ;;  %v2865_v61 = vshrl.u32 %v14553_v28, 16  ;;  %v14583_v28 = vld [vmem:[%s16031_s2] ss:$0 sm:$0xff]  ;;  %v3336_v26 = vsel %vm721_vm0, %v3326_v49, %v3335_v31 }
 0x227   : > { %2996 = vmatmul.bf16.gmra.mxu0 %v2864_v60  ;;  %v3596_v47 = vor.u32 %v3594_v42, %v3592_v34  ;;  %v2877_v34 = vshll.u32 %v14595_v1, 16 }
 0x228   : > { %v2867_v8 = vor.u32 %v2865_v61, %v2863_v32 }
 0x229   : > { %v2879_v5 = vrot.slane %v2877_v34, 1 }
 0x22a   : > { %v2665_v19 = vpop.f32.mrf.mxu3  ;;  %3419 = vmatmul.bf16.gmra.mxu2 %v3327_v7  ;;  %v2872_v53 = vsel %vm1064_vm1, %v2867_v8, %v2871_v22  ;;  %v11750_v7 = vunpack.c.h.b16 %v12392_v54 }
 0x22b   : > { %v14572_v11 = vadd.f32 %v2665_v19, %v2523_v57  ;;  %v3601_v57 = vsel %vm1064_vm1, %v3596_v47, %v3600_v3  ;;  %v3338_v19 = vshrl.u32 %v12486_v21, 16  ;;  %v2880_v22 = vsel %vm1064_vm1, %v2875_v52, %v2879_v5 }
 0x22c   : > { %v2148_v33 = vpop.f32.mrf.mxu1  ;;  %v1808_v10 = vpop.f32.mrf.mxu0 }
 0x22d   : > { %v2167_v43 = vadd.f32 %v2148_v33, %v1825_v55  ;;  %v2502_v56 = vpop.f32.mrf.mxu2  ;;  %v377_v33 = vpack.c.b16 %v11750_v7, %v11750_v7  ;;  %v3340_v54 = vrot.slane %v3338_v19, 3 }
 0x22f   : > { %3220 = vmatmul.bf16.gmra.mxu1 %v13318_v51  ;;  %3680 = vmatmul.bf16.gmra.mxu3 %v3593_v2  ;;  %v3341_v51 = vshll.u32 %v12486_v21, 16  ;;  %456 = vst [vmem:[#allocation2 + $0xc4] sm:$0xf] %v377_v33 }
 0x231   : > { %v3343_v56 = vrot.slane %v3341_v51, 4 }
 0x232   : > { %v2668_v17 = vpop.f32.mrf.mxu3 }
 0x233   : > { %v3602_v17 = vshrl.u32 %v14578_v46, 16  ;;  %v3344_v42 = vor.u32 %v3343_v56, %v3340_v54  ;;  %v13322_v46 = vld [vmem:[#allocation2 + $0xb4] sm:$0xff]   ;;  %v3610_v54 = vshrl.u32 %v14608_v38, 16 }
 0x234   : > { %v2150_v44 = vpop.f32.mrf.mxu1  ;;  %v2966_v48 = vpop.f32.mrf.mxu0 }
 0x235   : > { %v3018_v35 = vadd.f32 %v2966_v48, %v14362_v27  ;;  %v2503_v59 = vpop.f32.mrf.mxu2  ;;  %v13320_v27 = vld [vmem:[#allocation2 + $0xac] sm:$0xff]  }
 0x236   : > { %v2524_v23 = vadd.f32 %v2503_v59, %v2166_v63 }
 0x237   : > { %v3035_v32 = vmul.f32 %v14583_v28, %v3018_v35  ;;  %3000 = vmatmul.bf16.gmra.mxu0 %v2872_v53  ;;  %v3604_v35 = vor.u32 %v3602_v17, %v3600_v3  ;;  %v2716_v17 = vld [vmem:[#allocation2 + $0x84] sm:$0x1] }
 0x239   : > { %v3052_v41 = vadd.f32 %v14592_v0, %v3035_v32  ;;  %v14616_v32 = vld [vmem:[#allocation2 + $0x7c] sm:$0xff] }
 0x23a   : > { %v2669_v24 = vpop.f32.mrf.mxu3  ;;  %3424 = vmatmul.bf16.gmra.mxu2 %v3336_v26  ;;  %v12393_v26 = vld [vmem:[%s13823_s6 + $0x78] sm:$0xff]   ;;  %v2885_v3 = vshll.u32 %v14616_v32, 16 }
 0x23b   : > { %v14599_v60 = vadd.f32 %v2669_v24, %v2524_v23  ;;  %v3068_v55 = vmax.f32 %v3052_v41, 0.0  ;;  %v3345_v23 = vsel %vm721_vm0, %v3335_v31, %v3344_v42  ;;  %v12487_v24 = vld [vmem:[#allocation2 + $0xb8] sm:$0xff]   ;;  %v11753_v21 = vunpack.c.l.b16 %v12393_v26 }
 0x23c   : > { %v14601_v58 = vpop.f32.mrf.mxu1  ;;  %v2968_v63 = vpop.f32.mrf.mxu0  ;;  %v3347_v14 = vshrl.u32 %v12487_v24, 16  ;;  %v3350_v34 = vshll.u32 %v12487_v24, 16 }
 0x23d   : > { %v5113_v49 = vpack.c.bf16 %v3068_v55, %v3068_v55  ;;  %v3019_v9 = vadd.f32 %v2968_v63, %v14382_v6  ;;  %v2506_v2 = vpop.f32.mrf.mxu2  ;;  %v2881_v63 = vshrl.u32 %v14595_v1, 16  ;;  %v378_v7 = vpack.c.b16 %v11753_v21, %v11753_v21 }
 0x23e   : > { %v2525_v62 = vadd.f32 %v2506_v2, %v2167_v43  ;;  %v3606_v43 = vshll.u32 %v14608_v38, 16  ;;  %v2887_v2 = vrot.slane %v2885_v3, 1  ;;  %v3349_v1 = vrot.slane %v3347_v14, 3 }
 0x23f   : > { %3224 = vmatmul.bf16.gmra.mxu1 %v13320_v27  ;;  %3685 = vmatmul.bf16.gmra.mxu3 %v3601_v57  ;;  %v5177_v10 = vunpack.c.l.b16 %v5113_v49  ;;  %v3036_v61 = vmul.f32 %v14583_v28, %v3019_v9  ;;  %458 = vst [vmem:[#allocation2 + $0xcc] sm:$0xf] %v378_v7  ;;  %v14626_v9 = vld [vmem:[#allocation2 + $0xbc] sm:$0xff]  ;;  %v2883_v33 = vor.u32 %v2881_v63, %v2879_v5 }
 0x240   : > { %v3608_v59 = vrot.slane %v3606_v43, 1  ;;  %v3614_v56 = vshll.u32 %v14626_v9, 16  ;;  %v2783_v43 = vunpack.c.l.b16 %v2716_v17  ;;  %v13327_v17 = vld [vmem:[#allocation2 + $0x7c] sm:$0xff]  }
 0x241   : > { %v5215_v25 = vpack.c.b16 %v5177_v10, %v5177_v10  ;;  %v3053_v29 = vadd.f32 %v14592_v0, %v3036_v61  ;;  %v3352_v10 = vrot.slane %v3350_v34, 4 }
 0x242   : > { %v2672_v8 = vpop.f32.mrf.mxu3  ;;  %v3609_v55 = vsel %vm1064_vm1, %v3604_v35, %v3608_v59  ;;  %v3616_v38 = vrot.slane %v3614_v56, 1  ;;  %v2796_v35 = vpack.c.b16 %v2783_v43, %v2783_v43 }
 0x243   : > { %v14611_v6 = vadd.f32 %v2672_v8, %v2525_v62  ;;  %5279 = vst [vmem:[#allocation3 + $0x18] sm:$0xf] %v5215_v25  ;;  %v3069_v37 = vmax.f32 %v3053_v29, 0.0  ;;  %v14636_v8 = vor.u32 %v3352_v10, %v3349_v1  ;;  %v3108_v10 = vld [vmem:[#allocation2 + $0xc8] sm:$0xf] }
 0x244   : > { %v3192_v16 = vpop.f32.mrf.mxu1  ;;  %v2971_v44 = vpop.f32.mrf.mxu0 }
 0x245   : > { %v5114_v45 = vpack.c.bf16 %v3069_v37, %v3069_v37  ;;  %v2508_v48 = vpop.f32.mrf.mxu2 }
 0x247   : > { %v5178_v53 = vunpack.c.l.b16 %v5114_v45  ;;  %3004 = vmatmul.bf16.gmra.mxu0 %v2880_v22 }
 0x249   : > { %v5216_v47 = vpack.c.b16 %v5178_v53, %v5178_v53  ;;  %v3612_v53 = vor.u32 %v3610_v54, %v3608_v59 }
 0x24a   : > { %v2674_v41 = vpop.f32.mrf.mxu3  ;;  %3428 = vmatmul.bf16.gmra.mxu2 %v3345_v23  ;;  %v3354_v23 = vsel %vm721_vm0, %v3344_v42, %v14636_v8 }
 0x24b   : > { %5280 = vst [vmem:[#allocation3 + $0x1c] sm:$0xf] %v5216_v47 }
 0x24c   : > { %v3195_v27 = vpop.f32.mrf.mxu1  ;;  %v2972_v57 = vpop.f32.mrf.mxu0 }
 0x24d   : > { %v3020_v31 = vadd.f32 %v2972_v57, %v14412_v13  ;;  %v3394_v49 = vpop.f32.mrf.mxu2  ;;  %v2893_v57 = vshll.u32 %v2796_v35, 16 }
 0x24e   : > { %v3395_v51 = vadd.f32 %v3394_v49, %v14601_v58  ;;  %v2888_v58 = vsel %vm1064_vm1, %v2883_v33, %v2887_v2 }
 0x24f   : > { %3228 = vmatmul.bf16.gmra.mxu1 %v13322_v46  ;;  %3689 = vmatmul.bf16.gmra.mxu3 %v3609_v55  ;;  %v3037_v19 = vmul.f32 %v14583_v28, %v3020_v31  ;;  %v13323_v46 = vld [vmem:[#allocation2 + $0xbc] sm:$0xff]   ;;  %v2889_v55 = vshrl.u32 %v14616_v32, 16  ;;  %v14649_v31 = vld [vmem:[#allocation2 + $0xc4] sm:$0xff]  ;;  %v2895_v49 = vrot.slane %v2893_v57, 1  ;;  %v3618_v32 = vshrl.u32 %v14626_v9, 16 }
 0x251   : > { %v3054_v61 = vadd.f32 %v14592_v0, %v3037_v19  ;;  %v2891_v7 = vor.u32 %v2889_v55, %v2887_v2  ;;  %v3156_v2 = vunpack.c.l.b16 %v3108_v10  ;;  %v11554_v10 = vld [vmem:[#allocation4 + $0x38] sm:$0xff] }
 0x252   : > { %v3655_v62 = vpop.f32.mrf.mxu3  ;;  %5763 = vmatpush.bf16.msra.mxu3 %v11554_v10 }
 0x253   : > { %v14629_v52 = vadd.f32 %v3655_v62, %v3395_v51  ;;  %v3070_v13 = vmax.f32 %v3054_v61, 0.0  ;;  %v3622_v61 = vshll.u32 %v14649_v31, 16  ;;  %v2896_v54 = vsel %vm1064_vm1, %v2891_v7, %v2895_v49 }
 0x254   : > { %v14631_v25 = vpop.f32.mrf.mxu1  ;;  %v2975_v29 = vpop.f32.mrf.mxu0 }
 0x255   : > { %v5115_v5 = vpack.c.bf16 %v3070_v13, %v3070_v13  ;;  %v3021_v37 = vadd.f32 %v2975_v29, %v14425_v20  ;;  %v3396_v44 = vpop.f32.mrf.mxu2  ;;  %v12488_v20 = vld [vmem:[#allocation2 + $0xc0] sm:$0xff]  }
 0x256   : > { %v3397_v48 = vadd.f32 %v3396_v44, %v3192_v16  ;;  %v3617_v16 = vsel %vm1064_vm1, %v3612_v53, %v3616_v38  ;;  %v3356_v63 = vshrl.u32 %v12488_v20, 16  ;;  %v3359_v3 = vshll.u32 %v12488_v20, 16  ;;  %v3470_v53 = vld [vmem:[#allocation2 + $0xcc] sm:$0x1] }
 0x257   : > { %v5179_v22 = vunpack.c.l.b16 %v5115_v5  ;;  %v3038_v45 = vmul.f32 %v14583_v28, %v3021_v37  ;;  %3009 = vmatmul.bf16.gmra.mxu0 %v2888_v58  ;;  %v12926_v58 = vld [vmem:[#allocation2 + $0x74] sm:$0x8]  ;;  %v13325_v5 = vld [vmem:[#allocation2 + $0x74] sm:$0xf0]   ;;  %v11934_v37 = vunpack.c.h.b16 %v12488_v20  ;;  %v3520_v55 = vunpack.c.l.b16 %v3470_v53 }
 0x258   : > { %v3358_v51 = vrot.slane %v3356_v63, 3  ;;  %v3361_v33 = vrot.slane %v3359_v3, 4  ;;  %v12927_v43 = vor.u32 %v13325_v5, %v12926_v58 }
 0x259   : > { %v5217_v47 = vpack.c.b16 %v5179_v22, %v5179_v22  ;;  %v3055_v26 = vadd.f32 %v14592_v0, %v3038_v45  ;;  %v3620_v22 = vor.u32 %v3618_v32, %v3616_v38  ;;  %v14657_v45 = vrot.slane %v3622_v61, 1 }
 0x25a   : > { %v3657_v41 = vpop.f32.mrf.mxu3  ;;  %3432 = vmatmul.bf16.gmra.mxu2 %v3354_v23  ;;  %v14654_v56 = vor.u32 %v3361_v33, %v3358_v51  ;;  %v3812_v35 = vshrl.u32 %v12927_v43, 16  ;;  %v3815_v23 = vshll.u32 %v12927_v43, 16  ;;  %v3168_v20 = vpack.c.b16 %v3156_v2, %v11934_v37 }
 0x25b   : > { %v14643_v24 = vadd.f32 %v3657_v41, %v3397_v48  ;;  %5282 = vst [vmem:[#allocation3 + $0x24] sm:$0xf] %v5217_v47  ;;  %v3071_v27 = vmax.f32 %v3055_v26, 0.0  ;;  %v3820_v47 = vshrl.u32 %v13327_v17, 16  ;;  %v3256_v41 = vpack.c.b16 %v3156_v2, %v3156_v2 }
 0x25c   : > { %v14645_v21 = vpop.f32.mrf.mxu1  ;;  %v2977_v59 = vpop.f32.mrf.mxu0  ;;  %v3817_v63 = vrot.slane %v3815_v23, 4  ;;  %v3533_v61 = vpack.c.b16 %v3520_v55, %v3520_v55  ;;  %v13329_v23 = vld [vmem:[#allocation2 + $0x84] sm:$0xff]   ;;  %v11523_v55 = vld [vmem:[#allocation2 + $0x78] sm:$0xff] }
 0x25d   : > { %v5116_v42 = vpack.c.bf16 %v3071_v27, %v3071_v27  ;;  %v3399_v14 = vpop.f32.mrf.mxu2  ;;  %v3368_v7 = vshll.u32 %v3256_v41, 16 }
 0x25e   : > { %v3630_v43 = vshll.u32 %v3533_v61, 16 }
 0x25f   : > { %3233 = vmatmul.bf16.gmra.mxu1 %v13323_v46  ;;  %3693 = vmatmul.bf16.gmra.mxu3 %v3617_v16  ;;  %v5180_v34 = vunpack.c.l.b16 %v5116_v42  ;;  %v3823_v46 = vshll.u32 %v13327_v17, 16  ;;  %v3625_v16 = vsel %vm1064_vm1, %v3620_v22, %v14657_v45  ;;  %v3814_v42 = vrot.slane %v3812_v35, 3 }
 0x260   : > { %v3370_v2 = vrot.slane %v3368_v7, 4  ;;  %v14693_v7 = vld [vmem:[#allocation2 + $0x80] sm:$0xff] }
 0x261   : > { %v5218_v19 = vpack.c.b16 %v5180_v34, %v5180_v34  ;;  %v3825_v3 = vrot.slane %v3823_v46, 4  ;;  %v3365_v34 = vshrl.u32 %v3256_v41, 16 }
 0x262   : > { %v3660_v1 = vpop.f32.mrf.mxu3 }
 0x263   : > { %5283 = vst [vmem:[#allocation3 + $0x28] sm:$0xf] %v5218_v19  ;;  %v11562_v1 = vld [vmem:[#allocation4 + $0x78] sm:$0xff] }
 0x264   : > { %v3201_v62 = vpop.f32.mrf.mxu1  ;;  %v2979_v13 = vpop.f32.mrf.mxu0  ;;  %5511 = vmatpush.bf16.msra.mxu2 %v11562_v1 }
 0x265   : > { %v3022_v29 = vadd.f32 %v2979_v13, %v14453_v50  ;;  %v3400_v44 = vpop.f32.mrf.mxu2  ;;  %v3363_v50 = vsel %vm721_vm0, %v14636_v8, %v14654_v56  ;;  %v3822_v8 = vrot.slane %v3820_v47, 3  ;;  %v3818_v62 = vor.u32 %v3817_v63, %v3814_v42  ;;  %v12489_v63 = vld [vmem:[#allocation2 + $0x78] sm:$0xff]  }
 0x266   : > { %v3401_v48 = vadd.f32 %v3400_v44, %v14631_v25 }
 0x267   : > { %v3039_v9 = vmul.f32 %v14583_v28, %v3022_v29  ;;  %3013 = vmatmul.bf16.gmra.mxu0 %v2896_v54  ;;  %v14674_v13 = vor.u32 %v3825_v3, %v3822_v8  ;;  %v3367_v29 = vrot.slane %v3365_v34, 3 }
 0x269   : > { %v3056_v26 = vadd.f32 %v14592_v0, %v3039_v9  ;;  %v3827_v22 = vsel %vm721_vm0, %v3818_v62, %v14674_v13  ;;  %v4394_v9 = vld [vmem:[#allocation2 + $0x80] sm:$0x8]  ;;  %v3371_v53 = vor.u32 %v3370_v2, %v3367_v29  ;;  %v4206_v29 = vshrl.u32 %v11523_v55, 16 }
 0x26a   : > { %v3661_v38 = vpop.f32.mrf.mxu3  ;;  %3437 = vmatmul.bf16.gmra.mxu2 %v3363_v50 }
 0x26b   : > { %v14665_v27 = vadd.f32 %v3661_v38, %v3401_v48  ;;  %v3072_v25 = vmax.f32 %v3056_v26, 0.0  ;;  %v14684_v48 = vld [vmem:[#allocation2 + $0x84] sm:$0xf]  ;;  %v4444_v26 = vunpack.c.l.b16 %v4394_v9  ;;  %v3829_v38 = vshrl.u32 %v13329_v23, 16 }
 0x26c   : > { %v14669_v59 = vpop.f32.mrf.mxu1  ;;  %v2981_v57 = vpop.f32.mrf.mxu0  ;;  %v4445_v41 = vunpack.c.l.b16 %v14684_v48  ;;  %v11553_v9 = vld [vmem:[#allocation4 + $0x30] sm:$0xff] }
 0x26d   : > { %v5117_v14 = vpack.c.bf16 %v3072_v25, %v3072_v25  ;;  %v3023_v49 = vadd.f32 %v2981_v57, %v14470_v15  ;;  %v3403_v19 = vpop.f32.mrf.mxu2  ;;  %5764 = vmatpush.bf16.msra.mxu3 %v11553_v9 }
 0x26e   : > { %v3404_v32 = vadd.f32 %v3403_v19, %v14645_v21  ;;  %v3626_v21 = vshrl.u32 %v14649_v31, 16  ;;  %v3632_v31 = vrot.slane %v3630_v43, 1  ;;  %v4469_v8 = vpack.c.b16 %v4445_v41, %v4444_v26  ;;  %v14695_v19 = vld [vmem:[#allocation2 + $0x88] sm:$0xff]  }
 0x26f   : > { %3237 = vmatmul.bf16.gmra.mxu1 %v3168_v20  ;;  %3698 = vmatmul.bf16.gmra.mxu3 %v3625_v16  ;;  %v5181_v51 = vunpack.c.l.b16 %v5117_v14  ;;  %v3040_v33 = vmul.f32 %v14583_v28, %v3023_v49  ;;  %v3832_v20 = vshll.u32 %v13329_v23, 16  ;;  %v3372_v16 = vsel %vm721_vm0, %v14654_v56, %v3371_v53 }
 0x270   : > { %v3628_v46 = vor.u32 %v3626_v21, %v14657_v45  ;;  %v3831_v45 = vrot.slane %v3829_v38, 3  ;;  %v4208_v49 = vshll.u32 %v11523_v55, 16  ;;  %v4486_v1 = vshll.u32 %v4469_v8, 16  ;;  %v13331_v38 = vld [vmem:[#allocation2 + $0x8c] sm:$0xff]  }
 0x271   : > { %v5219_v54 = vpack.c.b16 %v5181_v51, %v5181_v51  ;;  %v3057_v58 = vadd.f32 %v14592_v0, %v3040_v33  ;;  %v3834_v34 = vrot.slane %v3832_v20, 4  ;;  %v4483_v33 = vshrl.u32 %v4469_v8, 16 }
 0x272   : > { %v3664_v15 = vpop.f32.mrf.mxu3  ;;  %v3633_v3 = vsel %vm1064_vm1, %v3628_v46, %v3632_v31  ;;  %v4491_v61 = vshrl.u32 %v14695_v19, 16  ;;  %v4494_v62 = vshll.u32 %v14695_v19, 16  ;;  %v4210_v2 = vrot.slane %v4208_v49, 1 }
 0x273   : > { %v14677_v5 = vadd.f32 %v3664_v15, %v3404_v32  ;;  %5285 = vst [vmem:[#allocation3 + $0x30] sm:$0xf] %v5219_v54  ;;  %v3073_v37 = vmax.f32 %v3057_v58, 0.0  ;;  %v14702_v54 = vor.u32 %v3834_v34, %v3831_v45  ;;  %v4213_v58 = vshll.u32 %v14693_v7, 16 }
 0x274   : > { %v14679_v17 = vpop.f32.mrf.mxu1  ;;  %v2984_v44 = vpop.f32.mrf.mxu0  ;;  %v4485_v21 = vrot.slane %v4483_v33, 3  ;;  %v4488_v43 = vrot.slane %v4486_v1, 4  ;;  %v4493_v53 = vrot.slane %v4491_v61, 3  ;;  %v3841_v8 = vshll.u32 %v13331_v38, 16  ;;  %v14723_v61 = vld [vmem:[#allocation2 + $0x90] sm:$0xff]  }
 0x275   : > { %v5118_v35 = vpack.c.bf16 %v3073_v37, %v3073_v37  ;;  %v3405_v47 = vpop.f32.mrf.mxu2  ;;  %v4215_v26 = vrot.slane %v4213_v58, 1  ;;  %v4503_v58 = vshll.u32 %v14723_v61, 16 }
 0x276   : > { %v3836_v47 = vsel %vm721_vm0, %v14674_v13, %v14702_v54  ;;  %v3843_v1 = vrot.slane %v3841_v8, 4 }
 0x277   : > { %v5182_v50 = vunpack.c.l.b16 %v5118_v35  ;;  %3947 = vmatmul.bf16.vlgmr.msrb.gmra.mxu0 %v3827_v22  ;;  %v4496_v35 = vrot.slane %v4494_v62, 4 }
 0x279   : > { %v5220_v25 = vpack.c.b16 %v5182_v50, %v5182_v50  ;;  %v4211_v50 = vor.u32 %v4210_v2, %v4206_v29  ;;  %v4500_v2 = vshrl.u32 %v14723_v61, 16 }
 0x27a   : > { %v3666_v57 = vpop.f32.mrf.mxu3  ;;  %3441 = vmatmul.bf16.gmra.mxu2 %v3372_v16  ;;  %v4489_v16 = vor.u32 %v4488_v43, %v4485_v21  ;;  %v4217_v21 = vshrl.u32 %v14693_v7, 16 }
 0x27b   : > { %5286 = vst [vmem:[#allocation3 + $0x34] sm:$0xf] %v5220_v25  ;;  %v4216_v13 = vsel %vm1064_vm1, %v4211_v50, %v4215_v26  ;;  %v4502_v9 = vrot.slane %v4500_v2, 3 }
 0x27c   : > { %v3208_v42 = vpop.f32.mrf.mxu1  ;;  %v2985_v14 = vpop.f32.mrf.mxu0 }
 0x27d   : > { %v3024_v56 = vadd.f32 %v2985_v14, %v14499_v30  ;;  %v3407_v51 = vpop.f32.mrf.mxu2  ;;  %v4497_v42 = vor.u32 %v4496_v35, %v4493_v53  ;;  %v4505_v53 = vrot.slane %v4503_v58, 4 }
 0x27e   : > { %v3408_v32 = vadd.f32 %v3407_v51, %v14669_v59  ;;  %v11561_v59 = vld [vmem:[#allocation4 + $0x70] sm:$0xff] }
 0x27f   : > { %4048 = vmatmul.bf16.vlgmr.msrb.gmra.mxu1 %v12489_v63  ;;  %3702 = vmatmul.bf16.gmra.mxu3 %v3633_v3  ;;  %v3041_v10 = vmul.f32 %v14583_v28, %v3024_v56  ;;  %v3838_v63 = vshrl.u32 %v13331_v38, 16  ;;  %v12490_v56 = vld [vmem:[#allocation2 + $0x80] sm:$0xff]   ;;  %v4498_v51 = vsel %vm721_vm0, %v4489_v16, %v4497_v42  ;;  %v4506_v16 = vor.u32 %v4505_v53, %v4502_v9 }
 0x280   : > { %5512 = vmatpush.bf16.msra.mxu2 %v11561_v59 }
 0x281   : > { %v3058_v30 = vadd.f32 %v14592_v0, %v3041_v10 }
 0x282   : > { %v3668_v15 = vpop.f32.mrf.mxu3 }
 0x283   : > { %v14706_v37 = vadd.f32 %v3668_v15, %v3408_v32  ;;  %v3074_v44 = vmax.f32 %v3058_v30, 0.0  ;;  %v14721_v32 = vld [vmem:[#allocation2 + $0x88] sm:$0xff] }
 0x284   : > { %v14708_v22 = vpop.f32.mrf.mxu1  ;;  %v2988_v23 = vpop.f32.mrf.mxu0  ;;  %v4221_v43 = vshll.u32 %v14721_v32, 16 }
 0x285   : > { %v5119_v46 = vpack.c.bf16 %v3074_v44, %v3074_v44  ;;  %v3025_v31 = vadd.f32 %v2988_v23, %v14508_v4  ;;  %v3409_v20 = vpop.f32.mrf.mxu2 }
 0x286   : > { %v3410_v57 = vadd.f32 %v3409_v20, %v14679_v17  ;;  %v3840_v17 = vrot.slane %v3838_v63, 3  ;;  %v4223_v50 = vrot.slane %v4221_v43, 1 }
 0x287   : > { %v5183_v25 = vunpack.c.l.b16 %v5119_v46  ;;  %v3042_v55 = vmul.f32 %v14583_v28, %v3025_v31  ;;  %3952 = vmatmul.bf16.gmra.mxu0 %v3836_v47  ;;  %v4219_v47 = vor.u32 %v4217_v21, %v4215_v26  ;;  %v13333_v31 = vld [vmem:[#allocation2 + $0x94] sm:$0xff]   ;;  %v4225_v21 = vshrl.u32 %v14721_v32, 16 }
 0x288   : > { %v14727_v30 = vor.u32 %v3843_v1, %v3840_v17 }
 0x289   : > { %v5221_v3 = vpack.c.b16 %v5183_v25, %v5183_v25  ;;  %v3059_v14 = vadd.f32 %v14592_v0, %v3042_v55  ;;  %v3847_v25 = vshrl.u32 %v13333_v31, 16  ;;  %v3850_v55 = vshll.u32 %v13333_v31, 16  ;;  %v13335_v31 = vld [vmem:[#allocation2 + $0x9c] sm:$0xff]  }
 0x28a   : > { %v3670_v4 = vpop.f32.mrf.mxu3  ;;  %4325 = vmatmul.bf16.vlgmr.msrb.gmra.mxu2 %v4216_v13  ;;  %v3845_v23 = vsel %vm721_vm0, %v14702_v54, %v14727_v30 }
 0x28b   : > { %v14718_v45 = vadd.f32 %v3670_v4, %v3410_v57  ;;  %5288 = vst [vmem:[#allocation3 + $0x3c] sm:$0xf] %v5221_v3  ;;  %v3075_v34 = vmax.f32 %v3059_v14, 0.0  ;;  %v4224_v57 = vsel %vm1064_vm1, %v4219_v47, %v4223_v50  ;;  %v3849_v14 = vrot.slane %v3847_v25, 3 }
 0x28c   : > { %v3212_v49 = vpop.f32.mrf.mxu1  ;;  %v2990_v33 = vpop.f32.mrf.mxu0  ;;  %v3852_v4 = vrot.slane %v3850_v55, 4  ;;  %v4227_v47 = vor.u32 %v4225_v21, %v4223_v50  ;;  %v3856_v25 = vshrl.u32 %v13335_v31, 16  ;;  %v3859_v55 = vshll.u32 %v13335_v31, 16  ;;  %v11559_v21 = vld [vmem:[#allocation4 + $0x60] sm:$0xff] }
 0x28d   : > { %v5120_v10 = vpack.c.bf16 %v3075_v34, %v3075_v34  ;;  %v3412_v62 = vpop.f32.mrf.mxu2  ;;  %v14744_v34 = vld [vmem:[#allocation2 + $0x90] sm:$0xff] }
 0x28e   : > { %v11552_v62 = vld [vmem:[#allocation4 + $0x28] sm:$0xff]  ;;  %v3853_v58 = vor.u32 %v3852_v4, %v3849_v14  ;;  %v3858_v50 = vrot.slane %v3856_v25, 3  ;;  %v14764_v4 = vld [vmem:[#allocation2 + $0xa0] sm:$0xff]  }
 0x28f   : > { %4053 = vmatmul.bf16.gmra.mxu1 %v12490_v56  ;;  %4618 = vmatmul.bf16.vlgmr.msrb.gmra.mxu3 %v4498_v51  ;;  %v5184_v29 = vunpack.c.l.b16 %v5120_v10  ;;  %v14746_v56 = vld [vmem:[#allocation2 + $0x98] sm:$0xff]  }
 0x290   : > { %v11560_v10 = vld [vmem:[#allocation4 + $0x68] sm:$0xff]  ;;  %v4512_v2 = vshll.u32 %v14746_v56, 16  ;;  %5765 = vmatpush.bf16.msra.mxu3 %v11552_v62  ;;  %v4233_v62 = vshrl.u32 %v14744_v34, 16 }
 0x291   : > { %v5222_v15 = vpack.c.b16 %v5184_v29, %v5184_v29  ;;  %v4509_v29 = vshrl.u32 %v14746_v56, 16  ;;  %5513 = vmatpush.bf16.msra.mxu2 %v11560_v10  ;;  %v14762_v14 = vld [vmem:[#allocation2 + $0x98] sm:$0xff] }
 0x292   : > { %v3673_v44 = vpop.f32.mrf.mxu3  ;;  %v4514_v53 = vrot.slane %v4512_v2, 4 }
 0x293   : > { %5289 = vst [vmem:[#allocation3 + $0x40] sm:$0xf] %v5222_v15  ;;  %v4511_v9 = vrot.slane %v4509_v29, 3 }
 0x294   : > { %v3214_v59 = vpop.f32.mrf.mxu1  ;;  %v2992_v35 = vpop.f32.mrf.mxu0 }
 0x295   : > { %v3026_v46 = vadd.f32 %v2992_v35, %v14522_v18  ;;  %v3413_v38 = vpop.f32.mrf.mxu2  ;;  %v4507_v18 = vsel %vm721_vm0, %v4497_v42, %v4506_v16  ;;  %5514 = vmatpush.bf16.msra.mxu2 %v11559_v21 }
 0x296   : > { %v3414_v20 = vadd.f32 %v3413_v38, %v14708_v22 }
 0x297   : > { %v3043_v7 = vmul.f32 %v14583_v28, %v3026_v46  ;;  %3956 = vmatmul.bf16.gmra.mxu0 %v3845_v23  ;;  %v3854_v23 = vsel %vm721_vm0, %v14727_v30, %v3853_v58 }
 0x299   : > { %v3060_v63 = vadd.f32 %v14592_v0, %v3043_v7 }
 0x29a   : > { %v3674_v8 = vpop.f32.mrf.mxu3  ;;  %4330 = vmatmul.bf16.gmra.mxu2 %v4224_v57 }
 0x29b   : > { %v14739_v54 = vadd.f32 %v3674_v8, %v3414_v20  ;;  %v3076_v26 = vmax.f32 %v3060_v63, 0.0  ;;  %v4515_v20 = vor.u32 %v4514_v53, %v4511_v9 }
 0x29c   : > { %v14741_v13 = vpop.f32.mrf.mxu1  ;;  %v2994_v3 = vpop.f32.mrf.mxu0 }
 0x29d   : > { %v5121_v22 = vpack.c.bf16 %v3076_v26, %v3076_v26  ;;  %v3027_v51 = vadd.f32 %v2994_v3, %v14530_v12  ;;  %v3416_v33 = vpop.f32.mrf.mxu2  ;;  %v4229_v12 = vshll.u32 %v14744_v34, 16  ;;  %v3861_v3 = vrot.slane %v3859_v55, 4 }
 0x29e   : > { %v3417_v42 = vadd.f32 %v3416_v33, %v3212_v49 }
 0x29f   : > { %4057 = vmatmul.bf16.gmra.mxu1 %v14695_v19  ;;  %4623 = vmatmul.bf16.gmra.mxu3 %v4507_v18  ;;  %v5185_v17 = vunpack.c.l.b16 %v5121_v22  ;;  %v3044_v1 = vmul.f32 %v14583_v28, %v3027_v51  ;;  %v4231_v32 = vrot.slane %v4229_v12, 1  ;;  %v4516_v18 = vsel %vm721_vm0, %v4506_v16, %v4515_v20  ;;  %v11551_v12 = vld [vmem:[#allocation4 + $0x20] sm:$0xff] }
 0x2a0   : > { %v4521_v16 = vshll.u32 %v14764_v4, 16  ;;  %v3862_v10 = vor.u32 %v3861_v3, %v3858_v50  ;;  %5766 = vmatpush.bf16.msra.mxu3 %v11551_v12 }
 0x2a1   : > { %v5223_v15 = vpack.c.b16 %v5185_v17, %v5185_v17  ;;  %v3061_v19 = vadd.f32 %v14592_v0, %v3044_v1  ;;  %v4232_v57 = vsel %vm1064_vm1, %v4227_v47, %v4231_v32  ;;  %v4518_v1 = vshrl.u32 %v14764_v4, 16 }
 0x2a2   : > { %v3677_v43 = vpop.f32.mrf.mxu3  ;;  %v4235_v9 = vor.u32 %v4233_v62, %v4231_v32 }
 0x2a3   : > { %v14756_v44 = vadd.f32 %v3677_v43, %v3417_v42  ;;  %5291 = vst [vmem:[#allocation3 + $0x48] sm:$0xf] %v5223_v15  ;;  %v3077_v59 = vmax.f32 %v3061_v19, 0.0  ;;  %v4237_v42 = vshll.u32 %v14762_v14, 16  ;;  %v4520_v19 = vrot.slane %v4518_v1, 3 }
 0x2a4   : > { %v3218_v49 = vpop.f32.mrf.mxu1  ;;  %v2997_v35 = vpop.f32.mrf.mxu0 }
 0x2a5   : > { %v5122_v46 = vpack.c.bf16 %v3077_v59, %v3077_v59  ;;  %v3418_v38 = vpop.f32.mrf.mxu2  ;;  %v3863_v59 = vsel %vm721_vm0, %v3853_v58, %v3862_v10  ;;  %v4239_v53 = vrot.slane %v4237_v42, 1  ;;  %v4241_v42 = vshrl.u32 %v14762_v14, 16 }
 0x2a7   : > { %v5186_v7 = vunpack.c.l.b16 %v5122_v46  ;;  %3960 = vmatmul.bf16.gmra.mxu0 %v3854_v23  ;;  %v13337_v23 = vld [vmem:[#allocation2 + $0xa4] sm:$0xff]  }
 0x2a8   : > { %v3865_v25 = vshrl.u32 %v13337_v23, 16  ;;  %v3868_v55 = vshll.u32 %v13337_v23, 16 }
 0x2a9   : > { %v5224_v63 = vpack.c.b16 %v5186_v7, %v5186_v7 }
 0x2aa   : > { %v3679_v8 = vpop.f32.mrf.mxu3  ;;  %4334 = vmatmul.bf16.gmra.mxu2 %v4232_v57  ;;  %v4240_v57 = vsel %vm1064_vm1, %v4235_v9, %v4239_v53  ;;  %v3867_v50 = vrot.slane %v3865_v25, 3  ;;  %v13339_v9 = vld [vmem:[#allocation2 + $0xac] sm:$0xff]  }
 0x2ab   : > { %5292 = vst [vmem:[#allocation3 + $0x4c] sm:$0xf] %v5224_v63 }
 0x2ac   : > { %v3221_v26 = vpop.f32.mrf.mxu1  ;;  %v2998_v30 = vpop.f32.mrf.mxu0 }
 0x2ad   : > { %v3028_v22 = vadd.f32 %v2998_v30, %v14541_v39  ;;  %v3420_v51 = vpop.f32.mrf.mxu2 }
 0x2ae   : > { %v3421_v17 = vadd.f32 %v3420_v51, %v14741_v13  ;;  %v4523_v13 = vrot.slane %v4521_v16, 4  ;;  %v14787_v51 = vld [vmem:[#allocation2 + $0xa8] sm:$0xff]  }
 0x2af   : > { %4061 = vmatmul.bf16.gmra.mxu1 %v14723_v61  ;;  %4627 = vmatmul.bf16.gmra.mxu3 %v4516_v18  ;;  %v3045_v33 = vmul.f32 %v14583_v28, %v3028_v22  ;;  %v14785_v22 = vld [vmem:[#allocation2 + $0xa0] sm:$0xff]  ;;  %v4527_v1 = vshrl.u32 %v14787_v51, 16  ;;  %v4530_v16 = vshll.u32 %v14787_v51, 16 }
 0x2b0   : > { %v4524_v7 = vor.u32 %v4523_v13, %v4520_v19  ;;  %v4243_v13 = vor.u32 %v4241_v42, %v4239_v53  ;;  %v4249_v42 = vshrl.u32 %v14785_v22, 16 }
 0x2b1   : > { %v3062_v29 = vadd.f32 %v14592_v0, %v3045_v33  ;;  %v4529_v21 = vrot.slane %v4527_v1, 3  ;;  %v4532_v12 = vrot.slane %v4530_v16, 4 }
 0x2b2   : > { %v3681_v39 = vpop.f32.mrf.mxu3  ;;  %v4525_v18 = vsel %vm721_vm0, %v4515_v20, %v4524_v7 }
 0x2b3   : > { %v14775_v2 = vadd.f32 %v3681_v39, %v3421_v17  ;;  %v3078_v61 = vmax.f32 %v3062_v29, 0.0  ;;  %v4245_v29 = vshll.u32 %v14785_v22, 16  ;;  %v4533_v23 = vor.u32 %v4532_v12, %v4529_v21 }
 0x2b4   : > { %v3222_v15 = vpop.f32.mrf.mxu1  ;;  %v3001_v43 = vpop.f32.mrf.mxu0 }
 0x2b5   : > { %v5123_v35 = vpack.c.bf16 %v3078_v61, %v3078_v61  ;;  %v3029_v34 = vadd.f32 %v3001_v43, %v14549_v36  ;;  %v3422_v47 = vpop.f32.mrf.mxu2  ;;  %v4247_v43 = vrot.slane %v4245_v29, 1 }
 0x2b6   : > { %v3423_v38 = vadd.f32 %v3422_v47, %v3218_v49  ;;  %v3870_v49 = vrot.slane %v3868_v55, 4  ;;  %v3874_v47 = vshrl.u32 %v13339_v9, 16 }
 0x2b7   : > { %v5187_v46 = vunpack.c.l.b16 %v5123_v35  ;;  %v3046_v31 = vmul.f32 %v14583_v28, %v3029_v34  ;;  %3965 = vmatmul.bf16.gmra.mxu0 %v3863_v59 }
 0x2b8   : > { %v14792_v62 = vor.u32 %v3870_v49, %v3867_v50 }
 0x2b9   : > { %v5225_v58 = vpack.c.b16 %v5187_v46, %v5187_v46  ;;  %v3063_v32 = vadd.f32 %v14592_v0, %v3046_v31  ;;  %v3877_v46 = vshll.u32 %v13339_v9, 16  ;;  %v4248_v31 = vsel %vm1064_vm1, %v4243_v13, %v4247_v43 }
 0x2ba   : > { %v3683_v63 = vpop.f32.mrf.mxu3  ;;  %4338 = vmatmul.bf16.gmra.mxu2 %v4240_v57  ;;  %v3872_v19 = vsel %vm721_vm0, %v3862_v10, %v14792_v62 }
 0x2bb   : > { %v14782_v8 = vadd.f32 %v3683_v63, %v3423_v38  ;;  %5294 = vst [vmem:[#allocation3 + $0x54] sm:$0xf] %v5225_v58  ;;  %v3079_v36 = vmax.f32 %v3063_v32, 0.0  ;;  %v3876_v58 = vrot.slane %v3874_v47, 3  ;;  %v3879_v32 = vrot.slane %v3877_v46, 4  ;;  %v14807_v63 = vld [vmem:[#allocation2 + $0xa8] sm:$0xff] }
 0x2bc   : > { %v3225_v26 = vpop.f32.mrf.mxu1  ;;  %v3003_v30 = vpop.f32.mrf.mxu0 }
 0x2bd   : > { %v5124_v3 = vpack.c.bf16 %v3079_v36, %v3079_v36  ;;  %v3425_v33 = vpop.f32.mrf.mxu2  ;;  %v14809_v36 = vld [vmem:[#allocation2 + $0xb0] sm:$0xff]   ;;  %v3880_v16 = vor.u32 %v3879_v32, %v3876_v58 }
 0x2be   : > { %v11550_v33 = vld [vmem:[#allocation4 + $0x18] sm:$0xff]  ;;  %v4539_v1 = vshll.u32 %v14809_v36, 16 }
 0x2bf   : > { %4066 = vmatmul.bf16.gmra.mxu1 %v14746_v56  ;;  %4631 = vmatmul.bf16.gmra.mxu3 %v4525_v18  ;;  %v5188_v17 = vunpack.c.l.b16 %v5124_v3  ;;  %v11558_v3 = vld [vmem:[#allocation4 + $0x58] sm:$0xff] }
 0x2c0   : > { %5515 = vmatpush.bf16.msra.mxu2 %v11558_v3  ;;  %5767 = vmatpush.bf16.msra.mxu3 %v11550_v33  ;;  %v4541_v21 = vrot.slane %v4539_v1, 4  ;;  %v4257_v3 = vshrl.u32 %v14807_v63, 16 }
 0x2c1   : > { %v5226_v20 = vpack.c.b16 %v5188_v17, %v5188_v17  ;;  %v4536_v17 = vshrl.u32 %v14809_v36, 16 }
 0x2c2   : > { %v3686_v39 = vpop.f32.mrf.mxu3 }
 0x2c3   : > { %5295 = vst [vmem:[#allocation3 + $0x58] sm:$0xf] %v5226_v20 }
 0x2c4   : > { %v3227_v61 = vpop.f32.mrf.mxu1  ;;  %v3005_v56 = vpop.f32.mrf.mxu0 }
 0x2c5   : > { %v3030_v59 = vadd.f32 %v3005_v56, %v14563_v40  ;;  %v3426_v35 = vpop.f32.mrf.mxu2  ;;  %v4534_v40 = vsel %vm721_vm0, %v4524_v7, %v4533_v23  ;;  %v4538_v61 = vrot.slane %v4536_v17, 3  ;;  %v3881_v56 = vsel %vm721_vm0, %v14792_v62, %v3880_v16 }
 0x2c6   : > { %v3427_v14 = vadd.f32 %v3426_v35, %v3222_v15 }
 0x2c7   : > { %v3047_v34 = vmul.f32 %v14583_v28, %v3030_v59  ;;  %3969 = vmatmul.bf16.gmra.mxu0 %v3872_v19  ;;  %v4251_v19 = vor.u32 %v4249_v42, %v4247_v43  ;;  %v13341_v59 = vld [vmem:[#allocation2 + $0xb4] sm:$0xff]   ;;  %v14823_v35 = vor.u32 %v4541_v21, %v4538_v61  ;;  %v11549_v42 = vld [vmem:[#allocation4 + $0x10] sm:$0xff] }
 0x2c8   : > { %5768 = vmatpush.bf16.msra.mxu3 %v11549_v42 }
 0x2c9   : > { %v3064_v38 = vadd.f32 %v14592_v0, %v3047_v34  ;;  %v3883_v34 = vshrl.u32 %v13341_v59, 16  ;;  %v4543_v62 = vsel %vm721_vm0, %v4533_v23, %v14823_v35 }
 0x2ca   : > { %v3687_v25 = vpop.f32.mrf.mxu3  ;;  %4343 = vmatmul.bf16.gmra.mxu2 %v4248_v31 }
 0x2cb   : > { %v14802_v55 = vadd.f32 %v3687_v25, %v3427_v14  ;;  %v3080_v10 = vmax.f32 %v3064_v38, 0.0  ;;  %v3886_v14 = vshll.u32 %v13341_v59, 16  ;;  %v3885_v25 = vrot.slane %v3883_v34, 3 }
 0x2cc   : > { %v14804_v53 = vpop.f32.mrf.mxu1  ;;  %v3007_v57 = vpop.f32.mrf.mxu0 }
 0x2cd   : > { %v5125_v15 = vpack.c.bf16 %v3080_v10, %v3080_v10  ;;  %v3031_v18 = vadd.f32 %v3007_v57, %v14572_v11  ;;  %v3429_v30 = vpop.f32.mrf.mxu2  ;;  %v4253_v11 = vshll.u32 %v14807_v63, 16  ;;  %v3888_v10 = vrot.slane %v3886_v14, 4  ;;  %v14830_v57 = vld [vmem:[#allocation2 + $0xb8] sm:$0xff]  }
 0x2ce   : > { %v3430_v7 = vadd.f32 %v3429_v30, %v3225_v26  ;;  %v4545_v30 = vshrl.u32 %v14830_v57, 16 }
 0x2cf   : > { %4070 = vmatmul.bf16.gmra.mxu1 %v14764_v4  ;;  %4636 = vmatmul.bf16.gmra.mxu3 %v4534_v40  ;;  %v5189_v50 = vunpack.c.l.b16 %v5125_v15  ;;  %v3048_v49 = vmul.f32 %v14583_v28, %v3031_v18  ;;  %v4255_v22 = vrot.slane %v4253_v11, 1  ;;  %v14828_v40 = vld [vmem:[#allocation2 + $0xb0] sm:$0xff]  ;;  %v13504_v15 = vld [vmem:[%s16031_s2] ss:$0 sm:$0xff] }
 0x2d0   : > { %v4547_v11 = vrot.slane %v4545_v30, 3 }
 0x2d1   : > { %v5227_v20 = vpack.c.b16 %v5189_v50, %v5189_v50  ;;  %v3065_v4 = vadd.f32 %v14592_v0, %v3048_v49  ;;  %v4256_v47 = vsel %vm1064_vm1, %v4251_v19, %v4255_v22  ;;  %v4548_v50 = vshll.u32 %v14830_v57, 16 }
 0x2d2   : > { %v3690_v29 = vpop.f32.mrf.mxu3  ;;  %v14840_v49 = vor.u32 %v3888_v10, %v3885_v25  ;;  %v13506_v10 = vld [vmem:[%s13823_s6 + $0x78] sm:$0xff]  }
 0x2d3   : > { %v14819_v39 = vadd.f32 %v3690_v29, %v3430_v7  ;;  %5297 = vst [vmem:[#allocation3 + $0x60] sm:$0xf] %v5227_v20  ;;  %v3081_v28 = vmax.f32 %v3065_v4, 0.0  ;;  %v11557_v20 = vld [vmem:[#allocation4 + $0x50] sm:$0xff]  ;;  %v4550_v4 = vrot.slane %v4548_v50, 4 }
 0x2d4   : > { %v3231_v26 = vpop.f32.mrf.mxu1  ;;  %v3010_v12 = vpop.f32.mrf.mxu0  ;;  %v3890_v63 = vsel %vm721_vm0, %v3880_v16, %v14840_v49  ;;  %5516 = vmatpush.bf16.msra.mxu2 %v11557_v20 }
 0x2d5   : > { %v5126_v13 = vpack.c.bf16 %v3081_v28, %v3081_v28  ;;  %v3431_v9 = vpop.f32.mrf.mxu2  ;;  %v4259_v28 = vor.u32 %v4257_v3, %v4255_v22 }
 0x2d7   : > { %v5190_v0 = vunpack.c.l.b16 %v5126_v13  ;;  %3973 = vmatmul.bf16.gmra.mxu0 %v3881_v56  ;;  %v13343_v56 = vld [vmem:[#allocation2 + $0xbc] sm:$0xff]  }
 0x2d8   : > { %v3892_v34 = vshrl.u32 %v13343_v56, 16  ;;  %v3895_v14 = vshll.u32 %v13343_v56, 16 }
 0x2d9   : > { %v5228_v46 = vpack.c.b16 %v5190_v0, %v5190_v0  ;;  %v4551_v0 = vor.u32 %v4550_v4, %v4547_v11 }
 0x2da   : > { %v3692_v31 = vpop.f32.mrf.mxu3  ;;  %4347 = vmatmul.bf16.gmra.mxu2 %v4256_v47  ;;  %v3897_v25 = vrot.slane %v3895_v14, 4 }
 0x2db   : > { %5298 = vst [vmem:[#allocation3 + $0x64] sm:$0xf] %v5228_v46 }
 0x2dc   : > { %v3234_v38 = vpop.f32.mrf.mxu1  ;;  %v3011_v43 = vpop.f32.mrf.mxu0 }
 0x2dd   : > { %v3032_v58 = vadd.f32 %v3011_v43, %v14599_v60  ;;  %v3433_v32 = vpop.f32.mrf.mxu2  ;;  %v4261_v60 = vshll.u32 %v14828_v40, 16 }
 0x2de   : > { %v3434_v23 = vadd.f32 %v3433_v32, %v14804_v53 }
 0x2df   : > { %4074 = vmatmul.bf16.gmra.mxu1 %v14787_v51  ;;  %4640 = vmatmul.bf16.gmra.mxu3 %v4543_v62  ;;  %v3049_v18 = vmul.f32 %v13504_v15, %v3032_v58  ;;  %v13505_v51 = vld [vmem:[%s16031_s2 + $0x1] ss:$0 sm:$0xff]  ;;  %v4263_v61 = vrot.slane %v4261_v60, 1  ;;  %v4552_v62 = vsel %vm721_vm0, %v14823_v35, %v4551_v0  ;;  %v11754_v58 = vunpack.c.h.b16 %v13506_v10 }
 0x2e1   : > { %v3066_v33 = vadd.f32 %v13505_v51, %v3049_v18  ;;  %v4264_v47 = vsel %vm1064_vm1, %v4259_v28, %v4263_v61  ;;  %v14862_v18 = vld [vmem:[#allocation2 + $0xc0] sm:$0xff]  }
 0x2e2   : > { %v3694_v7 = vpop.f32.mrf.mxu3  ;;  %v4554_v3 = vshrl.u32 %v14862_v18, 16  ;;  %v4557_v35 = vshll.u32 %v14862_v18, 16 }
 0x2e3   : > { %v14847_v17 = vadd.f32 %v3694_v7, %v3434_v23  ;;  %v3082_v1 = vmax.f32 %v3066_v33, 0.0  ;;  %v379_v23 = vpack.c.b16 %v11754_v58, %v11754_v58  ;;  %v4265_v33 = vshrl.u32 %v14828_v40, 16 }
 0x2e4   : > { %v14849_v53 = vpop.f32.mrf.mxu1  ;;  %v3014_v29 = vpop.f32.mrf.mxu0  ;;  %v4556_v42 = vrot.slane %v4554_v3, 3 }
 0x2e5   : > { %v5127_v21 = vpack.c.bf16 %v3082_v1, %v3082_v1  ;;  %v3033_v12 = vadd.f32 %v3014_v29, %v14611_v6  ;;  %v3435_v19 = vpop.f32.mrf.mxu2  ;;  %459 = vst [vmem:[#allocation2 + $0xd0] sm:$0xf] %v379_v23  ;;  %v4267_v29 = vor.u32 %v4265_v33, %v4263_v61 }
 0x2e6   : > { %v3436_v9 = vadd.f32 %v3435_v19, %v3231_v26  ;;  %v3894_v26 = vrot.slane %v3892_v34, 3 }
 0x2e7   : > { %v5191_v13 = vunpack.c.l.b16 %v5127_v21  ;;  %v3050_v59 = vmul.f32 %v13504_v15, %v3033_v12  ;;  %3978 = vmatmul.bf16.gmra.mxu0 %v3890_v63  ;;  %v14860_v15 = vld [vmem:[#allocation2 + $0xb8] sm:$0xff]  ;;  %v13345_v21 = vld [vmem:[#allocation2 + $0xc4] sm:$0xff]  }
 0x2e8   : > { %v3898_v60 = vor.u32 %v3897_v25, %v3894_v26  ;;  %v4269_v7 = vshll.u32 %v14860_v15, 16  ;;  %v3901_v19 = vshrl.u32 %v13345_v21, 16  ;;  %v4273_v58 = vshrl.u32 %v14860_v15, 16 }
 0x2e9   : > { %v5229_v16 = vpack.c.b16 %v5191_v13, %v5191_v13  ;;  %v3067_v22 = vadd.f32 %v13505_v51, %v3050_v59  ;;  %v3904_v13 = vshll.u32 %v13345_v21, 16 }
 0x2ea   : > { %v3696_v46 = vpop.f32.mrf.mxu3  ;;  %4351 = vmatmul.bf16.gmra.mxu2 %v4264_v47  ;;  %v3899_v4 = vsel %vm721_vm0, %v14840_v49, %v3898_v60  ;;  %v4271_v63 = vrot.slane %v4269_v7, 1 }
 0x2eb   : > { %v14855_v31 = vadd.f32 %v3696_v46, %v3436_v9  ;;  %5300 = vst [vmem:[#allocation3 + $0x6c] sm:$0xf] %v5229_v16  ;;  %v3083_v6 = vmax.f32 %v3067_v22, 0.0  ;;  %v3906_v16 = vrot.slane %v3904_v13, 4  ;;  %v14877_v22 = vld [vmem:[#allocation2 + $0xc0] sm:$0xff]  ;;  %v14879_v46 = vld [vmem:[#allocation2 + $0xc8] sm:$0xff]  }
 0x2ec   : > { %v3238_v38 = vpop.f32.mrf.mxu1  ;;  %v3016_v43 = vpop.f32.mrf.mxu0  ;;  %v4272_v59 = vsel %vm1064_vm1, %v4267_v29, %v4271_v63  ;;  %v4563_v25 = vshrl.u32 %v14879_v46, 16  ;;  %v13346_v7 = vld [vmem:[#allocation2 + $0xcc] sm:$0xff]  }
 0x2ed   : > { %v5128_v32 = vpack.c.bf16 %v3083_v6, %v3083_v6  ;;  %v3438_v30 = vpop.f32.mrf.mxu2  ;;  %v11548_v43 = vld [vmem:[#allocation4 + $0x8] sm:$0xff] }
 0x2ee   : > { %5769 = vmatpush.bf16.msra.mxu3 %v11548_v43  ;;  %v4565_v30 = vrot.slane %v4563_v25, 3 }
 0x2ef   : > { %4079 = vmatmul.bf16.gmra.mxu1 %v14809_v36  ;;  %4644 = vmatmul.bf16.gmra.mxu3 %v4552_v62  ;;  %v5192_v50 = vunpack.c.l.b16 %v5128_v32  ;;  %v4559_v36 = vrot.slane %v4557_v35, 4  ;;  %v11556_v62 = vld [vmem:[#allocation4 + $0x48] sm:$0xff]  ;;  %v4277_v32 = vshll.u32 %v14877_v22, 16 }
 0x2f0   : > { %5517 = vmatpush.bf16.msra.mxu2 %v11556_v62 }
 0x2f1   : > { %v5230_v51 = vpack.c.b16 %v5192_v50, %v5192_v50  ;;  %v4560_v56 = vor.u32 %v4559_v36, %v4556_v42  ;;  %v4279_v33 = vrot.slane %v4277_v32, 1  ;;  %v3913_v42 = vshll.u32 %v13346_v7, 16 }
 0x2f2   : > { %v3699_v1 = vpop.f32.mrf.mxu3 }
 0x2f3   : > { %5301 = vst [vmem:[#allocation3 + $0x70] sm:$0xf] %v5230_v51  ;;  %v4561_v49 = vsel %vm721_vm0, %v4551_v0, %v4560_v56  ;;  %v4566_v0 = vshll.u32 %v14879_v46, 16  ;;  %v4275_v51 = vor.u32 %v4273_v58, %v4271_v63  ;;  %v11533_v63 = vld [vmem:[#allocation2 + $0xc8] sm:$0xff] }
 0x2f4   : > { %v3240_v20 = vpop.f32.mrf.mxu1  ;;  %v3948_v11 = vpop.f32.mrf.mxu0 }
 0x2f5   : > { %v4000_v28 = vadd.f32 %v3948_v11, %v14629_v52  ;;  %v3439_v12 = vpop.f32.mrf.mxu2  ;;  %v3903_v52 = vrot.slane %v3901_v19, 3  ;;  %v4568_v50 = vrot.slane %v4566_v0, 4  ;;  %v3910_v20 = vshrl.u32 %v13346_v7, 16 }
 0x2f6   : > { %v3440_v40 = vadd.f32 %v3439_v12, %v14849_v53  ;;  %v4280_v36 = vsel %vm1064_vm1, %v4275_v51, %v4279_v33 }
 0x2f7   : > { %3982 = vmatmul.bf16.gmra.mxu0 %v3899_v4  ;;  %v3907_v10 = vor.u32 %v3906_v16, %v3903_v52  ;;  %v4569_v15 = vor.u32 %v4568_v50, %v4565_v30  ;;  %v3912_v12 = vrot.slane %v3910_v20, 3 }
 0x2f9   : > { %v4570_v29 = vsel %vm721_vm0, %v4560_v56, %v4569_v15  ;;  %v4281_v56 = vshrl.u32 %v14877_v22, 16 }
 0x2fa   : > { %v3700_v9 = vpop.f32.mrf.mxu3  ;;  %4356 = vmatmul.bf16.gmra.mxu2 %v4272_v59 }
 0x2fb   : > { %v14874_v34 = vadd.f32 %v3700_v9, %v3440_v40  ;;  %v4283_v25 = vor.u32 %v4281_v56, %v4279_v33 }
 0x2fc   : > { %v4049_v14 = vpop.f32.mrf.mxu1  ;;  %v3950_v47 = vpop.f32.mrf.mxu0 }
 0x2fd   : > { %v4101_v61 = vadd.f32 %v4049_v14, %v4000_v28  ;;  %v4001_v53 = vadd.f32 %v3950_v47, %v14643_v24  ;;  %v3442_v6 = vpop.f32.mrf.mxu2  ;;  %v14892_v28 = vld [vmem:[#allocation2 + $0xd0] sm:$0xff]  }
 0x2fe   : > { %v3443_v26 = vadd.f32 %v3442_v6, %v3238_v38  ;;  %v3908_v38 = vsel %vm721_vm0, %v3898_v60, %v3907_v10  ;;  %v3915_v60 = vrot.slane %v3913_v42, 4  ;;  %v4572_v13 = vshrl.u32 %v14892_v28, 16  ;;  %v11555_v6 = vld [vmem:[#allocation4 + $0x40] sm:$0xff] }
 0x2ff   : > { %4083 = vmatmul.bf16.gmra.mxu1 %v14830_v57  ;;  %4649 = vmatmul.bf16.gmra.mxu3 %v4561_v49  ;;  %v4575_v9 = vshll.u32 %v14892_v28, 16  ;;  %v4285_v49 = vshll.u32 %v11533_v63, 16  ;;  %v14908_v42 = vld [vmem:[#allocation2 + $0xd0] sm:$0xff] }
 0x300   : > { %v3916_v14 = vor.u32 %v3915_v60, %v3912_v12  ;;  %v4574_v16 = vrot.slane %v4572_v13, 3  ;;  %5518 = vmatpush.bf16.msra.mxu2 %v11555_v6 }
 0x301   : > { %v4577_v62 = vrot.slane %v4575_v9, 4  ;;  %v4287_v0 = vrot.slane %v4285_v49, 1  ;;  %v4418_v49 = vld [vmem:[#allocation2 + $0xe0] sm:$0xf] }
 0x302   : > { %v3703_v23 = vpop.f32.mrf.mxu3 }
 0x303   : > { %v14887_v24 = vadd.f32 %v3703_v23, %v3443_v26  ;;  %v3917_v26 = vsel %vm721_vm0, %v3907_v10, %v3916_v14 }
 0x304   : > { %v4051_v57 = vpop.f32.mrf.mxu1  ;;  %v3953_v35 = vpop.f32.mrf.mxu0 }
 0x305   : > { %v4102_v3 = vadd.f32 %v4051_v57, %v4001_v53  ;;  %v3444_v1 = vpop.f32.mrf.mxu2  ;;  %v4578_v57 = vor.u32 %v4577_v62, %v4574_v16  ;;  %v4288_v35 = vsel %vm1064_vm1, %v4283_v25, %v4287_v0 }
 0x307   : > { %3986 = vmatmul.bf16.gmra.mxu0 %v3908_v38  ;;  %v4579_v33 = vsel %vm721_vm0, %v4569_v15, %v4578_v57  ;;  %v4293_v15 = vshll.u32 %v14908_v42, 16 }
 0x309   : > { %v4295_v56 = vrot.slane %v4293_v15, 1 }
 0x30a   : > { %v3705_v11 = vpop.f32.mrf.mxu3  ;;  %4360 = vmatmul.bf16.gmra.mxu2 %v4280_v36  ;;  %v14910_v36 = vld [vmem:[#allocation2 + $0xd8] sm:$0xff]  }
 0x30b   : > { %v4581_v11 = vshrl.u32 %v14910_v36, 16 }
 0x30c   : > { %v4054_v4 = vpop.f32.mrf.mxu1  ;;  %v3954_v21 = vpop.f32.mrf.mxu0 }
 0x30d   : > { %v4002_v40 = vadd.f32 %v3954_v21, %v14665_v27  ;;  %v4326_v19 = vpop.f32.mrf.mxu2  ;;  %v11547_v27 = vld [vmem:[#allocation4] sm:$0xff]  ;;  %v4584_v4 = vshll.u32 %v14910_v36, 16  ;;  %v4289_v21 = vshrl.u32 %v11533_v63, 16  ;;  %v14920_v63 = vunpack.c.l.b16 %v4418_v49 }
 0x30e   : > { %v4378_v59 = vadd.f32 %v4326_v19, %v4101_v61  ;;  %v11982_v61 = vunpack.c.h.b16 %v14892_v28  ;;  %5770 = vmatpush.bf16.msra.mxu3 %v11547_v27 }
 0x30f   : > { %4087 = vmatmul.bf16.gmra.mxu1 %v14862_v18  ;;  %4653 = vmatmul.bf16.gmra.mxu3 %v4570_v29  ;;  %v4586_v19 = vrot.slane %v4584_v4, 4  ;;  %v4291_v9 = vor.u32 %v4289_v21, %v4287_v0 }
 0x310   : > { %v3810_v22 = vpack.c.b16 %v11982_v61, %v11982_v61  ;;  %v11535_v61 = vld [vmem:[#allocation2 + $0x84] sm:$0xff] }
 0x311   : > { %v4296_v27 = vsel %vm1064_vm1, %v4291_v9, %v4295_v56  ;;  %v5333_v9 = vld [vmem:[#allocation3 + $0x8] sm:$0x8] }
 0x312   : > { %v4619_v47 = vpop.f32.mrf.mxu3  ;;  %v3919_v30 = vshrl.u32 %v3810_v22, 16  ;;  %v3922_v50 = vshll.u32 %v3810_v22, 16  ;;  %v5573_v48 = vunpack.c.l.b16 %v5333_v9  ;;  %v11589_v9 = vld [vmem:[#allocation4 + $0xf0] sm:$0xff] }
 0x313   : > { %v14899_v52 = vadd.f32 %v4619_v47, %v4378_v59  ;;  %v4141_v47 = vld [vmem:[#allocation2 + $0xd8] sm:$0x1] }
 0x314   : > { %v4055_v53 = vpop.f32.mrf.mxu1  ;;  %v3957_v43 = vpop.f32.mrf.mxu0  ;;  %v3921_v1 = vrot.slane %v3919_v30, 3  ;;  %v3924_v20 = vrot.slane %v3922_v50, 4  ;;  %v4191_v62 = vunpack.c.l.b16 %v4141_v47  ;;  %v13507_v30 = vld [vmem:[#allocation2 + $0x88] sm:$0xff]  }
 0x315   : > { %v4103_v18 = vadd.f32 %v4055_v53, %v4002_v40  ;;  %v4003_v58 = vadd.f32 %v3957_v43, %v14677_v5  ;;  %v4328_v32 = vpop.f32.mrf.mxu2  ;;  %v4583_v40 = vrot.slane %v4581_v11, 3  ;;  %v11985_v50 = vunpack.c.l.b16 %v13507_v30  ;;  %v11590_v11 = vld [vmem:[#allocation4 + $0xf8] sm:$0xff] }
 0x316   : > { %v4379_v23 = vadd.f32 %v4328_v32, %v4102_v3  ;;  %v3925_v29 = vor.u32 %v3924_v20, %v3921_v1  ;;  %v14931_v32 = vld [vmem:[#allocation2 + $0x8c] sm:$0xff]  ;;  %v4297_v20 = vshrl.u32 %v14908_v42, 16  ;;  %6447 = vmatpush.bf16.msrb.mxu1 %v11590_v11 }
 0x317   : > { %3991 = vmatmul.bf16.gmra.mxu0 %v3917_v26  ;;  %v14918_v6 = vor.u32 %v4586_v19, %v4583_v40  ;;  %v4687_v21 = vpack.c.b16 %v11985_v50, %v4445_v41 }
 0x318   : > { %v3926_v59 = vsel %vm721_vm0, %v3916_v14, %v3925_v29  ;;  %v4299_v19 = vor.u32 %v4297_v20, %v4295_v56  ;;  %v11617_v20 = vld [vmem:[#allocation4 + $0x170] sm:$0xff] }
 0x31a   : > { %v4621_v38 = vpop.f32.mrf.mxu3  ;;  %4364 = vmatmul.bf16.gmra.mxu2 %v4288_v35  ;;  %v4879_v35 = vshll.u32 %v11535_v61, 16  ;;  %6448 = vmatpush.bf16.msrb.mxu1 %v11589_v9 }
 0x31b   : > { %v14905_v51 = vadd.f32 %v4621_v38, %v4379_v23  ;;  %v11598_v38 = vld [vmem:[#allocation4 + $0x138] sm:$0xff] }
 0x31c   : > { %v4058_v10 = vpop.f32.mrf.mxu1  ;;  %v3959_v5 = vpop.f32.mrf.mxu0  ;;  %6613 = vmatpush.bf16.msrb.mxu2 %v11598_v38  ;;  %v4881_v15 = vrot.slane %v4879_v35, 1 }
 0x31d   : > { %v4104_v7 = vadd.f32 %v4058_v10, %v4003_v58  ;;  %v4331_v3 = vpop.f32.mrf.mxu2  ;;  %v4204_v58 = vpack.c.b16 %v4191_v62, %v4191_v62  ;;  %v11582_v10 = vld [vmem:[#allocation4 + $0xb8] sm:$0xff] }
 0x31e   : > { %6089 = vmatpush.bf16.msrb.mxu0 %v11582_v10  ;;  %v12985_v10 = vld [vmem:[#allocation2 + $0x8c] sm:$0xff]  }
 0x31f   : > { %4092 = vmatmul.bf16.gmra.mxu1 %v14879_v46  ;;  %4657 = vmatmul.bf16.gmra.mxu3 %v4579_v33  ;;  %v4301_v3 = vshll.u32 %v4204_v58, 16  ;;  %v14944_v58 = vld [vmem:[#allocation2 + $0x94] sm:$0xff] }
 0x322   : > { %v4624_v12 = vpop.f32.mrf.mxu3 }
 0x324   : > { %v4060_v60 = vpop.f32.mrf.mxu1  ;;  %v3961_v13 = vpop.f32.mrf.mxu0 }
 0x325   : > { %v4004_v46 = vadd.f32 %v3961_v13, %v14706_v37  ;;  %v4332_v16 = vpop.f32.mrf.mxu2  ;;  %v4588_v37 = vsel %vm721_vm0, %v4578_v57, %v14918_v6  ;;  %v11618_v57 = vld [vmem:[#allocation4 + $0x178] sm:$0xff]  ;;  %v4303_v13 = vrot.slane %v4301_v3, 1 }
 0x326   : > { %v4380_v53 = vadd.f32 %v4332_v16, %v4103_v18  ;;  %v4481_v18 = vpack.c.b16 %v14920_v63, %v14920_v63  ;;  %6955 = vmatpush.bf16.msrb.mxu3 %v11618_v57 }
 0x327   : > { %3995 = vmatmul.bf16.gmra.mxu0 %v3926_v59  ;;  %v5334_v59 = vld [vmem:[#allocation3 + $0xc] sm:$0xf]  ;;  %v4304_v41 = vsel %vm1064_vm1, %v4299_v19, %v4303_v13 }
 0x328   : > { %v4590_v5 = vshrl.u32 %v4481_v18, 16  ;;  %v4593_v1 = vshll.u32 %v4481_v18, 16 }
 0x32a   : > { %v4625_v43 = vpop.f32.mrf.mxu3  ;;  %4369 = vmatmul.bf16.gmra.mxu2 %v4296_v27  ;;  %v4592_v12 = vrot.slane %v4590_v5, 3  ;;  %v4595_v60 = vrot.slane %v4593_v1, 4  ;;  %v11597_v5 = vld [vmem:[#allocation4 + $0x130] sm:$0xff]  ;;  %6956 = vmatpush.bf16.msrb.mxu3 %v11617_v20 }
 0x32b   : > { %v14923_v26 = vadd.f32 %v4625_v43, %v4380_v53  ;;  %v5415_v53 = vunpack.c.l.b16 %v5334_v59  ;;  %v11581_v1 = vld [vmem:[#allocation4 + $0xb0] sm:$0xff]  ;;  %6614 = vmatpush.bf16.msrb.mxu2 %v11597_v5 }
 0x32c   : > { %v4062_v14 = vpop.f32.mrf.mxu1  ;;  %v3963_v0 = vpop.f32.mrf.mxu0  ;;  %v4596_v16 = vor.u32 %v4595_v60, %v4592_v12  ;;  %6090 = vmatpush.bf16.msrb.mxu0 %v11581_v1 }
 0x32d   : > { %v4105_v25 = vadd.f32 %v4062_v14, %v4004_v46  ;;  %v4005_v22 = vadd.f32 %v3963_v0, %v14718_v45  ;;  %v4335_v23 = vpop.f32.mrf.mxu2  ;;  %v5574_v14 = vpack.c.b16 %v5415_v53, %v5573_v48  ;;  %v12562_v0 = vld [vmem:[#allocation3 + $0x10] sm:$0xff]  }
 0x32e   : > { %v4381_v33 = vadd.f32 %v4335_v23, %v4104_v7  ;;  %v4884_v7 = vshll.u32 %v14931_v32, 16  ;;  %v4597_v56 = vsel %vm721_vm0, %v14918_v6, %v4596_v16  ;;  %v5596_v35 = vshrl.u32 %v12562_v0, 16 }
 0x32f   : > { %4096 = vmatmul.bf16.gmra.mxu1 %v14892_v28  ;;  %4662 = vmatmul.bf16.gmra.mxu3 %v4588_v37  ;;  %v4877_v28 = vshrl.u32 %v11535_v61, 16  ;;  %v5588_v23 = vshrl.u32 %v5574_v14, 16  ;;  %v5591_v30 = vshll.u32 %v5574_v14, 16  ;;  %v5599_v38 = vshll.u32 %v12562_v0, 16  ;;  %v12987_v14 = vld [vmem:[#allocation2 + $0x94] sm:$0xff]  }
 0x330   : > { %v4886_v47 = vrot.slane %v4884_v7, 1  ;;  %v12029_v3 = vunpack.c.l.b16 %v12562_v0 }
 0x331   : > { %v4882_v49 = vor.u32 %v4881_v15, %v4877_v28  ;;  %v5593_v28 = vrot.slane %v5591_v30, 4  ;;  %v5601_v15 = vrot.slane %v5599_v38, 4 }
 0x332   : > { %v4628_v45 = vpop.f32.mrf.mxu3 }
 0x333   : > { %v14934_v4 = vadd.f32 %v4628_v45, %v4381_v33  ;;  %v4887_v43 = vsel %vm1064_vm1, %v4882_v49, %v4886_v47  ;;  %v4888_v33 = vshrl.u32 %v14931_v32, 16  ;;  %v5590_v45 = vrot.slane %v5588_v23, 3 }
 0x334   : > { %v4064_v29 = vpop.f32.mrf.mxu1  ;;  %v3966_v42 = vpop.f32.mrf.mxu0 }
 0x335   : > { %v4106_v40 = vadd.f32 %v4064_v29, %v4005_v22  ;;  %v4337_v46 = vpop.f32.mrf.mxu2  ;;  %v4890_v32 = vor.u32 %v4888_v33, %v4886_v47  ;;  %v5439_v42 = vpack.c.b16 %v12029_v3, %v5415_v53  ;;  %v5594_v19 = vor.u32 %v5593_v28, %v5590_v45  ;;  %v11538_v53 = vld [vmem:[#allocation2 + $0x9c] sm:$0xff]  ;;  %v12564_v45 = vld [vmem:[#allocation3 + $0x20] sm:$0xff]  }
 0x336   : > { %v14962_v28 = vld [vmem:[#allocation2 + $0xa4] sm:$0xff] }
 0x337   : > { %4719 = vmatmul.bf16.vlgmr.msra.gmra.mxu0 %v4687_v21  ;;  %v5598_v21 = vrot.slane %v5596_v35, 3 }
 0x339   : > { %v5602_v59 = vor.u32 %v5601_v15, %v5598_v21  ;;  %v11616_v21 = vld [vmem:[#allocation4 + $0x168] sm:$0xff] }
 0x33a   : > { %v4630_v27 = vpop.f32.mrf.mxu3  ;;  %4373 = vmatmul.bf16.gmra.mxu2 %v4304_v41  ;;  %6957 = vmatpush.bf16.msrb.mxu3 %v11616_v21 }
 0x33b   : > { %v5603_v16 = vsel %vm721_vm0, %v5594_v19, %v5602_v59  ;;  %v12989_v19 = vld [vmem:[#allocation2 + $0x9c] sm:$0xff]  }
 0x33c   : > { %v4067_v62 = vpop.f32.mrf.mxu1  ;;  %v3967_v61 = vpop.f32.mrf.mxu0 }
 0x33d   : > { %v4006_v37 = vadd.f32 %v3967_v61, %v14739_v54  ;;  %v4339_v18 = vpop.f32.mrf.mxu2  ;;  %v4892_v54 = vshll.u32 %v14944_v58, 16  ;;  %v4896_v61 = vshrl.u32 %v14944_v58, 16 }
 0x33e   : > { %v4382_v22 = vadd.f32 %v4339_v18, %v4105_v25 }
 0x33f   : > { %4996 = vmatmul.bf16.vlgmr.msra.gmra.mxu1 %v4887_v43  ;;  %4666 = vmatmul.bf16.gmra.mxu3 %v4597_v56  ;;  %v4894_v12 = vrot.slane %v4892_v54, 1 }
 0x342   : > { %v4632_v50 = vpop.f32.mrf.mxu3 }
 0x343   : > { %v14946_v57 = vadd.f32 %v4632_v50, %v4382_v22  ;;  %v4898_v50 = vor.u32 %v4896_v61, %v4894_v12 }
 0x344   : > { %v4068_v6 = vpop.f32.mrf.mxu1  ;;  %v3970_v11 = vpop.f32.mrf.mxu0 }
 0x345   : > { %v4107_v25 = vadd.f32 %v4068_v6, %v4006_v37  ;;  %v4007_v29 = vadd.f32 %v3970_v11, %v14756_v44  ;;  %v4341_v7 = vpop.f32.mrf.mxu2  ;;  %v4895_v44 = vsel %vm1064_vm1, %v4890_v32, %v4894_v12  ;;  %v4900_v37 = vshll.u32 %v11538_v53, 16  ;;  %v13349_v6 = vld [vmem:[#allocation3 + $0x14] sm:$0xff]  }
 0x346   : > { %v4383_v60 = vadd.f32 %v4341_v7, %v4106_v40  ;;  %v12563_v40 = vld [vmem:[#allocation3 + $0x18] sm:$0xff]   ;;  %v11596_v11 = vld [vmem:[#allocation4 + $0x128] sm:$0xff]  ;;  %v5614_v32 = vshrl.u32 %v12564_v45, 16  ;;  %v5617_v12 = vshll.u32 %v12564_v45, 16 }
 0x347   : > { %4724 = vmatmul.bf16.gmra.mxu0 %v12985_v10  ;;  %v5605_v62 = vshrl.u32 %v12563_v40, 16  ;;  %v5608_v43 = vshll.u32 %v12563_v40, 16  ;;  %v4902_v35 = vrot.slane %v4900_v37, 1  ;;  %6615 = vmatpush.bf16.msrb.mxu2 %v11596_v11 }
 0x349   : > { %v5607_v22 = vrot.slane %v5605_v62, 3  ;;  %v5610_v23 = vrot.slane %v5608_v43, 4  ;;  %v4903_v1 = vsel %vm1064_vm1, %v4898_v50, %v4902_v35 }
 0x34a   : > { %v4634_v13 = vpop.f32.mrf.mxu3  ;;  %5519 = vmatmul.bf16.vlgmr.msra.gmra.mxu2 %v5439_v42 }
 0x34b   : > { %v14951_v46 = vadd.f32 %v4634_v13, %v4383_v60  ;;  %v5611_v33 = vor.u32 %v5610_v23, %v5607_v22  ;;  %v11588_v60 = vld [vmem:[#allocation4 + $0xe8] sm:$0xff]  ;;  %v4904_v13 = vshrl.u32 %v11538_v53, 16 }
 0x34c   : > { %v4071_v49 = vpop.f32.mrf.mxu1  ;;  %v3972_v41 = vpop.f32.mrf.mxu0  ;;  %6449 = vmatpush.bf16.msrb.mxu1 %v11588_v60 }
 0x34d   : > { %v4108_v48 = vadd.f32 %v4071_v49, %v4007_v29  ;;  %v4344_v47 = vpop.f32.mrf.mxu2  ;;  %v5612_v3 = vsel %vm721_vm0, %v5602_v59, %v5611_v33  ;;  %v11580_v29 = vld [vmem:[#allocation4 + $0xa8] sm:$0xff]  ;;  %v4908_v59 = vshll.u32 %v14962_v28, 16  ;;  %v4906_v41 = vor.u32 %v4904_v13, %v4902_v35  ;;  %v12991_v35 = vld [vmem:[#allocation2 + $0xa4] sm:$0xff]  }
 0x34e   : > { %6091 = vmatpush.bf16.msrb.mxu0 %v11580_v29 }
 0x34f   : > { %5001 = vmatmul.bf16.gmra.mxu1 %v4895_v44  ;;  %5771 = vmatmul.bf16.vlgmr.msra.gmra.mxu3 %v5603_v16  ;;  %v5616_v44 = vrot.slane %v5614_v32, 3  ;;  %v5619_v16 = vrot.slane %v5617_v12, 4  ;;  %v4910_v47 = vrot.slane %v4908_v59, 1  ;;  %v11587_v32 = vld [vmem:[#allocation4 + $0xe0] sm:$0xff] }
 0x350   : > { %6450 = vmatpush.bf16.msrb.mxu1 %v11587_v32 }
 0x351   : > { %v5620_v62 = vor.u32 %v5619_v16, %v5616_v44 }
 0x352   : > { %v4637_v27 = vpop.f32.mrf.mxu3 }
 0x353   : > { %v13351_v27 = vld [vmem:[#allocation3 + $0x1c] sm:$0xff]   ;;  %v5621_v61 = vsel %vm721_vm0, %v5611_v33, %v5620_v62  ;;  %v11615_v33 = vld [vmem:[#allocation4 + $0x160] sm:$0xff] }
 0x354   : > { %v4073_v56 = vpop.f32.mrf.mxu1  ;;  %v3974_v18 = vpop.f32.mrf.mxu0  ;;  %6958 = vmatpush.bf16.msrb.mxu3 %v11615_v33  ;;  %v14987_v33 = vld [vmem:[#allocation2 + $0xbc] sm:$0xff] }
 0x355   : > { %v4008_v0 = vadd.f32 %v3974_v18, %v14775_v2  ;;  %v4345_v30 = vpop.f32.mrf.mxu2  ;;  %v4911_v56 = vsel %vm1064_vm1, %v4906_v41, %v4910_v47  ;;  %v12565_v18 = vld [vmem:[#allocation3 + $0x28] sm:$0xff]   ;;  %v4932_v32 = vshll.u32 %v14987_v33, 16 }
 0x356   : > { %v4384_v38 = vadd.f32 %v4345_v30, %v4107_v25  ;;  %v5623_v30 = vshrl.u32 %v12565_v18, 16  ;;  %v5626_v50 = vshll.u32 %v12565_v18, 16 }
 0x357   : > { %4728 = vmatmul.bf16.gmra.mxu0 %v12987_v14 }
 0x358   : > { %v5628_v45 = vrot.slane %v5626_v50, 4 }
 0x35a   : > { %v4638_v10 = vpop.f32.mrf.mxu3  ;;  %5524 = vmatmul.bf16.gmra.mxu2 %v13349_v6  ;;  %v4912_v6 = vshrl.u32 %v14962_v28, 16 }
 0x35b   : > { %v14957_v54 = vadd.f32 %v4638_v10, %v4384_v38 }
 0x35c   : > { %v4075_v5 = vpop.f32.mrf.mxu1  ;;  %v3976_v20 = vpop.f32.mrf.mxu0  ;;  %v4914_v11 = vor.u32 %v4912_v6, %v4910_v47  ;;  %v12993_v47 = vld [vmem:[#allocation2 + $0xac] sm:$0xff]  }
 0x35d   : > { %v4109_v58 = vadd.f32 %v4075_v5, %v4008_v0  ;;  %v4009_v2 = vadd.f32 %v3976_v20, %v14782_v8  ;;  %v4348_v25 = vpop.f32.mrf.mxu2  ;;  %v11540_v0 = vld [vmem:[#allocation2 + $0xac] sm:$0xff] }
 0x35e   : > { %v4385_v15 = vadd.f32 %v4348_v25, %v4108_v48  ;;  %v4916_v5 = vshll.u32 %v11540_v0, 16 }
 0x35f   : > { %5005 = vmatmul.bf16.gmra.mxu1 %v4903_v1  ;;  %5776 = vmatmul.bf16.gmra.mxu3 %v5612_v3  ;;  %v14973_v1 = vld [vmem:[#allocation4 + $0x120] sm:$0xff] }
 0x360   : > { %6616 = vmatpush.bf16.msrb.mxu2 %v14973_v1  ;;  %v4918_v29 = vrot.slane %v4916_v5, 1 }
 0x362   : > { %v4641_v7 = vpop.f32.mrf.mxu3 }
 0x363   : > { %v14964_v8 = vadd.f32 %v4641_v7, %v4385_v15  ;;  %v13353_v15 = vld [vmem:[#allocation3 + $0x24] sm:$0xff]  }
 0x364   : > { %v4077_v42 = vpop.f32.mrf.mxu1  ;;  %v3979_v49 = vpop.f32.mrf.mxu0 }
 0x365   : > { %v4110_v9 = vadd.f32 %v4077_v42, %v4009_v2  ;;  %v4350_v48 = vpop.f32.mrf.mxu2  ;;  %v12566_v49 = vld [vmem:[#allocation3 + $0x30] sm:$0xff]  }
 0x366   : > { %v5632_v16 = vshrl.u32 %v12566_v49, 16  ;;  %v5635_v48 = vshll.u32 %v12566_v49, 16  ;;  %v4934_v49 = vrot.slane %v4932_v32, 1 }
 0x367   : > { %4732 = vmatmul.bf16.gmra.mxu0 %v12989_v19 }
 0x36a   : > { %v4643_v40 = vpop.f32.mrf.mxu3  ;;  %5528 = vmatmul.bf16.gmra.mxu2 %v13351_v27 }
 0x36b   : > { %v4920_v40 = vshrl.u32 %v11540_v0, 16 }
 0x36c   : > { %v4080_v43 = vpop.f32.mrf.mxu1  ;;  %v3980_v14 = vpop.f32.mrf.mxu0 }
 0x36d   : > { %v4010_v53 = vadd.f32 %v3980_v14, %v14802_v55  ;;  %v4352_v37 = vpop.f32.mrf.mxu2  ;;  %v11579_v55 = vld [vmem:[#allocation4 + $0xa0] sm:$0xff]  ;;  %v5634_v14 = vrot.slane %v5632_v16, 3  ;;  %v13357_v16 = vld [vmem:[#allocation3 + $0x34] sm:$0xff]  }
 0x36e   : > { %v4386_v22 = vadd.f32 %v4352_v37, %v4109_v58  ;;  %6092 = vmatpush.bf16.msrb.mxu0 %v11579_v55  ;;  %v5625_v58 = vrot.slane %v5623_v30, 3  ;;  %v12567_v55 = vld [vmem:[#allocation3 + $0x38] sm:$0xff]  }
 0x36f   : > { %5009 = vmatmul.bf16.gmra.mxu1 %v4911_v56  ;;  %5780 = vmatmul.bf16.gmra.mxu3 %v5621_v61 }
 0x370   : > { %v5629_v7 = vor.u32 %v5628_v45, %v5625_v58  ;;  %v11614_v58 = vld [vmem:[#allocation4 + $0x158] sm:$0xff] }
 0x371   : > { %6959 = vmatpush.bf16.msrb.mxu3 %v11614_v58 }
 0x372   : > { %v4645_v23 = vpop.f32.mrf.mxu3  ;;  %v5630_v13 = vsel %vm721_vm0, %v5620_v62, %v5629_v7  ;;  %v4922_v62 = vor.u32 %v4920_v40, %v4918_v29 }
 0x373   : > { %v14970_v38 = vadd.f32 %v4645_v23, %v4386_v22  ;;  %v13355_v23 = vld [vmem:[#allocation3 + $0x2c] sm:$0xff]  }
 0x374   : > { %v4081_v10 = vpop.f32.mrf.mxu1  ;;  %v3983_v2 = vpop.f32.mrf.mxu0 }
 0x375   : > { %v4111_v20 = vadd.f32 %v4081_v10, %v4010_v53  ;;  %v4011_v3 = vadd.f32 %v3983_v2, %v14819_v39  ;;  %v4354_v25 = vpop.f32.mrf.mxu2  ;;  %v4919_v39 = vsel %vm1064_vm1, %v4914_v11, %v4918_v29  ;;  %v5637_v53 = vrot.slane %v5635_v48, 4  ;;  %v14989_v2 = vld [vmem:[#allocation4 + $0x118] sm:$0xff] }
 0x376   : > { %v4387_v28 = vadd.f32 %v4354_v25, %v4110_v9  ;;  %v11541_v9 = vld [vmem:[#allocation2 + $0xb4] sm:$0xff]  ;;  %6617 = vmatpush.bf16.msrb.mxu2 %v14989_v2  ;;  %v5641_v11 = vshrl.u32 %v12567_v55, 16  ;;  %v5644_v29 = vshll.u32 %v12567_v55, 16 }
 0x377   : > { %4737 = vmatmul.bf16.gmra.mxu0 %v12991_v35  ;;  %v4924_v27 = vshll.u32 %v11541_v9, 16  ;;  %v5638_v30 = vor.u32 %v5637_v53, %v5634_v14  ;;  %v11543_v14 = vld [vmem:[#allocation2 + $0xc4] sm:$0xff] }
 0x379   : > { %v4926_v37 = vrot.slane %v4924_v27, 1  ;;  %v5639_v5 = vsel %vm721_vm0, %v5629_v7, %v5638_v30  ;;  %v4928_v7 = vshrl.u32 %v11541_v9, 16 }
 0x37a   : > { %v4647_v21 = vpop.f32.mrf.mxu3  ;;  %5532 = vmatmul.bf16.gmra.mxu2 %v13353_v15  ;;  %v12995_v15 = vld [vmem:[#allocation2 + $0xb4] sm:$0xff]  }
 0x37b   : > { %v14977_v12 = vadd.f32 %v4647_v21, %v4387_v28  ;;  %v4927_v10 = vsel %vm1064_vm1, %v4922_v62, %v4926_v37 }
 0x37c   : > { %v4084_v60 = vpop.f32.mrf.mxu1  ;;  %v3985_v19 = vpop.f32.mrf.mxu0 }
 0x37d   : > { %v4112_v42 = vadd.f32 %v4084_v60, %v4011_v3  ;;  %v4357_v59 = vpop.f32.mrf.mxu2  ;;  %v11578_v3 = vld [vmem:[#allocation4 + $0x98] sm:$0xff]  ;;  %v5643_v19 = vrot.slane %v5641_v11, 3 }
 0x37e   : > { %6093 = vmatpush.bf16.msrb.mxu0 %v11578_v3  ;;  %v4930_v59 = vor.u32 %v4928_v7, %v4926_v37  ;;  %v13359_v11 = vld [vmem:[#allocation3 + $0x3c] sm:$0xff]  }
 0x37f   : > { %5014 = vmatmul.bf16.gmra.mxu1 %v4919_v39  ;;  %5784 = vmatmul.bf16.gmra.mxu3 %v5630_v13 }
 0x382   : > { %v4650_v44 = vpop.f32.mrf.mxu3 }
 0x384   : > { %v4086_v41 = vpop.f32.mrf.mxu1  ;;  %v3987_v43 = vpop.f32.mrf.mxu0 }
 0x385   : > { %v4012_v56 = vadd.f32 %v3987_v43, %v14847_v17  ;;  %v4358_v61 = vpop.f32.mrf.mxu2 }
 0x386   : > { %v4388_v18 = vadd.f32 %v4358_v61, %v4111_v20 }
 0x387   : > { %4741 = vmatmul.bf16.gmra.mxu0 %v12993_v47  ;;  %v4935_v47 = vsel %vm1064_vm1, %v4930_v59, %v4934_v49 }
 0x38a   : > { %v4651_v22 = vpop.f32.mrf.mxu3  ;;  %5537 = vmatmul.bf16.gmra.mxu2 %v13355_v23 }
 0x38b   : > { %v14982_v50 = vadd.f32 %v4651_v22, %v4388_v18  ;;  %v12997_v18 = vld [vmem:[#allocation2 + $0xbc] sm:$0xff]  }
 0x38c   : > { %v4088_v35 = vpop.f32.mrf.mxu1  ;;  %v3989_v6 = vpop.f32.mrf.mxu0 }
 0x38d   : > { %v4113_v0 = vadd.f32 %v4088_v35, %v4012_v56  ;;  %v4013_v17 = vadd.f32 %v3989_v6, %v14855_v31  ;;  %v4361_v20 = vpop.f32.mrf.mxu2  ;;  %v11586_v31 = vld [vmem:[#allocation4 + $0xd8] sm:$0xff]  ;;  %v4936_v35 = vshrl.u32 %v14987_v33, 16  ;;  %v15001_v6 = vld [vmem:[#allocation4 + $0x110] sm:$0xff] }
 0x38e   : > { %v4389_v45 = vadd.f32 %v4361_v20, %v4112_v42  ;;  %6451 = vmatpush.bf16.msrb.mxu1 %v11586_v31  ;;  %v5646_v42 = vrot.slane %v5644_v29, 4  ;;  %v12568_v56 = vld [vmem:[#allocation3 + $0x40] sm:$0xff]   ;;  %6618 = vmatpush.bf16.msrb.mxu2 %v15001_v6  ;;  %v11585_v31 = vld [vmem:[#allocation4 + $0xd0] sm:$0xff] }
 0x38f   : > { %5018 = vmatmul.bf16.gmra.mxu1 %v4927_v10  ;;  %5789 = vmatmul.bf16.gmra.mxu3 %v5639_v5  ;;  %v5650_v62 = vshrl.u32 %v12568_v56, 16  ;;  %v5653_v37 = vshll.u32 %v12568_v56, 16  ;;  %v4940_v10 = vshll.u32 %v11543_v14, 16  ;;  %v4938_v58 = vor.u32 %v4936_v35, %v4934_v49 }
 0x390   : > { %v5647_v48 = vor.u32 %v5646_v42, %v5643_v19  ;;  %v12569_v42 = vld [vmem:[#allocation3 + $0x48] sm:$0xff]  }
 0x391   : > { %v5655_v20 = vrot.slane %v5653_v37, 4  ;;  %v5659_v59 = vshrl.u32 %v12569_v42, 16  ;;  %v5662_v49 = vshll.u32 %v12569_v42, 16  ;;  %v13361_v37 = vld [vmem:[#allocation3 + $0x44] sm:$0xff]  }
 0x392   : > { %v4654_v25 = vpop.f32.mrf.mxu3  ;;  %v5648_v27 = vsel %vm721_vm0, %v5638_v30, %v5647_v48  ;;  %v11613_v30 = vld [vmem:[#allocation4 + $0x150] sm:$0xff]  ;;  %6452 = vmatpush.bf16.msrb.mxu1 %v11585_v31 }
 0x393   : > { %v14992_v28 = vadd.f32 %v4654_v25, %v4389_v45  ;;  %6960 = vmatpush.bf16.msrb.mxu3 %v11613_v30  ;;  %v4942_v45 = vrot.slane %v4940_v10, 1 }
 0x394   : > { %v4090_v21 = vpop.f32.mrf.mxu1  ;;  %v3992_v39 = vpop.f32.mrf.mxu0 }
 0x395   : > { %v4114_v60 = vadd.f32 %v4090_v21, %v4013_v17  ;;  %v4363_v13 = vpop.f32.mrf.mxu2 }
 0x397   : > { %4745 = vmatmul.bf16.gmra.mxu0 %v12995_v15 }
 0x39a   : > { %v4656_v44 = vpop.f32.mrf.mxu3  ;;  %5541 = vmatmul.bf16.gmra.mxu2 %v13357_v16  ;;  %v12999_v16 = vld [vmem:[#allocation2 + $0xc4] sm:$0xff]  }
 0x39c   : > { %v4093_v41 = vpop.f32.mrf.mxu1  ;;  %v3993_v40 = vpop.f32.mrf.mxu0 }
 0x39d   : > { %v4014_v9 = vadd.f32 %v3993_v40, %v14874_v34  ;;  %v4365_v43 = vpop.f32.mrf.mxu2  ;;  %v11577_v34 = vld [vmem:[#allocation4 + $0x90] sm:$0xff]  ;;  %v4944_v41 = vshrl.u32 %v11543_v14, 16 }
 0x39e   : > { %v4390_v53 = vadd.f32 %v4365_v43, %v4113_v0  ;;  %6094 = vmatpush.bf16.msrb.mxu0 %v11577_v34  ;;  %v5652_v0 = vrot.slane %v5650_v62, 3 }
 0x39f   : > { %5022 = vmatmul.bf16.gmra.mxu1 %v4935_v47  ;;  %5793 = vmatmul.bf16.gmra.mxu3 %v5648_v27  ;;  %v5664_v27 = vrot.slane %v5662_v49, 4 }
 0x3a0   : > { %v5656_v29 = vor.u32 %v5655_v20, %v5652_v0  ;;  %v15025_v20 = vld [vmem:[#allocation4 + $0x108] sm:$0xff] }
 0x3a1   : > { %6619 = vmatpush.bf16.msrb.mxu2 %v15025_v20 }
 0x3a2   : > { %v4658_v61 = vpop.f32.mrf.mxu3  ;;  %v5657_v39 = vsel %vm721_vm0, %v5647_v48, %v5656_v29  ;;  %v4946_v48 = vor.u32 %v4944_v41, %v4942_v45 }
 0x3a3   : > { %v14998_v22 = vadd.f32 %v4658_v61, %v4390_v53 }
 0x3a4   : > { %v4094_v23 = vpop.f32.mrf.mxu1  ;;  %v3996_v5 = vpop.f32.mrf.mxu0 }
 0x3a5   : > { %v4115_v17 = vadd.f32 %v4094_v23, %v4014_v9  ;;  %v4015_v55 = vadd.f32 %v3996_v5, %v14887_v24  ;;  %v4367_v3 = vpop.f32.mrf.mxu2  ;;  %v4943_v24 = vsel %vm1064_vm1, %v4938_v58, %v4942_v45  ;;  %v5661_v9 = vrot.slane %v5659_v59, 3  ;;  %v15020_v5 = vld [vmem:[%s16031_s2] ss:$0 sm:$0xff]  ;;  %v11612_v58 = vld [vmem:[#allocation4 + $0x148] sm:$0xff] }
 0x3a6   : > { %v4391_v33 = vadd.f32 %v4367_v3, %v4114_v60  ;;  %v15009_v60 = vld [vmem:[#allocation2 + $0xcc] sm:$0xff]  ;;  %v11576_v3 = vld [vmem:[#allocation4 + $0x88] sm:$0xff]  ;;  %6961 = vmatpush.bf16.msrb.mxu3 %v11612_v58 }
 0x3a7   : > { %4750 = vmatmul.bf16.gmra.mxu0 %v12997_v18  ;;  %v4948_v47 = vshll.u32 %v15009_v60, 16  ;;  %v5665_v18 = vor.u32 %v5664_v27, %v5661_v9  ;;  %v4952_v42 = vshrl.u32 %v15009_v60, 16  ;;  %v13363_v60 = vld [vmem:[#allocation3 + $0x4c] sm:$0xff]  }
 0x3a8   : > { %6095 = vmatpush.bf16.msrb.mxu0 %v11576_v3 }
 0x3a9   : > { %v4950_v56 = vrot.slane %v4948_v47, 1  ;;  %v5666_v30 = vsel %vm721_vm0, %v5656_v29, %v5665_v18 }
 0x3aa   : > { %v4660_v25 = vpop.f32.mrf.mxu3  ;;  %5545 = vmatmul.bf16.gmra.mxu2 %v13359_v11 }
 0x3ab   : > { %v15005_v21 = vadd.f32 %v4660_v25, %v4391_v33  ;;  %v4951_v14 = vsel %vm1064_vm1, %v4946_v48, %v4950_v56  ;;  %v15030_v33 = vld [vmem:[%s16031_s2 + $0x1] ss:$0 sm:$0xff]  ;;  %v4954_v9 = vor.u32 %v4952_v42, %v4950_v56 }
 0x3ac   : > { %v4097_v15 = vpop.f32.mrf.mxu1  ;;  %v3998_v32 = vpop.f32.mrf.mxu0 }
 0x3ad   : > { %v4116_v7 = vadd.f32 %v4097_v15, %v4015_v55  ;;  %v4370_v19 = vpop.f32.mrf.mxu2  ;;  %v15023_v55 = vld [vmem:[#allocation2 + $0xd4] sm:$0xff] }
 0x3ae   : > { %v11584_v32 = vld [vmem:[#allocation4 + $0xc8] sm:$0xff]  ;;  %v13001_v19 = vld [vmem:[#allocation2 + $0xcc] sm:$0xff]  }
 0x3af   : > { %5027 = vmatmul.bf16.gmra.mxu1 %v4943_v24  ;;  %5797 = vmatmul.bf16.gmra.mxu3 %v5657_v39 }
 0x3b0   : > { %6453 = vmatpush.bf16.msrb.mxu1 %v11584_v32  ;;  %v11575_v32 = vld [vmem:[#allocation4 + $0x80] sm:$0xff] }
 0x3b1   : > { %6096 = vmatpush.bf16.msrb.mxu0 %v11575_v32 }
 0x3b2   : > { %v4663_v13 = vpop.f32.mrf.mxu3 }
 0x3b3   : > { %v4956_v13 = vshll.u32 %v15023_v55, 16 }
 0x3b4   : > { %v4099_v44 = vpop.f32.mrf.mxu1  ;;  %v4720_v40 = vpop.f32.mrf.mxu0 }
 0x3b5   : > { %v4371_v43 = vpop.f32.mrf.mxu2  ;;  %v4772_v61 = vadd.f32 %v4720_v40, %v14899_v52  ;;  %v4958_v27 = vrot.slane %v4956_v13, 1 }
 0x3b6   : > { %v4392_v53 = vadd.f32 %v4371_v43, %v4115_v17  ;;  %v12570_v17 = vld [vmem:[#allocation3 + $0x50] sm:$0xff]  }
 0x3b7   : > { %4754 = vmatmul.bf16.gmra.mxu0 %v12999_v16  ;;  %v5668_v15 = vshrl.u32 %v12570_v17, 16  ;;  %v5671_v24 = vshll.u32 %v12570_v17, 16  ;;  %v15043_v17 = vld [vmem:[#allocation2 + $0xdc] sm:$0xff] }
 0x3b9   : > { %v5670_v16 = vrot.slane %v5668_v15, 3  ;;  %v5673_v41 = vrot.slane %v5671_v24, 4  ;;  %v4964_v15 = vshll.u32 %v15043_v17, 16  ;;  %v15050_v24 = vld [vmem:[#allocation4 + $0x100] sm:$0xff] }
 0x3ba   : > { %v4664_v62 = vpop.f32.mrf.mxu3  ;;  %5550 = vmatmul.bf16.gmra.mxu2 %v13361_v37 }
 0x3bb   : > { %v15013_v23 = vadd.f32 %v4664_v62, %v4392_v53  ;;  %6620 = vmatpush.bf16.msrb.mxu2 %v15050_v24 }
 0x3bc   : > { %v4997_v35 = vpop.f32.mrf.mxu1  ;;  %v4722_v34 = vpop.f32.mrf.mxu0 }
 0x3bd   : > { %v5049_v10 = vadd.f32 %v4997_v35, %v4772_v61  ;;  %v4374_v0 = vpop.f32.mrf.mxu2  ;;  %v4773_v11 = vadd.f32 %v4722_v34, %v14905_v51  ;;  %v5674_v61 = vor.u32 %v5673_v41, %v5670_v16  ;;  %v4959_v35 = vsel %vm1064_vm1, %v4954_v9, %v4958_v27  ;;  %v13365_v9 = vld [vmem:[#allocation3 + $0x54] sm:$0xff]  }
 0x3be   : > { %v4393_v45 = vadd.f32 %v4374_v0, %v4116_v7 }
 0x3bf   : > { %v5065_v52 = vmul.f32 %v15020_v5, %v5049_v10  ;;  %5031 = vmatmul.bf16.gmra.mxu1 %v4951_v14  ;;  %5802 = vmatmul.bf16.gmra.mxu3 %v5666_v30  ;;  %v5675_v34 = vsel %vm721_vm0, %v5665_v18, %v5674_v61  ;;  %v4960_v18 = vshrl.u32 %v15023_v55, 16  ;;  %v4966_v55 = vrot.slane %v4964_v15, 1 }
 0x3c1   : > { %v5081_v25 = vadd.f32 %v15030_v33, %v5065_v52  ;;  %v12571_v52 = vld [vmem:[#allocation3 + $0x58] sm:$0xff]  }
 0x3c2   : > { %v4667_v29 = vpop.f32.mrf.mxu3 }
 0x3c3   : > { %v5097_v31 = vmax.f32 %v5081_v25, 0.0  ;;  %v15035_v39 = vadd.f32 %v4667_v29, %v4393_v45  ;;  %v5677_v45 = vshrl.u32 %v12571_v52, 16  ;;  %v5680_v25 = vshll.u32 %v12571_v52, 16 }
 0x3c4   : > { %v4999_v7 = vpop.f32.mrf.mxu1  ;;  %v4725_v51 = vpop.f32.mrf.mxu0 }
 0x3c5   : > { %v5129_v59 = vpack.c.bf16 %v5097_v31, %v5097_v31  ;;  %v5050_v49 = vadd.f32 %v4999_v7, %v4773_v11  ;;  %v4376_v40 = vpop.f32.mrf.mxu2  ;;  %v13002_v11 = vld [vmem:[#allocation2 + $0xd4] sm:$0xff]   ;;  %v5682_v13 = vrot.slane %v5680_v25, 4  ;;  %v4962_v51 = vor.u32 %v4960_v18, %v4958_v27 }
 0x3c6   : > { %v11611_v7 = vld [vmem:[#allocation4 + $0x140] sm:$0xff] }
 0x3c7   : > { %v5193_v44 = vunpack.c.l.b16 %v5129_v59  ;;  %v5066_v47 = vmul.f32 %v15020_v5, %v5050_v49  ;;  %4758 = vmatmul.bf16.gmra.mxu0 %v13001_v19  ;;  %6962 = vmatpush.bf16.msrb.mxu3 %v11611_v7 }
 0x3c9   : > { %v5231_v43 = vpack.c.b16 %v5193_v44, %v5193_v44  ;;  %v5082_v48 = vadd.f32 %v15030_v33, %v5066_v47  ;;  %v13510_v44 = vld [vmem:[#allocation4 + $0x78] sm:$0xff]  ;;  %v4812_v47 = vld [vmem:[#allocation2 + $0xe4] sm:$0x1] }
 0x3ca   : > { %v4669_v53 = vpop.f32.mrf.mxu3  ;;  %5554 = vmatmul.bf16.gmra.mxu2 %v13363_v60  ;;  %v4862_v27 = vunpack.c.l.b16 %v4812_v47 }
 0x3cb   : > { %5303 = vst [vmem:[#allocation3 + $0x78] sm:$0xf] %v5231_v43  ;;  %v5098_v62 = vmax.f32 %v5082_v48, 0.0  ;;  %8045 = vmatpush.bf16.msra.mxu3 %v13510_v44  ;;  %v11583_v53 = vld [vmem:[#allocation4 + $0xc0] sm:$0xff] }
 0x3cc   : > { %v5002_v37 = vpop.f32.mrf.mxu1  ;;  %v4726_v10 = vpop.f32.mrf.mxu0  ;;  %6454 = vmatpush.bf16.msrb.mxu1 %v11583_v53  ;;  %v13514_v53 = vld [vmem:[#allocation4 + $0x58] sm:$0xff] }
 0x3cd   : > { %v5130_v14 = vpack.c.bf16 %v5098_v62, %v5098_v62  ;;  %v5520_v56 = vpop.f32.mrf.mxu2  ;;  %v4774_v3 = vadd.f32 %v4726_v10, %v14923_v26  ;;  %v5679_v26 = vrot.slane %v5677_v45, 3  ;;  %v4967_v37 = vsel %vm1064_vm1, %v4962_v51, %v4966_v55 }
 0x3cf   : > { %v5194_v30 = vunpack.c.l.b16 %v5130_v14  ;;  %5035 = vmatmul.bf16.gmra.mxu1 %v4959_v35  ;;  %5806 = vmatmul.bf16.gmra.mxu3 %v5675_v34  ;;  %v15056_v43 = vor.u32 %v5682_v13, %v5679_v26  ;;  %v13511_v35 = vld [vmem:[#allocation4 + $0x70] sm:$0xff]  ;;  %v11563_v13 = vld [vmem:[#allocation3 + $0xc] sm:$0xff] }
 0x3d0   : > { %8046 = vmatpush.bf16.msra.mxu3 %v13511_v35 }
 0x3d1   : > { %v5232_v0 = vpack.c.b16 %v5194_v30, %v5194_v30 }
 0x3d2   : > { %v5772_v58 = vpop.f32.mrf.mxu3 }
 0x3d3   : > { %5304 = vst [vmem:[#allocation3 + $0x7c] sm:$0xf] %v5232_v0  ;;  %v15046_v29 = vadd.f32 %v5772_v58, %v5520_v56  ;;  %v15064_v0 = vld [vmem:[#allocation3 + $0x60] sm:$0xff]   ;;  %v4875_v58 = vpack.c.b16 %v4862_v27, %v4862_v27 }
 0x3d4   : > { %v5003_v31 = vpop.f32.mrf.mxu1  ;;  %v4729_v42 = vpop.f32.mrf.mxu0  ;;  %v5689_v15 = vshll.u32 %v15064_v0, 16  ;;  %v13366_v27 = vld [vmem:[#allocation3 + $0x5c] sm:$0xff]  }
 0x3d5   : > { %v5051_v19 = vadd.f32 %v5003_v31, %v4774_v3  ;;  %v5522_v49 = vpop.f32.mrf.mxu2  ;;  %v4775_v41 = vadd.f32 %v4729_v42, %v14934_v4  ;;  %v5684_v4 = vsel %vm721_vm0, %v5674_v61, %v15056_v43  ;;  %v12026_v3 = vunpack.c.h.b16 %v14910_v36 }
 0x3d6   : > { %v5686_v61 = vshrl.u32 %v15064_v0, 16  ;;  %v4972_v42 = vshll.u32 %v4875_v58, 16  ;;  %v5691_v44 = vrot.slane %v5689_v15, 4  ;;  %v11654_v15 = vld [vmem:[#allocation4 + $0x238] sm:$0xff] }
 0x3d7   : > { %v5067_v59 = vmul.f32 %v15020_v5, %v5051_v19  ;;  %4763 = vmatmul.bf16.gmra.mxu0 %v13002_v11  ;;  %v13512_v11 = vld [vmem:[#allocation4 + $0x68] sm:$0xff]  ;;  %v4698_v7 = vpack.c.b16 %v14920_v63, %v12026_v3  ;;  %v4968_v19 = vshrl.u32 %v15043_v17, 16  ;;  %v5932_v63 = vshll.u32 %v11563_v13, 16  ;;  %v13515_v3 = vld [vmem:[#allocation4 + $0x50] sm:$0xff]  ;;  %7821 = vmatpush.bf16.msra.mxu2 %v11654_v15 }
 0x3d8   : > { %8047 = vmatpush.bf16.msra.mxu3 %v13512_v11  ;;  %v5688_v51 = vrot.slane %v5686_v61, 3  ;;  %v15103_v15 = vld [vmem:[#allocation3 + $0x1c] sm:$0xff] }
 0x3d9   : > { %v5083_v16 = vadd.f32 %v15030_v33, %v5067_v59  ;;  %v13513_v59 = vld [vmem:[#allocation4 + $0x60] sm:$0xff]  ;;  %v4970_v47 = vor.u32 %v4968_v19, %v4966_v55 }
 0x3da   : > { %v5774_v40 = vpop.f32.mrf.mxu3  ;;  %5558 = vmatmul.bf16.gmra.mxu2 %v13365_v9  ;;  %v15077_v35 = vor.u32 %v5691_v44, %v5688_v51 }
 0x3db   : > { %v5099_v48 = vmax.f32 %v5083_v16, 0.0  ;;  %v15058_v60 = vadd.f32 %v5774_v40, %v5522_v49  ;;  %v5357_v16 = vld [vmem:[#allocation3 + $0x68] sm:$0xf]  ;;  %v4974_v40 = vrot.slane %v4972_v42, 1 }
 0x3dc   : > { %v5006_v62 = vpop.f32.mrf.mxu1  ;;  %v4731_v34 = vpop.f32.mrf.mxu0  ;;  %8048 = vmatpush.bf16.msra.mxu3 %v13513_v59  ;;  %v15073_v17 = vunpack.c.l.b16 %v5357_v16  ;;  %v5693_v11 = vsel %vm721_vm0, %v15056_v43, %v15077_v35  ;;  %v11634_v16 = vld [vmem:[#allocation4 + $0x1f8] sm:$0xff] }
 0x3dd   : > { %v5131_v14 = vpack.c.bf16 %v5099_v48, %v5099_v48  ;;  %v5052_v10 = vadd.f32 %v5006_v62, %v4775_v41  ;;  %v5525_v52 = vpop.f32.mrf.mxu2  ;;  %v15075_v62 = vld [vmem:[#allocation3 + $0x14] sm:$0xff]  ;;  %v4975_v55 = vsel %vm1064_vm1, %v4970_v47, %v4974_v40  ;;  %7479 = vmatpush.bf16.msra.mxu1 %v11634_v16 }
 0x3de   : > { %v13368_v52 = vld [vmem:[#allocation3 + $0x14] sm:$0xf0]   ;;  %v5586_v58 = vpack.c.b16 %v15073_v17, %v15073_v17 }
 0x3df   : > { %v5195_v30 = vunpack.c.l.b16 %v5131_v14  ;;  %v5068_v56 = vmul.f32 %v15020_v5, %v5052_v10  ;;  %5040 = vmatmul.bf16.gmra.mxu1 %v4967_v37  ;;  %5810 = vmatmul.bf16.gmra.mxu3 %v5684_v4  ;;  %v5930_v4 = vshrl.u32 %v11563_v13, 16 }
 0x3e0   : > { %8049 = vmatpush.bf16.msra.mxu3 %v13514_v53  ;;  %v5698_v44 = vshll.u32 %v5586_v58, 16  ;;  %v13517_v53 = vld [vmem:[#allocation4 + $0x40] sm:$0xff] }
 0x3e1   : > { %v5233_v45 = vpack.c.b16 %v5195_v30, %v5195_v30  ;;  %v5084_v25 = vadd.f32 %v15030_v33, %v5068_v56  ;;  %v5934_v30 = vrot.slane %v5932_v63, 1  ;;  %v13055_v56 = vld [vmem:[#allocation3 + $0x14] sm:$0x8] }
 0x3e2   : > { %v5777_v31 = vpop.f32.mrf.mxu3  ;;  %v13056_v61 = vor.u32 %v13368_v52, %v13055_v56 }
 0x3e3   : > { %5306 = vst [vmem:[#allocation3 + $0x84] sm:$0xf] %v5233_v45  ;;  %v5100_v18 = vmax.f32 %v5084_v25, 0.0  ;;  %v5937_v45 = vshll.u32 %v15075_v62, 16  ;;  %v13370_v25 = vld [vmem:[#allocation3 + $0x1c] sm:$0xff]   ;;  %v5935_v42 = vor.u32 %v5934_v30, %v5930_v4  ;;  %v5700_v4 = vrot.slane %v5698_v44, 4 }
 0x3e4   : > { %v5008_v32 = vpop.f32.mrf.mxu1  ;;  %v4733_v26 = vpop.f32.mrf.mxu0  ;;  %8050 = vmatpush.bf16.msra.mxu3 %v13515_v3  ;;  %v6280_v59 = vshrl.u32 %v13370_v25, 16  ;;  %v6283_v43 = vshll.u32 %v13370_v25, 16  ;;  %v6272_v40 = vshrl.u32 %v13056_v61, 16 }
 0x3e5   : > { %v5132_v36 = vpack.c.bf16 %v5100_v18, %v5100_v18  ;;  %v5526_v41 = vpop.f32.mrf.mxu2  ;;  %v4776_v48 = vadd.f32 %v4733_v26, %v14946_v57  ;;  %v11626_v32 = vld [vmem:[#allocation4 + $0x1b8] sm:$0xff]  ;;  %v5695_v26 = vshrl.u32 %v5586_v58, 16  ;;  %v15091_v13 = vrot.slane %v5937_v45, 1 }
 0x3e6   : > { %7313 = vmatpush.bf16.msra.mxu0 %v11626_v32  ;;  %v6274_v52 = vrot.slane %v6272_v40, 3 }
 0x3e7   : > { %v5196_v49 = vunpack.c.l.b16 %v5132_v36  ;;  %4767 = vmatmul.bf16.gmra.mxu0 %v4698_v7  ;;  %v13516_v36 = vld [vmem:[#allocation4 + $0x48] sm:$0xff] }
 0x3e8   : > { %8051 = vmatpush.bf16.msra.mxu3 %v13516_v36  ;;  %v13372_v36 = vld [vmem:[#allocation3 + $0x24] sm:$0xff]  }
 0x3e9   : > { %v5234_v9 = vpack.c.b16 %v5196_v49, %v5196_v49  ;;  %v6289_v16 = vshrl.u32 %v13372_v36, 16 }
 0x3ea   : > { %v5778_v37 = vpop.f32.mrf.mxu3  ;;  %5563 = vmatmul.bf16.gmra.mxu2 %v13366_v27  ;;  %v5940_v27 = vsel %vm1064_vm1, %v5935_v42, %v15091_v13 }
 0x3eb   : > { %5307 = vst [vmem:[#allocation3 + $0x88] sm:$0xf] %v5234_v9  ;;  %v15079_v14 = vadd.f32 %v5778_v37, %v5526_v41  ;;  %v6275_v9 = vshll.u32 %v13056_v61, 16  ;;  %v5697_v37 = vrot.slane %v5695_v26, 3 }
 0x3ec   : > { %v5010_v10 = vpop.f32.mrf.mxu1  ;;  %v4735_v57 = vpop.f32.mrf.mxu0  ;;  %8052 = vmatpush.bf16.msra.mxu3 %v13517_v53  ;;  %v11653_v53 = vld [vmem:[#allocation4 + $0x230] sm:$0xff] }
 0x3ed   : > { %v5053_v34 = vadd.f32 %v5010_v10, %v4776_v48  ;;  %v5529_v18 = vpop.f32.mrf.mxu2  ;;  %v4777_v19 = vadd.f32 %v4735_v57, %v14951_v46  ;;  %v6282_v10 = vrot.slane %v6280_v59, 3  ;;  %v12070_v57 = vunpack.c.h.b16 %v15064_v0  ;;  %7822 = vmatpush.bf16.msra.mxu2 %v11653_v53 }
 0x3ee   : > { %v6277_v3 = vrot.slane %v6275_v9, 4  ;;  %v15111_v9 = vld [vmem:[#allocation3 + $0x20] sm:$0xff] }
 0x3ef   : > { %v5069_v31 = vmul.f32 %v15020_v5, %v5053_v34  ;;  %5044 = vmatmul.bf16.gmra.mxu1 %v4975_v55  ;;  %5815 = vmatmul.bf16.gmra.mxu3 %v5693_v11  ;;  %v6285_v55 = vrot.slane %v6283_v43, 4 }
 0x3f0   : > { %v6278_v32 = vor.u32 %v6277_v3, %v6274_v52 }
 0x3f1   : > { %v5085_v7 = vadd.f32 %v15030_v33, %v5069_v31  ;;  %v15100_v25 = vor.u32 %v6285_v55, %v6282_v10  ;;  %v5450_v31 = vpack.c.b16 %v15073_v17, %v12070_v57  ;;  %v5945_v17 = vshll.u32 %v15103_v15, 16 }
 0x3f2   : > { %v5781_v49 = vpop.f32.mrf.mxu3 }
 0x3f3   : > { %v5101_v51 = vmax.f32 %v5085_v7, 0.0  ;;  %v15093_v41 = vadd.f32 %v5781_v49, %v5529_v18  ;;  %v5701_v18 = vor.u32 %v5700_v4, %v5697_v37  ;;  %v6287_v42 = vsel %vm721_vm0, %v6278_v32, %v15100_v25  ;;  %v11625_v37 = vld [vmem:[#allocation4 + $0x1b0] sm:$0xff] }
 0x3f4   : > { %v5012_v47 = vpop.f32.mrf.mxu1  ;;  %v4738_v63 = vpop.f32.mrf.mxu0  ;;  %7314 = vmatpush.bf16.msra.mxu0 %v11625_v37  ;;  %v6803_v4 = vshll.u32 %v15111_v9, 16 }
 0x3f5   : > { %v5133_v46 = vpack.c.bf16 %v5101_v51, %v5101_v51  ;;  %v5054_v48 = vadd.f32 %v5012_v47, %v4777_v19  ;;  %v5531_v56 = vpop.f32.mrf.mxu2  ;;  %v5702_v26 = vsel %vm721_vm0, %v15077_v35, %v5701_v18  ;;  %v11599_v51 = vld [vmem:[#allocation3 + $0x18] sm:$0xff]  ;;  %v6292_v47 = vshll.u32 %v13372_v36, 16 }
 0x3f7   : > { %v5197_v34 = vunpack.c.l.b16 %v5133_v46  ;;  %v5070_v30 = vmul.f32 %v15020_v5, %v5054_v48  ;;  %6097 = vmatmul.bf16.vlgmr.msrb.gmra.mxu0 %v5940_v27  ;;  %v5941_v46 = vshrl.u32 %v15075_v62, 16  ;;  %v5947_v48 = vrot.slane %v5945_v17, 1  ;;  %v13374_v17 = vld [vmem:[#allocation3 + $0x2c] sm:$0xff]  }
 0x3f8   : > { %v6798_v27 = vshll.u32 %v11599_v51, 16  ;;  %v6294_v57 = vrot.slane %v6292_v47, 4  ;;  %v6301_v53 = vshll.u32 %v13374_v17, 16 }
 0x3f9   : > { %v5235_v58 = vpack.c.b16 %v5197_v34, %v5197_v34  ;;  %v5086_v45 = vadd.f32 %v15030_v33, %v5070_v30  ;;  %v5943_v34 = vor.u32 %v5941_v46, %v15091_v13  ;;  %v13518_v46 = vld [vmem:[#allocation4 + $0x138] sm:$0xff] }
 0x3fa   : > { %v5783_v11 = vpop.f32.mrf.mxu3  ;;  %5567 = vmatmul.bf16.gmra.mxu2 %v5450_v31  ;;  %v6800_v52 = vrot.slane %v6798_v27, 1  ;;  %v6805_v31 = vrot.slane %v6803_v4, 1  ;;  %v15135_v27 = vld [vmem:[#allocation3 + $0x28] sm:$0xff] }
 0x3fb   : > { %5309 = vst [vmem:[#allocation3 + $0x90] sm:$0xf] %v5235_v58  ;;  %v5102_v61 = vmax.f32 %v5086_v45, 0.0  ;;  %v5948_v62 = vsel %vm1064_vm1, %v5943_v34, %v5947_v48  ;;  %v6796_v11 = vshrl.u32 %v11599_v51, 16 }
 0x3fc   : > { %v5015_v0 = vpop.f32.mrf.mxu1  ;;  %v4739_v19 = vpop.f32.mrf.mxu0 }
 0x3fd   : > { %v5134_v7 = vpack.c.bf16 %v5102_v61, %v5102_v61  ;;  %v5533_v43 = vpop.f32.mrf.mxu2  ;;  %v4778_v44 = vadd.f32 %v4739_v19, %v14957_v54  ;;  %v6291_v54 = vrot.slane %v6289_v16, 3  ;;  %v11633_v61 = vld [vmem:[#allocation4 + $0x1f0] sm:$0xff]  ;;  %v15124_v0 = vld [vmem:[#allocation3 + $0x24] sm:$0xff] }
 0x3fe   : > { %7480 = vmatpush.bf16.msra.mxu1 %v11633_v61 }
 0x3ff   : > { %v5198_v59 = vunpack.c.l.b16 %v5134_v7  ;;  %6455 = vmatmul.bf16.vlgmr.msrb.gmra.mxu1 %v6287_v42  ;;  %5819 = vmatmul.bf16.gmra.mxu3 %v5702_v26  ;;  %v15122_v45 = vor.u32 %v6294_v57, %v6291_v54  ;;  %v12573_v7 = vld [vmem:[#allocation3 + $0x18] sm:$0xff]   ;;  %v6801_v42 = vor.u32 %v6800_v52, %v6796_v11 }
 0x401   : > { %v5236_v49 = vpack.c.b16 %v5198_v59, %v5198_v59 }
 0x402   : > { %v5785_v40 = vpop.f32.mrf.mxu3 }
 0x403   : > { %5310 = vst [vmem:[#allocation3 + $0x94] sm:$0xf] %v5236_v49  ;;  %v15114_v35 = vadd.f32 %v5785_v40, %v5533_v43  ;;  %v6806_v43 = vsel %vm1064_vm1, %v6801_v42, %v6805_v31  ;;  %v15144_v42 = vld [vmem:[#allocation3 + $0x2c] sm:$0xff] }
 0x404   : > { %v5016_v63 = vpop.f32.mrf.mxu1  ;;  %v4742_v55 = vpop.f32.mrf.mxu0 }
 0x405   : > { %v5055_v10 = vadd.f32 %v5016_v63, %v4778_v44  ;;  %v5535_v56 = vpop.f32.mrf.mxu2  ;;  %v4779_v58 = vadd.f32 %v4742_v55, %v14964_v8  ;;  %v6296_v8 = vsel %vm721_vm0, %v15100_v25, %v15122_v45  ;;  %v5953_v44 = vshll.u32 %v15124_v0, 16 }
 0x406   : > { %v6298_v63 = vshrl.u32 %v13374_v17, 16 }
 0x407   : > { %v5071_v30 = vmul.f32 %v15020_v5, %v5055_v10  ;;  %6102 = vmatmul.bf16.gmra.mxu0 %v5948_v62  ;;  %v5949_v10 = vshrl.u32 %v15103_v15, 16  ;;  %v5955_v55 = vrot.slane %v5953_v44, 1  ;;  %v13520_v15 = vld [vmem:[#allocation4 + $0x128] sm:$0xff]  ;;  %v5961_v44 = vshll.u32 %v15144_v42, 16 }
 0x408   : > { %v6300_v62 = vrot.slane %v6298_v63, 3 }
 0x409   : > { %v5087_v3 = vadd.f32 %v15030_v33, %v5071_v30  ;;  %v5951_v4 = vor.u32 %v5949_v10, %v5947_v48  ;;  %v13519_v30 = vld [vmem:[#allocation4 + $0x130] sm:$0xff]  ;;  %v6807_v48 = vshrl.u32 %v15111_v9, 16  ;;  %v5963_v10 = vrot.slane %v5961_v44, 1 }
 0x40a   : > { %v5787_v13 = vpop.f32.mrf.mxu3  ;;  %6621 = vmatmul.bf16.vlgmr.msrb.gmra.mxu2 %v12573_v7 }
 0x40b   : > { %v5103_v18 = vmax.f32 %v5087_v3, 0.0  ;;  %v15126_v32 = vadd.f32 %v5787_v13, %v5535_v56  ;;  %v6303_v56 = vrot.slane %v6301_v53, 4  ;;  %v6811_v3 = vshll.u32 %v15135_v27, 16 }
 0x40c   : > { %v5019_v19 = vpop.f32.mrf.mxu1  ;;  %v4744_v59 = vpop.f32.mrf.mxu0 }
 0x40d   : > { %v5135_v36 = vpack.c.bf16 %v5103_v18, %v5103_v18  ;;  %v5056_v26 = vadd.f32 %v5019_v19, %v4779_v58  ;;  %v5538_v16 = vpop.f32.mrf.mxu2  ;;  %v5956_v58 = vsel %vm1064_vm1, %v5951_v4, %v5955_v55  ;;  %v15141_v61 = vor.u32 %v6303_v56, %v6300_v62 }
 0x40e   : > { %v6813_v19 = vrot.slane %v6811_v3, 1 }
 0x40f   : > { %v5199_v49 = vunpack.c.l.b16 %v5135_v36  ;;  %v5072_v51 = vmul.f32 %v15020_v5, %v5056_v26  ;;  %6460 = vmatmul.bf16.gmra.mxu1 %v6296_v8  ;;  %6963 = vmatmul.bf16.vlgmr.msrb.gmra.mxu3 %v6806_v43  ;;  %v12574_v26 = vld [vmem:[#allocation3 + $0x20] sm:$0xff]   ;;  %v6809_v8 = vor.u32 %v6807_v48, %v6805_v31  ;;  %v11624_v31 = vld [vmem:[#allocation4 + $0x1a8] sm:$0xff] }
 0x410   : > { %8904 = vmatpush.bf16.msrb.mxu3 %v13518_v46  ;;  %7315 = vmatpush.bf16.msra.mxu0 %v11624_v31 }
 0x411   : > { %v5237_v47 = vpack.c.b16 %v5199_v49, %v5199_v49  ;;  %v5088_v40 = vadd.f32 %v15030_v33, %v5072_v51  ;;  %v13376_v49 = vld [vmem:[#allocation3 + $0x34] sm:$0xff]   ;;  %v6814_v9 = vsel %vm1064_vm1, %v6809_v8, %v6813_v19 }
 0x412   : > { %v5790_v37 = vpop.f32.mrf.mxu3  ;;  %v6307_v46 = vshrl.u32 %v13376_v49, 16 }
 0x413   : > { %5312 = vst [vmem:[#allocation3 + $0x9c] sm:$0xf] %v5237_v47  ;;  %v5104_v25 = vmax.f32 %v5088_v40, 0.0  ;;  %v11652_v47 = vld [vmem:[#allocation4 + $0x228] sm:$0xff] }
 0x414   : > { %v5021_v34 = vpop.f32.mrf.mxu1  ;;  %v4746_v57 = vpop.f32.mrf.mxu0  ;;  %8905 = vmatpush.bf16.msrb.mxu3 %v13519_v30  ;;  %7823 = vmatpush.bf16.msra.mxu2 %v11652_v47  ;;  %v15158_v37 = vld [vmem:[#allocation3 + $0x30] sm:$0xff] }
 0x415   : > { %v5136_v54 = vpack.c.bf16 %v5104_v25, %v5104_v25  ;;  %v5539_v13 = vpop.f32.mrf.mxu2  ;;  %v4780_v18 = vadd.f32 %v4746_v57, %v14970_v38  ;;  %v6305_v38 = vsel %vm721_vm0, %v15122_v45, %v15141_v61  ;;  %v6310_v45 = vshll.u32 %v13376_v49, 16  ;;  %v11632_v34 = vld [vmem:[#allocation4 + $0x1e8] sm:$0xff]  ;;  %v13378_v49 = vld [vmem:[#allocation3 + $0x3c] sm:$0xff]  }
 0x416   : > { %v5957_v25 = vshrl.u32 %v15124_v0, 16  ;;  %7481 = vmatpush.bf16.msra.mxu1 %v11632_v34  ;;  %v6819_v3 = vshll.u32 %v15158_v37, 16  ;;  %v6316_v47 = vshrl.u32 %v13378_v49, 16  ;;  %v6319_v31 = vshll.u32 %v13378_v49, 16 }
 0x417   : > { %v5200_v52 = vunpack.c.l.b16 %v5136_v54  ;;  %6106 = vmatmul.bf16.gmra.mxu0 %v5956_v58  ;;  %v6312_v56 = vrot.slane %v6310_v45, 4 }
 0x418   : > { %8906 = vmatpush.bf16.msrb.mxu3 %v13520_v15  ;;  %v5959_v62 = vor.u32 %v5957_v25, %v5955_v55 }
 0x419   : > { %v5238_v11 = vpack.c.b16 %v5200_v52, %v5200_v52 }
 0x41a   : > { %v5791_v7 = vpop.f32.mrf.mxu3  ;;  %6626 = vmatmul.bf16.gmra.mxu2 %v12574_v26  ;;  %v5964_v0 = vsel %vm1064_vm1, %v5959_v62, %v5963_v10  ;;  %v15172_v26 = vld [vmem:[#allocation3 + $0x34] sm:$0xff] }
 0x41b   : > { %5313 = vst [vmem:[#allocation3 + $0xa0] sm:$0xf] %v5238_v11  ;;  %v15146_v36 = vadd.f32 %v5791_v7, %v5539_v13  ;;  %v6821_v7 = vrot.slane %v6819_v3, 1 }
 0x41c   : > { %v5023_v59 = vpop.f32.mrf.mxu1  ;;  %v4748_v43 = vpop.f32.mrf.mxu0  ;;  %8907 = vmatpush.bf16.msrb.mxu3 %v14973_v1 }
 0x41d   : > { %v5057_v17 = vadd.f32 %v5023_v59, %v4780_v18  ;;  %v5542_v16 = vpop.f32.mrf.mxu2  ;;  %v4781_v1 = vadd.f32 %v4748_v43, %v14977_v12  ;;  %v12575_v59 = vld [vmem:[#allocation3 + $0x28] sm:$0xff]  }
 0x41f   : > { %v5073_v51 = vmul.f32 %v15020_v5, %v5057_v17  ;;  %6464 = vmatmul.bf16.gmra.mxu1 %v6305_v38  ;;  %6968 = vmatmul.bf16.gmra.mxu3 %v6814_v9 }
 0x420   : > { %8908 = vmatpush.bf16.msrb.mxu3 %v14989_v2  ;;  %v6309_v2 = vrot.slane %v6307_v46, 3 }
 0x421   : > { %v5089_v40 = vadd.f32 %v15030_v33, %v5073_v51  ;;  %v5969_v51 = vshll.u32 %v15172_v26, 16 }
 0x422   : > { %v5794_v63 = vpop.f32.mrf.mxu3  ;;  %v15169_v55 = vor.u32 %v6312_v56, %v6309_v2 }
 0x423   : > { %v5105_v53 = vmax.f32 %v5089_v40, 0.0  ;;  %v15161_v54 = vadd.f32 %v5794_v63, %v5542_v16  ;;  %v11651_v63 = vld [vmem:[#allocation4 + $0x220] sm:$0xff] }
 0x424   : > { %v5025_v57 = vpop.f32.mrf.mxu1  ;;  %v4751_v12 = vpop.f32.mrf.mxu0  ;;  %8909 = vmatpush.bf16.msrb.mxu3 %v15001_v6  ;;  %v6815_v6 = vshrl.u32 %v15135_v27, 16  ;;  %7824 = vmatpush.bf16.msra.mxu2 %v11651_v63 }
 0x425   : > { %v5137_v4 = vpack.c.bf16 %v5105_v53, %v5105_v53  ;;  %v5058_v30 = vadd.f32 %v5025_v57, %v4781_v1  ;;  %v5544_v13 = vpop.f32.mrf.mxu2  ;;  %v5971_v1 = vrot.slane %v5969_v51, 1  ;;  %v15186_v53 = vld [vmem:[#allocation4 + $0x1a0] sm:$0xff] }
 0x426   : > { %v6817_v17 = vor.u32 %v6815_v6, %v6813_v19  ;;  %7316 = vmatpush.bf16.msra.mxu0 %v15186_v53  ;;  %v15195_v13 = vld [vmem:[#allocation4 + $0x1e0] sm:$0xff] }
 0x427   : > { %v5201_v52 = vunpack.c.l.b16 %v5137_v4  ;;  %v5074_v58 = vmul.f32 %v15020_v5, %v5058_v30  ;;  %6110 = vmatmul.bf16.gmra.mxu0 %v5964_v0  ;;  %v6318_v4 = vrot.slane %v6316_v47, 3  ;;  %7482 = vmatpush.bf16.msra.mxu1 %v15195_v13  ;;  %v5973_v47 = vshrl.u32 %v15172_v26, 16 }
 0x428   : > { %8910 = vmatpush.bf16.msrb.mxu3 %v15025_v20  ;;  %v6314_v20 = vsel %vm721_vm0, %v15141_v61, %v15169_v55  ;;  %v6822_v9 = vsel %vm1064_vm1, %v6817_v17, %v6821_v7  ;;  %v5965_v61 = vshrl.u32 %v15144_v42, 16 }
 0x429   : > { %v5239_v11 = vpack.c.b16 %v5201_v52, %v5201_v52  ;;  %v5090_v18 = vadd.f32 %v15030_v33, %v5074_v58  ;;  %v5975_v63 = vor.u32 %v5973_v47, %v5971_v1 }
 0x42a   : > { %v5796_v15 = vpop.f32.mrf.mxu3  ;;  %6630 = vmatmul.bf16.gmra.mxu2 %v12575_v59  ;;  %v5967_v57 = vor.u32 %v5965_v61, %v5963_v10  ;;  %v6823_v10 = vshrl.u32 %v15158_v37, 16  ;;  %v13380_v37 = vld [vmem:[#allocation3 + $0x44] sm:$0xff]  }
 0x42b   : > { %5315 = vst [vmem:[#allocation3 + $0xa8] sm:$0xf] %v5239_v11  ;;  %v5106_v48 = vmax.f32 %v5090_v18, 0.0  ;;  %v15197_v11 = vld [vmem:[#allocation3 + $0x3c] sm:$0xff]  ;;  %v12576_v15 = vld [vmem:[#allocation3 + $0x30] sm:$0xff]   ;;  %v6325_v51 = vshrl.u32 %v13380_v37, 16 }
 0x42c   : > { %v5028_v8 = vpop.f32.mrf.mxu1  ;;  %v4752_v38 = vpop.f32.mrf.mxu0  ;;  %8911 = vmatpush.bf16.msrb.mxu3 %v15050_v24  ;;  %v15181_v24 = vld [vmem:[#allocation3 + $0x38] sm:$0xff]  ;;  %v5972_v42 = vsel %vm1064_vm1, %v5967_v57, %v5971_v1  ;;  %v5977_v49 = vshll.u32 %v15197_v11, 16  ;;  %v15217_v1 = vld [vmem:[#allocation3 + $0x44] sm:$0xff] }
 0x42d   : > { %v5138_v43 = vpack.c.bf16 %v5106_v48, %v5106_v48  ;;  %v5546_v44 = vpop.f32.mrf.mxu2  ;;  %v4782_v19 = vadd.f32 %v4752_v38, %v14982_v50  ;;  %v6321_v50 = vrot.slane %v6319_v31, 4  ;;  %v6827_v30 = vshll.u32 %v15181_v24, 16 }
 0x42e   : > { %v6825_v48 = vor.u32 %v6823_v10, %v6821_v7  ;;  %v5979_v31 = vrot.slane %v5977_v49, 1  ;;  %v12577_v10 = vld [vmem:[#allocation3 + $0x38] sm:$0xff]  }
 0x42f   : > { %v5202_v27 = vunpack.c.l.b16 %v5138_v43  ;;  %6468 = vmatmul.bf16.gmra.mxu1 %v6314_v20  ;;  %6972 = vmatmul.bf16.gmra.mxu3 %v6822_v9  ;;  %v6322_v52 = vor.u32 %v6321_v50, %v6318_v4  ;;  %v6829_v58 = vrot.slane %v6827_v30, 1 }
 0x430   : > { %v5980_v50 = vsel %vm1064_vm1, %v5975_v63, %v5979_v31 }
 0x431   : > { %v5240_v16 = vpack.c.b16 %v5202_v27, %v5202_v27  ;;  %v6830_v43 = vsel %vm1064_vm1, %v6825_v48, %v6829_v58 }
 0x432   : > { %v5798_v40 = vpop.f32.mrf.mxu3 }
 0x433   : > { %5316 = vst [vmem:[#allocation3 + $0xac] sm:$0xf] %v5240_v16  ;;  %v15184_v46 = vadd.f32 %v5798_v40, %v5546_v44  ;;  %v6328_v44 = vshll.u32 %v13380_v37, 16  ;;  %v15226_v37 = vld [vmem:[#allocation4 + $0x218] sm:$0xff] }
 0x434   : > { %v5029_v45 = vpop.f32.mrf.mxu1  ;;  %v4755_v34 = vpop.f32.mrf.mxu0  ;;  %7825 = vmatpush.bf16.msra.mxu2 %v15226_v37 }
 0x435   : > { %v5059_v25 = vadd.f32 %v5029_v45, %v4782_v19  ;;  %v5548_v62 = vpop.f32.mrf.mxu2  ;;  %v4783_v56 = vadd.f32 %v4755_v34, %v14992_v28  ;;  %v6323_v28 = vsel %vm721_vm0, %v15169_v55, %v6322_v52  ;;  %v15208_v55 = vld [vmem:[#allocation3 + $0x40] sm:$0xff]  ;;  %v6330_v34 = vrot.slane %v6328_v44, 4 }
 0x436   : > { %v6835_v4 = vshll.u32 %v15208_v55, 16  ;;  %v15237_v44 = vld [vmem:[#allocation4 + $0x1d8] sm:$0xff] }
 0x437   : > { %v5075_v12 = vmul.f32 %v15020_v5, %v5059_v25  ;;  %6115 = vmatmul.bf16.gmra.mxu0 %v5972_v42  ;;  %v6327_v25 = vrot.slane %v6325_v51, 3  ;;  %7483 = vmatpush.bf16.msra.mxu1 %v15237_v44 }
 0x439   : > { %v5091_v2 = vadd.f32 %v15030_v33, %v5075_v12 }
 0x43a   : > { %v5800_v3 = vpop.f32.mrf.mxu3  ;;  %6634 = vmatmul.bf16.gmra.mxu2 %v12576_v15 }
 0x43b   : > { %v5107_v0 = vmax.f32 %v5091_v2, 0.0  ;;  %v15199_v18 = vadd.f32 %v5800_v3, %v5548_v62  ;;  %v15214_v62 = vor.u32 %v6330_v34, %v6327_v25  ;;  %v6831_v2 = vshrl.u32 %v15181_v24, 16 }
 0x43c   : > { %v5032_v6 = vpop.f32.mrf.mxu1  ;;  %v4757_v17 = vpop.f32.mrf.mxu0  ;;  %v5985_v24 = vshll.u32 %v15217_v1, 16 }
 0x43d   : > { %v5139_v59 = vpack.c.bf16 %v5107_v0, %v5107_v0  ;;  %v5060_v8 = vadd.f32 %v5032_v6, %v4783_v56  ;;  %v5551_v9 = vpop.f32.mrf.mxu2  ;;  %v6837_v56 = vrot.slane %v6835_v4, 1  ;;  %v6833_v15 = vor.u32 %v6831_v2, %v6829_v58 }
 0x43e   : > { %v5987_v51 = vrot.slane %v5985_v24, 1 }
 0x43f   : > { %v5203_v38 = vunpack.c.l.b16 %v5139_v59  ;;  %v5076_v20 = vmul.f32 %v15020_v5, %v5060_v8  ;;  %6473 = vmatmul.bf16.gmra.mxu1 %v6323_v28  ;;  %6976 = vmatmul.bf16.gmra.mxu3 %v6830_v43  ;;  %v13382_v59 = vld [vmem:[#allocation3 + $0x4c] sm:$0xff]   ;;  %v6838_v8 = vsel %vm1064_vm1, %v6833_v15, %v6837_v56  ;;  %v15228_v43 = vld [vmem:[#allocation4 + $0x198] sm:$0xff] }
 0x440   : > { %7317 = vmatpush.bf16.msra.mxu0 %v15228_v43 }
 0x441   : > { %v5241_v7 = vpack.c.b16 %v5203_v38, %v5203_v38  ;;  %v5092_v27 = vadd.f32 %v15030_v33, %v5076_v20  ;;  %v6334_v20 = vshrl.u32 %v13382_v59, 16 }
 0x442   : > { %v5803_v16 = vpop.f32.mrf.mxu3 }
 0x443   : > { %5318 = vst [vmem:[#allocation3 + $0xb4] sm:$0xf] %v5241_v7  ;;  %v5108_v19 = vmax.f32 %v5092_v27, 0.0  ;;  %v15234_v7 = vld [vmem:[#allocation3 + $0x48] sm:$0xff]  ;;  %v5981_v27 = vshrl.u32 %v15197_v11, 16 }
 0x444   : > { %v5034_v40 = vpop.f32.mrf.mxu1  ;;  %v4759_v45 = vpop.f32.mrf.mxu0  ;;  %v6843_v34 = vshll.u32 %v15234_v7, 16 }
 0x445   : > { %v5140_v61 = vpack.c.bf16 %v5108_v19, %v5108_v19  ;;  %v5552_v30 = vpop.f32.mrf.mxu2  ;;  %v4784_v42 = vadd.f32 %v4759_v45, %v14998_v22  ;;  %v6332_v22 = vsel %vm721_vm0, %v6322_v52, %v15214_v62  ;;  %v6337_v52 = vshll.u32 %v13382_v59, 16 }
 0x446   : > { %v6336_v45 = vrot.slane %v6334_v20, 3  ;;  %v15260_v20 = vld [vmem:[#allocation3 + $0x50] sm:$0xff] }
 0x447   : > { %v5204_v57 = vunpack.c.l.b16 %v5140_v61  ;;  %6119 = vmatmul.bf16.gmra.mxu0 %v5980_v50  ;;  %v5983_v61 = vor.u32 %v5981_v27, %v5979_v31  ;;  %v6339_v63 = vrot.slane %v6337_v52, 4  ;;  %v6839_v31 = vshrl.u32 %v15208_v55, 16  ;;  %v15265_v27 = vld [vmem:[#allocation4 + $0x210] sm:$0xff] }
 0x448   : > { %7826 = vmatpush.bf16.msra.mxu2 %v15265_v27 }
 0x449   : > { %v5242_v12 = vpack.c.b16 %v5204_v57, %v5204_v57  ;;  %v5988_v11 = vsel %vm1064_vm1, %v5983_v61, %v5987_v51  ;;  %v6841_v15 = vor.u32 %v6839_v31, %v6837_v56 }
 0x44a   : > { %v5804_v26 = vpop.f32.mrf.mxu3  ;;  %6639 = vmatmul.bf16.gmra.mxu2 %v12577_v10  ;;  %v15249_v10 = vld [vmem:[#allocation3 + $0x4c] sm:$0xff] }
 0x44b   : > { %5319 = vst [vmem:[#allocation3 + $0xb8] sm:$0xf] %v5242_v12  ;;  %v15219_v3 = vadd.f32 %v5804_v26, %v5552_v30  ;;  %v15246_v12 = vor.u32 %v6339_v63, %v6336_v45  ;;  %v6845_v26 = vrot.slane %v6843_v34, 1  ;;  %v6851_v45 = vshll.u32 %v15260_v20, 16 }
 0x44c   : > { %v5036_v0 = vpop.f32.mrf.mxu1  ;;  %v4761_v48 = vpop.f32.mrf.mxu0 }
 0x44d   : > { %v5061_v6 = vadd.f32 %v5036_v0, %v4784_v42  ;;  %v5555_v28 = vpop.f32.mrf.mxu2  ;;  %v4785_v38 = vadd.f32 %v4761_v48, %v15005_v21  ;;  %v15251_v0 = vld [vmem:[#allocation3 + $0x40] sm:$0xff]   ;;  %v6846_v59 = vsel %vm1064_vm1, %v6841_v15, %v6845_v26 }
 0x44f   : > { %v5077_v17 = vmul.f32 %v15020_v5, %v5061_v6  ;;  %6477 = vmatmul.bf16.gmra.mxu1 %v6332_v22  ;;  %6981 = vmatmul.bf16.gmra.mxu3 %v6838_v8  ;;  %v13384_v22 = vld [vmem:[#allocation3 + $0x54] sm:$0xff]   ;;  %v5993_v8 = vshll.u32 %v15249_v10, 16 }
 0x450   : > { %v6346_v56 = vshll.u32 %v13384_v22, 16 }
 0x451   : > { %v5093_v58 = vadd.f32 %v15030_v33, %v5077_v17  ;;  %v5995_v52 = vrot.slane %v5993_v8, 1 }
 0x452   : > { %v5807_v49 = vpop.f32.mrf.mxu3  ;;  %v6348_v61 = vrot.slane %v6346_v56, 4 }
 0x453   : > { %v5109_v9 = vmax.f32 %v5093_v58, 0.0  ;;  %v15239_v16 = vadd.f32 %v5807_v49, %v5555_v28  ;;  %v6343_v58 = vshrl.u32 %v13384_v22, 16 }
 0x454   : > { %v5038_v19 = vpop.f32.mrf.mxu1  ;;  %v4764_v40 = vpop.f32.mrf.mxu0 }
 0x455   : > { %v5141_v47 = vpack.c.bf16 %v5109_v9, %v5109_v9  ;;  %v5062_v21 = vadd.f32 %v5038_v19, %v4785_v38  ;;  %v5557_v4 = vpop.f32.mrf.mxu2  ;;  %v15267_v19 = vld [vmem:[#allocation4 + $0x190] sm:$0xff] }
 0x456   : > { %7318 = vmatpush.bf16.msra.mxu0 %v15267_v19 }
 0x457   : > { %v5205_v25 = vunpack.c.l.b16 %v5141_v47  ;;  %v5078_v57 = vmul.f32 %v15020_v5, %v5062_v21  ;;  %6123 = vmatmul.bf16.gmra.mxu0 %v5988_v11 }
 0x459   : > { %v5243_v50 = vpack.c.b16 %v5205_v25, %v5205_v25  ;;  %v5094_v30 = vadd.f32 %v15030_v33, %v5078_v57  ;;  %v6341_v33 = vsel %vm721_vm0, %v15214_v62, %v15246_v12  ;;  %v5989_v62 = vshrl.u32 %v15217_v1, 16  ;;  %v13521_v1 = vld [vmem:[%s16031_s2] ss:$0 sm:$0xff] }
 0x45a   : > { %v5809_v42 = vpop.f32.mrf.mxu3  ;;  %6643 = vmatmul.bf16.gmra.mxu2 %v15251_v0 }
 0x45b   : > { %5321 = vst [vmem:[#allocation3 + $0xc0] sm:$0xf] %v5243_v50  ;;  %v5110_v2 = vmax.f32 %v5094_v30, 0.0  ;;  %v5991_v40 = vor.u32 %v5989_v62, %v5987_v51  ;;  %v13522_v51 = vld [vmem:[%s16031_s2 + $0x1] ss:$0 sm:$0xff]  ;;  %v6847_v30 = vshrl.u32 %v15234_v7, 16 }
 0x45c   : > { %v5041_v5 = vpop.f32.mrf.mxu1  ;;  %v4765_v48 = vpop.f32.mrf.mxu0  ;;  %v6853_v42 = vrot.slane %v6851_v45, 1 }
 0x45d   : > { %v5142_v6 = vpack.c.bf16 %v5110_v2, %v5110_v2  ;;  %v5559_v17 = vpop.f32.mrf.mxu2  ;;  %v4786_v28 = vadd.f32 %v4765_v48, %v15013_v23  ;;  %v6345_v23 = vrot.slane %v6343_v58, 3  ;;  %v5996_v25 = vsel %vm1064_vm1, %v5991_v40, %v5995_v52  ;;  %v15281_v2 = vld [vmem:[#allocation4 + $0x1d0] sm:$0xff] }
 0x45e   : > { %v15283_v5 = vld [vmem:[#allocation3 + $0x54] sm:$0xff]  ;;  %7484 = vmatpush.bf16.msra.mxu1 %v15281_v2 }
 0x45f   : > { %v5206_v55 = vunpack.c.l.b16 %v5142_v6  ;;  %6481 = vmatmul.bf16.gmra.mxu1 %v6341_v33  ;;  %6985 = vmatmul.bf16.gmra.mxu3 %v6846_v59  ;;  %v6349_v4 = vor.u32 %v6348_v61, %v6345_v23  ;;  %v15287_v6 = vld [vmem:[#allocation3 + $0x48] sm:$0xff]   ;;  %v6849_v33 = vor.u32 %v6847_v30, %v6845_v26 }
 0x461   : > { %v5244_v24 = vpack.c.b16 %v5206_v55, %v5206_v55  ;;  %v6350_v7 = vsel %vm721_vm0, %v15246_v12, %v6349_v4  ;;  %v13386_v55 = vld [vmem:[#allocation3 + $0x5c] sm:$0xff]   ;;  %v6854_v8 = vsel %vm1064_vm1, %v6849_v33, %v6853_v42  ;;  %v5997_v12 = vshrl.u32 %v15249_v10, 16 }
 0x462   : > { %v5811_v38 = vpop.f32.mrf.mxu3  ;;  %v6355_v62 = vshll.u32 %v13386_v55, 16  ;;  %v6855_v10 = vshrl.u32 %v15260_v20, 16 }
 0x463   : > { %5322 = vst [vmem:[#allocation3 + $0xc4] sm:$0xf] %v5244_v24  ;;  %v15263_v49 = vadd.f32 %v5811_v38, %v5559_v17  ;;  %v6352_v38 = vshrl.u32 %v13386_v55, 16 }
 0x464   : > { %v5042_v9 = vpop.f32.mrf.mxu1  ;;  %v4768_v21 = vpop.f32.mrf.mxu0 }
 0x465   : > { %v5063_v47 = vadd.f32 %v5042_v9, %v4786_v28  ;;  %v5561_v34 = vpop.f32.mrf.mxu2  ;;  %v4787_v11 = vadd.f32 %v4768_v21, %v15035_v39  ;;  %v6001_v28 = vshll.u32 %v15283_v5, 16  ;;  %v15295_v21 = vld [vmem:[#allocation3 + $0x58] sm:$0xff] }
 0x467   : > { %v5079_v63 = vmul.f32 %v13521_v1, %v5063_v47  ;;  %6128 = vmatmul.bf16.gmra.mxu0 %v5996_v25  ;;  %v6003_v40 = vrot.slane %v6001_v28, 1  ;;  %v6354_v25 = vrot.slane %v6352_v38, 3 }
 0x469   : > { %v5095_v57 = vadd.f32 %v13522_v51, %v5079_v63 }
 0x46a   : > { %v5813_v50 = vpop.f32.mrf.mxu3  ;;  %6647 = vmatmul.bf16.gmra.mxu2 %v15287_v6 }
 0x46b   : > { %v5111_v31 = vmax.f32 %v5095_v57, 0.0  ;;  %v15285_v15 = vadd.f32 %v5813_v50, %v5561_v34  ;;  %v6357_v34 = vrot.slane %v6355_v62, 4  ;;  %v6005_v62 = vshrl.u32 %v15283_v5, 16 }
 0x46c   : > { %v5045_v48 = vpop.f32.mrf.mxu1  ;;  %v4770_v59 = vpop.f32.mrf.mxu0 }
 0x46d   : > { %v5143_v22 = vpack.c.bf16 %v5111_v31, %v5111_v31  ;;  %v5064_v39 = vadd.f32 %v5045_v48, %v4787_v11  ;;  %v5564_v58 = vpop.f32.mrf.mxu2  ;;  %v6358_v31 = vor.u32 %v6357_v34, %v6354_v25  ;;  %v6857_v59 = vor.u32 %v6855_v10, %v6853_v42  ;;  %v15334_v10 = vld [vmem:[#allocation3 + $0x58] sm:$0xff]  }
 0x46f   : > { %v5207_v17 = vunpack.c.l.b16 %v5143_v22  ;;  %v5080_v24 = vmul.f32 %v13521_v1, %v5064_v39  ;;  %6486 = vmatmul.bf16.gmra.mxu1 %v6350_v7  ;;  %6989 = vmatmul.bf16.gmra.mxu3 %v6854_v8  ;;  %v5999_v1 = vor.u32 %v5997_v12, %v5995_v52  ;;  %v15302_v22 = vld [vmem:[#allocation3 + $0x5c] sm:$0xff]  ;;  %v6359_v8 = vsel %vm721_vm0, %v6349_v4, %v6358_v31 }
 0x470   : > { %v6009_v28 = vshll.u32 %v15302_v22, 16 }
 0x471   : > { %v5245_v56 = vpack.c.b16 %v5207_v17, %v5207_v17  ;;  %v5096_v26 = vadd.f32 %v13522_v51, %v5080_v24  ;;  %v6859_v51 = vshll.u32 %v15295_v21, 16  ;;  %v6004_v11 = vsel %vm1064_vm1, %v5999_v1, %v6003_v40  ;;  %v13388_v24 = vld [vmem:[#allocation3 + $0x64] sm:$0xff]  }
 0x472   : > { %v5816_v9 = vpop.f32.mrf.mxu3  ;;  %v6361_v38 = vshrl.u32 %v13388_v24, 16  ;;  %v6364_v42 = vshll.u32 %v13388_v24, 16  ;;  %v6007_v1 = vor.u32 %v6005_v62, %v6003_v40 }
 0x473   : > { %5324 = vst [vmem:[#allocation3 + $0xcc] sm:$0xf] %v5245_v56  ;;  %v5112_v47 = vmax.f32 %v5096_v26, 0.0  ;;  %v6861_v33 = vrot.slane %v6859_v51, 1  ;;  %v15313_v56 = vld [vmem:[#allocation4 + $0x208] sm:$0xff]  ;;  %v6011_v9 = vrot.slane %v6009_v28, 1 }
 0x474   : > { %v5047_v23 = vpop.f32.mrf.mxu1  ;;  %v6098_v45 = vpop.f32.mrf.mxu0  ;;  %v15315_v26 = vld [vmem:[#allocation4 + $0x188] sm:$0xff]  ;;  %7827 = vmatpush.bf16.msra.mxu2 %v15313_v56  ;;  %v6366_v25 = vrot.slane %v6364_v42, 4 }
 0x475   : > { %v5144_v61 = vpack.c.bf16 %v5112_v47, %v5112_v47  ;;  %v6150_v63 = vadd.f32 %v6098_v45, %v15046_v29  ;;  %v5565_v50 = vpop.f32.mrf.mxu2  ;;  %v15306_v29 = vld [vmem:[#allocation3 + $0x50] sm:$0xff]   ;;  %v6862_v20 = vsel %vm1064_vm1, %v6857_v59, %v6861_v33  ;;  %7319 = vmatpush.bf16.msra.mxu0 %v15315_v26 }
 0x476   : > { %v15322_v47 = vld [vmem:[#allocation4 + $0x1c8] sm:$0xff] }
 0x477   : > { %v5208_v57 = vunpack.c.l.b16 %v5144_v61  ;;  %6132 = vmatmul.bf16.gmra.mxu0 %v6004_v11  ;;  %7485 = vmatpush.bf16.msra.mxu1 %v15322_v47 }
 0x479   : > { %v5246_v30 = vpack.c.b16 %v5208_v57, %v5208_v57  ;;  %v6012_v57 = vsel %vm1064_vm1, %v6007_v1, %v6011_v9  ;;  %v5848_v1 = vld [vmem:[#allocation3 + $0x6c] sm:$0x1] }
 0x47a   : > { %v5817_v48 = vpop.f32.mrf.mxu3  ;;  %6652 = vmatmul.bf16.gmra.mxu2 %v15306_v29 }
 0x47b   : > { %5325 = vst [vmem:[#allocation3 + $0xd0] sm:$0xf] %v5246_v30  ;;  %v15304_v52 = vadd.f32 %v5817_v48, %v5565_v50  ;;  %v6863_v50 = vshrl.u32 %v15295_v21, 16  ;;  %v15332_v48 = vld [vmem:[#allocation3 + $0x64] sm:$0xff] }
 0x47c   : > { %v6456_v39 = vpop.f32.mrf.mxu1  ;;  %v6100_v55 = vpop.f32.mrf.mxu0  ;;  %v6017_v21 = vshll.u32 %v15332_v48, 16 }
 0x47d   : > { %v6508_v7 = vadd.f32 %v6456_v39, %v6150_v63  ;;  %v6151_v17 = vadd.f32 %v6100_v55, %v15058_v60  ;;  %v5568_v58 = vpop.f32.mrf.mxu2  ;;  %v15319_v60 = vld [vmem:[#allocation3 + $0x60] sm:$0xff]  ;;  %v6363_v63 = vrot.slane %v6361_v38, 3  ;;  %v6865_v39 = vor.u32 %v6863_v50, %v6861_v33 }
 0x47e   : > { %v6867_v34 = vshll.u32 %v15319_v60, 16  ;;  %v6013_v33 = vshrl.u32 %v15302_v22, 16  ;;  %v15345_v62 = vrot.slane %v6017_v21, 1  ;;  %v5915_v50 = vunpack.c.l.b16 %v5848_v1 }
 0x47f   : > { %6490 = vmatmul.bf16.gmra.mxu1 %v6359_v8  ;;  %6994 = vmatmul.bf16.gmra.mxu3 %v6862_v20  ;;  %v15329_v5 = vor.u32 %v6366_v25, %v6363_v63 }
 0x480   : > { %v6869_v30 = vrot.slane %v6867_v34, 1  ;;  %v6015_v25 = vor.u32 %v6013_v33, %v6011_v9  ;;  %v15373_v33 = vld [vmem:[#allocation3 + $0x60] sm:$0xff]  }
 0x481   : > { %v6368_v55 = vsel %vm721_vm0, %v6358_v31, %v15329_v5 }
 0x482   : > { %v5820_v4 = vpop.f32.mrf.mxu3  ;;  %v6870_v24 = vsel %vm1064_vm1, %v6865_v39, %v6869_v30  ;;  %v13523_v39 = vld [vmem:[#allocation4 + $0xf8] sm:$0xff] }
 0x483   : > { %v15324_v12 = vadd.f32 %v5820_v4, %v5568_v58  ;;  %v15342_v4 = vld [vmem:[#allocation3 + $0x68] sm:$0xff] }
 0x484   : > { %v6458_v23 = vpop.f32.mrf.mxu1  ;;  %v6103_v45 = vpop.f32.mrf.mxu0  ;;  %v6875_v22 = vshll.u32 %v15342_v4, 16 }
 0x485   : > { %v6509_v61 = vadd.f32 %v6458_v23, %v6151_v17  ;;  %v5570_v51 = vpop.f32.mrf.mxu2  ;;  %v13389_v17 = vld [vmem:[#allocation3 + $0x6c] sm:$0xff]  }
 0x486   : > { %v6370_v58 = vshrl.u32 %v13389_v17, 16  ;;  %v6373_v38 = vshll.u32 %v13389_v17, 16  ;;  %v15349_v23 = vld [vmem:[#allocation4 + $0x200] sm:$0xff]  ;;  %v15367_v21 = vrot.slane %v6875_v22, 1 }
 0x487   : > { %6136 = vmatmul.bf16.gmra.mxu0 %v6012_v57  ;;  %v15351_v45 = vld [vmem:[#allocation4 + $0x180] sm:$0xff]  ;;  %7828 = vmatpush.bf16.msra.mxu2 %v15349_v23 }
 0x488   : > { %v6372_v57 = vrot.slane %v6370_v58, 3  ;;  %v6375_v51 = vrot.slane %v6373_v38, 4  ;;  %7320 = vmatpush.bf16.msra.mxu0 %v15351_v45  ;;  %v13525_v58 = vld [vmem:[#allocation4 + $0xf0] sm:$0xff] }
 0x489   : > { %v13526_v38 = vld [vmem:[#allocation4 + $0x30] sm:$0xff] }
 0x48a   : > { %v5822_v11 = vpop.f32.mrf.mxu3  ;;  %6656 = vmatmul.bf16.gmra.mxu2 %v15334_v10 }
 0x48b   : > { %v6020_v11 = vsel %vm1064_vm1, %v6015_v25, %v15345_v62  ;;  %8803 = vmatpush.bf16.msrb.mxu2 %v13523_v39 }
 0x48c   : > { %v6461_v40 = vpop.f32.mrf.mxu1  ;;  %v6104_v59 = vpop.f32.mrf.mxu0 }
 0x48d   : > { %v6152_v8 = vadd.f32 %v6104_v59, %v15079_v14  ;;  %v6622_v20 = vpop.f32.mrf.mxu2  ;;  %v15361_v40 = vld [vmem:[#allocation3 + $0x70] sm:$0xff]   ;;  %v13524_v59 = vld [vmem:[#allocation4 + $0x38] sm:$0xff] }
 0x48e   : > { %v6674_v28 = vadd.f32 %v6622_v20, %v6508_v7  ;;  %8249 = vmatpush.bf16.msrb.mxu0 %v13524_v59  ;;  %v15369_v20 = vld [vmem:[#allocation4 + $0x1c0] sm:$0xff]  ;;  %v7032_v59 = vld [vmem:[#allocation3 + $0x20] sm:$0x8] }
 0x48f   : > { %6494 = vmatmul.bf16.gmra.mxu1 %v6368_v55  ;;  %6998 = vmatmul.bf16.gmra.mxu3 %v6870_v24  ;;  %v15363_v55 = vor.u32 %v6375_v51, %v6372_v57  ;;  %v6871_v24 = vshrl.u32 %v15319_v60, 16  ;;  %v13527_v57 = vld [vmem:[#allocation4 + $0xb8] sm:$0xff] }
 0x490   : > { %8804 = vmatpush.bf16.msrb.mxu2 %v13525_v58  ;;  %7486 = vmatpush.bf16.msra.mxu1 %v15369_v20 }
 0x492   : > { %v6964_v42 = vpop.f32.mrf.mxu3  ;;  %8250 = vmatpush.bf16.msrb.mxu0 %v13526_v38  ;;  %v13532_v38 = vld [vmem:[#allocation4 + $0x20] sm:$0xff] }
 0x493   : > { %v15347_v31 = vadd.f32 %v6964_v42, %v6674_v28  ;;  %v5928_v28 = vpack.c.b16 %v5915_v50, %v5915_v50 }
 0x494   : > { %v6462_v14 = vpop.f32.mrf.mxu1  ;;  %v6107_v7 = vpop.f32.mrf.mxu0  ;;  %8510 = vmatpush.bf16.msrb.mxu1 %v13527_v57 }
 0x495   : > { %v15353_v63 = vadd.f32 %v6462_v14, %v6152_v8  ;;  %v6153_v34 = vadd.f32 %v6107_v7, %v15093_v41  ;;  %v6624_v9 = vpop.f32.mrf.mxu2  ;;  %v12118_v8 = vunpack.c.h.b16 %v15361_v40  ;;  %v6873_v14 = vor.u32 %v6871_v24, %v6869_v30 }
 0x496   : > { %v6675_v41 = vadd.f32 %v6624_v9, %v6509_v61  ;;  %v6377_v7 = vsel %vm721_vm0, %v15329_v5, %v15363_v55  ;;  %v6025_v22 = vshll.u32 %v5928_v28, 16  ;;  %v15384_v9 = vld [vmem:[#allocation3 + $0x24] sm:$0xf]  ;;  %v13530_v5 = vld [vmem:[#allocation4 + $0xb0] sm:$0xff]  ;;  %v13531_v28 = vld [vmem:[#allocation4 + $0xe0] sm:$0xff] }
 0x497   : > { %6141 = vmatmul.bf16.gmra.mxu0 %v6020_v11  ;;  %v6270_v25 = vpack.c.b16 %v12118_v8, %v12118_v8  ;;  %v6878_v51 = vsel %vm1064_vm1, %v6873_v14, %v15367_v21  ;;  %v13528_v11 = vld [vmem:[#allocation4 + $0xe8] sm:$0xff] }
 0x498   : > { %8805 = vmatpush.bf16.msrb.mxu2 %v13528_v11  ;;  %8511 = vmatpush.bf16.msrb.mxu1 %v13530_v5  ;;  %v15386_v8 = vld [vmem:[#allocation3 + $0x70] sm:$0xff]  ;;  %v6027_v24 = vrot.slane %v6025_v22, 1  ;;  %v15394_v5 = vld [vmem:[#allocation3 + $0x28] sm:$0xff]  }
 0x499   : > { %v6379_v50 = vshrl.u32 %v6270_v25, 16  ;;  %v6382_v39 = vshll.u32 %v6270_v25, 16  ;;  %v13533_v11 = vld [vmem:[#allocation4 + $0xa8] sm:$0xff] }
 0x49a   : > { %v6966_v17 = vpop.f32.mrf.mxu3  ;;  %6660 = vmatmul.bf16.gmra.mxu2 %v15373_v33 }
 0x49b   : > { %v15371_v42 = vadd.f32 %v6966_v17, %v6675_v41  ;;  %v6021_v17 = vshrl.u32 %v15332_v48, 16  ;;  %v6381_v57 = vrot.slane %v6379_v50, 3  ;;  %v6883_v48 = vshll.u32 %v15386_v8, 16 }
 0x49c   : > { %v6465_v61 = vpop.f32.mrf.mxu1  ;;  %v6109_v60 = vpop.f32.mrf.mxu0  ;;  %8806 = vmatpush.bf16.msrb.mxu2 %v13531_v28  ;;  %8512 = vmatpush.bf16.msrb.mxu1 %v13533_v11  ;;  %v7146_v28 = vshrl.u32 %v15394_v5, 16 }
 0x49d   : > { %v15376_v1 = vadd.f32 %v6465_v61, %v6153_v34  ;;  %v6627_v30 = vpop.f32.mrf.mxu2  ;;  %v13529_v34 = vld [vmem:[#allocation4 + $0x28] sm:$0xff]  ;;  %v6023_v14 = vor.u32 %v6021_v17, %v15345_v62  ;;  %v7099_v60 = vunpack.c.l.b16 %v7032_v59  ;;  %v6879_v17 = vshrl.u32 %v15342_v4, 16 }
 0x49e   : > { %8251 = vmatpush.bf16.msrb.mxu0 %v13529_v34  ;;  %v13534_v30 = vld [vmem:[#allocation4 + $0xd8] sm:$0xff] }
 0x49f   : > { %6499 = vmatmul.bf16.gmra.mxu1 %v6377_v7  ;;  %7002 = vmatmul.bf16.gmra.mxu3 %v6878_v51  ;;  %v7100_v7 = vunpack.c.l.b16 %v15384_v9  ;;  %v6384_v51 = vrot.slane %v6382_v39, 4  ;;  %v6028_v22 = vsel %vm1064_vm1, %v6023_v14, %v6027_v24  ;;  %v13536_v39 = vld [vmem:[#allocation4 + $0xa0] sm:$0xff]  ;;  %v15400_v24 = vrot.slane %v6883_v48, 1 }
 0x4a0   : > { %8807 = vmatpush.bf16.msrb.mxu2 %v13534_v30  ;;  %8513 = vmatpush.bf16.msrb.mxu1 %v13536_v39 }
 0x4a1   : > { %v7124_v59 = vpack.c.b16 %v7100_v7, %v7099_v60  ;;  %v6385_v50 = vor.u32 %v6384_v51, %v6381_v57  ;;  %v6714_v60 = vld [vmem:[#allocation3 + $0x78] sm:$0x1]  ;;  %v6881_v57 = vor.u32 %v6879_v17, %v15367_v21  ;;  %v7148_v21 = vrot.slane %v7146_v28, 3 }
 0x4a2   : > { %v6969_v41 = vpop.f32.mrf.mxu3  ;;  %8252 = vmatpush.bf16.msrb.mxu0 %v13532_v38  ;;  %v13537_v38 = vld [vmem:[#allocation4 + $0xd0] sm:$0xff]  ;;  %v6781_v39 = vunpack.c.l.b16 %v6714_v60 }
 0x4a3   : > { %v7138_v11 = vshrl.u32 %v7124_v59, 16  ;;  %v7141_v48 = vshll.u32 %v7124_v59, 16  ;;  %v6386_v30 = vsel %vm721_vm0, %v15363_v55, %v6385_v50  ;;  %v13541_v55 = vld [vmem:[#allocation4 + $0x8] sm:$0xff] }
 0x4a4   : > { %v6467_v58 = vpop.f32.mrf.mxu1  ;;  %v6111_v61 = vpop.f32.mrf.mxu0  ;;  %8808 = vmatpush.bf16.msrb.mxu2 %v13537_v38 }
 0x4a5   : > { %v6154_v25 = vadd.f32 %v6111_v61, %v15114_v35  ;;  %v6628_v34 = vpop.f32.mrf.mxu2  ;;  %v13535_v35 = vld [vmem:[#allocation4 + $0x18] sm:$0xff]  ;;  %v7149_v58 = vshll.u32 %v15394_v5, 16  ;;  %v15406_v61 = vld [vmem:[#allocation3 + $0x68] sm:$0xff]   ;;  %v7140_v38 = vrot.slane %v7138_v11, 3  ;;  %v13545_v11 = vld [vmem:[#allocation4 + $0x88] sm:$0xff] }
 0x4a6   : > { %v6676_v62 = vadd.f32 %v6628_v34, %v15353_v63  ;;  %8253 = vmatpush.bf16.msrb.mxu0 %v13535_v35  ;;  %v6886_v35 = vsel %vm1064_vm1, %v6881_v57, %v15400_v24  ;;  %v13543_v57 = vld [vmem:[#allocation4 + $0xc0] sm:$0xff] }
 0x4a7   : > { %6145 = vmatmul.bf16.gmra.mxu0 %v6028_v22  ;;  %v13538_v22 = vld [vmem:[#allocation4 + $0x10] sm:$0xff] }
 0x4aa   : > { %v6970_v41 = vpop.f32.mrf.mxu3  ;;  %6665 = vmatmul.bf16.gmra.mxu2 %v15406_v61  ;;  %8254 = vmatpush.bf16.msrb.mxu0 %v13538_v22 }
 0x4ab   : > { %v15404_v63 = vadd.f32 %v6970_v41, %v6676_v62  ;;  %v13539_v62 = vld [vmem:[#allocation4 + $0x98] sm:$0xff]  ;;  %v13540_v41 = vld [vmem:[#allocation4 + $0xc8] sm:$0xff] }
 0x4ac   : > { %v6469_v14 = vpop.f32.mrf.mxu1  ;;  %v6113_v4 = vpop.f32.mrf.mxu0  ;;  %8514 = vmatpush.bf16.msrb.mxu1 %v13539_v62  ;;  %8809 = vmatpush.bf16.msrb.mxu2 %v13540_v41  ;;  %v13546_v41 = vld [vmem:[#allocation4 + $0x178] sm:$0xff] }
 0x4ad   : > { %v15410_v51 = vadd.f32 %v6469_v14, %v6154_v25  ;;  %v6155_v34 = vadd.f32 %v6113_v4, %v15126_v32  ;;  %v7151_v25 = vrot.slane %v7149_v58, 4  ;;  %v6631_v59 = vpop.f32.mrf.mxu2  ;;  %v7143_v14 = vrot.slane %v7141_v48, 4  ;;  %v13542_v32 = vld [vmem:[#allocation4 + $0x90] sm:$0xff] }
 0x4ae   : > { %v6677_v17 = vadd.f32 %v6631_v59, %v15376_v1  ;;  %8255 = vmatpush.bf16.msrb.mxu0 %v13541_v55  ;;  %v6794_v4 = vpack.c.b16 %v6781_v39, %v6781_v39  ;;  %v13544_v1 = vld [vmem:[#allocation4] sm:$0xff] }
 0x4af   : > { %6503 = vmatmul.bf16.gmra.mxu1 %v6386_v30  ;;  %7007 = vmatmul.bf16.gmra.mxu3 %v6886_v35  ;;  %v15418_v22 = vor.u32 %v7151_v25, %v7148_v21  ;;  %v7144_v62 = vor.u32 %v7143_v14, %v7140_v38  ;;  %v12586_v21 = vld [vmem:[#allocation3 + $0x30] sm:$0xff]   ;;  %v12121_v25 = vunpack.c.l.b16 %v15394_v5  ;;  %v13547_v59 = vld [vmem:[#allocation4 + $0x80] sm:$0xff]  ;;  %v13548_v5 = vld [vmem:[#allocation4 + $0x170] sm:$0xff] }
 0x4b0   : > { %8515 = vmatpush.bf16.msrb.mxu1 %v13542_v32  ;;  %8810 = vmatpush.bf16.msrb.mxu2 %v13543_v57  ;;  %v6891_v48 = vshll.u32 %v6794_v4, 16  ;;  %v7155_v14 = vshrl.u32 %v12586_v21, 16  ;;  %v7158_v55 = vshll.u32 %v12586_v21, 16 }
 0x4b1   : > { %v7153_v35 = vsel %vm721_vm0, %v7144_v62, %v15418_v22  ;;  %v7407_v4 = vpack.c.b16 %v12121_v25, %v7100_v7  ;;  %v13550_v7 = vld [vmem:[#allocation4 + $0x168] sm:$0xff] }
 0x4b2   : > { %v6973_v50 = vpop.f32.mrf.mxu3  ;;  %8256 = vmatpush.bf16.msrb.mxu0 %v13544_v1  ;;  %v6893_v38 = vrot.slane %v6891_v48, 1  ;;  %v7160_v1 = vrot.slane %v7158_v55, 4  ;;  %v15434_v48 = vld [vmem:[#allocation3 + $0x2c] sm:$0xff] }
 0x4b3   : > { %v15420_v28 = vadd.f32 %v6973_v50, %v6677_v17  ;;  %v6887_v17 = vshrl.u32 %v15386_v8, 16  ;;  %v7157_v8 = vrot.slane %v7155_v14, 3  ;;  %v7669_v25 = vshll.u32 %v15434_v48, 16 }
 0x4b4   : > { %v6471_v58 = vpop.f32.mrf.mxu1  ;;  %v6116_v30 = vpop.f32.mrf.mxu0  ;;  %8516 = vmatpush.bf16.msrb.mxu1 %v13545_v11 }
 0x4b5   : > { %v15422_v60 = vadd.f32 %v6471_v58, %v6155_v34  ;;  %v6633_v39 = vpop.f32.mrf.mxu2  ;;  %v6889_v50 = vor.u32 %v6887_v17, %v15400_v24  ;;  %v11635_v58 = vld [vmem:[#allocation3 + $0x24] sm:$0xff]  ;;  %v15437_v21 = vor.u32 %v7160_v1, %v7157_v8 }
 0x4b6   : > { %v7664_v24 = vshll.u32 %v11635_v58, 16  ;;  %v13554_v8 = vld [vmem:[#allocation4 + $0x158] sm:$0xff] }
 0x4b7   : > { %7321 = vmatmul.bf16.vlgmr.msra.gmra.mxu0 %v7153_v35  ;;  %v6894_v62 = vsel %vm1064_vm1, %v6889_v50, %v6893_v38  ;;  %v13549_v35 = vld [vmem:[#allocation4 + $0x1b8] sm:$0xff]  ;;  %v13552_v38 = vld [vmem:[#allocation4 + $0x160] sm:$0xff]  ;;  %v7162_v55 = vsel %vm721_vm0, %v15418_v22, %v15437_v21  ;;  %v7662_v50 = vshrl.u32 %v11635_v58, 16 }
 0x4b8   : > { %9181 = vmatpush.bf16.msra.mxu0 %v13546_v41  ;;  %8517 = vmatpush.bf16.msrb.mxu1 %v13547_v59  ;;  %v13551_v59 = vld [vmem:[#allocation4 + $0x1b0] sm:$0xff]  ;;  %v7666_v14 = vrot.slane %v7664_v24, 1 }
 0x4ba   : > { %v6975_v34 = vpop.f32.mrf.mxu3  ;;  %6669 = vmatmul.bf16.gmra.mxu2 %v15361_v40  ;;  %v7667_v1 = vor.u32 %v7666_v14, %v7662_v50  ;;  %v13559_v50 = vld [vmem:[#allocation4 + $0x1f0] sm:$0xff] }
 0x4bc   : > { %v6474_v32 = vpop.f32.mrf.mxu1  ;;  %v6117_v57 = vpop.f32.mrf.mxu0  ;;  %9182 = vmatpush.bf16.msra.mxu0 %v13548_v5  ;;  %v13553_v5 = vld [vmem:[#allocation4 + $0x1a8] sm:$0xff] }
 0x4bd   : > { %v6156_v30 = vadd.f32 %v6117_v57, %v15146_v36  ;;  %v6635_v11 = vpop.f32.mrf.mxu2  ;;  %v12587_v57 = vld [vmem:[#allocation3 + $0x38] sm:$0xff]  }
 0x4be   : > { %v6678_v9 = vadd.f32 %v6635_v11, %v15410_v51  ;;  %v7167_v22 = vshll.u32 %v12587_v57, 16 }
 0x4bf   : > { %7487 = vmatmul.bf16.vlgmr.msra.gmra.mxu1 %v7407_v4  ;;  %7011 = vmatmul.bf16.gmra.mxu3 %v6894_v62  ;;  %v15448_v4 = vrot.slane %v7669_v25, 1  ;;  %v15451_v62 = vld [vmem:[#allocation3 + $0x6c] sm:$0xf] }
 0x4c0   : > { %9474 = vmatpush.bf16.msra.mxu1 %v13549_v35  ;;  %9183 = vmatpush.bf16.msra.mxu0 %v13550_v7  ;;  %v7164_v35 = vshrl.u32 %v12587_v57, 16  ;;  %v7997_v7 = vunpack.c.l.b16 %v15451_v62  ;;  %v7169_v14 = vrot.slane %v7167_v22, 4  ;;  %v13409_v62 = vld [vmem:[#allocation3 + $0xbc] sm:$0xff]  }
 0x4c1   : > { %v7672_v58 = vsel %vm1064_vm1, %v7667_v1, %v15448_v4 }
 0x4c2   : > { %v6977_v39 = vpop.f32.mrf.mxu3 }
 0x4c3   : > { %v15439_v36 = vadd.f32 %v6977_v39, %v6678_v9  ;;  %v13114_v39 = vld [vmem:[#allocation3 + $0x2c] sm:$0xff]  }
 0x4c4   : > { %v6475_v41 = vpop.f32.mrf.mxu1  ;;  %9475 = vmatpush.bf16.msra.mxu1 %v13551_v59  ;;  %v6120_v17 = vpop.f32.mrf.mxu0  ;;  %9184 = vmatpush.bf16.msra.mxu0 %v13552_v38  ;;  %v7166_v38 = vrot.slane %v7164_v35, 3  ;;  %v13562_v35 = vld [vmem:[#allocation4 + $0x1e8] sm:$0xff] }
 0x4c5   : > { %v15442_v34 = vadd.f32 %v6475_v41, %v6156_v30  ;;  %v6157_v51 = vadd.f32 %v6120_v17, %v15161_v54  ;;  %v6637_v32 = vpop.f32.mrf.mxu2  ;;  %v12165_v54 = vunpack.c.l.b16 %v15361_v40  ;;  %v13555_v41 = vld [vmem:[#allocation4 + $0x150] sm:$0xff]  ;;  %v13556_v17 = vld [vmem:[#allocation4 + $0x1f8] sm:$0xff] }
 0x4c6   : > { %v6679_v30 = vadd.f32 %v6637_v32, %v15422_v60  ;;  %v15464_v32 = vld [vmem:[#allocation3 + $0x34] sm:$0xff] }
 0x4c7   : > { %7326 = vmatmul.bf16.gmra.mxu0 %v7162_v55  ;;  %v8021_v59 = vpack.c.b16 %v12165_v54, %v7997_v7  ;;  %v13560_v54 = vld [vmem:[#allocation4 + $0x230] sm:$0xff] }
 0x4c8   : > { %9476 = vmatpush.bf16.msra.mxu1 %v13553_v5  ;;  %9185 = vmatpush.bf16.msra.mxu0 %v13554_v8  ;;  %v7170_v5 = vor.u32 %v7169_v14, %v7166_v38 }
 0x4ca   : > { %v6979_v11 = vpop.f32.mrf.mxu3  ;;  %7829 = vmatmul.bf16.vlgmr.msra.gmra.mxu2 %v7672_v58  ;;  %v7171_v22 = vsel %vm721_vm0, %v15437_v21, %v7170_v5  ;;  %v7176_v21 = vshll.u32 %v15251_v0, 16 }
 0x4cb   : > { %v15454_v9 = vadd.f32 %v6979_v11, %v6679_v30  ;;  %9575 = vmatpush.bf16.msra.mxu2 %v13556_v17  ;;  %v7677_v30 = vshll.u32 %v15464_v32, 16  ;;  %v13561_v11 = vld [vmem:[#allocation4 + $0x140] sm:$0xff] }
 0x4cc   : > { %v6478_v24 = vpop.f32.mrf.mxu1  ;;  %9477 = vmatpush.bf16.msra.mxu1 %v15186_v53  ;;  %v6122_v25 = vpop.f32.mrf.mxu0  ;;  %9186 = vmatpush.bf16.msra.mxu0 %v13555_v41  ;;  %v13557_v53 = vld [vmem:[#allocation4 + $0x238] sm:$0xff] }
 0x4cd   : > { %v15460_v60 = vadd.f32 %v6478_v24, %v6157_v51  ;;  %v6640_v55 = vpop.f32.mrf.mxu2  ;;  %v13558_v51 = vld [vmem:[#allocation4 + $0x148] sm:$0xff]  ;;  %v7673_v24 = vshrl.u32 %v15434_v48, 16 }
 0x4ce   : > { %v13563_v25 = vld [vmem:[#allocation4 + $0x228] sm:$0xff]  ;;  %v13564_v55 = vld [vmem:[#allocation4 + $0x220] sm:$0xff] }
 0x4cf   : > { %7492 = vmatmul.bf16.gmra.mxu1 %v13114_v39  ;;  %8053 = vmatmul.bf16.vlgmr.msra.gmra.mxu3 %v8021_v59  ;;  %v7679_v39 = vrot.slane %v7677_v30, 1  ;;  %v7675_v41 = vor.u32 %v7673_v24, %v15448_v4  ;;  %v7173_v59 = vshrl.u32 %v15251_v0, 16  ;;  %v13392_v4 = vld [vmem:[#allocation3 + $0x74] sm:$0xff]  }
 0x4d0   : > { %9478 = vmatpush.bf16.msra.mxu1 %v15228_v43  ;;  %9852 = vmatpush.bf16.msra.mxu3 %v13557_v53  ;;  %v7178_v53 = vrot.slane %v7176_v21, 4 }
 0x4d1   : > { %9187 = vmatpush.bf16.msra.mxu0 %v13558_v51  ;;  %9576 = vmatpush.bf16.msra.mxu2 %v13559_v50  ;;  %v7680_v48 = vsel %vm1064_vm1, %v7675_v41, %v7679_v39  ;;  %v7175_v0 = vrot.slane %v7173_v59, 3  ;;  %v11638_v50 = vld [vmem:[#allocation3 + $0x3c] sm:$0xff] }
 0x4d2   : > { %v6982_v57 = vpop.f32.mrf.mxu3 }
 0x4d3   : > { %v7179_v30 = vor.u32 %v7178_v53, %v7175_v0 }
 0x4d4   : > { %v6480_v8 = vpop.f32.mrf.mxu1  ;;  %9479 = vmatpush.bf16.msra.mxu1 %v15267_v19  ;;  %v6124_v1 = vpop.f32.mrf.mxu0  ;;  %9853 = vmatpush.bf16.msra.mxu3 %v13560_v54 }
 0x4d5   : > { %9188 = vmatpush.bf16.msra.mxu0 %v13561_v11  ;;  %v6158_v43 = vadd.f32 %v6124_v1, %v15184_v46  ;;  %9577 = vmatpush.bf16.msra.mxu2 %v13562_v35  ;;  %v6641_v58 = vpop.f32.mrf.mxu2  ;;  %v7685_v1 = vshll.u32 %v11638_v50, 16  ;;  %v7180_v11 = vsel %vm721_vm0, %v7170_v5, %v7179_v30  ;;  %v13118_v5 = vld [vmem:[#allocation3 + $0x3c] sm:$0xff]  }
 0x4d6   : > { %v6680_v19 = vadd.f32 %v6641_v58, %v15442_v34  ;;  %v13116_v34 = vld [vmem:[#allocation3 + $0x34] sm:$0xff]   ;;  %v7185_v58 = vshll.u32 %v15287_v6, 16 }
 0x4d7   : > { %7330 = vmatmul.bf16.gmra.mxu0 %v7171_v22  ;;  %v7182_v22 = vshrl.u32 %v15287_v6, 16 }
 0x4d8   : > { %9480 = vmatpush.bf16.msra.mxu1 %v15315_v26  ;;  %9854 = vmatpush.bf16.msra.mxu3 %v13563_v25  ;;  %v11639_v25 = vld [vmem:[#allocation3 + $0x44] sm:$0xff] }
 0x4d9   : > { %9578 = vmatpush.bf16.msra.mxu2 %v15195_v13  ;;  %v7693_v21 = vshll.u32 %v11639_v25, 16 }
 0x4da   : > { %v6983_v46 = vpop.f32.mrf.mxu3  ;;  %7834 = vmatmul.bf16.gmra.mxu2 %v7680_v48 }
 0x4db   : > { %v15479_v17 = vadd.f32 %v6983_v46, %v6680_v19 }
 0x4dc   : > { %v6482_v38 = vpop.f32.mrf.mxu1  ;;  %9481 = vmatpush.bf16.msra.mxu1 %v15351_v45  ;;  %v6126_v14 = vpop.f32.mrf.mxu0  ;;  %9855 = vmatpush.bf16.msra.mxu3 %v13564_v55  ;;  %v7689_v55 = vshrl.u32 %v11638_v50, 16 }
 0x4dd   : > { %v6516_v26 = vadd.f32 %v6482_v38, %v6158_v43  ;;  %v6159_v13 = vadd.f32 %v6126_v14, %v15199_v18  ;;  %9579 = vmatpush.bf16.msra.mxu2 %v15237_v44  ;;  %v6644_v51 = vpop.f32.mrf.mxu2 }
 0x4de   : > { %v6681_v57 = vadd.f32 %v6644_v51, %v15460_v60  ;;  %v7681_v60 = vshrl.u32 %v15464_v32, 16  ;;  %v13394_v32 = vld [vmem:[#allocation3 + $0x7c] sm:$0xff]   ;;  %v7194_v51 = vshll.u32 %v15306_v29, 16 }
 0x4df   : > { %7496 = vmatmul.bf16.gmra.mxu1 %v13116_v34  ;;  %8058 = vmatmul.bf16.gmra.mxu3 %v13392_v4  ;;  %v7695_v4 = vrot.slane %v7693_v21, 1  ;;  %v13122_v21 = vld [vmem:[#allocation3 + $0x4c] sm:$0xff]  }
 0x4e0   : > { %9856 = vmatpush.bf16.msra.mxu3 %v15226_v37  ;;  %v7687_v37 = vrot.slane %v7685_v1, 1 }
 0x4e1   : > { %9580 = vmatpush.bf16.msra.mxu2 %v15281_v2  ;;  %v7683_v2 = vor.u32 %v7681_v60, %v7679_v39  ;;  %v7187_v39 = vrot.slane %v7185_v58, 4 }
 0x4e2   : > { %v6986_v45 = vpop.f32.mrf.mxu3  ;;  %v7691_v0 = vor.u32 %v7689_v55, %v7687_v37 }
 0x4e3   : > { %v15488_v8 = vadd.f32 %v6986_v45, %v6681_v57 }
 0x4e4   : > { %v6484_v18 = vpop.f32.mrf.mxu1  ;;  %v6129_v44 = vpop.f32.mrf.mxu0  ;;  %9857 = vmatpush.bf16.msra.mxu3 %v15265_v27  ;;  %v7688_v27 = vsel %vm1064_vm1, %v7683_v2, %v7687_v37  ;;  %v7696_v45 = vsel %vm1064_vm1, %v7691_v0, %v7695_v4 }
 0x4e5   : > { %v6517_v54 = vadd.f32 %v6484_v18, %v6159_v13  ;;  %9581 = vmatpush.bf16.msra.mxu2 %v15322_v47  ;;  %v6646_v43 = vpop.f32.mrf.mxu2  ;;  %v13120_v18 = vld [vmem:[#allocation3 + $0x44] sm:$0xff]  }
 0x4e6   : > { %v13396_v44 = vld [vmem:[#allocation3 + $0x84] sm:$0xff]   ;;  %v11640_v43 = vld [vmem:[#allocation3 + $0x4c] sm:$0xff] }
 0x4e7   : > { %7334 = vmatmul.bf16.gmra.mxu0 %v7180_v11  ;;  %v7196_v11 = vrot.slane %v7194_v51, 4  ;;  %v7701_v2 = vshll.u32 %v11640_v43, 16 }
 0x4e8   : > { %9858 = vmatpush.bf16.msra.mxu3 %v15313_v56  ;;  %v7184_v56 = vrot.slane %v7182_v22, 3 }
 0x4e9   : > { %9582 = vmatpush.bf16.msra.mxu2 %v15369_v20 }
 0x4ea   : > { %v6988_v35 = vpop.f32.mrf.mxu3  ;;  %7838 = vmatmul.bf16.gmra.mxu2 %v7688_v27  ;;  %v7188_v6 = vor.u32 %v7187_v39, %v7184_v56  ;;  %v7200_v56 = vshrl.u32 %v15334_v10, 16  ;;  %v7203_v39 = vshll.u32 %v15334_v10, 16 }
 0x4ec   : > { %v6487_v47 = vpop.f32.mrf.mxu1  ;;  %v6130_v24 = vpop.f32.mrf.mxu0  ;;  %9859 = vmatpush.bf16.msra.mxu3 %v15349_v23  ;;  %v7189_v14 = vsel %vm721_vm0, %v7179_v30, %v7188_v6 }
 0x4ed   : > { %v6160_v19 = vadd.f32 %v6130_v24, %v15219_v3  ;;  %v6648_v20 = vpop.f32.mrf.mxu2  ;;  %v7697_v47 = vshrl.u32 %v11639_v25, 16 }
 0x4ee   : > { %v6682_v41 = vadd.f32 %v6648_v20, %v6516_v26  ;;  %v7191_v26 = vshrl.u32 %v15306_v29, 16 }
 0x4ef   : > { %7500 = vmatmul.bf16.gmra.mxu1 %v13118_v5  ;;  %8062 = vmatmul.bf16.gmra.mxu3 %v13394_v32  ;;  %v7703_v5 = vrot.slane %v7701_v2, 1  ;;  %v7699_v32 = vor.u32 %v7697_v47, %v7695_v4  ;;  %v13400_v2 = vld [vmem:[#allocation3 + $0x94] sm:$0xff]  }
 0x4f0   : > { %v7193_v50 = vrot.slane %v7191_v26, 3 }
 0x4f2   : > { %v6990_v46 = vpop.f32.mrf.mxu3  ;;  %v7197_v37 = vor.u32 %v7196_v11, %v7193_v50 }
 0x4f3   : > { %v15501_v59 = vadd.f32 %v6990_v46, %v6682_v41  ;;  %v7704_v41 = vsel %vm1064_vm1, %v7699_v32, %v7703_v5 }
 0x4f4   : > { %v6488_v48 = vpop.f32.mrf.mxu1  ;;  %v6133_v34 = vpop.f32.mrf.mxu0  ;;  %v7198_v58 = vsel %vm721_vm0, %v7188_v6, %v7197_v37 }
 0x4f5   : > { %v6518_v38 = vadd.f32 %v6488_v48, %v6160_v19  ;;  %v6161_v23 = vadd.f32 %v6133_v34, %v15239_v16  ;;  %v6650_v3 = vpop.f32.mrf.mxu2  ;;  %v13398_v48 = vld [vmem:[#allocation3 + $0x8c] sm:$0xff]   ;;  %v7205_v34 = vrot.slane %v7203_v39, 4 }
 0x4f6   : > { %v6683_v13 = vadd.f32 %v6650_v3, %v6517_v54 }
 0x4f7   : > { %7339 = vmatmul.bf16.gmra.mxu0 %v7189_v14  ;;  %v11641_v14 = vld [vmem:[#allocation3 + $0x54] sm:$0xff] }
 0x4fa   : > { %v6992_v53 = vpop.f32.mrf.mxu3  ;;  %7842 = vmatmul.bf16.gmra.mxu2 %v7696_v45 }
 0x4fb   : > { %v15507_v57 = vadd.f32 %v6992_v53, %v6683_v13  ;;  %v7709_v13 = vshll.u32 %v11641_v14, 16 }
 0x4fc   : > { %v6491_v1 = vpop.f32.mrf.mxu1  ;;  %v6135_v30 = vpop.f32.mrf.mxu0 }
 0x4fd   : > { %v6519_v16 = vadd.f32 %v6491_v1, %v6161_v23  ;;  %v6653_v54 = vpop.f32.mrf.mxu2  ;;  %v7705_v1 = vshrl.u32 %v11640_v43, 16 }
 0x4fe   : > { %v13124_v54 = vld [vmem:[#allocation3 + $0x54] sm:$0xff]  }
 0x4ff   : > { %7505 = vmatmul.bf16.gmra.mxu1 %v13120_v18  ;;  %8066 = vmatmul.bf16.gmra.mxu3 %v13396_v44  ;;  %v7707_v18 = vor.u32 %v7705_v1, %v7703_v5  ;;  %v7209_v44 = vshrl.u32 %v15373_v33, 16 }
 0x502   : > { %v6995_v60 = vpop.f32.mrf.mxu3 }
 0x504   : > { %v6493_v29 = vpop.f32.mrf.mxu1  ;;  %v6137_v35 = vpop.f32.mrf.mxu0 }
 0x505   : > { %v6162_v22 = vadd.f32 %v6137_v35, %v15263_v49  ;;  %v6654_v27 = vpop.f32.mrf.mxu2 }
 0x506   : > { %v6684_v24 = vadd.f32 %v6654_v27, %v6518_v38  ;;  %v7202_v38 = vrot.slane %v7200_v56, 3 }
 0x507   : > { %7343 = vmatmul.bf16.gmra.mxu0 %v7198_v58 }
 0x508   : > { %v7206_v55 = vor.u32 %v7205_v34, %v7202_v38 }
 0x50a   : > { %v6996_v19 = vpop.f32.mrf.mxu3  ;;  %7847 = vmatmul.bf16.gmra.mxu2 %v7704_v41  ;;  %v7207_v51 = vsel %vm721_vm0, %v7197_v37, %v7206_v55  ;;  %v7211_v37 = vrot.slane %v7209_v44, 3  ;;  %v7713_v41 = vshrl.u32 %v11641_v14, 16 }
 0x50b   : > { %v15514_v20 = vadd.f32 %v6996_v19, %v6684_v24 }
 0x50c   : > { %v6495_v46 = vpop.f32.mrf.mxu1  ;;  %v6139_v6 = vpop.f32.mrf.mxu0 }
 0x50d   : > { %v6520_v49 = vadd.f32 %v6495_v46, %v6162_v22  ;;  %v6163_v25 = vadd.f32 %v6139_v6, %v15285_v15  ;;  %v6657_v23 = vpop.f32.mrf.mxu2  ;;  %v7711_v15 = vrot.slane %v7709_v13, 1  ;;  %v11642_v22 = vld [vmem:[#allocation3 + $0x5c] sm:$0xff] }
 0x50e   : > { %v6685_v3 = vadd.f32 %v6657_v23, %v6519_v16  ;;  %v7212_v16 = vshll.u32 %v15373_v33, 16  ;;  %v7717_v33 = vshll.u32 %v11642_v22, 16 }
 0x50f   : > { %7509 = vmatmul.bf16.gmra.mxu1 %v13122_v21  ;;  %8071 = vmatmul.bf16.gmra.mxu3 %v13398_v48  ;;  %v7712_v50 = vsel %vm1064_vm1, %v7707_v18, %v7711_v15  ;;  %v7715_v6 = vor.u32 %v7713_v41, %v7711_v15 }
 0x510   : > { %v7214_v43 = vrot.slane %v7212_v16, 4  ;;  %v7719_v46 = vrot.slane %v7717_v33, 1  ;;  %v11644_v33 = vld [vmem:[#allocation3 + $0x6c] sm:$0xff] }
 0x512   : > { %v6999_v10 = vpop.f32.mrf.mxu3  ;;  %v7215_v47 = vor.u32 %v7214_v43, %v7211_v37  ;;  %v7720_v34 = vsel %vm1064_vm1, %v7715_v6, %v7719_v46  ;;  %v13128_v43 = vld [vmem:[#allocation3 + $0x64] sm:$0xff]  }
 0x513   : > { %v15518_v4 = vadd.f32 %v6999_v10, %v6685_v3  ;;  %v13126_v3 = vld [vmem:[#allocation3 + $0x5c] sm:$0xff]  }
 0x514   : > { %v6497_v0 = vpop.f32.mrf.mxu1  ;;  %v6142_v26 = vpop.f32.mrf.mxu0  ;;  %v7216_v39 = vsel %vm721_vm0, %v7206_v55, %v7215_v47  ;;  %v13402_v55 = vld [vmem:[#allocation3 + $0x9c] sm:$0xff]  }
 0x515   : > { %v6521_v53 = vadd.f32 %v6497_v0, %v6163_v25  ;;  %v6659_v45 = vpop.f32.mrf.mxu2  ;;  %v7221_v25 = vshll.u32 %v15406_v61, 16 }
 0x517   : > { %7347 = vmatmul.bf16.gmra.mxu0 %v7207_v51  ;;  %v7223_v13 = vrot.slane %v7221_v25, 4 }
 0x51a   : > { %v7001_v30 = vpop.f32.mrf.mxu3  ;;  %7851 = vmatmul.bf16.gmra.mxu2 %v7712_v50 }
 0x51b   : > { %v7721_v30 = vshrl.u32 %v11642_v22, 16 }
 0x51c   : > { %v6500_v11 = vpop.f32.mrf.mxu1  ;;  %v6143_v60 = vpop.f32.mrf.mxu0 }
 0x51d   : > { %v6164_v29 = vadd.f32 %v6143_v60, %v15304_v52  ;;  %v6661_v35 = vpop.f32.mrf.mxu2  ;;  %v7723_v50 = vor.u32 %v7721_v30, %v7719_v46  ;;  %v7230_v60 = vshll.u32 %v15361_v40, 16 }
 0x51e   : > { %v6686_v58 = vadd.f32 %v6661_v35, %v6520_v49  ;;  %v7218_v49 = vshrl.u32 %v15406_v61, 16 }
 0x51f   : > { %7513 = vmatmul.bf16.gmra.mxu1 %v13124_v54  ;;  %8075 = vmatmul.bf16.gmra.mxu3 %v13400_v2  ;;  %v7227_v54 = vshrl.u32 %v15361_v40, 16 }
 0x520   : > { %v7220_v14 = vrot.slane %v7218_v49, 3 }
 0x521   : > { %v7229_v22 = vrot.slane %v7227_v54, 3 }
 0x522   : > { %v7003_v27 = vpop.f32.mrf.mxu3  ;;  %v7224_v51 = vor.u32 %v7223_v13, %v7220_v14  ;;  %v13406_v13 = vld [vmem:[#allocation3 + $0xac] sm:$0xff]  }
 0x523   : > { %v15525_v5 = vadd.f32 %v7003_v27, %v6686_v58  ;;  %v13404_v58 = vld [vmem:[#allocation3 + $0xa4] sm:$0xff]   ;;  %v7232_v27 = vrot.slane %v7230_v60, 4  ;;  %v15571_v60 = vld [vmem:[%s16033_s4 + $0x1] ss:$0 sm:$0xff] }
 0x524   : > { %v6501_v24 = vpop.f32.mrf.mxu1  ;;  %v6146_v19 = vpop.f32.mrf.mxu0  ;;  %v7225_v15 = vsel %vm721_vm0, %v7215_v47, %v7224_v51 }
 0x525   : > { %v6522_v32 = vadd.f32 %v6501_v24, %v6164_v29  ;;  %v6165_v56 = vadd.f32 %v6146_v19, %v15324_v12  ;;  %v6663_v52 = vpop.f32.mrf.mxu2  ;;  %v15540_v19 = vor.u32 %v7232_v27, %v7229_v22 }
 0x526   : > { %v6687_v21 = vadd.f32 %v6663_v52, %v6521_v53  ;;  %v11643_v53 = vld [vmem:[#allocation3 + $0x64] sm:$0xff] }
 0x527   : > { %7352 = vmatmul.bf16.gmra.mxu0 %v7216_v39  ;;  %v7725_v45 = vshll.u32 %v11643_v53, 16  ;;  %v7234_v41 = vsel %vm721_vm0, %v7224_v51, %v15540_v19  ;;  %v15552_v51 = vld [vmem:[#allocation3 + $0x74] sm:$0xff] }
 0x529   : > { %v7727_v44 = vrot.slane %v7725_v45, 1  ;;  %v7056_v45 = vld [vmem:[#allocation3 + $0x80] sm:$0xf] }
 0x52a   : > { %v7005_v48 = vpop.f32.mrf.mxu3  ;;  %7855 = vmatmul.bf16.gmra.mxu2 %v7720_v34 }
 0x52b   : > { %v15531_v38 = vadd.f32 %v7005_v48, %v6687_v21  ;;  %v7728_v29 = vsel %vm1064_vm1, %v7723_v50, %v7727_v44  ;;  %v7729_v21 = vshrl.u32 %v11643_v53, 16  ;;  %v15546_v48 = vld [vmem:[#allocation3 + $0x78] sm:$0xff]  }
 0x52c   : > { %v6504_v23 = vpop.f32.mrf.mxu1  ;;  %v6148_v10 = vpop.f32.mrf.mxu0  ;;  %v7236_v34 = vshrl.u32 %v15546_v48, 16 }
 0x52d   : > { %v6523_v12 = vadd.f32 %v6504_v23, %v6165_v56  ;;  %v6666_v0 = vpop.f32.mrf.mxu2  ;;  %v7733_v56 = vshll.u32 %v11644_v33, 16  ;;  %v7731_v49 = vor.u32 %v7729_v21, %v7727_v44  ;;  %v7239_v23 = vshll.u32 %v15546_v48, 16 }
 0x52e   : > { %v7238_v0 = vrot.slane %v7236_v34, 3  ;;  %v15564_v44 = vunpack.c.l.b16 %v7056_v45 }
 0x52f   : > { %7518 = vmatmul.bf16.gmra.mxu1 %v13126_v3  ;;  %8079 = vmatmul.bf16.gmra.mxu3 %v13402_v55  ;;  %v7735_v6 = vrot.slane %v7733_v56, 1  ;;  %v13130_v55 = vld [vmem:[#allocation3 + $0x6c] sm:$0xff]   ;;  %v7241_v53 = vrot.slane %v7239_v23, 4 }
 0x531   : > { %v15562_v30 = vor.u32 %v7241_v53, %v7238_v0 }
 0x532   : > { %v7008_v26 = vpop.f32.mrf.mxu3 }
 0x534   : > { %v6506_v61 = vpop.f32.mrf.mxu1  ;;  %v7322_v1 = vpop.f32.mrf.mxu0 }
 0x535   : > { %v6667_v18 = vpop.f32.mrf.mxu2  ;;  %v7374_v10 = vadd.f32 %v7322_v1, %v15347_v31 }
 0x536   : > { %v6688_v16 = vadd.f32 %v6667_v18, %v6522_v32  ;;  %v15557_v18 = vld [vmem:[%s16033_s4] ss:$0 sm:$0xff] }
 0x537   : > { %7356 = vmatmul.bf16.gmra.mxu0 %v7225_v15 }
 0x53a   : > { %v7009_v11 = vpop.f32.mrf.mxu3  ;;  %7860 = vmatmul.bf16.gmra.mxu2 %v7728_v29 }
 0x53b   : > { %v15537_v2 = vadd.f32 %v7009_v11, %v6688_v16  ;;  %v7741_v16 = vshll.u32 %v15552_v51, 16 }
 0x53c   : > { %v7488_v37 = vpop.f32.mrf.mxu1  ;;  %v7324_v35 = vpop.f32.mrf.mxu0 }
 0x53d   : > { %v6670_v47 = vpop.f32.mrf.mxu2  ;;  %v7540_v61 = vadd.f32 %v7488_v37, %v7374_v10  ;;  %v7375_v1 = vadd.f32 %v7324_v35, %v15371_v42  ;;  %v15576_v42 = vsel %vm721_vm0, %v15540_v19, %v15562_v30  ;;  %v7136_v37 = vpack.c.b16 %v15564_v44, %v15564_v44 }
 0x53e   : > { %v6689_v24 = vadd.f32 %v6670_v47, %v6523_v12  ;;  %v7736_v12 = vsel %vm1064_vm1, %v7731_v49, %v7735_v6  ;;  %v7737_v35 = vshrl.u32 %v11644_v33, 16  ;;  %v13131_v33 = vld [vmem:[#allocation3 + $0x74] sm:$0xff]  }
 0x53f   : > { %7522 = vmatmul.bf16.gmra.mxu1 %v13128_v43  ;;  %8084 = vmatmul.bf16.gmra.mxu3 %v13404_v58  ;;  %v7743_v58 = vrot.slane %v7741_v16, 1  ;;  %v7245_v56 = vshrl.u32 %v7136_v37, 16  ;;  %v13408_v49 = vld [vmem:[#allocation3 + $0xb4] sm:$0xff]  }
 0x540   : > { %v7739_v27 = vor.u32 %v7737_v35, %v7735_v6  ;;  %v7580_v35 = vld [vmem:[#allocation3 + $0x84] sm:$0x1] }
 0x541   : > { %v7247_v34 = vrot.slane %v7245_v56, 3 }
 0x542   : > { %v7012_v32 = vpop.f32.mrf.mxu3 }
 0x543   : > { %v15542_v40 = vadd.f32 %v7012_v32, %v6689_v24 }
 0x544   : > { %v7490_v39 = vpop.f32.mrf.mxu1  ;;  %v7327_v52 = vpop.f32.mrf.mxu0 }
 0x545   : > { %v6672_v46 = vpop.f32.mrf.mxu2  ;;  %v7541_v29 = vadd.f32 %v7490_v39, %v7375_v1  ;;  %v7248_v39 = vshll.u32 %v7136_v37, 16  ;;  %v7744_v52 = vsel %vm1064_vm1, %v7739_v27, %v7743_v58 }
 0x547   : > { %7360 = vmatmul.bf16.gmra.mxu0 %v7234_v41  ;;  %v7250_v23 = vrot.slane %v7248_v39, 4 }
 0x549   : > { %v7251_v0 = vor.u32 %v7250_v23, %v7247_v34 }
 0x54a   : > { %v7014_v25 = vpop.f32.mrf.mxu3  ;;  %7864 = vmatmul.bf16.gmra.mxu2 %v7736_v12 }
 0x54b   : > { %v7252_v1 = vsel %vm721_vm0, %v15562_v30, %v7251_v0 }
 0x54c   : > { %v7493_v3 = vpop.f32.mrf.mxu1  ;;  %v7328_v14 = vpop.f32.mrf.mxu0 }
 0x54d   : > { %v7830_v26 = vpop.f32.mrf.mxu2  ;;  %v15594_v3 = vld [vmem:[#allocation3 + $0x7c] sm:$0xff]  ;;  %v7376_v45 = vadd.f32 %v7328_v14, %v15404_v63 }
 0x54e   : > { %v7882_v15 = vadd.f32 %v7830_v26, %v7540_v61  ;;  %v7749_v53 = vshll.u32 %v15594_v3, 16 }
 0x54f   : > { %7526 = vmatmul.bf16.gmra.mxu1 %v13130_v55  ;;  %8088 = vmatmul.bf16.gmra.mxu3 %v13406_v13  ;;  %v7948_v55 = vld [vmem:[#allocation3 + $0x68] sm:$0x8] }
 0x550   : > { %v7899_v54 = vmul.f32 %v15557_v18, %v7882_v15  ;;  %v8107_v15 = vunpack.c.l.b16 %v7948_v55 }
 0x552   : > { %v15559_v31 = vpop.f32.mrf.mxu3  ;;  %v7916_v47 = vadd.f32 %v15571_v60, %v7899_v54  ;;  %v7745_v54 = vshrl.u32 %v15552_v51, 16  ;;  %v7647_v51 = vunpack.c.l.b16 %v7580_v35 }
 0x554   : > { %v7494_v50 = vpop.f32.mrf.mxu1  ;;  %v7331_v11 = vpop.f32.mrf.mxu0  ;;  %v7932_v25 = vmax.f32 %v7916_v47, 0.0  ;;  %v7747_v27 = vor.u32 %v7745_v54, %v7743_v58  ;;  %v7753_v54 = vshrl.u32 %v15594_v3, 16 }
 0x555   : > { %v7832_v43 = vpop.f32.mrf.mxu2  ;;  %v7542_v37 = vadd.f32 %v7494_v50, %v7376_v45  ;;  %v7377_v47 = vadd.f32 %v7331_v11, %v15420_v28  ;;  %v7660_v28 = vpack.c.b16 %v7647_v51, %v7647_v51  ;;  %v11655_v11 = vld [vmem:[#allocation3 + $0x6c] sm:$0xff] }
 0x556   : > { %v7883_v22 = vadd.f32 %v7832_v43, %v7541_v29  ;;  %v7751_v29 = vrot.slane %v7749_v53, 1  ;;  %v12162_v43 = vunpack.c.h.b16 %v15546_v48  ;;  %v8401_v55 = vshll.u32 %v11655_v11, 16 }
 0x557   : > { %7365 = vmatmul.bf16.gmra.mxu0 %v15576_v42 }
 0x558   : > { %v7900_v24 = vmul.f32 %v15557_v18, %v7883_v22  ;;  %v8108_v22 = vpack.c.b16 %v7997_v7, %v8107_v15  ;;  %v7418_v50 = vpack.c.b16 %v15564_v44, %v12162_v43  ;;  %v15625_v15 = vld [vmem:[#allocation3 + $0xc0] sm:$0xff]   ;;  %v8403_v43 = vrot.slane %v8401_v55, 1 }
 0x559   : > { %v15642_v55 = vld [vmem:[#allocation3 + $0x7c] sm:$0xff] }
 0x55a   : > { %v15583_v32 = vpop.f32.mrf.mxu3  ;;  %v7917_v46 = vadd.f32 %v15571_v60, %v7900_v24  ;;  %7868 = vmatmul.bf16.gmra.mxu2 %v7744_v52  ;;  %v7752_v24 = vsel %vm1064_vm1, %v7747_v27, %v7751_v29  ;;  %v8122_v52 = vshrl.u32 %v8108_v22, 16  ;;  %v7755_v27 = vor.u32 %v7753_v54, %v7751_v29 }
 0x55c   : > { %v7497_v41 = vpop.f32.mrf.mxu1  ;;  %v7333_v21 = vpop.f32.mrf.mxu0  ;;  %v7933_v6 = vmax.f32 %v7917_v46, 0.0  ;;  %v8125_v46 = vshll.u32 %v8108_v22, 16  ;;  %v7972_v22 = vld [vmem:[#allocation3 + $0xc8] sm:$0xf] }
 0x55d   : > { %v7835_v12 = vpop.f32.mrf.mxu2  ;;  %v7543_v58 = vadd.f32 %v7497_v41, %v7377_v47  ;;  %v8399_v47 = vshrl.u32 %v11655_v11, 16 }
 0x55e   : > { %v12302_v10 = vpack.c.bf16 %v7933_v6, %v7932_v25  ;;  %v8127_v25 = vrot.slane %v8125_v46, 4  ;;  %v15617_v6 = vld [vmem:[#allocation3 + $0x74] sm:$0xff]  ;;  %v7757_v12 = vshll.u32 %v7660_v28, 16 }
 0x55f   : > { %7531 = vmatmul.bf16.gmra.mxu1 %v13131_v33  ;;  %8092 = vmatmul.bf16.gmra.mxu3 %v13408_v49  ;;  %v8124_v49 = vrot.slane %v8122_v52, 3  ;;  %v8406_v53 = vshll.u32 %v15617_v6, 16  ;;  %v13411_v52 = vld [vmem:[#allocation3 + $0x74] sm:$0xf0]   ;;  %v8404_v3 = vor.u32 %v8403_v43, %v8399_v47 }
 0x560   : > { %12303 = vst [vmem:[%s15592_s27] sm:$0xff] %v12302_v10  }
 0x561   : > { %v8128_v0 = vor.u32 %v8127_v25, %v8124_v49 }
 0x562   : > { %v8059_v13 = vpop.f32.mrf.mxu3 }
 0x564   : > { %v7499_v26 = vpop.f32.mrf.mxu1  ;;  %v15599_v61 = vpop.f32.mrf.mxu0 }
 0x565   : > { %v7836_v16 = vpop.f32.mrf.mxu2 }
 0x566   : > { %v7884_v63 = vadd.f32 %v7836_v16, %v7542_v37  ;;  %v7759_v37 = vrot.slane %v7757_v12, 1 }
 0x567   : > { %7369 = vmatmul.bf16.gmra.mxu0 %v7252_v1  ;;  %v8137_v1 = vsel %vm721_vm0, %v8128_v0, %v15540_v19  ;;  %v15633_v19 = vunpack.c.l.b16 %v7972_v22 }
 0x568   : > { %v7901_v7 = vmul.f32 %v15557_v18, %v7884_v63  ;;  %v12206_v63 = vunpack.c.h.b16 %v15625_v15  ;;  %v7760_v46 = vsel %vm1064_vm1, %v7755_v27, %v7759_v37 }
 0x56a   : > { %v15607_v14 = vpop.f32.mrf.mxu3  ;;  %7873 = vmatmul.bf16.gmra.mxu2 %v7752_v24  ;;  %v7918_v44 = vadd.f32 %v15571_v60, %v7901_v7  ;;  %v8408_v24 = vrot.slane %v8406_v53, 1  ;;  %v13413_v7 = vld [vmem:[#allocation3 + $0x7c] sm:$0xff]  }
 0x56b   : > { %v8684_v49 = vshrl.u32 %v13413_v7, 16  ;;  %v8687_v25 = vshll.u32 %v13413_v7, 16 }
 0x56c   : > { %v15611_v56 = vpop.f32.mrf.mxu1  ;;  %v15614_v39 = vpop.f32.mrf.mxu0  ;;  %v7934_v26 = vmax.f32 %v7918_v44, 0.0  ;;  %v8409_v28 = vsel %vm1064_vm1, %v8404_v3, %v8408_v24  ;;  %v13415_v3 = vld [vmem:[#allocation3 + $0x84] sm:$0xff]  }
 0x56d   : > { %v7839_v33 = vpop.f32.mrf.mxu2  ;;  %v8689_v0 = vrot.slane %v8687_v25, 4  ;;  %v8696_v25 = vshll.u32 %v13415_v3, 16 }
 0x56e   : > { %v7885_v21 = vadd.f32 %v7839_v33, %v7543_v58  ;;  %v7378_v58 = vadd.f32 %v15599_v61, %v15439_v36  ;;  %v8032_v33 = vpack.c.b16 %v15633_v19, %v12206_v63 }
 0x56f   : > { %7535 = vmatmul.bf16.gmra.mxu1 %v7418_v50  ;;  %8097 = vmatmul.bf16.gmra.mxu3 %v13409_v62  ;;  %v13184_v50 = vld [vmem:[#allocation3 + $0x74] sm:$0x8] }
 0x570   : > { %v7902_v34 = vmul.f32 %v15557_v18, %v7885_v21  ;;  %v13185_v11 = vor.u32 %v13411_v52, %v13184_v50  ;;  %v7544_v44 = vadd.f32 %v15611_v56, %v7378_v58 }
 0x572   : > { %v15621_v23 = vpop.f32.mrf.mxu3  ;;  %v7919_v41 = vadd.f32 %v15571_v60, %v7902_v34  ;;  %v8676_v34 = vshrl.u32 %v13185_v11, 16  ;;  %v8679_v12 = vshll.u32 %v13185_v11, 16 }
 0x574   : > { %v7503_v10 = vpop.f32.mrf.mxu1  ;;  %v7340_v13 = vpop.f32.mrf.mxu0  ;;  %v7935_v45 = vmax.f32 %v7919_v41, 0.0  ;;  %v7379_v41 = vadd.f32 %v15614_v39, %v15454_v9  ;;  %v8410_v9 = vshrl.u32 %v15617_v6, 16 }
 0x575   : > { %v7841_v16 = vpop.f32.mrf.mxu2  ;;  %v8686_v13 = vrot.slane %v8684_v49, 3  ;;  %v8693_v49 = vshrl.u32 %v13415_v3, 16 }
 0x576   : > { %v12307_v35 = vpack.c.bf16 %v7935_v45, %v7934_v26  ;;  %v8678_v45 = vrot.slane %v8676_v34, 3  ;;  %v8414_v16 = vshll.u32 %v15642_v55, 16  ;;  %v7545_v54 = vadd.f32 %v7503_v10, %v7379_v41 }
 0x577   : > { %8257 = vmatmul.bf16.vlgmr.msrb.gmra.mxu0 %v8137_v1  ;;  %v8681_v1 = vrot.slane %v8679_v12, 4  ;;  %v8690_v43 = vor.u32 %v8689_v0, %v8686_v13  ;;  %v8698_v41 = vrot.slane %v8696_v25, 4 }
 0x578   : > { %12730 = vst [vmem:[%s15592_s27 + $0x8] sm:$0xff] %v12307_v35   ;;  %v12658_v35 = vld [vmem:[#allocation3 + $0x80] sm:$0xff]   ;;  %v8416_v39 = vrot.slane %v8414_v16, 1 }
 0x579   : > { %v8682_v27 = vor.u32 %v8681_v1, %v8678_v45  ;;  %v8148_v50 = vshrl.u32 %v12658_v35, 16  ;;  %v8151_v52 = vshll.u32 %v12658_v35, 16 }
 0x57a   : > { %v8065_v51 = vpop.f32.mrf.mxu3  ;;  %7877 = vmatmul.bf16.gmra.mxu2 %v7760_v46 }
 0x57b   : > { %v8691_v10 = vsel %vm721_vm0, %v8682_v27, %v8690_v43  ;;  %v8153_v11 = vrot.slane %v8151_v52, 4 }
 0x57c   : > { %v7506_v62 = vpop.f32.mrf.mxu1  ;;  %v15637_v29 = vpop.f32.mrf.mxu0 }
 0x57d   : > { %v7843_v21 = vpop.f32.mrf.mxu2  ;;  %v8412_v62 = vor.u32 %v8410_v9, %v8408_v24  ;;  %v15660_v24 = vld [vmem:[#allocation3 + $0x84] sm:$0xff]  ;;  %v7380_v0 = vadd.f32 %v15637_v29, %v15479_v17 }
 0x57e   : > { %v7886_v36 = vadd.f32 %v7843_v21, %v7544_v44  ;;  %v8422_v1 = vshll.u32 %v15660_v24, 16 }
 0x57f   : > { %8518 = vmatmul.bf16.vlgmr.msrb.gmra.mxu1 %v8409_v28  ;;  %8101 = vmatmul.bf16.gmra.mxu3 %v8032_v33  ;;  %v8417_v6 = vsel %vm1064_vm1, %v8412_v62, %v8416_v39  ;;  %v8150_v28 = vrot.slane %v8148_v50, 3 }
 0x580   : > { %v7903_v56 = vmul.f32 %v15557_v18, %v7886_v36  ;;  %v8695_v36 = vrot.slane %v8693_v49, 3  ;;  %v8424_v27 = vrot.slane %v8422_v1, 1  ;;  %v12660_v1 = vld [vmem:[#allocation3 + $0x90] sm:$0xff]  }
 0x581   : > { %v8154_v12 = vor.u32 %v8153_v11, %v8150_v28 }
 0x582   : > { %v15644_v61 = vpop.f32.mrf.mxu3  ;;  %v7920_v63 = vadd.f32 %v15571_v60, %v7903_v56  ;;  %v8699_v56 = vor.u32 %v8698_v41, %v8695_v36 }
 0x584   : > { %v7507_v53 = vpop.f32.mrf.mxu1  ;;  %v7344_v26 = vpop.f32.mrf.mxu0  ;;  %v7936_v58 = vmax.f32 %v7920_v63, 0.0 }
 0x585   : > { %v7845_v37 = vpop.f32.mrf.mxu2  ;;  %v7381_v17 = vadd.f32 %v7344_v26, %v15488_v8 }
 0x586   : > { %v7887_v22 = vadd.f32 %v7845_v37, %v7545_v54  ;;  %v15668_v54 = vld [vmem:[#allocation3 + $0x88] sm:$0xff]   ;;  %v7546_v37 = vadd.f32 %v7507_v53, %v7380_v0 }
 0x587   : > { %8262 = vmatmul.bf16.gmra.mxu0 %v15576_v42  ;;  %v8157_v29 = vshrl.u32 %v15668_v54, 16 }
 0x588   : > { %v7904_v47 = vmul.f32 %v15557_v18, %v7887_v22  ;;  %v8418_v22 = vshrl.u32 %v15642_v55, 16 }
 0x58a   : > { %v15654_v51 = vpop.f32.mrf.mxu3  ;;  %v7921_v42 = vadd.f32 %v15571_v60, %v7904_v47  ;;  %8811 = vmatmul.bf16.vlgmr.msrb.gmra.mxu2 %v8691_v10  ;;  %v8160_v47 = vshll.u32 %v15668_v54, 16  ;;  %v8420_v52 = vor.u32 %v8418_v22, %v8416_v39  ;;  %v13417_v10 = vld [vmem:[#allocation3 + $0x8c] sm:$0xff]  }
 0x58b   : > { %v8702_v26 = vshrl.u32 %v13417_v10, 16 }
 0x58c   : > { %v7510_v46 = vpop.f32.mrf.mxu1  ;;  %v7346_v7 = vpop.f32.mrf.mxu0  ;;  %v7937_v33 = vmax.f32 %v7921_v42, 0.0  ;;  %v8425_v53 = vsel %vm1064_vm1, %v8420_v52, %v8424_v27  ;;  %v8159_v42 = vrot.slane %v8157_v29, 3  ;;  %v13419_v52 = vld [vmem:[#allocation3 + $0x94] sm:$0xff]  }
 0x58d   : > { %v7848_v21 = vpop.f32.mrf.mxu2  ;;  %v7547_v3 = vadd.f32 %v7510_v46, %v7381_v17  ;;  %v8162_v7 = vrot.slane %v8160_v47, 4  ;;  %v8169_v17 = vshll.u32 %v12660_v1, 16 }
 0x58e   : > { %v12312_v44 = vpack.c.bf16 %v7937_v33, %v7936_v58  ;;  %v15679_v33 = vld [vmem:[#allocation3 + $0x8c] sm:$0xff]  ;;  %v8704_v21 = vrot.slane %v8702_v26, 3  ;;  %v15697_v26 = vld [vmem:[#allocation3 + $0x94] sm:$0xff] }
 0x58f   : > { %8523 = vmatmul.bf16.gmra.mxu1 %v8417_v6  ;;  %8912 = vmatmul.bf16.vlgmr.msrb.gmra.mxu3 %v15546_v48  ;;  %v8155_v48 = vsel %vm721_vm0, %v15562_v30, %v8154_v12  ;;  %v8700_v30 = vsel %vm721_vm0, %v8690_v43, %v8699_v56  ;;  %v8705_v6 = vshll.u32 %v13417_v10, 16  ;;  %v15685_v11 = vor.u32 %v8162_v7, %v8159_v42 }
 0x590   : > { %12731 = vst [vmem:[%s15592_s27 + $0x10] sm:$0xff] %v12312_v44   ;;  %v8430_v44 = vshll.u32 %v15679_v33, 16  ;;  %v8711_v42 = vshrl.u32 %v13419_v52, 16  ;;  %v8714_v7 = vshll.u32 %v13419_v52, 16 }
 0x591   : > { %v8707_v46 = vrot.slane %v8705_v6, 4  ;;  %v8164_v41 = vsel %vm721_vm0, %v8154_v12, %v15685_v11 }
 0x592   : > { %v8072_v34 = vpop.f32.mrf.mxu3  ;;  %v8713_v6 = vrot.slane %v8711_v42, 3 }
 0x593   : > { %v8708_v0 = vor.u32 %v8707_v46, %v8704_v21  ;;  %v8438_v21 = vshll.u32 %v15697_v26, 16 }
 0x594   : > { %v7512_v13 = vpop.f32.mrf.mxu1  ;;  %v7348_v45 = vpop.f32.mrf.mxu0 }
 0x595   : > { %v7849_v16 = vpop.f32.mrf.mxu2  ;;  %v8709_v29 = vsel %vm721_vm0, %v8699_v56, %v8708_v0  ;;  %v7382_v10 = vadd.f32 %v7348_v45, %v15501_v59 }
 0x596   : > { %v7888_v9 = vadd.f32 %v7849_v16, %v7546_v37  ;;  %v8426_v16 = vshrl.u32 %v15660_v24, 16  ;;  %v8432_v37 = vrot.slane %v8430_v44, 1 }
 0x597   : > { %8266 = vmatmul.bf16.gmra.mxu0 %v8155_v48 }
 0x598   : > { %v7905_v55 = vmul.f32 %v15557_v18, %v7888_v9  ;;  %v8166_v9 = vshrl.u32 %v12660_v1, 16 }
 0x59a   : > { %v15671_v63 = vpop.f32.mrf.mxu3  ;;  %8816 = vmatmul.bf16.gmra.mxu2 %v8700_v30  ;;  %v7922_v43 = vadd.f32 %v15571_v60, %v7905_v55  ;;  %v8428_v30 = vor.u32 %v8426_v16, %v8424_v27  ;;  %v8168_v55 = vrot.slane %v8166_v9, 3 }
 0x59c   : > { %v7514_v50 = vpop.f32.mrf.mxu1  ;;  %v7350_v62 = vpop.f32.mrf.mxu0  ;;  %v7938_v34 = vmax.f32 %v7922_v43, 0.0 }
 0x59d   : > { %v7852_v8 = vpop.f32.mrf.mxu2  ;;  %v7383_v59 = vadd.f32 %v7350_v62, %v15507_v57  ;;  %v8434_v62 = vshrl.u32 %v15679_v33, 16 }
 0x59e   : > { %v7889_v58 = vadd.f32 %v7852_v8, %v7547_v3  ;;  %v8171_v3 = vrot.slane %v8169_v17, 4  ;;  %v7548_v8 = vadd.f32 %v7514_v50, %v7382_v10 }
 0x59f   : > { %8527 = vmatmul.bf16.gmra.mxu1 %v8425_v53  ;;  %8917 = vmatmul.bf16.gmra.mxu3 %v12658_v35  ;;  %v8433_v53 = vsel %vm1064_vm1, %v8428_v30, %v8432_v37  ;;  %v8436_v17 = vor.u32 %v8434_v62, %v8432_v37 }
 0x5a0   : > { %v7906_v39 = vmul.f32 %v15557_v18, %v7889_v58  ;;  %v8172_v45 = vor.u32 %v8171_v3, %v8168_v55  ;;  %v8716_v58 = vrot.slane %v8714_v7, 4  ;;  %v15717_v7 = vld [vmem:[#allocation3 + $0x9c] sm:$0xff] }
 0x5a2   : > { %v15683_v28 = vpop.f32.mrf.mxu3  ;;  %v7923_v35 = vadd.f32 %v15571_v60, %v7906_v39  ;;  %v15706_v50 = vsel %vm721_vm0, %v15685_v11, %v8172_v45  ;;  %v8717_v44 = vor.u32 %v8716_v58, %v8713_v6 }
 0x5a4   : > { %v7516_v49 = vpop.f32.mrf.mxu1  ;;  %v7353_v25 = vpop.f32.mrf.mxu0  ;;  %v7939_v36 = vmax.f32 %v7923_v35, 0.0 }
 0x5a5   : > { %v7854_v13 = vpop.f32.mrf.mxu2  ;;  %v7549_v35 = vadd.f32 %v7516_v49, %v7383_v59 }
 0x5a6   : > { %v12317_v48 = vpack.c.bf16 %v7939_v36, %v7938_v34  ;;  %v12661_v34 = vld [vmem:[#allocation3 + $0x98] sm:$0xff]   ;;  %v8440_v36 = vrot.slane %v8438_v21, 1 }
 0x5a7   : > { %8270 = vmatmul.bf16.gmra.mxu0 %v8164_v41  ;;  %v8175_v49 = vshrl.u32 %v12661_v34, 16  ;;  %v8178_v16 = vshll.u32 %v12661_v34, 16 }
 0x5a8   : > { %12732 = vst [vmem:[%s15592_s27 + $0x18] sm:$0xff] %v12317_v48   ;;  %v8441_v33 = vsel %vm1064_vm1, %v8436_v17, %v8440_v36 }
 0x5a9   : > { %v8180_v55 = vrot.slane %v8178_v16, 4 }
 0x5aa   : > { %v8078_v22 = vpop.f32.mrf.mxu3  ;;  %8820 = vmatmul.bf16.gmra.mxu2 %v8709_v29  ;;  %v13421_v29 = vld [vmem:[#allocation3 + $0x9c] sm:$0xff]  }
 0x5ab   : > { %v8718_v22 = vsel %vm721_vm0, %v8708_v0, %v8717_v44  ;;  %v8723_v42 = vshll.u32 %v13421_v29, 16 }
 0x5ac   : > { %v7519_v47 = vpop.f32.mrf.mxu1  ;;  %v7354_v12 = vpop.f32.mrf.mxu0 }
 0x5ad   : > { %v7856_v24 = vpop.f32.mrf.mxu2  ;;  %v8725_v59 = vrot.slane %v8723_v42, 4  ;;  %v7384_v58 = vadd.f32 %v7354_v12, %v15514_v20 }
 0x5ae   : > { %v7890_v56 = vadd.f32 %v7856_v24, %v7548_v8  ;;  %v8720_v24 = vshrl.u32 %v13421_v29, 16 }
 0x5af   : > { %8531 = vmatmul.bf16.gmra.mxu1 %v8433_v53  ;;  %8921 = vmatmul.bf16.gmra.mxu3 %v15668_v54  ;;  %v8177_v53 = vrot.slane %v8175_v49, 3 }
 0x5b0   : > { %v7907_v46 = vmul.f32 %v15557_v18, %v7890_v56  ;;  %v8722_v56 = vrot.slane %v8720_v24, 3 }
 0x5b1   : > { %v8181_v8 = vor.u32 %v8180_v55, %v8177_v53 }
 0x5b2   : > { %v15699_v27 = vpop.f32.mrf.mxu3  ;;  %v7924_v41 = vadd.f32 %v15571_v60, %v7907_v46  ;;  %v8446_v46 = vshll.u32 %v15717_v7, 16 }
 0x5b4   : > { %v7520_v43 = vpop.f32.mrf.mxu1  ;;  %v7357_v39 = vpop.f32.mrf.mxu0  ;;  %v7940_v52 = vmax.f32 %v7924_v41, 0.0  ;;  %v8442_v41 = vshrl.u32 %v15697_v26, 16 }
 0x5b5   : > { %v7858_v25 = vpop.f32.mrf.mxu2  ;;  %v7550_v62 = vadd.f32 %v7520_v43, %v7384_v58  ;;  %v7385_v20 = vadd.f32 %v7357_v39, %v15518_v4 }
 0x5b6   : > { %v7891_v57 = vadd.f32 %v7858_v25, %v7549_v35  ;;  %v15723_v35 = vsel %vm721_vm0, %v8172_v45, %v8181_v8  ;;  %v8726_v25 = vor.u32 %v8725_v59, %v8722_v56  ;;  %v8444_v29 = vor.u32 %v8442_v41, %v8440_v36  ;;  %v12663_v41 = vld [vmem:[#allocation3 + $0xa8] sm:$0xff]  }
 0x5b7   : > { %8275 = vmatmul.bf16.gmra.mxu0 %v15706_v50 }
 0x5b8   : > { %v7908_v13 = vmul.f32 %v15557_v18, %v7891_v57  ;;  %v12662_v57 = vld [vmem:[#allocation3 + $0xa0] sm:$0xff]   ;;  %v8727_v17 = vsel %vm721_vm0, %v8717_v44, %v8726_v25 }
 0x5b9   : > { %v8184_v12 = vshrl.u32 %v12662_v57, 16 }
 0x5ba   : > { %v15712_v48 = vpop.f32.mrf.mxu3  ;;  %v7925_v47 = vadd.f32 %v15571_v60, %v7908_v13  ;;  %8824 = vmatmul.bf16.gmra.mxu2 %v8718_v22  ;;  %v8448_v13 = vrot.slane %v8446_v46, 1  ;;  %v8187_v22 = vshll.u32 %v12662_v57, 16 }
 0x5bc   : > { %v7523_v9 = vpop.f32.mrf.mxu1  ;;  %v7359_v30 = vpop.f32.mrf.mxu0  ;;  %v7941_v10 = vmax.f32 %v7925_v47, 0.0  ;;  %v13423_v47 = vld [vmem:[#allocation3 + $0xa4] sm:$0xff]  }
 0x5bd   : > { %v7861_v3 = vpop.f32.mrf.mxu2  ;;  %v7551_v26 = vadd.f32 %v7523_v9, %v7385_v20  ;;  %v8729_v4 = vshrl.u32 %v13423_v47, 16  ;;  %v8732_v39 = vshll.u32 %v13423_v47, 16  ;;  %v8450_v20 = vshrl.u32 %v15717_v7, 16 }
 0x5be   : > { %v12322_v0 = vpack.c.bf16 %v7941_v10, %v7940_v52  ;;  %v8186_v52 = vrot.slane %v8184_v12, 3  ;;  %v8189_v10 = vrot.slane %v8187_v22, 4  ;;  %v15733_v3 = vld [vmem:[#allocation3 + $0xa4] sm:$0xff] }
 0x5bf   : > { %8536 = vmatmul.bf16.gmra.mxu1 %v8441_v33  ;;  %8925 = vmatmul.bf16.gmra.mxu3 %v12660_v1  ;;  %v8449_v33 = vsel %vm1064_vm1, %v8444_v29, %v8448_v13  ;;  %v8734_v9 = vrot.slane %v8732_v39, 4  ;;  %v8454_v59 = vshll.u32 %v15733_v3, 16  ;;  %v8196_v29 = vshll.u32 %v12663_v41, 16 }
 0x5c0   : > { %12733 = vst [vmem:[%s15592_s27 + $0x20] sm:$0xff] %v12322_v0   ;;  %v8190_v42 = vor.u32 %v8189_v10, %v8186_v52  ;;  %v8731_v0 = vrot.slane %v8729_v4, 3 }
 0x5c1   : > { %v8456_v12 = vrot.slane %v8454_v59, 1  ;;  %v8198_v4 = vrot.slane %v8196_v29, 4 }
 0x5c2   : > { %v8085_v37 = vpop.f32.mrf.mxu3  ;;  %v15742_v46 = vsel %vm721_vm0, %v8181_v8, %v8190_v42 }
 0x5c4   : > { %v7525_v6 = vpop.f32.mrf.mxu1  ;;  %v7361_v21 = vpop.f32.mrf.mxu0 }
 0x5c5   : > { %v7862_v1 = vpop.f32.mrf.mxu2  ;;  %v7386_v8 = vadd.f32 %v7361_v21, %v15525_v5 }
 0x5c6   : > { %v7892_v49 = vadd.f32 %v7862_v1, %v7550_v62  ;;  %v8735_v62 = vor.u32 %v8734_v9, %v8731_v0 }
 0x5c7   : > { %8279 = vmatmul.bf16.gmra.mxu0 %v15723_v35 }
 0x5c8   : > { %v7909_v43 = vmul.f32 %v15557_v18, %v7892_v49  ;;  %v8736_v47 = vsel %vm721_vm0, %v8726_v25, %v8735_v62 }
 0x5ca   : > { %v15727_v16 = vpop.f32.mrf.mxu3  ;;  %8829 = vmatmul.bf16.gmra.mxu2 %v8727_v17  ;;  %v7926_v44 = vadd.f32 %v15571_v60, %v7909_v43  ;;  %v8193_v17 = vshrl.u32 %v12663_v41, 16  ;;  %v8452_v43 = vor.u32 %v8450_v20, %v8448_v13 }
 0x5cc   : > { %v7527_v45 = vpop.f32.mrf.mxu1  ;;  %v7363_v30 = vpop.f32.mrf.mxu0  ;;  %v7942_v6 = vmax.f32 %v7926_v44, 0.0  ;;  %v8457_v10 = vsel %vm1064_vm1, %v8452_v43, %v8456_v12 }
 0x5cd   : > { %v7865_v53 = vpop.f32.mrf.mxu2  ;;  %v7552_v44 = vadd.f32 %v7527_v45, %v7386_v8  ;;  %v7387_v13 = vadd.f32 %v7363_v30, %v15531_v38  ;;  %v8458_v30 = vshrl.u32 %v15733_v3, 16 }
 0x5ce   : > { %v7893_v55 = vadd.f32 %v7865_v53, %v7551_v26  ;;  %v13425_v26 = vld [vmem:[#allocation3 + $0xac] sm:$0xff]   ;;  %v8195_v53 = vrot.slane %v8193_v17, 3 }
 0x5cf   : > { %8540 = vmatmul.bf16.gmra.mxu1 %v8449_v33  ;;  %8930 = vmatmul.bf16.gmra.mxu3 %v12661_v34  ;;  %v8738_v39 = vshrl.u32 %v13425_v26, 16  ;;  %v8460_v43 = vor.u32 %v8458_v30, %v8456_v12 }
 0x5d0   : > { %v7910_v36 = vmul.f32 %v15557_v18, %v7893_v55  ;;  %v8741_v55 = vshll.u32 %v13425_v26, 16  ;;  %v8199_v5 = vor.u32 %v8198_v4, %v8195_v53  ;;  %v13427_v26 = vld [vmem:[#allocation3 + $0xb4] sm:$0xff]  }
 0x5d1   : > { %v8740_v21 = vrot.slane %v8738_v39, 3 }
 0x5d2   : > { %v15737_v24 = vpop.f32.mrf.mxu3  ;;  %v7927_v56 = vadd.f32 %v15571_v60, %v7910_v36  ;;  %v15750_v36 = vld [vmem:[#allocation3 + $0xac] sm:$0xff]  ;;  %v8743_v9 = vrot.slane %v8741_v55, 4 }
 0x5d3   : > { %v8462_v59 = vshll.u32 %v15750_v36, 16 }
 0x5d4   : > { %v7529_v37 = vpop.f32.mrf.mxu1  ;;  %v7366_v34 = vpop.f32.mrf.mxu0  ;;  %v7943_v58 = vmax.f32 %v7927_v56, 0.0 }
 0x5d5   : > { %v7867_v1 = vpop.f32.mrf.mxu2  ;;  %v8464_v20 = vrot.slane %v8462_v59, 1 }
 0x5d6   : > { %v12327_v49 = vpack.c.bf16 %v7943_v58, %v7942_v6  ;;  %v7553_v6 = vadd.f32 %v7529_v37, %v7387_v13  ;;  %v15758_v58 = vsel %vm721_vm0, %v8190_v42, %v8199_v5  ;;  %v8744_v1 = vor.u32 %v8743_v9, %v8740_v21  ;;  %v15773_v13 = vld [vmem:[#allocation3 + $0xb4] sm:$0xff] }
 0x5d7   : > { %8283 = vmatmul.bf16.gmra.mxu0 %v15742_v46 }
 0x5d8   : > { %12734 = vst [vmem:[%s15592_s27 + $0x28] sm:$0xff] %v12327_v49   ;;  %v15761_v49 = vld [vmem:[#allocation3 + $0xb0] sm:$0xff]  }
 0x5d9   : > { %v8202_v37 = vshrl.u32 %v15761_v49, 16  ;;  %v8205_v42 = vshll.u32 %v15761_v49, 16 }
 0x5da   : > { %v8091_v22 = vpop.f32.mrf.mxu3  ;;  %8833 = vmatmul.bf16.gmra.mxu2 %v8736_v47  ;;  %v8745_v47 = vsel %vm721_vm0, %v8735_v62, %v8744_v1 }
 0x5db   : > { %v8207_v39 = vrot.slane %v8205_v42, 4 }
 0x5dc   : > { %v7532_v33 = vpop.f32.mrf.mxu1  ;;  %v7367_v52 = vpop.f32.mrf.mxu0 }
 0x5dd   : > { %v7869_v7 = vpop.f32.mrf.mxu2 }
 0x5de   : > { %v7894_v25 = vadd.f32 %v7869_v7, %v7552_v44  ;;  %v8204_v7 = vrot.slane %v8202_v37, 3  ;;  %v8747_v44 = vshrl.u32 %v13427_v26, 16 }
 0x5df   : > { %8544 = vmatmul.bf16.gmra.mxu1 %v8457_v10  ;;  %8934 = vmatmul.bf16.gmra.mxu3 %v12662_v57  ;;  %v8465_v10 = vsel %vm1064_vm1, %v8460_v43, %v8464_v20 }
 0x5e0   : > { %v7911_v57 = vmul.f32 %v15557_v18, %v7894_v25  ;;  %v8750_v25 = vshll.u32 %v13427_v26, 16  ;;  %v8208_v21 = vor.u32 %v8207_v39, %v8204_v7  ;;  %v8749_v9 = vrot.slane %v8747_v44, 3 }
 0x5e2   : > { %v15752_v0 = vpop.f32.mrf.mxu3  ;;  %v7928_v22 = vadd.f32 %v15571_v60, %v7911_v57  ;;  %v8752_v59 = vrot.slane %v8750_v25, 4  ;;  %v15779_v30 = vsel %vm721_vm0, %v8199_v5, %v8208_v21 }
 0x5e4   : > { %v7533_v56 = vpop.f32.mrf.mxu1  ;;  %v7370_v34 = vpop.f32.mrf.mxu0  ;;  %v7944_v53 = vmax.f32 %v7928_v22, 0.0  ;;  %v8753_v22 = vor.u32 %v8752_v59, %v8749_v9 }
 0x5e5   : > { %v7871_v45 = vpop.f32.mrf.mxu2 }
 0x5e6   : > { %v7895_v38 = vadd.f32 %v7871_v45, %v7553_v6  ;;  %v7388_v6 = vadd.f32 %v7367_v52, %v15537_v2  ;;  %v7389_v52 = vadd.f32 %v7370_v34, %v15542_v40 }
 0x5e7   : > { %8288 = vmatmul.bf16.gmra.mxu0 %v15758_v58 }
 0x5e8   : > { %v7912_v17 = vmul.f32 %v15557_v18, %v7895_v38  ;;  %v8470_v38 = vshll.u32 %v15773_v13, 16  ;;  %v7554_v37 = vadd.f32 %v7533_v56, %v7388_v6 }
 0x5ea   : > { %v15766_v29 = vpop.f32.mrf.mxu3  ;;  %v7929_v8 = vadd.f32 %v15571_v60, %v7912_v17  ;;  %8837 = vmatmul.bf16.gmra.mxu2 %v8745_v47  ;;  %v15782_v17 = vld [vmem:[#allocation3 + $0xb8] sm:$0xff]   ;;  %v8466_v47 = vshrl.u32 %v15750_v36, 16  ;;  %v8472_v43 = vrot.slane %v8470_v38, 1 }
 0x5eb   : > { %v8211_v5 = vshrl.u32 %v15782_v17, 16 }
 0x5ec   : > { %v7536_v33 = vpop.f32.mrf.mxu1  ;;  %v7372_v3 = vpop.f32.mrf.mxu0  ;;  %v7945_v4 = vmax.f32 %v7929_v8, 0.0  ;;  %v8214_v8 = vshll.u32 %v15782_v17, 16 }
 0x5ed   : > { %v7874_v55 = vpop.f32.mrf.mxu2  ;;  %v8754_v3 = vsel %vm721_vm0, %v8744_v1, %v8753_v22  ;;  %v7555_v39 = vadd.f32 %v7536_v33, %v7389_v52 }
 0x5ee   : > { %v12332_v62 = vpack.c.bf16 %v7945_v4, %v7944_v53  ;;  %v8468_v53 = vor.u32 %v8466_v47, %v8464_v20  ;;  %v13429_v4 = vld [vmem:[#allocation3 + $0xbc] sm:$0xff]   ;;  %v8213_v55 = vrot.slane %v8211_v5, 3  ;;  %v8216_v40 = vrot.slane %v8214_v8, 4 }
 0x5ef   : > { %8549 = vmatmul.bf16.gmra.mxu1 %v8465_v10  ;;  %8938 = vmatmul.bf16.gmra.mxu3 %v12663_v41  ;;  %v8756_v44 = vshrl.u32 %v13429_v4, 16  ;;  %v8759_v25 = vshll.u32 %v13429_v4, 16  ;;  %v8474_v5 = vshrl.u32 %v15773_v13, 16 }
 0x5f0   : > { %12735 = vst [vmem:[%s15592_s27 + $0x30] sm:$0xff] %v12332_v62   ;;  %v8473_v36 = vsel %vm1064_vm1, %v8468_v53, %v8472_v43  ;;  %v15796_v62 = vld [vmem:[#allocation3 + $0xbc] sm:$0xff]  ;;  %v15802_v33 = vor.u32 %v8216_v40, %v8213_v55 }
 0x5f1   : > { %v8761_v6 = vrot.slane %v8759_v25, 4 }
 0x5f2   : > { %v8098_v12 = vpop.f32.mrf.mxu3  ;;  %v15808_v47 = vsel %vm721_vm0, %v8208_v21, %v15802_v33  ;;  %v13431_v21 = vld [vmem:[#allocation3 + $0xc4] sm:$0xff]  }
 0x5f3   : > { %v8765_v40 = vshrl.u32 %v13431_v21, 16 }
 0x5f4   : > { %v7538_v57 = vpop.f32.mrf.mxu1  ;;  %v8258_v45 = vpop.f32.mrf.mxu0 }
 0x5f5   : > { %v7875_v41 = vpop.f32.mrf.mxu2  ;;  %v8259_v42 = vadd.f32 %v8258_v45, %v15559_v31  ;;  %v8758_v57 = vrot.slane %v8756_v44, 3 }
 0x5f6   : > { %v7896_v26 = vadd.f32 %v7875_v41, %v7554_v37 }
 0x5f7   : > { %8292 = vmatmul.bf16.gmra.mxu0 %v15779_v30 }
 0x5f8   : > { %v7913_v7 = vmul.f32 %v15557_v18, %v7896_v26  ;;  %v8762_v26 = vor.u32 %v8761_v6, %v8758_v57 }
 0x5fa   : > { %v15786_v2 = vpop.f32.mrf.mxu3  ;;  %8842 = vmatmul.bf16.gmra.mxu2 %v8754_v3  ;;  %v7930_v12 = vadd.f32 %v15571_v60, %v7913_v7  ;;  %v8220_v3 = vshrl.u32 %v15625_v15, 16  ;;  %v8763_v53 = vsel %vm721_vm0, %v8753_v22, %v8762_v26 }
 0x5fc   : > { %v8519_v10 = vpop.f32.mrf.mxu1  ;;  %v8260_v31 = vpop.f32.mrf.mxu0  ;;  %v7946_v37 = vmax.f32 %v7930_v12, 0.0  ;;  %v8767_v12 = vrot.slane %v8765_v40, 3 }
 0x5fd   : > { %v8571_v56 = vadd.f32 %v8519_v10, %v8259_v42  ;;  %v7878_v34 = vpop.f32.mrf.mxu2  ;;  %v8261_v20 = vadd.f32 %v8260_v31, %v15583_v32  ;;  %v8478_v32 = vshll.u32 %v15796_v62, 16  ;;  %v8223_v10 = vshll.u32 %v15625_v15, 16 }
 0x5fe   : > { %v7897_v1 = vadd.f32 %v7878_v34, %v7555_v39  ;;  %v8476_v31 = vor.u32 %v8474_v5, %v8472_v43  ;;  %v8222_v39 = vrot.slane %v8220_v3, 3  ;;  %v8768_v34 = vshll.u32 %v13431_v21, 16  ;;  %v8334_v3 = vld [vmem:[#allocation3 + $0xcc] sm:$0x1] }
 0x5ff   : > { %8553 = vmatmul.bf16.gmra.mxu1 %v8473_v36  ;;  %8943 = vmatmul.bf16.gmra.mxu3 %v15761_v49  ;;  %v8480_v8 = vrot.slane %v8478_v32, 1  ;;  %v8225_v55 = vrot.slane %v8223_v10, 4 }
 0x600   : > { %v7914_v9 = vmul.f32 %v15557_v18, %v7897_v1  ;;  %v15819_v1 = vld [vmem:[#allocation3 + $0xc4] sm:$0xff] }
 0x601   : > { %v8481_v7 = vsel %vm1064_vm1, %v8476_v31, %v8480_v8  ;;  %v8226_v43 = vor.u32 %v8225_v55, %v8222_v39  ;;  %v13432_v31 = vld [vmem:[#allocation3 + $0xcc] sm:$0xff]  }
 0x602   : > { %v15800_v59 = vpop.f32.mrf.mxu3  ;;  %v7931_v45 = vadd.f32 %v15571_v60, %v7914_v9  ;;  %v8770_v9 = vrot.slane %v8768_v34, 4  ;;  %v8774_v55 = vshrl.u32 %v13432_v31, 16 }
 0x604   : > { %v8521_v49 = vpop.f32.mrf.mxu1  ;;  %v8263_v41 = vpop.f32.mrf.mxu0  ;;  %v7947_v42 = vmax.f32 %v7931_v45, 0.0  ;;  %v8486_v45 = vshll.u32 %v15819_v1, 16 }
 0x605   : > { %v8572_v38 = vadd.f32 %v8521_v49, %v8261_v20  ;;  %v7880_v18 = vpop.f32.mrf.mxu2  ;;  %v8771_v41 = vor.u32 %v8770_v9, %v8767_v12  ;;  %v15835_v12 = vld [vmem:[#allocation3 + $0xd0] sm:$0xff]  }
 0x606   : > { %v12337_v52 = vpack.c.bf16 %v7947_v42, %v7946_v37  ;;  %v8482_v42 = vshrl.u32 %v15796_v62, 16  ;;  %v8488_v18 = vrot.slane %v8486_v45, 1 }
 0x607   : > { %8296 = vmatmul.bf16.gmra.mxu0 %v15808_v47 }
 0x608   : > { %12736 = vst [vmem:[%s15592_s27 + $0x38] sm:$0xff] %v12337_v52  }
 0x60a   : > { %v8104_v60 = vpop.f32.mrf.mxu3  ;;  %8846 = vmatmul.bf16.gmra.mxu2 %v8763_v53 }
 0x60c   : > { %v8524_v4 = vpop.f32.mrf.mxu1  ;;  %v8264_v36 = vpop.f32.mrf.mxu0 }
 0x60d   : > { %v8812_v13 = vpop.f32.mrf.mxu2  ;;  %v8265_v25 = vadd.f32 %v8264_v36, %v15607_v14  ;;  %v8484_v4 = vor.u32 %v8482_v42, %v8480_v8  ;;  %v8490_v42 = vshrl.u32 %v15819_v1, 16 }
 0x60e   : > { %v8864_v44 = vadd.f32 %v8812_v13, %v8571_v56  ;;  %v8227_v56 = vsel %vm721_vm0, %v15802_v33, %v8226_v43  ;;  %v8777_v13 = vshll.u32 %v13432_v31, 16 }
 0x60f   : > { %8557 = vmatmul.bf16.gmra.mxu1 %v8481_v7  ;;  %8947 = vmatmul.bf16.gmra.mxu3 %v15782_v17  ;;  %v8120_v17 = vpack.c.b16 %v15633_v19, %v15633_v19  ;;  %v8772_v19 = vsel %vm721_vm0, %v8762_v26, %v8771_v41  ;;  %v8492_v31 = vor.u32 %v8490_v42, %v8488_v18 }
 0x610   : > { %v8779_v8 = vrot.slane %v8777_v13, 4 }
 0x611   : > { %v8229_v5 = vshrl.u32 %v8120_v17, 16  ;;  %v8232_v60 = vshll.u32 %v8120_v17, 16  ;;  %v9258_v17 = vld [vmem:[#allocation3 + $0x80] sm:$0x8] }
 0x612   : > { %v8913_v22 = vpop.f32.mrf.mxu3 }
 0x613   : > { %v15821_v20 = vadd.f32 %v8913_v22, %v8864_v44  ;;  %v8231_v62 = vrot.slane %v8229_v5, 3  ;;  %v8234_v7 = vrot.slane %v8232_v60, 4  ;;  %v8776_v44 = vrot.slane %v8774_v55, 3  ;;  %v15843_v60 = vld [vmem:[#allocation3 + $0x80] sm:$0xff] }
 0x614   : > { %v8525_v57 = vpop.f32.mrf.mxu1  ;;  %v8267_v49 = vpop.f32.mrf.mxu0 }
 0x615   : > { %v8573_v6 = vadd.f32 %v8525_v57, %v8265_v25  ;;  %v8814_v14 = vpop.f32.mrf.mxu2  ;;  %v8268_v37 = vadd.f32 %v8267_v49, %v15621_v23  ;;  %v8384_v23 = vunpack.c.l.b16 %v8334_v3  ;;  %v8235_v26 = vor.u32 %v8234_v7, %v8231_v62 }
 0x616   : > { %v8865_v32 = vadd.f32 %v8814_v14, %v8572_v38  ;;  %v8489_v38 = vsel %vm1064_vm1, %v8484_v4, %v8488_v18  ;;  %v8780_v45 = vor.u32 %v8779_v8, %v8776_v44  ;;  %v9308_v3 = vunpack.c.l.b16 %v9258_v17 }
 0x617   : > { %8301 = vmatmul.bf16.gmra.mxu0 %v8227_v56  ;;  %v8397_v40 = vpack.c.b16 %v8384_v23, %v8384_v23  ;;  %v8236_v57 = vsel %vm721_vm0, %v8226_v43, %v8235_v26  ;;  %v15839_v56 = vld [vmem:[#allocation3 + $0x84] sm:$0xf]  ;;  %v15850_v23 = vld [vmem:[#allocation3 + $0xc8] sm:$0xff]   ;;  %v9077_v62 = vshll.u32 %v15843_v60, 16 }
 0x618   : > { %v9309_v43 = vunpack.c.l.b16 %v15839_v56  ;;  %v11681_v56 = vld [vmem:[#allocation3 + $0x94] sm:$0xff] }
 0x619   : > { %v8494_v9 = vshll.u32 %v8397_v40, 16  ;;  %v9079_v44 = vrot.slane %v9077_v62, 1  ;;  %v11679_v62 = vld [vmem:[#allocation3 + $0x84] sm:$0xff] }
 0x61a   : > { %v8915_v52 = vpop.f32.mrf.mxu3  ;;  %8850 = vmatmul.bf16.gmra.mxu2 %v8772_v19  ;;  %v9333_v7 = vpack.c.b16 %v9309_v43, %v9308_v3 }
 0x61b   : > { %v15830_v10 = vadd.f32 %v8915_v52, %v8865_v32  ;;  %v8496_v52 = vrot.slane %v8494_v9, 1 }
 0x61c   : > { %v8528_v53 = vpop.f32.mrf.mxu1  ;;  %v8269_v36 = vpop.f32.mrf.mxu0  ;;  %v9347_v8 = vshrl.u32 %v9333_v7, 16 }
 0x61d   : > { %v8574_v21 = vadd.f32 %v8528_v53, %v8268_v37  ;;  %v8817_v39 = vpop.f32.mrf.mxu2  ;;  %v11667_v37 = vld [vmem:[#allocation3 + $0x78] sm:$0xff]  ;;  %v8781_v53 = vsel %vm721_vm0, %v8771_v41, %v8780_v45  ;;  %v8497_v1 = vsel %vm1064_vm1, %v8492_v31, %v8496_v52 }
 0x61e   : > { %v9070_v26 = vshrl.u32 %v11667_v37, 16 }
 0x61f   : > { %8562 = vmatmul.bf16.gmra.mxu1 %v8489_v38  ;;  %8951 = vmatmul.bf16.gmra.mxu3 %v15625_v15  ;;  %v12254_v15 = vunpack.c.h.b16 %v15835_v12  ;;  %v9072_v38 = vshll.u32 %v11667_v37, 16  ;;  %v11669_v37 = vld [vmem:[#allocation3 + $0x88] sm:$0xff] }
 0x621   : > { %v8674_v36 = vpack.c.b16 %v12254_v15, %v12254_v15  ;;  %v9074_v40 = vrot.slane %v9072_v38, 1 }
 0x622   : > { %v8918_v34 = vpop.f32.mrf.mxu3 }
 0x623   : > { %v8783_v39 = vshrl.u32 %v8674_v36, 16  ;;  %v8786_v18 = vshll.u32 %v8674_v36, 16 }
 0x624   : > { %v8530_v25 = vpop.f32.mrf.mxu1  ;;  %v8271_v22 = vpop.f32.mrf.mxu0 }
 0x625   : > { %v8818_v49 = vpop.f32.mrf.mxu2  ;;  %v8272_v32 = vadd.f32 %v8271_v22, %v15644_v61  ;;  %v8785_v22 = vrot.slane %v8783_v39, 3  ;;  %v8788_v9 = vrot.slane %v8786_v18, 4  ;;  %v11680_v39 = vld [vmem:[#allocation3 + $0x8c] sm:$0xff] }
 0x626   : > { %v8866_v14 = vadd.f32 %v8818_v49, %v8573_v6  ;;  %v9350_v49 = vshll.u32 %v9333_v7, 16 }
 0x627   : > { %8305 = vmatmul.bf16.gmra.mxu0 %v8236_v57 }
 0x628   : > { %v9352_v52 = vrot.slane %v9350_v49, 4 }
 0x62a   : > { %v8919_v5 = vpop.f32.mrf.mxu3  ;;  %8855 = vmatmul.bf16.gmra.mxu2 %v8781_v53 }
 0x62b   : > { %v15846_v19 = vadd.f32 %v8919_v5, %v8866_v14  ;;  %v9075_v14 = vor.u32 %v9074_v40, %v9070_v26  ;;  %v9743_v40 = vshll.u32 %v11679_v62, 16 }
 0x62c   : > { %v8532_v4 = vpop.f32.mrf.mxu1  ;;  %v8273_v61 = vpop.f32.mrf.mxu0 }
 0x62d   : > { %v8575_v6 = vadd.f32 %v8532_v4, %v8272_v32  ;;  %v8821_v41 = vpop.f32.mrf.mxu2  ;;  %v8274_v13 = vadd.f32 %v8273_v61, %v15654_v51  ;;  %v9080_v32 = vsel %vm1064_vm1, %v9075_v14, %v9079_v44  ;;  %v9349_v51 = vrot.slane %v9347_v8, 3 }
 0x62e   : > { %v8867_v55 = vadd.f32 %v8821_v41, %v8574_v21  ;;  %v8789_v21 = vor.u32 %v8788_v9, %v8785_v22  ;;  %v9085_v61 = vshll.u32 %v11669_v37, 16  ;;  %v12257_v8 = vunpack.c.l.b16 %v15668_v54 }
 0x62f   : > { %8566 = vmatmul.bf16.gmra.mxu1 %v8497_v1  ;;  %8956 = vmatmul.bf16.gmra.mxu3 %v15850_v23  ;;  %v9353_v4 = vor.u32 %v9352_v52, %v9349_v51  ;;  %v9748_v22 = vshll.u32 %v11680_v39, 16  ;;  %v9741_v14 = vshrl.u32 %v11679_v62, 16 }
 0x630   : > { %v8790_v3 = vsel %vm721_vm0, %v8780_v45, %v8789_v21  ;;  %v9081_v45 = vshrl.u32 %v15843_v60, 16  ;;  %v9087_v18 = vrot.slane %v9085_v61, 1  ;;  %v9756_v61 = vshll.u32 %v11681_v56, 16 }
 0x631   : > { %v9362_v36 = vsel %vm721_vm0, %v9353_v4, %v15685_v11 }
 0x632   : > { %v8922_v34 = vpop.f32.mrf.mxu3  ;;  %v9083_v26 = vor.u32 %v9081_v45, %v9079_v44  ;;  %v9752_v45 = vshrl.u32 %v11680_v39, 16 }
 0x633   : > { %v15857_v25 = vadd.f32 %v8922_v34, %v8867_v55 }
 0x634   : > { %v8534_v57 = vpop.f32.mrf.mxu1  ;;  %v8276_v17 = vpop.f32.mrf.mxu0 }
 0x635   : > { %v8576_v15 = vadd.f32 %v8534_v57, %v8274_v13  ;;  %v8823_v42 = vpop.f32.mrf.mxu2  ;;  %v9745_v57 = vrot.slane %v9743_v40, 1  ;;  %v9551_v17 = vpack.c.b16 %v12257_v8, %v9309_v43  ;;  %v9089_v43 = vshrl.u32 %v11669_v37, 16  ;;  %v11671_v40 = vld [vmem:[#allocation3 + $0x98] sm:$0xff] }
 0x636   : > { %v11670_v42 = vld [vmem:[#allocation3 + $0x90] sm:$0xff] }
 0x637   : > { %9189 = vmatmul.bf16.vlgmr.msra.gmra.mxu0 %v9080_v32  ;;  %v9750_v32 = vrot.slane %v9748_v22, 1  ;;  %v9746_v54 = vor.u32 %v9745_v57, %v9741_v14  ;;  %v9097_v57 = vshrl.u32 %v11670_v42, 16 }
 0x63a   : > { %v8924_v5 = vpop.f32.mrf.mxu3  ;;  %8859 = vmatmul.bf16.gmra.mxu2 %v8790_v3 }
 0x63b   : > { %v9751_v5 = vsel %vm1064_vm1, %v9746_v54, %v9750_v32 }
 0x63c   : > { %v8537_v53 = vpop.f32.mrf.mxu1  ;;  %v8277_v31 = vpop.f32.mrf.mxu0 }
 0x63d   : > { %v8825_v38 = vpop.f32.mrf.mxu2  ;;  %v8278_v7 = vadd.f32 %v8277_v31, %v15671_v63 }
 0x63e   : > { %v8868_v1 = vadd.f32 %v8825_v38, %v8575_v6  ;;  %v9088_v6 = vsel %vm1064_vm1, %v9083_v26, %v9087_v18  ;;  %v9754_v26 = vor.u32 %v9752_v45, %v9750_v32 }
 0x63f   : > { %9482 = vmatmul.bf16.vlgmr.msra.gmra.mxu1 %v9362_v36  ;;  %8960 = vmatmul.bf16.gmra.mxu3 %v15835_v12  ;;  %v9091_v36 = vor.u32 %v9089_v43, %v9087_v18 }
 0x642   : > { %v8926_v41 = vpop.f32.mrf.mxu3 }
 0x643   : > { %v15866_v55 = vadd.f32 %v8926_v41, %v8868_v1 }
 0x644   : > { %v8538_v13 = vpop.f32.mrf.mxu1  ;;  %v8280_v11 = vpop.f32.mrf.mxu0 }
 0x645   : > { %v8577_v34 = vadd.f32 %v8538_v13, %v8278_v7  ;;  %v8827_v9 = vpop.f32.mrf.mxu2  ;;  %v8281_v49 = vadd.f32 %v8280_v11, %v15683_v28  ;;  %v9758_v13 = vrot.slane %v9756_v61, 1 }
 0x646   : > { %v8869_v63 = vadd.f32 %v8827_v9, %v8576_v15  ;;  %v9093_v15 = vshll.u32 %v11670_v42, 16 }
 0x647   : > { %9194 = vmatmul.bf16.gmra.mxu0 %v9088_v6  ;;  %v9759_v22 = vsel %vm1064_vm1, %v9754_v26, %v9758_v13  ;;  %v9101_v6 = vshll.u32 %v11671_v40, 16 }
 0x648   : > { %v9095_v53 = vrot.slane %v9093_v15, 1  ;;  %v13245_v15 = vld [vmem:[#allocation3 + $0x94] sm:$0xff]  }
 0x64a   : > { %v8928_v60 = vpop.f32.mrf.mxu3  ;;  %9583 = vmatmul.bf16.vlgmr.msra.gmra.mxu2 %v9551_v17  ;;  %v9096_v38 = vsel %vm1064_vm1, %v9091_v36, %v9095_v53 }
 0x64b   : > { %v15873_v21 = vadd.f32 %v8928_v60, %v8869_v63  ;;  %v11682_v63 = vld [vmem:[#allocation3 + $0x9c] sm:$0xff] }
 0x64c   : > { %v8541_v44 = vpop.f32.mrf.mxu1  ;;  %v8282_v52 = vpop.f32.mrf.mxu0  ;;  %v9764_v54 = vshll.u32 %v11682_v63, 16 }
 0x64d   : > { %v8578_v51 = vadd.f32 %v8541_v44, %v8281_v49  ;;  %v8830_v28 = vpop.f32.mrf.mxu2  ;;  %v9103_v49 = vrot.slane %v9101_v6, 1  ;;  %v9099_v44 = vor.u32 %v9097_v57, %v9095_v53  ;;  %v9768_v6 = vshrl.u32 %v11682_v63, 16 }
 0x64e   : > { %v9766_v28 = vrot.slane %v9764_v54, 1 }
 0x64f   : > { %9487 = vmatmul.bf16.gmra.mxu1 %v15706_v50  ;;  %9860 = vmatmul.bf16.vlgmr.msra.gmra.mxu3 %v9751_v5  ;;  %v13243_v50 = vld [vmem:[#allocation3 + $0x8c] sm:$0xff]   ;;  %v9104_v52 = vsel %vm1064_vm1, %v9099_v44, %v9103_v49 }
 0x650   : > { %v11684_v44 = vld [vmem:[#allocation3 + $0xac] sm:$0xff] }
 0x652   : > { %v8931_v3 = vpop.f32.mrf.mxu3 }
 0x654   : > { %v8543_v4 = vpop.f32.mrf.mxu1  ;;  %v8284_v31 = vpop.f32.mrf.mxu0 }
 0x655   : > { %v8831_v1 = vpop.f32.mrf.mxu2  ;;  %v8285_v7 = vadd.f32 %v8284_v31, %v15699_v27 }
 0x656   : > { %v8870_v62 = vadd.f32 %v8831_v1, %v8577_v34  ;;  %v11683_v1 = vld [vmem:[#allocation3 + $0xa4] sm:$0xff] }
 0x657   : > { %9198 = vmatmul.bf16.gmra.mxu0 %v9096_v38 }
 0x65a   : > { %v8932_v41 = vpop.f32.mrf.mxu3  ;;  %9588 = vmatmul.bf16.gmra.mxu2 %v13243_v50 }
 0x65b   : > { %v15879_v11 = vadd.f32 %v8932_v41, %v8870_v62  ;;  %v9105_v62 = vshrl.u32 %v11671_v40, 16  ;;  %v11673_v40 = vld [vmem:[#allocation3 + $0xa8] sm:$0xff] }
 0x65c   : > { %v8545_v37 = vpop.f32.mrf.mxu1  ;;  %v8286_v18 = vpop.f32.mrf.mxu0 }
 0x65d   : > { %v8579_v8 = vadd.f32 %v8545_v37, %v8285_v7  ;;  %v8834_v34 = vpop.f32.mrf.mxu2  ;;  %v8287_v9 = vadd.f32 %v8286_v18, %v15712_v48  ;;  %v11672_v48 = vld [vmem:[#allocation3 + $0xa0] sm:$0xff]  ;;  %v9772_v37 = vshll.u32 %v11683_v1, 16 }
 0x65e   : > { %v8871_v27 = vadd.f32 %v8834_v34, %v8578_v51  ;;  %v9760_v51 = vshrl.u32 %v11681_v56, 16  ;;  %v9109_v31 = vshll.u32 %v11672_v48, 16  ;;  %v9113_v54 = vshrl.u32 %v11672_v48, 16 }
 0x65f   : > { %9491 = vmatmul.bf16.gmra.mxu1 %v15723_v35  ;;  %9865 = vmatmul.bf16.gmra.mxu3 %v9759_v22  ;;  %v9774_v34 = vrot.slane %v9772_v37, 1  ;;  %v9121_v37 = vshrl.u32 %v11673_v40, 16 }
 0x660   : > { %v9762_v42 = vor.u32 %v9760_v51, %v9758_v13  ;;  %v9111_v56 = vrot.slane %v9109_v31, 1  ;;  %v9107_v13 = vor.u32 %v9105_v62, %v9103_v49 }
 0x662   : > { %v8935_v39 = vpop.f32.mrf.mxu3  ;;  %v9767_v4 = vsel %vm1064_vm1, %v9762_v42, %v9766_v28  ;;  %v9112_v26 = vsel %vm1064_vm1, %v9107_v13, %v9111_v56  ;;  %v11685_v13 = vld [vmem:[#allocation3 + $0xb4] sm:$0xff] }
 0x663   : > { %v15884_v60 = vadd.f32 %v8935_v39, %v8871_v27  ;;  %v9770_v39 = vor.u32 %v9768_v6, %v9766_v28  ;;  %v9788_v6 = vshll.u32 %v11685_v13, 16 }
 0x664   : > { %v8547_v17 = vpop.f32.mrf.mxu1  ;;  %v8289_v32 = vpop.f32.mrf.mxu0 }
 0x665   : > { %v8580_v14 = vadd.f32 %v8547_v17, %v8287_v9  ;;  %v8836_v35 = vpop.f32.mrf.mxu2  ;;  %v9775_v17 = vsel %vm1064_vm1, %v9770_v39, %v9774_v34  ;;  %v9117_v32 = vshll.u32 %v11673_v40, 16  ;;  %v13251_v39 = vld [vmem:[#allocation3 + $0xac] sm:$0xff]  }
 0x667   : > { %9202 = vmatmul.bf16.gmra.mxu0 %v9104_v52  ;;  %v9119_v63 = vrot.slane %v9117_v32, 1 }
 0x66a   : > { %v8937_v5 = vpop.f32.mrf.mxu3  ;;  %9592 = vmatmul.bf16.gmra.mxu2 %v13245_v15  ;;  %v9780_v15 = vshll.u32 %v11684_v44, 16 }
 0x66b   : > { %v9115_v5 = vor.u32 %v9113_v54, %v9111_v56  ;;  %v12676_v54 = vld [vmem:[#allocation3 + $0xc0] sm:$0xff]  }
 0x66c   : > { %v8550_v3 = vpop.f32.mrf.mxu1  ;;  %v8290_v43 = vpop.f32.mrf.mxu0  ;;  %v9782_v31 = vrot.slane %v9780_v15, 1  ;;  %v9421_v15 = vshll.u32 %v12676_v54, 16 }
 0x66d   : > { %v8838_v53 = vpop.f32.mrf.mxu2  ;;  %v8291_v61 = vadd.f32 %v8290_v43, %v15727_v16  ;;  %v13247_v16 = vld [vmem:[#allocation3 + $0x9c] sm:$0xff]   ;;  %v9120_v51 = vsel %vm1064_vm1, %v9115_v5, %v9119_v63  ;;  %v9418_v5 = vshrl.u32 %v12676_v54, 16 }
 0x66e   : > { %v8872_v36 = vadd.f32 %v8838_v53, %v8579_v8  ;;  %v11674_v53 = vld [vmem:[#allocation3 + $0xb0] sm:$0xff] }
 0x66f   : > { %9495 = vmatmul.bf16.gmra.mxu1 %v15742_v46  ;;  %9869 = vmatmul.bf16.gmra.mxu3 %v9767_v4  ;;  %v9776_v4 = vshrl.u32 %v11683_v1, 16 }
 0x672   : > { %v8939_v38 = vpop.f32.mrf.mxu3 }
 0x673   : > { %v15890_v7 = vadd.f32 %v8939_v38, %v8872_v36 }
 0x674   : > { %v8551_v41 = vpop.f32.mrf.mxu1  ;;  %v8293_v45 = vpop.f32.mrf.mxu0 }
 0x675   : > { %v8581_v50 = vadd.f32 %v8551_v41, %v8291_v61  ;;  %v8840_v46 = vpop.f32.mrf.mxu2  ;;  %v8294_v8 = vadd.f32 %v8293_v45, %v15737_v24  ;;  %v9778_v61 = vor.u32 %v9776_v4, %v9774_v34  ;;  %v9125_v41 = vshll.u32 %v11674_v53, 16 }
 0x676   : > { %v8873_v18 = vadd.f32 %v8840_v46, %v8580_v14 }
 0x677   : > { %9207 = vmatmul.bf16.gmra.mxu0 %v9112_v26  ;;  %v9783_v56 = vsel %vm1064_vm1, %v9778_v61, %v9782_v31  ;;  %v9127_v26 = vrot.slane %v9125_v41, 1 }
 0x67a   : > { %v8941_v22 = vpop.f32.mrf.mxu3  ;;  %9596 = vmatmul.bf16.gmra.mxu2 %v13247_v16  ;;  %v9123_v16 = vor.u32 %v9121_v37, %v9119_v63 }
 0x67b   : > { %v15894_v27 = vadd.f32 %v8941_v22, %v8873_v18 }
 0x67c   : > { %v8554_v9 = vpop.f32.mrf.mxu1  ;;  %v8295_v49 = vpop.f32.mrf.mxu0  ;;  %v9128_v34 = vsel %vm1064_vm1, %v9123_v16, %v9127_v26 }
 0x67d   : > { %v8582_v57 = vadd.f32 %v8554_v9, %v8294_v8  ;;  %v8843_v14 = vpop.f32.mrf.mxu2  ;;  %v9790_v49 = vrot.slane %v9788_v6, 1 }
 0x67f   : > { %9500 = vmatmul.bf16.gmra.mxu1 %v15758_v58  ;;  %9873 = vmatmul.bf16.gmra.mxu3 %v9775_v17  ;;  %v13249_v58 = vld [vmem:[#allocation3 + $0xa4] sm:$0xff]  }
 0x682   : > { %v8944_v24 = vpop.f32.mrf.mxu3 }
 0x684   : > { %v8556_v52 = vpop.f32.mrf.mxu1  ;;  %v8297_v35 = vpop.f32.mrf.mxu0 }
 0x685   : > { %v8844_v28 = vpop.f32.mrf.mxu2  ;;  %v8298_v42 = vadd.f32 %v8297_v35, %v15752_v0 }
 0x686   : > { %v8874_v3 = vadd.f32 %v8844_v28, %v8581_v50  ;;  %v9129_v28 = vshrl.u32 %v11674_v53, 16  ;;  %v13253_v53 = vld [vmem:[#allocation3 + $0xb4] sm:$0xff]  }
 0x687   : > { %9211 = vmatmul.bf16.gmra.mxu0 %v9120_v51  ;;  %v11686_v51 = vld [vmem:[#allocation3 + $0xbc] sm:$0xff] }
 0x688   : > { %v9796_v61 = vshll.u32 %v11686_v51, 16 }
 0x68a   : > { %v8945_v43 = vpop.f32.mrf.mxu3  ;;  %9601 = vmatmul.bf16.gmra.mxu2 %v13249_v58 }
 0x68b   : > { %v15900_v36 = vadd.f32 %v8945_v43, %v8874_v3 }
 0x68c   : > { %v8558_v48 = vpop.f32.mrf.mxu1  ;;  %v8299_v62 = vpop.f32.mrf.mxu0 }
 0x68d   : > { %v8583_v38 = vadd.f32 %v8558_v48, %v8298_v42  ;;  %v8847_v50 = vpop.f32.mrf.mxu2  ;;  %v8300_v45 = vadd.f32 %v8299_v62, %v15766_v29  ;;  %v11675_v29 = vld [vmem:[#allocation3 + $0xb8] sm:$0xff]  ;;  %v9423_v48 = vrot.slane %v9421_v15, 4 }
 0x68e   : > { %v8875_v0 = vadd.f32 %v8847_v50, %v8582_v57  ;;  %v9784_v57 = vshrl.u32 %v11684_v44, 16  ;;  %v9133_v24 = vshll.u32 %v11675_v29, 16  ;;  %v13255_v15 = vld [vmem:[#allocation3 + $0xbc] sm:$0xff]  }
 0x68f   : > { %9504 = vmatmul.bf16.gmra.mxu1 %v15779_v30  ;;  %9878 = vmatmul.bf16.gmra.mxu3 %v9783_v56 }
 0x690   : > { %v9786_v40 = vor.u32 %v9784_v57, %v9782_v31  ;;  %v9135_v3 = vrot.slane %v9133_v24, 1  ;;  %v9131_v31 = vor.u32 %v9129_v28, %v9127_v26  ;;  %v9137_v57 = vshrl.u32 %v11675_v29, 16  ;;  %v11677_v28 = vld [vmem:[#allocation3 + $0xc8] sm:$0xff] }
 0x692   : > { %v8948_v1 = vpop.f32.mrf.mxu3  ;;  %v9791_v14 = vsel %vm1064_vm1, %v9786_v40, %v9790_v49  ;;  %v9136_v62 = vsel %vm1064_vm1, %v9131_v31, %v9135_v3 }
 0x693   : > { %v15905_v46 = vadd.f32 %v8948_v1, %v8875_v0  ;;  %v9792_v0 = vshrl.u32 %v11685_v13, 16  ;;  %v11676_v1 = vld [vmem:[#allocation3 + $0xc0] sm:$0xff]  ;;  %v9427_v13 = vshrl.u32 %v15850_v23, 16 }
 0x694   : > { %v8560_v18 = vpop.f32.mrf.mxu1  ;;  %v8302_v22 = vpop.f32.mrf.mxu0 }
 0x695   : > { %v8584_v8 = vadd.f32 %v8560_v18, %v8300_v45  ;;  %v8849_v30 = vpop.f32.mrf.mxu2  ;;  %v9798_v45 = vrot.slane %v9796_v61, 1  ;;  %v9794_v26 = vor.u32 %v9792_v0, %v9790_v49 }
 0x696   : > { %v9430_v30 = vshll.u32 %v15850_v23, 16 }
 0x697   : > { %9215 = vmatmul.bf16.gmra.mxu0 %v9128_v34 }
 0x698   : > { %v9432_v24 = vrot.slane %v9430_v30, 4  ;;  %v15932_v30 = vld [vmem:[#allocation3 + $0xd0] sm:$0xff] }
 0x69a   : > { %v8950_v9 = vpop.f32.mrf.mxu3  ;;  %9605 = vmatmul.bf16.gmra.mxu2 %v13251_v39  ;;  %v11687_v39 = vld [vmem:[#allocation3 + $0xc4] sm:$0xff] }
 0x69c   : > { %v8563_v17 = vpop.f32.mrf.mxu1  ;;  %v8303_v32 = vpop.f32.mrf.mxu0 }
 0x69d   : > { %v8851_v63 = vpop.f32.mrf.mxu2  ;;  %v8304_v35 = vadd.f32 %v8303_v32, %v15786_v2  ;;  %v9139_v32 = vor.u32 %v9137_v57, %v9135_v3 }
 0x69e   : > { %v8876_v52 = vadd.f32 %v8851_v63, %v8583_v38 }
 0x69f   : > { %9508 = vmatmul.bf16.gmra.mxu1 %v15808_v47  ;;  %9882 = vmatmul.bf16.gmra.mxu3 %v9791_v14  ;;  %v9420_v47 = vrot.slane %v9418_v5, 3  ;;  %v9429_v14 = vrot.slane %v9427_v13, 3 }
 0x6a1   : > { %v9424_v41 = vor.u32 %v9423_v48, %v9420_v47  ;;  %v9149_v48 = vshll.u32 %v11677_v28, 16 }
 0x6a2   : > { %v8952_v44 = vpop.f32.mrf.mxu3 }
 0x6a3   : > { %v15911_v42 = vadd.f32 %v8952_v44, %v8876_v52  ;;  %v9425_v6 = vsel %vm721_vm0, %v15802_v33, %v9424_v41  ;;  %v9804_v33 = vshll.u32 %v11687_v39, 16  ;;  %v9800_v44 = vshrl.u32 %v11686_v51, 16 }
 0x6a4   : > { %v8564_v43 = vpop.f32.mrf.mxu1  ;;  %v8306_v4 = vpop.f32.mrf.mxu0  ;;  %v9439_v51 = vshll.u32 %v15835_v12, 16 }
 0x6a5   : > { %v8585_v58 = vadd.f32 %v8564_v43, %v8304_v35  ;;  %v8853_v38 = vpop.f32.mrf.mxu2  ;;  %v8307_v56 = vadd.f32 %v8306_v4, %v15800_v59  ;;  %v9141_v59 = vshll.u32 %v11676_v1, 16  ;;  %v9433_v35 = vor.u32 %v9432_v24, %v9429_v14  ;;  %v15940_v24 = vld [vmem:[#allocation3 + $0xd8] sm:$0xff]  }
 0x6a6   : > { %v8877_v2 = vadd.f32 %v8853_v38, %v8584_v8  ;;  %v9799_v8 = vsel %vm1064_vm1, %v9794_v26, %v9798_v45  ;;  %v9806_v23 = vrot.slane %v9804_v33, 1  ;;  %v9802_v4 = vor.u32 %v9800_v44, %v9798_v45 }
 0x6a7   : > { %9220 = vmatmul.bf16.gmra.mxu0 %v9136_v62  ;;  %v9143_v17 = vrot.slane %v9141_v59, 1  ;;  %v9434_v31 = vsel %vm721_vm0, %v9424_v41, %v9433_v35  ;;  %v9436_v62 = vshrl.u32 %v15835_v12, 16  ;;  %v9441_v26 = vrot.slane %v9439_v51, 4 }
 0x6a8   : > { %v9807_v47 = vsel %vm1064_vm1, %v9802_v4, %v9806_v23  ;;  %v9808_v12 = vshrl.u32 %v11687_v39, 16  ;;  %v9157_v14 = vshll.u32 %v15932_v30, 16 }
 0x6a9   : > { %v9144_v54 = vsel %vm1064_vm1, %v9139_v32, %v9143_v17 }
 0x6aa   : > { %v8954_v50 = vpop.f32.mrf.mxu3  ;;  %9609 = vmatmul.bf16.gmra.mxu2 %v13253_v53  ;;  %v9810_v57 = vor.u32 %v9808_v12, %v9806_v23  ;;  %v9005_v23 = vld [vmem:[#allocation3 + $0xd8] sm:$0x1] }
 0x6ab   : > { %v15915_v37 = vadd.f32 %v8954_v50, %v8877_v2  ;;  %v11688_v2 = vld [vmem:[#allocation3 + $0xcc] sm:$0xff]  ;;  %v9151_v50 = vrot.slane %v9149_v48, 1  ;;  %v9055_v51 = vunpack.c.l.b16 %v9005_v23 }
 0x6ac   : > { %v8567_v18 = vpop.f32.mrf.mxu1  ;;  %v8308_v16 = vpop.f32.mrf.mxu0 }
 0x6ad   : > { %v8586_v22 = vadd.f32 %v8567_v18, %v8307_v56  ;;  %v8856_v34 = vpop.f32.mrf.mxu2  ;;  %v9145_v56 = vshrl.u32 %v11676_v1, 16  ;;  %v9438_v18 = vrot.slane %v9436_v62, 3  ;;  %v9812_v16 = vshll.u32 %v11688_v2, 16 }
 0x6ae   : > { %v13257_v34 = vld [vmem:[#allocation3 + $0xc4] sm:$0xff]  }
 0x6af   : > { %9513 = vmatmul.bf16.gmra.mxu1 %v9425_v6  ;;  %9886 = vmatmul.bf16.gmra.mxu3 %v9799_v8  ;;  %v9147_v41 = vor.u32 %v9145_v56, %v9143_v17  ;;  %v9814_v13 = vrot.slane %v9812_v16, 1 }
 0x6b1   : > { %v9152_v6 = vsel %vm1064_vm1, %v9147_v41, %v9151_v50  ;;  %v9815_v32 = vsel %vm1064_vm1, %v9810_v57, %v9814_v13  ;;  %v13259_v41 = vld [vmem:[#allocation3 + $0xcc] sm:$0xff]  }
 0x6b2   : > { %v8957_v9 = vpop.f32.mrf.mxu3 }
 0x6b4   : > { %v8569_v49 = vpop.f32.mrf.mxu1  ;;  %v9190_v40 = vpop.f32.mrf.mxu0 }
 0x6b5   : > { %v8857_v63 = vpop.f32.mrf.mxu2  ;;  %v9242_v1 = vadd.f32 %v9190_v40, %v15821_v20  ;;  %v9445_v20 = vshrl.u32 %v15940_v24, 16  ;;  %v9448_v40 = vshll.u32 %v15940_v24, 16 }
 0x6b6   : > { %v8878_v52 = vadd.f32 %v8857_v63, %v8585_v58 }
 0x6b7   : > { %9224 = vmatmul.bf16.gmra.mxu0 %v9144_v54  ;;  %v9450_v48 = vrot.slane %v9448_v40, 4 }
 0x6ba   : > { %v8958_v5 = vpop.f32.mrf.mxu3  ;;  %9614 = vmatmul.bf16.gmra.mxu2 %v13255_v15  ;;  %v9159_v15 = vrot.slane %v9157_v14, 1  ;;  %v11690_v14 = vld [vmem:[#allocation3 + $0xdc] sm:$0xff] }
 0x6bb   : > { %v15923_v43 = vadd.f32 %v8958_v5, %v8878_v52  ;;  %v15945_v5 = vld [vmem:[#allocation3 + $0xd4] sm:$0xff] }
 0x6bc   : > { %v9483_v29 = vpop.f32.mrf.mxu1  ;;  %v9192_v3 = vpop.f32.mrf.mxu0 }
 0x6bd   : > { %v8860_v58 = vpop.f32.mrf.mxu2  ;;  %v9535_v39 = vadd.f32 %v9483_v29, %v9242_v1  ;;  %v9243_v52 = vadd.f32 %v9192_v3, %v15830_v10  ;;  %v9816_v3 = vshrl.u32 %v11688_v2, 16  ;;  %v15960_v2 = vld [vmem:[%s16033_s4 + $0x1] ss:$0 sm:$0xff]  ;;  %v9282_v1 = vld [vmem:[#allocation3 + $0xe0] sm:$0xf] }
 0x6be   : > { %v8879_v61 = vadd.f32 %v8860_v58, %v8586_v22  ;;  %v9442_v22 = vor.u32 %v9441_v26, %v9438_v18  ;;  %v9068_v26 = vpack.c.b16 %v9055_v51, %v9055_v51  ;;  %v9332_v57 = vunpack.c.l.b16 %v9282_v1 }
 0x6bf   : > { %9517 = vmatmul.bf16.gmra.mxu1 %v9434_v31  ;;  %9891 = vmatmul.bf16.gmra.mxu3 %v9807_v47  ;;  %v9447_v47 = vrot.slane %v9445_v20, 3 }
 0x6c0   : > { %v9443_v49 = vsel %vm721_vm0, %v9433_v35, %v9442_v22  ;;  %v9153_v35 = vshrl.u32 %v11677_v28, 16  ;;  %v15954_v28 = vld [vmem:[%s16033_s4] ss:$0 sm:$0xff] }
 0x6c2   : > { %v8961_v38 = vpop.f32.mrf.mxu3  ;;  %v9155_v31 = vor.u32 %v9153_v35, %v9151_v50  ;;  %v9451_v50 = vor.u32 %v9450_v48, %v9447_v47  ;;  %v9824_v47 = vshrl.u32 %v15945_v5, 16  ;;  %v9828_v48 = vshll.u32 %v11690_v14, 16 }
 0x6c3   : > { %v15929_v53 = vadd.f32 %v8961_v38, %v8879_v61  ;;  %v9820_v61 = vshll.u32 %v15945_v5, 16 }
 0x6c4   : > { %v9485_v0 = vpop.f32.mrf.mxu1  ;;  %v9195_v45 = vpop.f32.mrf.mxu0  ;;  %v9160_v62 = vsel %vm1064_vm1, %v9155_v31, %v9159_v15  ;;  %v9452_v12 = vsel %vm721_vm0, %v9442_v22, %v9451_v50 }
 0x6c5   : > { %v8862_v8 = vpop.f32.mrf.mxu2  ;;  %v9536_v58 = vadd.f32 %v9485_v0, %v9243_v52  ;;  %v9818_v0 = vor.u32 %v9816_v3, %v9814_v13  ;;  %v9822_v18 = vrot.slane %v9820_v61, 1 }
 0x6c7   : > { %9228 = vmatmul.bf16.gmra.mxu0 %v9152_v6  ;;  %v9823_v13 = vsel %vm1064_vm1, %v9818_v0, %v9822_v18  ;;  %v9826_v3 = vor.u32 %v9824_v47, %v9822_v18 }
 0x6ca   : > { %v8963_v59 = vpop.f32.mrf.mxu3  ;;  %9618 = vmatmul.bf16.gmra.mxu2 %v13257_v34 }
 0x6cc   : > { %v9488_v9 = vpop.f32.mrf.mxu1  ;;  %v15935_v17 = vpop.f32.mrf.mxu0 }
 0x6cd   : > { %v9584_v33 = vpop.f32.mrf.mxu2  ;;  %v9165_v9 = vshll.u32 %v9068_v26, 16  ;;  %v9244_v31 = vadd.f32 %v15935_v17, %v15846_v19 }
 0x6ce   : > { %v9636_v54 = vadd.f32 %v9584_v33, %v9535_v39  ;;  %v9161_v39 = vshrl.u32 %v15932_v30, 16  ;;  %v9345_v33 = vpack.c.b16 %v9332_v57, %v9332_v57 }
 0x6cf   : > { %9521 = vmatmul.bf16.gmra.mxu1 %v9443_v49  ;;  %9895 = vmatmul.bf16.gmra.mxu3 %v9815_v32  ;;  %v9167_v22 = vrot.slane %v9165_v9, 1 }
 0x6d0   : > { %v9454_v52 = vshrl.u32 %v9345_v33, 16  ;;  %v9457_v35 = vshll.u32 %v9345_v33, 16 }
 0x6d2   : > { %v9861_v63 = vpop.f32.mrf.mxu3  ;;  %v9456_v61 = vrot.slane %v9454_v52, 3  ;;  %v9459_v30 = vrot.slane %v9457_v35, 4 }
 0x6d3   : > { %v9913_v29 = vadd.f32 %v9861_v63, %v9636_v54  ;;  %v9163_v63 = vor.u32 %v9161_v39, %v9159_v15 }
 0x6d4   : > { %v9489_v44 = vpop.f32.mrf.mxu1  ;;  %v15947_v4 = vpop.f32.mrf.mxu0  ;;  %v9460_v15 = vor.u32 %v9459_v30, %v9456_v61 }
 0x6d5   : > { %v9586_v38 = vpop.f32.mrf.mxu2  ;;  %v9929_v56 = vmul.f32 %v15954_v28, %v9913_v29  ;;  %v9537_v51 = vadd.f32 %v9489_v44, %v9244_v31  ;;  %v9245_v17 = vadd.f32 %v15947_v4, %v15857_v25  ;;  %v12298_v4 = vunpack.c.h.b16 %v15940_v24 }
 0x6d6   : > { %v9637_v10 = vadd.f32 %v9586_v38, %v9536_v58  ;;  %v9461_v0 = vsel %vm721_vm0, %v9451_v50, %v9460_v15  ;;  %v9832_v50 = vshrl.u32 %v11690_v14, 16 }
 0x6d7   : > { %9233 = vmatmul.bf16.gmra.mxu0 %v9160_v62  ;;  %v9945_v59 = vadd.f32 %v15960_v2, %v9929_v56  ;;  %v9168_v62 = vsel %vm1064_vm1, %v9163_v63, %v9167_v22  ;;  %v9830_v56 = vrot.slane %v9828_v48, 1 }
 0x6d9   : > { %v9961_v54 = vmax.f32 %v9945_v59, 0.0  ;;  %v9831_v26 = vsel %vm1064_vm1, %v9826_v3, %v9830_v56 }
 0x6da   : > { %v9863_v45 = vpop.f32.mrf.mxu3  ;;  %9622 = vmatmul.bf16.gmra.mxu2 %v13259_v41  ;;  %v9676_v41 = vld [vmem:[#allocation3 + $0xe4] sm:$0x1] }
 0x6db   : > { %v9914_v16 = vadd.f32 %v9863_v45, %v9637_v10  ;;  %v13260_v10 = vld [vmem:[#allocation3 + $0xd4] sm:$0xff]  }
 0x6dc   : > { %v9492_v6 = vpop.f32.mrf.mxu1  ;;  %v9201_v8 = vpop.f32.mrf.mxu0 }
 0x6dd   : > { %v9930_v34 = vmul.f32 %v15954_v28, %v9914_v16  ;;  %v9589_v32 = vpop.f32.mrf.mxu2  ;;  %v9726_v16 = vunpack.c.l.b16 %v9676_v41  ;;  %v9538_v59 = vadd.f32 %v9492_v6, %v9245_v17 }
 0x6df   : > { %9526 = vmatmul.bf16.gmra.mxu1 %v9452_v12  ;;  %v9946_v49 = vadd.f32 %v15960_v2, %v9930_v34  ;;  %9899 = vmatmul.bf16.gmra.mxu3 %v9823_v13  ;;  %v9739_v12 = vpack.c.b16 %v9726_v16, %v9726_v16 }
 0x6e1   : > { %v9962_v20 = vmax.f32 %v9946_v49, 0.0  ;;  %v9836_v49 = vshll.u32 %v9739_v12, 16 }
 0x6e2   : > { %v9866_v40 = vpop.f32.mrf.mxu3 }
 0x6e3   : > { %v12342_v23 = vpack.c.bf16 %v9962_v20, %v9961_v54  ;;  %v9562_v20 = vpack.c.b16 %v9332_v57, %v12298_v4  ;;  %v9834_v40 = vor.u32 %v9832_v50, %v9830_v56  ;;  %v9838_v63 = vrot.slane %v9836_v49, 1 }
 0x6e4   : > { %v9494_v29 = vpop.f32.mrf.mxu1  ;;  %v9203_v58 = vpop.f32.mrf.mxu0 }
 0x6e5   : > { %12737 = vst [vmem:[%s15592_s27 + $0x40] sm:$0xff] %v12342_v23   ;;  %v9590_v38 = vpop.f32.mrf.mxu2  ;;  %v9246_v24 = vadd.f32 %v9203_v58, %v15866_v55  ;;  %v9839_v31 = vsel %vm1064_vm1, %v9834_v40, %v9838_v63 }
 0x6e6   : > { %v9638_v45 = vadd.f32 %v9590_v38, %v9537_v51 }
 0x6e7   : > { %9237 = vmatmul.bf16.gmra.mxu0 %v9168_v62 }
 0x6ea   : > { %v9867_v19 = vpop.f32.mrf.mxu3  ;;  %9627 = vmatmul.bf16.gmra.mxu2 %v13260_v10 }
 0x6eb   : > { %v9915_v8 = vadd.f32 %v9867_v19, %v9638_v45 }
 0x6ec   : > { %v9496_v5 = vpop.f32.mrf.mxu1  ;;  %v9205_v44 = vpop.f32.mrf.mxu0 }
 0x6ed   : > { %v9593_v18 = vpop.f32.mrf.mxu2  ;;  %v9931_v1 = vmul.f32 %v15954_v28, %v9915_v8  ;;  %v9539_v47 = vadd.f32 %v9496_v5, %v9246_v24  ;;  %v9247_v57 = vadd.f32 %v9205_v44, %v15873_v21 }
 0x6ee   : > { %v9639_v34 = vadd.f32 %v9593_v18, %v9538_v59 }
 0x6ef   : > { %9530 = vmatmul.bf16.gmra.mxu1 %v9461_v0  ;;  %9904 = vmatmul.bf16.gmra.mxu3 %v9831_v26  ;;  %v9947_v39 = vadd.f32 %v15960_v2, %v9931_v1 }
 0x6f1   : > { %v9963_v22 = vmax.f32 %v9947_v39, 0.0 }
 0x6f2   : > { %v9870_v13 = vpop.f32.mrf.mxu3 }
 0x6f3   : > { %v9916_v9 = vadd.f32 %v9870_v13, %v9639_v34 }
 0x6f4   : > { %v9498_v25 = vpop.f32.mrf.mxu1  ;;  %v9208_v32 = vpop.f32.mrf.mxu0 }
 0x6f5   : > { %v9932_v6 = vmul.f32 %v15954_v28, %v9916_v9  ;;  %v9595_v54 = vpop.f32.mrf.mxu2  ;;  %v9540_v15 = vadd.f32 %v9498_v25, %v9247_v57 }
 0x6f7   : > { %v9948_v33 = vadd.f32 %v15960_v2, %v9932_v6 }
 0x6f9   : > { %v9964_v52 = vmax.f32 %v9948_v33, 0.0 }
 0x6fa   : > { %v9872_v35 = vpop.f32.mrf.mxu3  ;;  %9631 = vmatmul.bf16.gmra.mxu2 %v9562_v20 }
 0x6fb   : > { %v12347_v23 = vpack.c.bf16 %v9964_v52, %v9963_v22 }
 0x6fc   : > { %v9501_v14 = vpop.f32.mrf.mxu1  ;;  %v9209_v29 = vpop.f32.mrf.mxu0 }
 0x6fd   : > { %12738 = vst [vmem:[%s15592_s27 + $0x48] sm:$0xff] %v12347_v23   ;;  %v9597_v48 = vpop.f32.mrf.mxu2  ;;  %v9248_v8 = vadd.f32 %v9209_v29, %v15879_v11 }
 0x6fe   : > { %v9640_v61 = vadd.f32 %v9597_v48, %v9539_v47 }
 0x6ff   : > { %9908 = vmatmul.bf16.gmra.mxu3 %v9839_v31 }
 0x702   : > { %v9874_v30 = vpop.f32.mrf.mxu3 }
 0x703   : > { %v9917_v38 = vadd.f32 %v9874_v30, %v9640_v61 }
 0x704   : > { %v9502_v62 = vpop.f32.mrf.mxu1  ;;  %v9212_v51 = vpop.f32.mrf.mxu0 }
 0x705   : > { %v9599_v10 = vpop.f32.mrf.mxu2  ;;  %v9933_v55 = vmul.f32 %v15954_v28, %v9917_v38  ;;  %v9541_v34 = vadd.f32 %v9502_v62, %v9248_v8  ;;  %v9249_v9 = vadd.f32 %v9212_v51, %v15884_v60 }
 0x706   : > { %v9641_v3 = vadd.f32 %v9599_v10, %v9540_v15 }
 0x707   : > { %v9949_v19 = vadd.f32 %v15960_v2, %v9933_v55 }
 0x709   : > { %v9965_v0 = vmax.f32 %v9949_v19, 0.0 }
 0x70a   : > { %v9876_v58 = vpop.f32.mrf.mxu3 }
 0x70b   : > { %v9918_v56 = vadd.f32 %v9876_v58, %v9641_v3 }
 0x70c   : > { %v9505_v45 = vpop.f32.mrf.mxu1  ;;  %v9214_v41 = vpop.f32.mrf.mxu0 }
 0x70d   : > { %v9934_v17 = vmul.f32 %v15954_v28, %v9918_v56  ;;  %v9602_v21 = vpop.f32.mrf.mxu2  ;;  %v9542_v49 = vadd.f32 %v9505_v45, %v9249_v9 }
 0x70f   : > { %v9950_v5 = vadd.f32 %v15960_v2, %v9934_v17 }
 0x711   : > { %v9966_v26 = vmax.f32 %v9950_v5, 0.0 }
 0x712   : > { %v9879_v16 = vpop.f32.mrf.mxu3 }
 0x713   : > { %v12352_v44 = vpack.c.bf16 %v9966_v26, %v9965_v0 }
 0x714   : > { %v9507_v59 = vpop.f32.mrf.mxu1  ;;  %v9216_v18 = vpop.f32.mrf.mxu0 }
 0x715   : > { %12739 = vst [vmem:[%s15592_s27 + $0x50] sm:$0xff] %v12352_v44   ;;  %v9603_v12 = vpop.f32.mrf.mxu2  ;;  %v9250_v14 = vadd.f32 %v9216_v18, %v15890_v7 }
 0x716   : > { %v9642_v1 = vadd.f32 %v9603_v12, %v9541_v34 }
 0x71a   : > { %v9880_v13 = vpop.f32.mrf.mxu3 }
 0x71b   : > { %v9919_v50 = vadd.f32 %v9880_v13, %v9642_v1 }
 0x71c   : > { %v9509_v25 = vpop.f32.mrf.mxu1  ;;  %v9218_v4 = vpop.f32.mrf.mxu0 }
 0x71d   : > { %v9606_v32 = vpop.f32.mrf.mxu2  ;;  %v9935_v6 = vmul.f32 %v15954_v28, %v9919_v50  ;;  %v9543_v47 = vadd.f32 %v9509_v25, %v9250_v14  ;;  %v9251_v57 = vadd.f32 %v9218_v4, %v15894_v27 }
 0x71e   : > { %v9643_v39 = vadd.f32 %v9606_v32, %v9542_v49 }
 0x71f   : > { %v9951_v40 = vadd.f32 %v15960_v2, %v9935_v6 }
 0x721   : > { %v9967_v52 = vmax.f32 %v9951_v40, 0.0 }
 0x722   : > { %v9883_v33 = vpop.f32.mrf.mxu3 }
 0x723   : > { %v9920_v11 = vadd.f32 %v9883_v33, %v9643_v39 }
 0x724   : > { %v9511_v54 = vpop.f32.mrf.mxu1  ;;  %v9221_v20 = vpop.f32.mrf.mxu0 }
 0x725   : > { %v9936_v63 = vmul.f32 %v15954_v28, %v9920_v11  ;;  %v9608_v60 = vpop.f32.mrf.mxu2  ;;  %v9544_v15 = vadd.f32 %v9511_v54, %v9251_v57 }
 0x727   : > { %v9952_v22 = vadd.f32 %v15960_v2, %v9936_v63 }
 0x729   : > { %v9968_v35 = vmax.f32 %v9952_v22, 0.0 }
 0x72a   : > { %v9885_v23 = vpop.f32.mrf.mxu3 }
 0x72b   : > { %v12357_v24 = vpack.c.bf16 %v9968_v35, %v9967_v52 }
 0x72c   : > { %v9514_v31 = vpop.f32.mrf.mxu1  ;;  %v9222_v29 = vpop.f32.mrf.mxu0 }
 0x72d   : > { %12740 = vst [vmem:[%s15592_s27 + $0x58] sm:$0xff] %v12357_v24   ;;  %v9610_v48 = vpop.f32.mrf.mxu2  ;;  %v9252_v16 = vadd.f32 %v9222_v29, %v15900_v36 }
 0x72e   : > { %v9644_v61 = vadd.f32 %v9610_v48, %v9543_v47 }
 0x732   : > { %v9887_v30 = vpop.f32.mrf.mxu3 }
 0x733   : > { %v9921_v38 = vadd.f32 %v9887_v30, %v9644_v61 }
 0x734   : > { %v9515_v62 = vpop.f32.mrf.mxu1  ;;  %v9225_v51 = vpop.f32.mrf.mxu0 }
 0x735   : > { %v9612_v10 = vpop.f32.mrf.mxu2  ;;  %v9937_v55 = vmul.f32 %v15954_v28, %v9921_v38  ;;  %v9545_v59 = vadd.f32 %v9515_v62, %v9252_v16  ;;  %v9253_v1 = vadd.f32 %v9225_v51, %v15905_v46 }
 0x736   : > { %v9645_v3 = vadd.f32 %v9612_v10, %v9544_v15 }
 0x737   : > { %v9953_v41 = vadd.f32 %v15960_v2, %v9937_v55 }
 0x739   : > { %v9969_v5 = vmax.f32 %v9953_v41, 0.0 }
 0x73a   : > { %v9889_v58 = vpop.f32.mrf.mxu3 }
 0x73b   : > { %v9922_v7 = vadd.f32 %v9889_v58, %v9645_v3 }
 0x73c   : > { %v9518_v56 = vpop.f32.mrf.mxu1  ;;  %v9227_v45 = vpop.f32.mrf.mxu0 }
 0x73d   : > { %v9938_v19 = vmul.f32 %v15954_v28, %v9922_v7  ;;  %v9615_v27 = vpop.f32.mrf.mxu2  ;;  %v9546_v4 = vadd.f32 %v9518_v56, %v9253_v1 }
 0x73f   : > { %v9954_v17 = vadd.f32 %v15960_v2, %v9938_v19 }
 0x741   : > { %v9970_v21 = vmax.f32 %v9954_v17, 0.0 }
 0x742   : > { %v9892_v0 = vpop.f32.mrf.mxu3 }
 0x743   : > { %v12362_v26 = vpack.c.bf16 %v9970_v21, %v9969_v5 }
 0x744   : > { %v9520_v44 = vpop.f32.mrf.mxu1  ;;  %v9229_v8 = vpop.f32.mrf.mxu0 }
 0x745   : > { %12741 = vst [vmem:[%s15592_s27 + $0x60] sm:$0xff] %v12362_v26   ;;  %v9616_v18 = vpop.f32.mrf.mxu2  ;;  %v9254_v52 = vadd.f32 %v9229_v8, %v15911_v42 }
 0x746   : > { %v9646_v34 = vadd.f32 %v9616_v18, %v9545_v59 }
 0x74a   : > { %v9893_v12 = vpop.f32.mrf.mxu3 }
 0x74b   : > { %v9923_v25 = vadd.f32 %v9893_v12, %v9646_v34 }
 0x74c   : > { %v9522_v13 = vpop.f32.mrf.mxu1  ;;  %v9231_v9 = vpop.f32.mrf.mxu0 }
 0x74d   : > { %v9619_v50 = vpop.f32.mrf.mxu2  ;;  %v9939_v32 = vmul.f32 %v15954_v28, %v9923_v25  ;;  %v9547_v24 = vadd.f32 %v9522_v13, %v9254_v52  ;;  %v9255_v47 = vadd.f32 %v9231_v9, %v15915_v37 }
 0x74e   : > { %v9647_v49 = vadd.f32 %v9619_v50, %v9546_v4 }
 0x74f   : > { %v9955_v11 = vadd.f32 %v15960_v2, %v9939_v32 }
 0x751   : > { %v9971_v40 = vmax.f32 %v9955_v11, 0.0 }
 0x752   : > { %v9896_v39 = vpop.f32.mrf.mxu3 }
 0x753   : > { %v9924_v36 = vadd.f32 %v9896_v39, %v9647_v49 }
 0x754   : > { %v9524_v6 = vpop.f32.mrf.mxu1  ;;  %v9234_v33 = vpop.f32.mrf.mxu0 }
 0x755   : > { %v9940_v54 = vmul.f32 %v15954_v28, %v9924_v36  ;;  %v9621_v46 = vpop.f32.mrf.mxu2  ;;  %v9548_v57 = vadd.f32 %v9524_v6, %v9255_v47 }
 0x757   : > { %v9956_v20 = vadd.f32 %v15960_v2, %v9940_v54 }
 0x759   : > { %v9972_v63 = vmax.f32 %v9956_v20, 0.0 }
 0x75a   : > { %v9898_v22 = vpop.f32.mrf.mxu3 }
 0x75b   : > { %v12367_v60 = vpack.c.bf16 %v9972_v63, %v9971_v40 }
 0x75c   : > { %v9527_v35 = vpop.f32.mrf.mxu1  ;;  %v9235_v23 = vpop.f32.mrf.mxu0 }
 0x75d   : > { %12742 = vst [vmem:[%s15592_s27 + $0x68] sm:$0xff] %v12367_v60   ;;  %v9623_v14 = vpop.f32.mrf.mxu2  ;;  %v9256_v17 = vadd.f32 %v9235_v23, %v15923_v43 }
 0x75e   : > { %v9648_v31 = vadd.f32 %v9623_v14, %v9547_v24 }
 0x762   : > { %v9900_v29 = vpop.f32.mrf.mxu3 }
 0x763   : > { %v9925_v30 = vadd.f32 %v9900_v29, %v9648_v31 }
 0x764   : > { %v9528_v48 = vpop.f32.mrf.mxu1  ;;  %v9238_v61 = vpop.f32.mrf.mxu0 }
 0x765   : > { %v9625_v62 = vpop.f32.mrf.mxu2  ;;  %v9941_v38 = vmul.f32 %v15954_v28, %v9925_v30  ;;  %v9549_v5 = vadd.f32 %v9528_v48, %v9256_v17  ;;  %v9257_v16 = vadd.f32 %v9238_v61, %v15929_v53 }
 0x766   : > { %v9649_v51 = vadd.f32 %v9625_v62, %v9548_v57 }
 0x767   : > { %v9957_v55 = vadd.f32 %v15960_v2, %v9941_v38 }
 0x769   : > { %v9973_v56 = vmax.f32 %v9957_v55, 0.0 }
 0x76a   : > { %v9902_v15 = vpop.f32.mrf.mxu3 }
 0x76b   : > { %v9926_v42 = vadd.f32 %v9902_v15, %v9649_v51 }
 0x76c   : > { %v9531_v10 = vpop.f32.mrf.mxu1  ;;  %v9240_v3 = vpop.f32.mrf.mxu0 }
 0x76d   : > { %v9942_v58 = vmul.f32 %v15954_v28, %v9926_v42  ;;  %v9628_v37 = vpop.f32.mrf.mxu2  ;;  %v9550_v8 = vadd.f32 %v9531_v10, %v9257_v16 }
 0x76f   : > { %v9958_v7 = vadd.f32 %v15960_v2, %v9942_v58 }
 0x771   : > { %v9974_v45 = vmax.f32 %v9958_v7, 0.0 }
 0x772   : > { %v9905_v41 = vpop.f32.mrf.mxu3 }
 0x773   : > { %v12372_v19 = vpack.c.bf16 %v9974_v45, %v9973_v56 }
 0x774   : > { %v9533_v27 = vpop.f32.mrf.mxu1 }
 0x775   : > { %12743 = vst [vmem:[%s15592_s27 + $0x70] sm:$0xff] %v12372_v19   ;;  %v9629_v21 = vpop.f32.mrf.mxu2 }
 0x776   : > { %v9650_v0 = vadd.f32 %v9629_v21, %v9549_v5 }
 0x77a   : > { %v9906_v26 = vpop.f32.mrf.mxu3 }
 0x77b   : > { %v9927_v44 = vadd.f32 %v9906_v26, %v9650_v0 }
 0x77d   : > { %v9632_v59 = vpop.f32.mrf.mxu2  ;;  %v9943_v34 = vmul.f32 %v15954_v28, %v9927_v44 }
 0x77e   : > { %v9651_v18 = vadd.f32 %v9632_v59, %v9550_v8 }
 0x77f   : > { %v9959_v13 = vadd.f32 %v15960_v2, %v9943_v34 }
 0x781   : > { %v9975_v4 = vmax.f32 %v9959_v13, 0.0 }
 0x782   : > { %v9909_v12 = vpop.f32.mrf.mxu3 }
 0x783   : > { %v9928_v1 = vadd.f32 %v9909_v12, %v9651_v18 }
 0x785   : > { %v9944_v43 = vmul.f32 %v15954_v28, %v9928_v1  ;;  %v9634_v25 = vpop.f32.mrf.mxu2 }
 0x787   : > { %v9960_v9 = vadd.f32 %v15960_v2, %v9944_v43 }
 0x789   : > { %v9976_v50 = vmax.f32 %v9960_v9, 0.0 }
 0x78a   : > { %v9911_v49 = vpop.f32.mrf.mxu3 }
 0x78b   : > { %v12377_v53 = vpack.c.bf16 %v9976_v50, %v9975_v4 }
 0x78d   : > { %12744 = vst [vmem:[%s15592_s27 + $0x78] sm:$0xff] %v12377_v53  }
 0x78e PF: > { %s16_s18 = sadd.s32 1, %s13607_s18  }
 0x78f   : > { %p13_p7 = scmp.ge.s32.totalorder %s16_s18, 4  }
 0x791   :  { %15 = sbr.rel (!%p13_p7) target bundleno = 1 (0x1), region = 91 }
 0x796   :  { %10062 = vsyncpa [#allocation5], 1 }
 0x797   :  { %10064 = vsyncpa [#allocation5 + $0x1], 1 }

</bundles_post_ra>
